<compile_context>
chip_gen: v6e
topology: v6e:2x2x1
jax: 0.10.0
libtpu: 0.0.40
codegen_flags: <defaults>
</compile_context>

<pallas_src>
import functools

import numpy as np

import jax
import jax.numpy as jnp
from jax.experimental import pallas as pl
from jax.experimental.pallas import tpu as pltpu


LANE_B = 4          # samples packed along the lane axis (4 * 32 ch = 128 lanes)


def _ru8(n):
    return ((n + 7) // 8) * 8


def _ru128(n):
    return ((n + 127) // 128) * 128


def _conv_out(n, k, s, p):
    return (n + 2 * p - k) // s + 1


# ------------------------------ fused kernel ------------------------------- #

def _fused_forward_kernel(cols1_ref, spool_ref, s2_ref, s3_ref, s4_ref,
                          w1_ref, b1_ref, w2_ref, b2_ref, w3_ref, b3_ref,
                          w4_ref, b4_ref, mask2_ref, mask4_ref,
                          fcw_ref, fcb_ref,
                          hidden_ref, misc_ref,
                          *, lane_b, groups, g2, g3, g4, misc_rows,
                          inv_r2, inv_r4):
    f32 = jnp.float32
    lanes2 = lane_b * 32
    lanes4 = lane_b * 64

    for g in range(groups):            # unrolled: lane groups handled this step
        base = g * lane_b

        # conv1 5x5/s1/p2 (+BN folded at trace time) + ReLU, lane-packed.
        # Each sample's GEMM weight writes only its own 32-lane slot.
        a1 = jnp.dot(cols1_ref[base], w1_ref[0], preferred_element_type=f32)
        for b in range(1, lane_b):
            a1 = a1 + jnp.dot(cols1_ref[base + b], w1_ref[b],
                              preferred_element_type=f32)
        a1 = jnp.maximum(a1 + b1_ref[...], 0.0)                   # (g1, 128)

        # maxpool 3x3/s2/p1: gather each tap with a 0/1 selection matmul and
        # take the running max (post-ReLU values are >= 0, so the zeros that
        # out-of-bounds taps / pad rows produce never win the max).
        pooled = jnp.dot(spool_ref[0:g2, :], a1, preferred_element_type=f32)
        for t in range(1, 9):
            tap = jnp.dot(spool_ref[t * g2:(t + 1) * g2, :], a1,
                          preferred_element_type=f32)
            pooled = jnp.maximum(pooled, tap)                     # (g2, 128)

        # conv2 3x3/s1/p1 + ReLU (block-diagonal per-tap weights).
        acc2 = jnp.dot(jnp.dot(s2_ref[0:g2, :], pooled, preferred_element_type=f32),
                       w2_ref[0], preferred_element_type=f32)
        for t in range(1, 9):
            tap = jnp.dot(s2_ref[t * g2:(t + 1) * g2, :], pooled,
                          preferred_element_type=f32)
            acc2 = acc2 + jnp.dot(tap, w2_ref[t], preferred_element_type=f32)
        hidden = jnp.maximum(acc2 + b2_ref[...], 0.0) * mask2_ref[...]
        hidden_ref[g] = hidden                                    # (g2, 128)
        pooled2 = jnp.sum(hidden, axis=0, keepdims=True) * inv_r2  # (1, 128)

        # conv3 3x3/s2/p1 + ReLU.
        acc3 = jnp.dot(jnp.dot(s3_ref[0:g3, :], hidden, preferred_element_type=f32),
                       w3_ref[0], preferred_element_type=f32)
        for t in range(1, 9):
            tap = jnp.dot(s3_ref[t * g3:(t + 1) * g3, :], hidden,
                          preferred_element_type=f32)
            acc3 = acc3 + jnp.dot(tap, w3_ref[t], preferred_element_type=f32)
        a3 = jnp.maximum(acc3 + b3_ref[...], 0.0)                 # (g3, 256)

        # conv4 3x3/s2/p1 + ReLU (pad rows forced to exact zero for the GAP).
        acc4 = jnp.dot(jnp.dot(s4_ref[0:g4, :], a3, preferred_element_type=f32),
                       w4_ref[0], preferred_element_type=f32)
        for t in range(1, 9):
            tap = jnp.dot(s4_ref[t * g4:(t + 1) * g4, :], a3,
                          preferred_element_type=f32)
            acc4 = acc4 + jnp.dot(tap, w4_ref[t], preferred_element_type=f32)
        a4 = jnp.maximum(acc4 + b4_ref[...], 0.0) * mask4_ref[...]  # (g4, 256)

        # Global average pools + FC (logits straight from pooled4).
        pooled4 = jnp.sum(a4, axis=0, keepdims=True) * inv_r4        # (1, 256)
        logits = (jnp.dot(pooled4, fcw_ref[...], preferred_element_type=f32)
                  + fcb_ref[...])                                    # (1, 256)

        # Pack final_conv / pooled4 / pooled2 / logits into one lane-dense
        # slab: 2 output DMAs per grid step instead of 5 small masked ones.
        misc_ref[g, 0:g4, :] = a4
        misc_ref[g, g4:misc_rows, :] = jnp.zeros((misc_rows - g4, lanes4), f32)
        misc_ref[g, g4:g4 + 1, :] = pooled4
        misc_ref[g, g4 + 1:g4 + 2, 0:lanes2] = pooled2
        misc_ref[g, g4 + 2:g4 + 3, :] = logits


# ------------------- static (trace-time) plumbing helpers ------------------ #

def _conv3x3_select(h_in, w_in, g_in, h_out, w_out, g_out, stride):
    """0/1 patch-selection matrix (9*g_out, g_in) + output-row validity mask."""
    sel = np.zeros((9 * g_out, g_in), np.float32)
    msk = np.zeros((g_out, 1), np.float32)
    msk[:h_out * w_out, 0] = 1.0
    for di in range(3):
        for dj in range(3):
            t = di * 3 + dj
            for oh in range(h_out):
                for ow in range(w_out):
                    ih = stride * oh + di - 1
                    iw = stride * ow + dj - 1
                    if 0 <= ih < h_in and 0 <= iw < w_in:
                        sel[t * g_out + oh * w_out + ow, ih * w_in + iw] = 1.0
    return sel, msk


# --------------------------------- module ---------------------------------- #

def init_params(key, num_classes=10):
    def conv_init(key, cout, cin, kh, kw):
        k1, k2 = jax.random.split(key)
        bound = 1.0 / jnp.sqrt(cin * kh * kw)
        w = jax.random.uniform(k1, (cout, cin, kh, kw), jnp.float32, -bound, bound)
        b = jax.random.uniform(k2, (cout,), jnp.float32, -bound, bound)
        return w, b

    ks = jax.random.split(key, 6)
    params = {
        "bn0_gamma": jnp.ones((3,), jnp.float32),
        "bn0_beta": jnp.zeros((3,), jnp.float32),
    }
    params["conv1_w"], params["conv1_b"] = conv_init(ks[0], 32, 3, 5, 5)
    params["conv2_w"], params["conv2_b"] = conv_init(ks[1], 32, 32, 3, 3)
    params["conv3_w"], params["conv3_b"] = conv_init(ks[2], 64, 32, 3, 3)
    params["conv4_w"], params["conv4_b"] = conv_init(ks[3], 64, 64, 3, 3)
    bound = 1.0 / jnp.sqrt(64.0)
    params["fc_w"] = jax.random.uniform(ks[4], (num_classes, 64), jnp.float32,
                                        -bound, bound)
    params["fc_b"] = jax.random.uniform(ks[5], (num_classes,), jnp.float32,
                                        -bound, bound)
    return params


def biased_mnist_cnn_forward(params, x_nchw, *, groups_per_step=2):
    n, cin, h, w = x_nchw.shape
    assert cin == 3
    num_classes = params["fc_b"].shape[0]
    assert num_classes <= 64
    lane_b = LANE_B

    # ---- derived spatial geometry ----------------------------------------- #
    hp, wp = _conv_out(h, 3, 2, 1), _conv_out(w, 3, 2, 1)     # after maxpool
    h3, w3 = _conv_out(hp, 3, 2, 1), _conv_out(wp, 3, 2, 1)   # after conv3
    h4, w4 = _conv_out(h3, 3, 2, 1), _conv_out(w3, 3, 2, 1)   # after conv4
    r1, r2, r4 = h * w, hp * wp, h4 * w4
    g1, g2, g3, g4 = _ru8(r1), _ru8(r2), _ru8(h3 * w3), _ru8(r4)
    k1 = 25 * cin
    k1p = _ru128(k1)
    lanes2, lanes4 = lane_b * 32, lane_b * 64
    misc_rows = _ru8(g4 + 3)

    # ---- batch tiling: lane_b samples per lane group, gp groups per step --- #
    n_groups = -(-n // lane_b)
    gp = max(1, min(groups_per_step, n_groups))
    num_steps = -(-n_groups // gp)
    gt = num_steps * gp
    n_pad = gt * lane_b

    # ---- BatchNorm2d (train mode, biased batch variance) folded into the
    #      conv1 input at trace time (exact w.r.t. conv1's zero padding) ----- #
    x = jnp.transpose(x_nchw, (0, 2, 3, 1)).astype(jnp.float32)   # NHWC
    mean = jnp.mean(x, axis=(0, 1, 2))
    var = jnp.mean(jnp.square(x - mean), axis=(0, 1, 2))
    scale = params["bn0_gamma"] / jnp.sqrt(var + 1e-5)
    shift = params["bn0_beta"] - mean * scale
    xb = x * scale + shift

    # ---- deduplicated conv1 im2col: one row per conv1 output position ------ #
    # TODO(synk): build the 5x5 patches in-kernel from the padded image to
    # remove this remaining ~25x XLA-side expansion entirely.
    xpad = jnp.pad(xb, ((0, 0), (2, 2), (2, 2), (0, 0)))
    taps = [xpad[:, ki:ki + h, kj:kj + w, :]
            for ki in range(5) for kj in range(5)]
    cols1 = jnp.stack(taps, axis=3).reshape(n, r1, k1)
    cols1 = jnp.pad(cols1, ((0, n_pad - n), (0, g1 - r1), (0, k1p - k1)))

    # ---- static 0/1 selection matrices + row-validity masks (numpy) -------- #
    spool_np, _ = _conv3x3_select(h, w, g1, hp, wp, g2, stride=2)   # pool taps
    s2_np, m2_np = _conv3x3_select(hp, wp, g2, hp, wp, g2, stride=1)
    s3_np, _ = _conv3x3_select(hp, wp, g2, h3, w3, g3, stride=2)
    s4_np, m4_np = _conv3x3_select(h3, w3, g3, h4, w4, g4, stride=2)
    spool, s2 = jnp.asarray(spool_np), jnp.asarray(s2_np)
    s3, s4 = jnp.asarray(s3_np), jnp.asarray(s4_np)
    mask2, mask4 = jnp.asarray(m2_np), jnp.asarray(m4_np)

    # ---- weights: GEMM form, lane-packed / block-diagonal over lane_b ------ #
    w1_gemm = jnp.transpose(params["conv1_w"], (2, 3, 1, 0)).reshape(k1, 32)
    w1_gemm = jnp.pad(w1_gemm, ((0, k1p - k1), (0, 0)))            # (k1p, 32)
    w1_lane = jnp.zeros((lane_b, k1p, lanes2), jnp.float32)
    for b in range(lane_b):
        w1_lane = w1_lane.at[b, :, b * 32:(b + 1) * 32].set(w1_gemm)
    b1_row = jnp.tile(params["conv1_b"], lane_b).reshape(1, lanes2)

    w2_tap = jnp.transpose(params["conv2_w"], (2, 3, 1, 0)).reshape(9, 32, 32)
    w2_blk = jnp.zeros((9, lanes2, lanes2), jnp.float32)
    for b in range(lane_b):
        w2_blk = w2_blk.at[:, b * 32:(b + 1) * 32, b * 32:(b + 1) * 32].set(w2_tap)
    b2_row = jnp.tile(params["conv2_b"], lane_b).reshape(1, lanes2)

    w3_tap = jnp.transpose(params["conv3_w"], (2, 3, 1, 0)).reshape(9, 32, 64)
    w3_blk = jnp.zeros((9, lanes2, lanes4), jnp.float32)
    for b in range(lane_b):
        w3_blk = w3_blk.at[:, b * 32:(b + 1) * 32, b * 64:(b + 1) * 64].set(w3_tap)
    b3_row = jnp.tile(params["conv3_b"], lane_b).reshape(1, lanes4)

    w4_tap = jnp.transpose(params["conv4_w"], (2, 3, 1, 0)).reshape(9, 64, 64)
    w4_blk = jnp.zeros((9, lanes4, lanes4), jnp.float32)
    for b in range(lane_b):
        w4_blk = w4_blk.at[:, b * 64:(b + 1) * 64, b * 64:(b + 1) * 64].set(w4_tap)
    b4_row = jnp.tile(params["conv4_b"], lane_b).reshape(1, lanes4)

    fcw_t = params["fc_w"].T                                        # (64, classes)
    fcw_blk = jnp.zeros((lanes4, lanes4), jnp.float32)
    for b in range(lane_b):
        fcw_blk = fcw_blk.at[b * 64:(b + 1) * 64,
                             b * 64:b * 64 + num_classes].set(fcw_t)
    fcb_row = jnp.zeros((lane_b, 64), jnp.float32)
    fcb_row = fcb_row.at[:, :num_classes].set(params["fc_b"]).reshape(1, lanes4)

    kernel = functools.partial(
        _fused_forward_kernel, lane_b=lane_b, groups=gp, g2=g2, g3=g3, g4=g4,
        misc_rows=misc_rows, inv_r2=1.0 / r2, inv_r4=1.0 / r4)

    def _const_spec(arr):
        zeros = (0,) * arr.ndim
        return pl.BlockSpec(arr.shape, lambda i, _z=zeros: _z)

    consts = [spool, s2, s3, s4, w1_lane, b1_row, w2_blk, b2_row,
              w3_blk, b3_row, w4_blk, b4_row, mask2, mask4, fcw_blk, fcb_row]
    in_specs = [pl.BlockSpec((gp * lane_b, g1, k1p), lambda i: (i, 0, 0))]
    in_specs += [_const_spec(c) for c in consts]

    out_specs = [
        pl.BlockSpec((gp, g2, lanes2), lambda i: (i, 0, 0)),         # hidden
        pl.BlockSpec((gp, misc_rows, lanes4), lambda i: (i, 0, 0)),  # misc slab
    ]
    out_shapes = [
        jax.ShapeDtypeStruct((gt, g2, lanes2), jnp.float32),
        jax.ShapeDtypeStruct((gt, misc_rows, lanes4), jnp.float32),
    ]

    flops = 2 * gt * (
        lane_b * g1 * k1p * lanes2
        + 9 * g2 * g1 * lanes2
        + 9 * (g2 * g2 * lanes2 + g2 * lanes2 * lanes2)
        + 9 * (g3 * g2 * lanes2 + g3 * lanes2 * lanes4)
        + 9 * (g4 * g3 * lanes4 + g4 * lanes4 * lanes4)
        + lanes4 * lanes4)
    const_elems = sum(int(np.prod(c.shape)) for c in consts)
    bytes_accessed = 4 * (n_pad * g1 * k1p + const_elems
                          + gt * (g2 * lanes2 + misc_rows * lanes4))

    hidden_out, misc_out = pl.pallas_call(
        kernel,
        out_shape=out_shapes,
        grid=(num_steps,),
        in_specs=in_specs,
        out_specs=out_specs,
        compiler_params=pltpu.CompilerParams(
            dimension_semantics=("parallel",),
            vmem_limit_bytes=48 * 1024 * 1024),
        cost_estimate=pl.CostEstimate(flops=int(flops), transcendentals=0,
                                      bytes_accessed=int(bytes_accessed)),
    )(cols1, *consts)

    # ---- unpack lane-packed, padded outputs -------------------------------- #
    hid = hidden_out.reshape(gt, g2, lane_b, 32)
    hid = jnp.transpose(hid, (0, 2, 1, 3)).reshape(gt * lane_b, g2, 32)
    hid = hid[:n, :r2, :].reshape(n, hp, wp, 32)

    fin = misc_out[:, :g4, :].reshape(gt, g4, lane_b, 64)
    fin = jnp.transpose(fin, (0, 2, 1, 3)).reshape(gt * lane_b, g4, 64)
    fin = fin[:n, :r4, :].reshape(n, h4, w4, 64)

    pooled4 = misc_out[:, g4, :].reshape(gt * lane_b, 64)[:n]
    pooled2 = misc_out[:, g4 + 1, :lanes2].reshape(gt * lane_b, 32)[:n]
    logits = misc_out[:, g4 + 2, :].reshape(gt, lane_b, 64)[:, :, :num_classes]
    logits = logits.reshape(gt * lane_b, num_classes)[:n]

    return {
        "final_conv": jnp.transpose(fin, (0, 3, 1, 2)),           # NCHW
        "pooled2": pooled2,
        "pooled4": pooled4,
        "hidden": jnp.transpose(hid, (0, 3, 1, 2)),               # NCHW
        "before_logits": pooled4,
        "logits": logits,
    }


# ----------------------------------- main ----------------------------------- #

if __name__ == "__main__":
    key = jax.random.PRNGKey(0)
    k_param, k_x = jax.random.split(key)
    params = init_params(k_param, num_classes=10)

    # MNIST-like input: batch=2, 3 channels, 16x16 spatial (NCHW)
    x = jax.random.normal(k_x, (2, 3, 16, 16), jnp.float32)

    fwd = jax.jit(biased_mnist_cnn_forward)
    out = fwd(params, x)
    out = jax.tree_util.tree_map(jax.block_until_ready, out)

    assert out["final_conv"].shape == (2, 64, 2, 2)
    assert out["hidden"].shape == (2, 32, 8, 8)
    assert out["pooled2"].shape == (2, 32)
    assert out["pooled4"].shape == (2, 64)
    assert out["before_logits"].shape == (2, 64)
    assert out["logits"].shape == (2, 10)
    print("KERNEL_OK")
</pallas_src>

<mosaic_0001>
module attributes {stable_mosaic.version = 11 : i64} {
  func.func @_fused_forward_kernel(%arg0: i32, %arg1: memref<4x256x128xf32, #tpu.memory_space<vmem>>, %arg2: memref<576x256xf32, #tpu.memory_space<vmem>>, %arg3: memref<576x64xf32, #tpu.memory_space<vmem>>, %arg4: memref<144x64xf32, #tpu.memory_space<vmem>>, %arg5: memref<72x16xf32, #tpu.memory_space<vmem>>, %arg6: memref<4x128x128xf32, #tpu.memory_space<vmem>>, %arg7: memref<1x128xf32, #tpu.memory_space<vmem>>, %arg8: memref<9x128x128xf32, #tpu.memory_space<vmem>>, %arg9: memref<1x128xf32, #tpu.memory_space<vmem>>, %arg10: memref<9x128x256xf32, #tpu.memory_space<vmem>>, %arg11: memref<1x256xf32, #tpu.memory_space<vmem>>, %arg12: memref<9x256x256xf32, #tpu.memory_space<vmem>>, %arg13: memref<1x256xf32, #tpu.memory_space<vmem>>, %arg14: memref<64x1xf32, #tpu.memory_space<vmem>>, %arg15: memref<8x1xf32, #tpu.memory_space<vmem>>, %arg16: memref<256x256xf32, #tpu.memory_space<vmem>>, %arg17: memref<1x256xf32, #tpu.memory_space<vmem>>, %arg18: memref<1x64x128xf32, #tpu.memory_space<vmem>>, %arg19: memref<1x16x256xf32, #tpu.memory_space<vmem>>) attributes {dimension_semantics = [#tpu.dimension_semantics<parallel>], iteration_bounds = array<i64: 1>, scalar_prefetch = 0 : i64, scratch_operands = 0 : i64, tpu.core_type = #tpu.core_type<tc>, window_params = [{transform_indices = @transform_0, window_bounds = array<i64: 4, 256, 128>}, {pipeline_mode = #tpu.pipeline_mode<synchronous>, transform_indices = @transform_1, window_bounds = array<i64: 576, 256>}, {pipeline_mode = #tpu.pipeline_mode<synchronous>, transform_indices = @transform_2, window_bounds = array<i64: 576, 64>}, {pipeline_mode = #tpu.pipeline_mode<synchronous>, transform_indices = @transform_3, window_bounds = array<i64: 144, 64>}, {pipeline_mode = #tpu.pipeline_mode<synchronous>, transform_indices = @transform_4, window_bounds = array<i64: 72, 16>}, {pipeline_mode = #tpu.pipeline_mode<synchronous>, transform_indices = @transform_5, window_bounds = array<i64: 4, 128, 128>}, {pipeline_mode = #tpu.pipeline_mode<synchronous>, transform_indices = @transform_6, window_bounds = array<i64: 1, 128>}, {pipeline_mode = #tpu.pipeline_mode<synchronous>, transform_indices = @transform_7, window_bounds = array<i64: 9, 128, 128>}, {pipeline_mode = #tpu.pipeline_mode<synchronous>, transform_indices = @transform_8, window_bounds = array<i64: 1, 128>}, {pipeline_mode = #tpu.pipeline_mode<synchronous>, transform_indices = @transform_9, window_bounds = array<i64: 9, 128, 256>}, {pipeline_mode = #tpu.pipeline_mode<synchronous>, transform_indices = @transform_10, window_bounds = array<i64: 1, 256>}, {pipeline_mode = #tpu.pipeline_mode<synchronous>, transform_indices = @transform_11, window_bounds = array<i64: 9, 256, 256>}, {pipeline_mode = #tpu.pipeline_mode<synchronous>, transform_indices = @transform_12, window_bounds = array<i64: 1, 256>}, {pipeline_mode = #tpu.pipeline_mode<synchronous>, transform_indices = @transform_13, window_bounds = array<i64: 64, 1>}, {pipeline_mode = #tpu.pipeline_mode<synchronous>, transform_indices = @transform_14, window_bounds = array<i64: 8, 1>}, {pipeline_mode = #tpu.pipeline_mode<synchronous>, transform_indices = @transform_15, window_bounds = array<i64: 256, 256>}, {pipeline_mode = #tpu.pipeline_mode<synchronous>, transform_indices = @transform_16, window_bounds = array<i64: 1, 256>}, {transform_indices = @transform_17, window_bounds = array<i64: 1, 64, 128>}, {transform_indices = @transform_18, window_bounds = array<i64: 1, 16, 256>}]} {
    %c0 = arith.constant 0 : index
    %c0_0 = arith.constant 0 : index
    %c0_1 = arith.constant 0 : index
    %0 = vector.load %arg1[%c0, %c0_0, %c0_1] : memref<4x256x128xf32, #tpu.memory_space<vmem>>, vector<1x256x128xf32>
    %1 = vector.shape_cast %0 : vector<1x256x128xf32> to vector<256x128xf32>
    %c0_2 = arith.constant 0 : index
    %c0_3 = arith.constant 0 : index
    %c0_4 = arith.constant 0 : index
    %2 = vector.load %arg6[%c0_2, %c0_3, %c0_4] : memref<4x128x128xf32, #tpu.memory_space<vmem>>, vector<1x128x128xf32>
    %3 = vector.shape_cast %2 : vector<1x128x128xf32> to vector<128x128xf32>
    %cst = arith.constant dense<0.000000e+00> : vector<256x128xf32>
    %4 = tpu.matmul %1, %3, %cst {dimension_numbers = #tpu.dot_dimension_numbers<[1], [0], [0], [1], [0, 0, 1, 1], [], []>} : vector<256x128xf32>, vector<128x128xf32>, vector<256x128xf32> -> vector<256x128xf32>
    %c1 = arith.constant 1 : index
    %c0_5 = arith.constant 0 : index
    %c0_6 = arith.constant 0 : index
    %5 = vector.load %arg1[%c1, %c0_5, %c0_6] : memref<4x256x128xf32, #tpu.memory_space<vmem>>, vector<1x256x128xf32>
    %6 = vector.shape_cast %5 : vector<1x256x128xf32> to vector<256x128xf32>
    %c1_7 = arith.constant 1 : index
    %c0_8 = arith.constant 0 : index
    %c0_9 = arith.constant 0 : index
    %7 = vector.load %arg6[%c1_7, %c0_8, %c0_9] : memref<4x128x128xf32, #tpu.memory_space<vmem>>, vector<1x128x128xf32>
    %8 = vector.shape_cast %7 : vector<1x128x128xf32> to vector<128x128xf32>
    %cst_10 = arith.constant dense<0.000000e+00> : vector<256x128xf32>
    %9 = tpu.matmul %6, %8, %cst_10 {dimension_numbers = #tpu.dot_dimension_numbers<[1], [0], [0], [1], [0, 0, 1, 1], [], []>} : vector<256x128xf32>, vector<128x128xf32>, vector<256x128xf32> -> vector<256x128xf32>
    %10 = arith.addf %4, %9 : vector<256x128xf32>
    %c2 = arith.constant 2 : index
    %c0_11 = arith.constant 0 : index
    %c0_12 = arith.constant 0 : index
    %11 = vector.load %arg1[%c2, %c0_11, %c0_12] : memref<4x256x128xf32, #tpu.memory_space<vmem>>, vector<1x256x128xf32>
    %12 = vector.shape_cast %11 : vector<1x256x128xf32> to vector<256x128xf32>
    %c2_13 = arith.constant 2 : index
    %c0_14 = arith.constant 0 : index
    %c0_15 = arith.constant 0 : index
    %13 = vector.load %arg6[%c2_13, %c0_14, %c0_15] : memref<4x128x128xf32, #tpu.memory_space<vmem>>, vector<1x128x128xf32>
    %14 = vector.shape_cast %13 : vector<1x128x128xf32> to vector<128x128xf32>
    %cst_16 = arith.constant dense<0.000000e+00> : vector<256x128xf32>
    %15 = tpu.matmul %12, %14, %cst_16 {dimension_numbers = #tpu.dot_dimension_numbers<[1], [0], [0], [1], [0, 0, 1, 1], [], []>} : vector<256x128xf32>, vector<128x128xf32>, vector<256x128xf32> -> vector<256x128xf32>
    %16 = arith.addf %10, %15 : vector<256x128xf32>
    %c3 = arith.constant 3 : index
    %c0_17 = arith.constant 0 : index
    %c0_18 = arith.constant 0 : index
    %17 = vector.load %arg1[%c3, %c0_17, %c0_18] : memref<4x256x128xf32, #tpu.memory_space<vmem>>, vector<1x256x128xf32>
    %18 = vector.shape_cast %17 : vector<1x256x128xf32> to vector<256x128xf32>
    %c3_19 = arith.constant 3 : index
    %c0_20 = arith.constant 0 : index
    %c0_21 = arith.constant 0 : index
    %19 = vector.load %arg6[%c3_19, %c0_20, %c0_21] : memref<4x128x128xf32, #tpu.memory_space<vmem>>, vector<1x128x128xf32>
    %20 = vector.shape_cast %19 : vector<1x128x128xf32> to vector<128x128xf32>
    %cst_22 = arith.constant dense<0.000000e+00> : vector<256x128xf32>
    %21 = tpu.matmul %18, %20, %cst_22 {dimension_numbers = #tpu.dot_dimension_numbers<[1], [0], [0], [1], [0, 0, 1, 1], [], []>} : vector<256x128xf32>, vector<128x128xf32>, vector<256x128xf32> -> vector<256x128xf32>
    %22 = arith.addf %16, %21 : vector<256x128xf32>
    %c0_23 = arith.constant 0 : index
    %c0_24 = arith.constant 0 : index
    %23 = vector.load %arg7[%c0_23, %c0_24] : memref<1x128xf32, #tpu.memory_space<vmem>>, vector<1x128xf32>
    %24 = vector.broadcast %23 : vector<1x128xf32> to vector<256x128xf32>
    %25 = arith.addf %22, %24 : vector<256x128xf32>
    %cst_25 = arith.constant 0.000000e+00 : f32
    %26 = vector.broadcast %cst_25 : f32 to vector<256x128xf32>
    %27 = arith.maximumf %25, %26 : vector<256x128xf32>
    %c0_26 = arith.constant 0 : index
    %c0_27 = arith.constant 0 : index
    %28 = vector.load %arg2[%c0_26, %c0_27] : memref<576x256xf32, #tpu.memory_space<vmem>>, vector<64x256xf32>
    %cst_28 = arith.constant dense<0.000000e+00> : vector<64x128xf32>
    %29 = tpu.matmul %28, %27, %cst_28 {dimension_numbers = #tpu.dot_dimension_numbers<[1], [0], [0], [1], [0, 0, 1, 1], [], []>} : vector<64x256xf32>, vector<256x128xf32>, vector<64x128xf32> -> vector<64x128xf32>
    %c64 = arith.constant 64 : index
    %c0_29 = arith.constant 0 : index
    %30 = vector.load %arg2[%c64, %c0_29] : memref<576x256xf32, #tpu.memory_space<vmem>>, vector<64x256xf32>
    %cst_30 = arith.constant dense<0.000000e+00> : vector<64x128xf32>
    %31 = tpu.matmul %30, %27, %cst_30 {dimension_numbers = #tpu.dot_dimension_numbers<[1], [0], [0], [1], [0, 0, 1, 1], [], []>} : vector<64x256xf32>, vector<256x128xf32>, vector<64x128xf32> -> vector<64x128xf32>
    %32 = arith.maximumf %29, %31 : vector<64x128xf32>
    %c128 = arith.constant 128 : index
    %c0_31 = arith.constant 0 : index
    %33 = vector.load %arg2[%c128, %c0_31] : memref<576x256xf32, #tpu.memory_space<vmem>>, vector<64x256xf32>
    %cst_32 = arith.constant dense<0.000000e+00> : vector<64x128xf32>
    %34 = tpu.matmul %33, %27, %cst_32 {dimension_numbers = #tpu.dot_dimension_numbers<[1], [0], [0], [1], [0, 0, 1, 1], [], []>} : vector<64x256xf32>, vector<256x128xf32>, vector<64x128xf32> -> vector<64x128xf32>
    %35 = arith.maximumf %32, %34 : vector<64x128xf32>
    %c192 = arith.constant 192 : index
    %c0_33 = arith.constant 0 : index
    %36 = vector.load %arg2[%c192, %c0_33] : memref<576x256xf32, #tpu.memory_space<vmem>>, vector<64x256xf32>
    %cst_34 = arith.constant dense<0.000000e+00> : vector<64x128xf32>
    %37 = tpu.matmul %36, %27, %cst_34 {dimension_numbers = #tpu.dot_dimension_numbers<[1], [0], [0], [1], [0, 0, 1, 1], [], []>} : vector<64x256xf32>, vector<256x128xf32>, vector<64x128xf32> -> vector<64x128xf32>
    %38 = arith.maximumf %35, %37 : vector<64x128xf32>
    %c256 = arith.constant 256 : index
    %c0_35 = arith.constant 0 : index
    %39 = vector.load %arg2[%c256, %c0_35] : memref<576x256xf32, #tpu.memory_space<vmem>>, vector<64x256xf32>
    %cst_36 = arith.constant dense<0.000000e+00> : vector<64x128xf32>
    %40 = tpu.matmul %39, %27, %cst_36 {dimension_numbers = #tpu.dot_dimension_numbers<[1], [0], [0], [1], [0, 0, 1, 1], [], []>} : vector<64x256xf32>, vector<256x128xf32>, vector<64x128xf32> -> vector<64x128xf32>
    %41 = arith.maximumf %38, %40 : vector<64x128xf32>
    %c320 = arith.constant 320 : index
    %c0_37 = arith.constant 0 : index
    %42 = vector.load %arg2[%c320, %c0_37] : memref<576x256xf32, #tpu.memory_space<vmem>>, vector<64x256xf32>
    %cst_38 = arith.constant dense<0.000000e+00> : vector<64x128xf32>
    %43 = tpu.matmul %42, %27, %cst_38 {dimension_numbers = #tpu.dot_dimension_numbers<[1], [0], [0], [1], [0, 0, 1, 1], [], []>} : vector<64x256xf32>, vector<256x128xf32>, vector<64x128xf32> -> vector<64x128xf32>
    %44 = arith.maximumf %41, %43 : vector<64x128xf32>
    %c384 = arith.constant 384 : index
    %c0_39 = arith.constant 0 : index
    %45 = vector.load %arg2[%c384, %c0_39] : memref<576x256xf32, #tpu.memory_space<vmem>>, vector<64x256xf32>
    %cst_40 = arith.constant dense<0.000000e+00> : vector<64x128xf32>
    %46 = tpu.matmul %45, %27, %cst_40 {dimension_numbers = #tpu.dot_dimension_numbers<[1], [0], [0], [1], [0, 0, 1, 1], [], []>} : vector<64x256xf32>, vector<256x128xf32>, vector<64x128xf32> -> vector<64x128xf32>
    %47 = arith.maximumf %44, %46 : vector<64x128xf32>
    %c448 = arith.constant 448 : index
    %c0_41 = arith.constant 0 : index
    %48 = vector.load %arg2[%c448, %c0_41] : memref<576x256xf32, #tpu.memory_space<vmem>>, vector<64x256xf32>
    %cst_42 = arith.constant dense<0.000000e+00> : vector<64x128xf32>
    %49 = tpu.matmul %48, %27, %cst_42 {dimension_numbers = #tpu.dot_dimension_numbers<[1], [0], [0], [1], [0, 0, 1, 1], [], []>} : vector<64x256xf32>, vector<256x128xf32>, vector<64x128xf32> -> vector<64x128xf32>
    %50 = arith.maximumf %47, %49 : vector<64x128xf32>
    %c512 = arith.constant 512 : index
    %c0_43 = arith.constant 0 : index
    %51 = vector.load %arg2[%c512, %c0_43] : memref<576x256xf32, #tpu.memory_space<vmem>>, vector<64x256xf32>
    %cst_44 = arith.constant dense<0.000000e+00> : vector<64x128xf32>
    %52 = tpu.matmul %51, %27, %cst_44 {dimension_numbers = #tpu.dot_dimension_numbers<[1], [0], [0], [1], [0, 0, 1, 1], [], []>} : vector<64x256xf32>, vector<256x128xf32>, vector<64x128xf32> -> vector<64x128xf32>
    %53 = arith.maximumf %50, %52 : vector<64x128xf32>
    %c0_45 = arith.constant 0 : index
    %c0_46 = arith.constant 0 : index
    %54 = vector.load %arg3[%c0_45, %c0_46] : memref<576x64xf32, #tpu.memory_space<vmem>>, vector<64x64xf32>
    %cst_47 = arith.constant dense<0.000000e+00> : vector<64x128xf32>
    %55 = tpu.matmul %54, %53, %cst_47 {dimension_numbers = #tpu.dot_dimension_numbers<[1], [0], [0], [1], [0, 0, 1, 1], [], []>} : vector<64x64xf32>, vector<64x128xf32>, vector<64x128xf32> -> vector<64x128xf32>
    %c0_48 = arith.constant 0 : index
    %c0_49 = arith.constant 0 : index
    %c0_50 = arith.constant 0 : index
    %56 = vector.load %arg8[%c0_48, %c0_49, %c0_50] : memref<9x128x128xf32, #tpu.memory_space<vmem>>, vector<1x128x128xf32>
    %57 = vector.shape_cast %56 : vector<1x128x128xf32> to vector<128x128xf32>
    %cst_51 = arith.constant dense<0.000000e+00> : vector<64x128xf32>
    %58 = tpu.matmul %55, %57, %cst_51 {dimension_numbers = #tpu.dot_dimension_numbers<[1], [0], [0], [1], [0, 0, 1, 1], [], []>} : vector<64x128xf32>, vector<128x128xf32>, vector<64x128xf32> -> vector<64x128xf32>
    %c64_52 = arith.constant 64 : index
    %c0_53 = arith.constant 0 : index
    %59 = vector.load %arg3[%c64_52, %c0_53] : memref<576x64xf32, #tpu.memory_space<vmem>>, vector<64x64xf32>
    %cst_54 = arith.constant dense<0.000000e+00> : vector<64x128xf32>
    %60 = tpu.matmul %59, %53, %cst_54 {dimension_numbers = #tpu.dot_dimension_numbers<[1], [0], [0], [1], [0, 0, 1, 1], [], []>} : vector<64x64xf32>, vector<64x128xf32>, vector<64x128xf32> -> vector<64x128xf32>
    %c1_55 = arith.constant 1 : index
    %c0_56 = arith.constant 0 : index
    %c0_57 = arith.constant 0 : index
    %61 = vector.load %arg8[%c1_55, %c0_56, %c0_57] : memref<9x128x128xf32, #tpu.memory_space<vmem>>, vector<1x128x128xf32>
    %62 = vector.shape_cast %61 : vector<1x128x128xf32> to vector<128x128xf32>
    %cst_58 = arith.constant dense<0.000000e+00> : vector<64x128xf32>
    %63 = tpu.matmul %60, %62, %cst_58 {dimension_numbers = #tpu.dot_dimension_numbers<[1], [0], [0], [1], [0, 0, 1, 1], [], []>} : vector<64x128xf32>, vector<128x128xf32>, vector<64x128xf32> -> vector<64x128xf32>
    %64 = arith.addf %58, %63 : vector<64x128xf32>
    %c128_59 = arith.constant 128 : index
    %c0_60 = arith.constant 0 : index
    %65 = vector.load %arg3[%c128_59, %c0_60] : memref<576x64xf32, #tpu.memory_space<vmem>>, vector<64x64xf32>
    %cst_61 = arith.constant dense<0.000000e+00> : vector<64x128xf32>
    %66 = tpu.matmul %65, %53, %cst_61 {dimension_numbers = #tpu.dot_dimension_numbers<[1], [0], [0], [1], [0, 0, 1, 1], [], []>} : vector<64x64xf32>, vector<64x128xf32>, vector<64x128xf32> -> vector<64x128xf32>
    %c2_62 = arith.constant 2 : index
    %c0_63 = arith.constant 0 : index
    %c0_64 = arith.constant 0 : index
    %67 = vector.load %arg8[%c2_62, %c0_63, %c0_64] : memref<9x128x128xf32, #tpu.memory_space<vmem>>, vector<1x128x128xf32>
    %68 = vector.shape_cast %67 : vector<1x128x128xf32> to vector<128x128xf32>
    %cst_65 = arith.constant dense<0.000000e+00> : vector<64x128xf32>
    %69 = tpu.matmul %66, %68, %cst_65 {dimension_numbers = #tpu.dot_dimension_numbers<[1], [0], [0], [1], [0, 0, 1, 1], [], []>} : vector<64x128xf32>, vector<128x128xf32>, vector<64x128xf32> -> vector<64x128xf32>
    %70 = arith.addf %64, %69 : vector<64x128xf32>
    %c192_66 = arith.constant 192 : index
    %c0_67 = arith.constant 0 : index
    %71 = vector.load %arg3[%c192_66, %c0_67] : memref<576x64xf32, #tpu.memory_space<vmem>>, vector<64x64xf32>
    %cst_68 = arith.constant dense<0.000000e+00> : vector<64x128xf32>
    %72 = tpu.matmul %71, %53, %cst_68 {dimension_numbers = #tpu.dot_dimension_numbers<[1], [0], [0], [1], [0, 0, 1, 1], [], []>} : vector<64x64xf32>, vector<64x128xf32>, vector<64x128xf32> -> vector<64x128xf32>
    %c3_69 = arith.constant 3 : index
    %c0_70 = arith.constant 0 : index
    %c0_71 = arith.constant 0 : index
    %73 = vector.load %arg8[%c3_69, %c0_70, %c0_71] : memref<9x128x128xf32, #tpu.memory_space<vmem>>, vector<1x128x128xf32>
    %74 = vector.shape_cast %73 : vector<1x128x128xf32> to vector<128x128xf32>
    %cst_72 = arith.constant dense<0.000000e+00> : vector<64x128xf32>
    %75 = tpu.matmul %72, %74, %cst_72 {dimension_numbers = #tpu.dot_dimension_numbers<[1], [0], [0], [1], [0, 0, 1, 1], [], []>} : vector<64x128xf32>, vector<128x128xf32>, vector<64x128xf32> -> vector<64x128xf32>
    %76 = arith.addf %70, %75 : vector<64x128xf32>
    %c256_73 = arith.constant 256 : index
    %c0_74 = arith.constant 0 : index
    %77 = vector.load %arg3[%c256_73, %c0_74] : memref<576x64xf32, #tpu.memory_space<vmem>>, vector<64x64xf32>
    %cst_75 = arith.constant dense<0.000000e+00> : vector<64x128xf32>
    %78 = tpu.matmul %77, %53, %cst_75 {dimension_numbers = #tpu.dot_dimension_numbers<[1], [0], [0], [1], [0, 0, 1, 1], [], []>} : vector<64x64xf32>, vector<64x128xf32>, vector<64x128xf32> -> vector<64x128xf32>
    %c4 = arith.constant 4 : index
    %c0_76 = arith.constant 0 : index
    %c0_77 = arith.constant 0 : index
    %79 = vector.load %arg8[%c4, %c0_76, %c0_77] : memref<9x128x128xf32, #tpu.memory_space<vmem>>, vector<1x128x128xf32>
    %80 = vector.shape_cast %79 : vector<1x128x128xf32> to vector<128x128xf32>
    %cst_78 = arith.constant dense<0.000000e+00> : vector<64x128xf32>
    %81 = tpu.matmul %78, %80, %cst_78 {dimension_numbers = #tpu.dot_dimension_numbers<[1], [0], [0], [1], [0, 0, 1, 1], [], []>} : vector<64x128xf32>, vector<128x128xf32>, vector<64x128xf32> -> vector<64x128xf32>
    %82 = arith.addf %76, %81 : vector<64x128xf32>
    %c320_79 = arith.constant 320 : index
    %c0_80 = arith.constant 0 : index
    %83 = vector.load %arg3[%c320_79, %c0_80] : memref<576x64xf32, #tpu.memory_space<vmem>>, vector<64x64xf32>
    %cst_81 = arith.constant dense<0.000000e+00> : vector<64x128xf32>
    %84 = tpu.matmul %83, %53, %cst_81 {dimension_numbers = #tpu.dot_dimension_numbers<[1], [0], [0], [1], [0, 0, 1, 1], [], []>} : vector<64x64xf32>, vector<64x128xf32>, vector<64x128xf32> -> vector<64x128xf32>
    %c5 = arith.constant 5 : index
    %c0_82 = arith.constant 0 : index
    %c0_83 = arith.constant 0 : index
    %85 = vector.load %arg8[%c5, %c0_82, %c0_83] : memref<9x128x128xf32, #tpu.memory_space<vmem>>, vector<1x128x128xf32>
    %86 = vector.shape_cast %85 : vector<1x128x128xf32> to vector<128x128xf32>
    %cst_84 = arith.constant dense<0.000000e+00> : vector<64x128xf32>
    %87 = tpu.matmul %84, %86, %cst_84 {dimension_numbers = #tpu.dot_dimension_numbers<[1], [0], [0], [1], [0, 0, 1, 1], [], []>} : vector<64x128xf32>, vector<128x128xf32>, vector<64x128xf32> -> vector<64x128xf32>
    %88 = arith.addf %82, %87 : vector<64x128xf32>
    %c384_85 = arith.constant 384 : index
    %c0_86 = arith.constant 0 : index
    %89 = vector.load %arg3[%c384_85, %c0_86] : memref<576x64xf32, #tpu.memory_space<vmem>>, vector<64x64xf32>
    %cst_87 = arith.constant dense<0.000000e+00> : vector<64x128xf32>
    %90 = tpu.matmul %89, %53, %cst_87 {dimension_numbers = #tpu.dot_dimension_numbers<[1], [0], [0], [1], [0, 0, 1, 1], [], []>} : vector<64x64xf32>, vector<64x128xf32>, vector<64x128xf32> -> vector<64x128xf32>
    %c6 = arith.constant 6 : index
    %c0_88 = arith.constant 0 : index
    %c0_89 = arith.constant 0 : index
    %91 = vector.load %arg8[%c6, %c0_88, %c0_89] : memref<9x128x128xf32, #tpu.memory_space<vmem>>, vector<1x128x128xf32>
    %92 = vector.shape_cast %91 : vector<1x128x128xf32> to vector<128x128xf32>
    %cst_90 = arith.constant dense<0.000000e+00> : vector<64x128xf32>
    %93 = tpu.matmul %90, %92, %cst_90 {dimension_numbers = #tpu.dot_dimension_numbers<[1], [0], [0], [1], [0, 0, 1, 1], [], []>} : vector<64x128xf32>, vector<128x128xf32>, vector<64x128xf32> -> vector<64x128xf32>
    %94 = arith.addf %88, %93 : vector<64x128xf32>
    %c448_91 = arith.constant 448 : index
    %c0_92 = arith.constant 0 : index
    %95 = vector.load %arg3[%c448_91, %c0_92] : memref<576x64xf32, #tpu.memory_space<vmem>>, vector<64x64xf32>
    %cst_93 = arith.constant dense<0.000000e+00> : vector<64x128xf32>
    %96 = tpu.matmul %95, %53, %cst_93 {dimension_numbers = #tpu.dot_dimension_numbers<[1], [0], [0], [1], [0, 0, 1, 1], [], []>} : vector<64x64xf32>, vector<64x128xf32>, vector<64x128xf32> -> vector<64x128xf32>
    %c7 = arith.constant 7 : index
    %c0_94 = arith.constant 0 : index
    %c0_95 = arith.constant 0 : index
    %97 = vector.load %arg8[%c7, %c0_94, %c0_95] : memref<9x128x128xf32, #tpu.memory_space<vmem>>, vector<1x128x128xf32>
    %98 = vector.shape_cast %97 : vector<1x128x128xf32> to vector<128x128xf32>
    %cst_96 = arith.constant dense<0.000000e+00> : vector<64x128xf32>
    %99 = tpu.matmul %96, %98, %cst_96 {dimension_numbers = #tpu.dot_dimension_numbers<[1], [0], [0], [1], [0, 0, 1, 1], [], []>} : vector<64x128xf32>, vector<128x128xf32>, vector<64x128xf32> -> vector<64x128xf32>
    %100 = arith.addf %94, %99 : vector<64x128xf32>
    %c512_97 = arith.constant 512 : index
    %c0_98 = arith.constant 0 : index
    %101 = vector.load %arg3[%c512_97, %c0_98] : memref<576x64xf32, #tpu.memory_space<vmem>>, vector<64x64xf32>
    %cst_99 = arith.constant dense<0.000000e+00> : vector<64x128xf32>
    %102 = tpu.matmul %101, %53, %cst_99 {dimension_numbers = #tpu.dot_dimension_numbers<[1], [0], [0], [1], [0, 0, 1, 1], [], []>} : vector<64x64xf32>, vector<64x128xf32>, vector<64x128xf32> -> vector<64x128xf32>
    %c8 = arith.constant 8 : index
    %c0_100 = arith.constant 0 : index
    %c0_101 = arith.constant 0 : index
    %103 = vector.load %arg8[%c8, %c0_100, %c0_101] : memref<9x128x128xf32, #tpu.memory_space<vmem>>, vector<1x128x128xf32>
    %104 = vector.shape_cast %103 : vector<1x128x128xf32> to vector<128x128xf32>
    %cst_102 = arith.constant dense<0.000000e+00> : vector<64x128xf32>
    %105 = tpu.matmul %102, %104, %cst_102 {dimension_numbers = #tpu.dot_dimension_numbers<[1], [0], [0], [1], [0, 0, 1, 1], [], []>} : vector<64x128xf32>, vector<128x128xf32>, vector<64x128xf32> -> vector<64x128xf32>
    %106 = arith.addf %100, %105 : vector<64x128xf32>
    %c0_103 = arith.constant 0 : index
    %c0_104 = arith.constant 0 : index
    %107 = vector.load %arg9[%c0_103, %c0_104] : memref<1x128xf32, #tpu.memory_space<vmem>>, vector<1x128xf32>
    %108 = vector.broadcast %107 : vector<1x128xf32> to vector<64x128xf32>
    %109 = arith.addf %106, %108 : vector<64x128xf32>
    %cst_105 = arith.constant 0.000000e+00 : f32
    %110 = vector.broadcast %cst_105 : f32 to vector<64x128xf32>
    %111 = arith.maximumf %109, %110 : vector<64x128xf32>
    %c0_106 = arith.constant 0 : index
    %c0_107 = arith.constant 0 : index
    %112 = vector.load %arg14[%c0_106, %c0_107] : memref<64x1xf32, #tpu.memory_space<vmem>>, vector<64x1xf32>
    %113 = vector.broadcast %112 : vector<64x1xf32> to vector<64x128xf32>
    %114 = arith.mulf %111, %113 : vector<64x128xf32>
    %c0_108 = arith.constant 0 : index
    %c0_109 = arith.constant 0 : index
    %c0_110 = arith.constant 0 : index
    %115 = vector.load %arg18[%c0_108, %c0_109, %c0_110] : memref<1x64x128xf32, #tpu.memory_space<vmem>>, vector<1x64x128xf32>
    %116 = vector.shape_cast %115 : vector<1x64x128xf32> to vector<64x128xf32>
    %117 = vector.shape_cast %114 : vector<64x128xf32> to vector<1x64x128xf32>
    tpu.vector_store %arg18[%c0_108, %c0_109, %c0_110], %117 {strides = array<i32>} : memref<1x64x128xf32, #tpu.memory_space<vmem>>, vector<1x64x128xf32>,
    %cst_111 = arith.constant dense<0.000000e+00> : vector<128xf32>
    %118 = vector.multi_reduction <add>, %114, %cst_111 [0] : vector<64x128xf32> to vector<128xf32>
    %119 = vector.shape_cast %118 : vector<128xf32> to vector<1x128xf32>
    %cst_112 = arith.constant 1.562500e-02 : f32
    %120 = vector.broadcast %cst_112 : f32 to vector<1x128xf32>
    %121 = arith.mulf %119, %120 : vector<1x128xf32>
    %c0_113 = arith.constant 0 : index
    %c0_114 = arith.constant 0 : index
    %122 = vector.load %arg4[%c0_113, %c0_114] : memref<144x64xf32, #tpu.memory_space<vmem>>, vector<16x64xf32>
    %cst_115 = arith.constant dense<0.000000e+00> : vector<16x128xf32>
    %123 = tpu.matmul %122, %114, %cst_115 {dimension_numbers = #tpu.dot_dimension_numbers<[1], [0], [0], [1], [0, 0, 1, 1], [], []>} : vector<16x64xf32>, vector<64x128xf32>, vector<16x128xf32> -> vector<16x128xf32>
    %c0_116 = arith.constant 0 : index
    %c0_117 = arith.constant 0 : index
    %c0_118 = arith.constant 0 : index
    %124 = vector.load %arg10[%c0_116, %c0_117, %c0_118] : memref<9x128x256xf32, #tpu.memory_space<vmem>>, vector<1x128x256xf32>
    %125 = vector.shape_cast %124 : vector<1x128x256xf32> to vector<128x256xf32>
    %cst_119 = arith.constant dense<0.000000e+00> : vector<16x256xf32>
    %126 = tpu.matmul %123, %125, %cst_119 {dimension_numbers = #tpu.dot_dimension_numbers<[1], [0], [0], [1], [0, 0, 1, 1], [], []>} : vector<16x128xf32>, vector<128x256xf32>, vector<16x256xf32> -> vector<16x256xf32>
    %c16 = arith.constant 16 : index
    %c0_120 = arith.constant 0 : index
    %127 = vector.load %arg4[%c16, %c0_120] : memref<144x64xf32, #tpu.memory_space<vmem>>, vector<16x64xf32>
    %cst_121 = arith.constant dense<0.000000e+00> : vector<16x128xf32>
    %128 = tpu.matmul %127, %114, %cst_121 {dimension_numbers = #tpu.dot_dimension_numbers<[1], [0], [0], [1], [0, 0, 1, 1], [], []>} : vector<16x64xf32>, vector<64x128xf32>, vector<16x128xf32> -> vector<16x128xf32>
    %c1_122 = arith.constant 1 : index
    %c0_123 = arith.constant 0 : index
    %c0_124 = arith.constant 0 : index
    %129 = vector.load %arg10[%c1_122, %c0_123, %c0_124] : memref<9x128x256xf32, #tpu.memory_space<vmem>>, vector<1x128x256xf32>
    %130 = vector.shape_cast %129 : vector<1x128x256xf32> to vector<128x256xf32>
    %cst_125 = arith.constant dense<0.000000e+00> : vector<16x256xf32>
    %131 = tpu.matmul %128, %130, %cst_125 {dimension_numbers = #tpu.dot_dimension_numbers<[1], [0], [0], [1], [0, 0, 1, 1], [], []>} : vector<16x128xf32>, vector<128x256xf32>, vector<16x256xf32> -> vector<16x256xf32>
    %132 = arith.addf %126, %131 : vector<16x256xf32>
    %c32 = arith.constant 32 : index
    %c0_126 = arith.constant 0 : index
    %133 = vector.load %arg4[%c32, %c0_126] : memref<144x64xf32, #tpu.memory_space<vmem>>, vector<16x64xf32>
    %cst_127 = arith.constant dense<0.000000e+00> : vector<16x128xf32>
    %134 = tpu.matmul %133, %114, %cst_127 {dimension_numbers = #tpu.dot_dimension_numbers<[1], [0], [0], [1], [0, 0, 1, 1], [], []>} : vector<16x64xf32>, vector<64x128xf32>, vector<16x128xf32> -> vector<16x128xf32>
    %c2_128 = arith.constant 2 : index
    %c0_129 = arith.constant 0 : index
    %c0_130 = arith.constant 0 : index
    %135 = vector.load %arg10[%c2_128, %c0_129, %c0_130] : memref<9x128x256xf32, #tpu.memory_space<vmem>>, vector<1x128x256xf32>
    %136 = vector.shape_cast %135 : vector<1x128x256xf32> to vector<128x256xf32>
    %cst_131 = arith.constant dense<0.000000e+00> : vector<16x256xf32>
    %137 = tpu.matmul %134, %136, %cst_131 {dimension_numbers = #tpu.dot_dimension_numbers<[1], [0], [0], [1], [0, 0, 1, 1], [], []>} : vector<16x128xf32>, vector<128x256xf32>, vector<16x256xf32> -> vector<16x256xf32>
    %138 = arith.addf %132, %137 : vector<16x256xf32>
    %c48 = arith.constant 48 : index
    %c0_132 = arith.constant 0 : index
    %139 = vector.load %arg4[%c48, %c0_132] : memref<144x64xf32, #tpu.memory_space<vmem>>, vector<16x64xf32>
    %cst_133 = arith.constant dense<0.000000e+00> : vector<16x128xf32>
    %140 = tpu.matmul %139, %114, %cst_133 {dimension_numbers = #tpu.dot_dimension_numbers<[1], [0], [0], [1], [0, 0, 1, 1], [], []>} : vector<16x64xf32>, vector<64x128xf32>, vector<16x128xf32> -> vector<16x128xf32>
    %c3_134 = arith.constant 3 : index
    %c0_135 = arith.constant 0 : index
    %c0_136 = arith.constant 0 : index
    %141 = vector.load %arg10[%c3_134, %c0_135, %c0_136] : memref<9x128x256xf32, #tpu.memory_space<vmem>>, vector<1x128x256xf32>
    %142 = vector.shape_cast %141 : vector<1x128x256xf32> to vector<128x256xf32>
    %cst_137 = arith.constant dense<0.000000e+00> : vector<16x256xf32>
    %143 = tpu.matmul %140, %142, %cst_137 {dimension_numbers = #tpu.dot_dimension_numbers<[1], [0], [0], [1], [0, 0, 1, 1], [], []>} : vector<16x128xf32>, vector<128x256xf32>, vector<16x256xf32> -> vector<16x256xf32>
    %144 = arith.addf %138, %143 : vector<16x256xf32>
    %c64_138 = arith.constant 64 : index
    %c0_139 = arith.constant 0 : index
    %145 = vector.load %arg4[%c64_138, %c0_139] : memref<144x64xf32, #tpu.memory_space<vmem>>, vector<16x64xf32>
    %cst_140 = arith.constant dense<0.000000e+00> : vector<16x128xf32>
    %146 = tpu.matmul %145, %114, %cst_140 {dimension_numbers = #tpu.dot_dimension_numbers<[1], [0], [0], [1], [0, 0, 1, 1], [], []>} : vector<16x64xf32>, vector<64x128xf32>, vector<16x128xf32> -> vector<16x128xf32>
    %c4_141 = arith.constant 4 : index
    %c0_142 = arith.constant 0 : index
    %c0_143 = arith.constant 0 : index
    %147 = vector.load %arg10[%c4_141, %c0_142, %c0_143] : memref<9x128x256xf32, #tpu.memory_space<vmem>>, vector<1x128x256xf32>
    %148 = vector.shape_cast %147 : vector<1x128x256xf32> to vector<128x256xf32>
    %cst_144 = arith.constant dense<0.000000e+00> : vector<16x256xf32>
    %149 = tpu.matmul %146, %148, %cst_144 {dimension_numbers = #tpu.dot_dimension_numbers<[1], [0], [0], [1], [0, 0, 1, 1], [], []>} : vector<16x128xf32>, vector<128x256xf32>, vector<16x256xf32> -> vector<16x256xf32>
    %150 = arith.addf %144, %149 : vector<16x256xf32>
    %c80 = arith.constant 80 : index
    %c0_145 = arith.constant 0 : index
    %151 = vector.load %arg4[%c80, %c0_145] : memref<144x64xf32, #tpu.memory_space<vmem>>, vector<16x64xf32>
    %cst_146 = arith.constant dense<0.000000e+00> : vector<16x128xf32>
    %152 = tpu.matmul %151, %114, %cst_146 {dimension_numbers = #tpu.dot_dimension_numbers<[1], [0], [0], [1], [0, 0, 1, 1], [], []>} : vector<16x64xf32>, vector<64x128xf32>, vector<16x128xf32> -> vector<16x128xf32>
    %c5_147 = arith.constant 5 : index
    %c0_148 = arith.constant 0 : index
    %c0_149 = arith.constant 0 : index
    %153 = vector.load %arg10[%c5_147, %c0_148, %c0_149] : memref<9x128x256xf32, #tpu.memory_space<vmem>>, vector<1x128x256xf32>
    %154 = vector.shape_cast %153 : vector<1x128x256xf32> to vector<128x256xf32>
    %cst_150 = arith.constant dense<0.000000e+00> : vector<16x256xf32>
    %155 = tpu.matmul %152, %154, %cst_150 {dimension_numbers = #tpu.dot_dimension_numbers<[1], [0], [0], [1], [0, 0, 1, 1], [], []>} : vector<16x128xf32>, vector<128x256xf32>, vector<16x256xf32> -> vector<16x256xf32>
    %156 = arith.addf %150, %155 : vector<16x256xf32>
    %c96 = arith.constant 96 : index
    %c0_151 = arith.constant 0 : index
    %157 = vector.load %arg4[%c96, %c0_151] : memref<144x64xf32, #tpu.memory_space<vmem>>, vector<16x64xf32>
    %cst_152 = arith.constant dense<0.000000e+00> : vector<16x128xf32>
    %158 = tpu.matmul %157, %114, %cst_152 {dimension_numbers = #tpu.dot_dimension_numbers<[1], [0], [0], [1], [0, 0, 1, 1], [], []>} : vector<16x64xf32>, vector<64x128xf32>, vector<16x128xf32> -> vector<16x128xf32>
    %c6_153 = arith.constant 6 : index
    %c0_154 = arith.constant 0 : index
    %c0_155 = arith.constant 0 : index
    %159 = vector.load %arg10[%c6_153, %c0_154, %c0_155] : memref<9x128x256xf32, #tpu.memory_space<vmem>>, vector<1x128x256xf32>
    %160 = vector.shape_cast %159 : vector<1x128x256xf32> to vector<128x256xf32>
    %cst_156 = arith.constant dense<0.000000e+00> : vector<16x256xf32>
    %161 = tpu.matmul %158, %160, %cst_156 {dimension_numbers = #tpu.dot_dimension_numbers<[1], [0], [0], [1], [0, 0, 1, 1], [], []>} : vector<16x128xf32>, vector<128x256xf32>, vector<16x256xf32> -> vector<16x256xf32>
    %162 = arith.addf %156, %161 : vector<16x256xf32>
    %c112 = arith.constant 112 : index
    %c0_157 = arith.constant 0 : index
    %163 = vector.load %arg4[%c112, %c0_157] : memref<144x64xf32, #tpu.memory_space<vmem>>, vector<16x64xf32>
    %cst_158 = arith.constant dense<0.000000e+00> : vector<16x128xf32>
    %164 = tpu.matmul %163, %114, %cst_158 {dimension_numbers = #tpu.dot_dimension_numbers<[1], [0], [0], [1], [0, 0, 1, 1], [], []>} : vector<16x64xf32>, vector<64x128xf32>, vector<16x128xf32> -> vector<16x128xf32>
    %c7_159 = arith.constant 7 : index
    %c0_160 = arith.constant 0 : index
    %c0_161 = arith.constant 0 : index
    %165 = vector.load %arg10[%c7_159, %c0_160, %c0_161] : memref<9x128x256xf32, #tpu.memory_space<vmem>>, vector<1x128x256xf32>
    %166 = vector.shape_cast %165 : vector<1x128x256xf32> to vector<128x256xf32>
    %cst_162 = arith.constant dense<0.000000e+00> : vector<16x256xf32>
    %167 = tpu.matmul %164, %166, %cst_162 {dimension_numbers = #tpu.dot_dimension_numbers<[1], [0], [0], [1], [0, 0, 1, 1], [], []>} : vector<16x128xf32>, vector<128x256xf32>, vector<16x256xf32> -> vector<16x256xf32>
    %168 = arith.addf %162, %167 : vector<16x256xf32>
    %c128_163 = arith.constant 128 : index
    %c0_164 = arith.constant 0 : index
    %169 = vector.load %arg4[%c128_163, %c0_164] : memref<144x64xf32, #tpu.memory_space<vmem>>, vector<16x64xf32>
    %cst_165 = arith.constant dense<0.000000e+00> : vector<16x128xf32>
    %170 = tpu.matmul %169, %114, %cst_165 {dimension_numbers = #tpu.dot_dimension_numbers<[1], [0], [0], [1], [0, 0, 1, 1], [], []>} : vector<16x64xf32>, vector<64x128xf32>, vector<16x128xf32> -> vector<16x128xf32>
    %c8_166 = arith.constant 8 : index
    %c0_167 = arith.constant 0 : index
    %c0_168 = arith.constant 0 : index
    %171 = vector.load %arg10[%c8_166, %c0_167, %c0_168] : memref<9x128x256xf32, #tpu.memory_space<vmem>>, vector<1x128x256xf32>
    %172 = vector.shape_cast %171 : vector<1x128x256xf32> to vector<128x256xf32>
    %cst_169 = arith.constant dense<0.000000e+00> : vector<16x256xf32>
    %173 = tpu.matmul %170, %172, %cst_169 {dimension_numbers = #tpu.dot_dimension_numbers<[1], [0], [0], [1], [0, 0, 1, 1], [], []>} : vector<16x128xf32>, vector<128x256xf32>, vector<16x256xf32> -> vector<16x256xf32>
    %174 = arith.addf %168, %173 : vector<16x256xf32>
    %c0_170 = arith.constant 0 : index
    %c0_171 = arith.constant 0 : index
    %175 = vector.load %arg11[%c0_170, %c0_171] : memref<1x256xf32, #tpu.memory_space<vmem>>, vector<1x256xf32>
    %176 = vector.broadcast %175 : vector<1x256xf32> to vector<16x256xf32>
    %177 = arith.addf %174, %176 : vector<16x256xf32>
    %cst_172 = arith.constant 0.000000e+00 : f32
    %178 = vector.broadcast %cst_172 : f32 to vector<16x256xf32>
    %179 = arith.maximumf %177, %178 : vector<16x256xf32>
    %c0_173 = arith.constant 0 : index
    %c0_174 = arith.constant 0 : index
    %180 = vector.load %arg5[%c0_173, %c0_174] : memref<72x16xf32, #tpu.memory_space<vmem>>, vector<8x16xf32>
    %cst_175 = arith.constant dense<0.000000e+00> : vector<8x256xf32>
    %181 = tpu.matmul %180, %179, %cst_175 {dimension_numbers = #tpu.dot_dimension_numbers<[1], [0], [0], [1], [0, 0, 1, 1], [], []>} : vector<8x16xf32>, vector<16x256xf32>, vector<8x256xf32> -> vector<8x256xf32>
    %c0_176 = arith.constant 0 : index
    %c0_177 = arith.constant 0 : index
    %c0_178 = arith.constant 0 : index
    %182 = vector.load %arg12[%c0_176, %c0_177, %c0_178] : memref<9x256x256xf32, #tpu.memory_space<vmem>>, vector<1x256x256xf32>
    %183 = vector.shape_cast %182 : vector<1x256x256xf32> to vector<256x256xf32>
    %cst_179 = arith.constant dense<0.000000e+00> : vector<8x256xf32>
    %184 = tpu.matmul %181, %183, %cst_179 {dimension_numbers = #tpu.dot_dimension_numbers<[1], [0], [0], [1], [0, 0, 1, 1], [], []>} : vector<8x256xf32>, vector<256x256xf32>, vector<8x256xf32> -> vector<8x256xf32>
    %c8_180 = arith.constant 8 : index
    %c0_181 = arith.constant 0 : index
    %185 = vector.load %arg5[%c8_180, %c0_181] : memref<72x16xf32, #tpu.memory_space<vmem>>, vector<8x16xf32>
    %cst_182 = arith.constant dense<0.000000e+00> : vector<8x256xf32>
    %186 = tpu.matmul %185, %179, %cst_182 {dimension_numbers = #tpu.dot_dimension_numbers<[1], [0], [0], [1], [0, 0, 1, 1], [], []>} : vector<8x16xf32>, vector<16x256xf32>, vector<8x256xf32> -> vector<8x256xf32>
    %c1_183 = arith.constant 1 : index
    %c0_184 = arith.constant 0 : index
    %c0_185 = arith.constant 0 : index
    %187 = vector.load %arg12[%c1_183, %c0_184, %c0_185] : memref<9x256x256xf32, #tpu.memory_space<vmem>>, vector<1x256x256xf32>
    %188 = vector.shape_cast %187 : vector<1x256x256xf32> to vector<256x256xf32>
    %cst_186 = arith.constant dense<0.000000e+00> : vector<8x256xf32>
    %189 = tpu.matmul %186, %188, %cst_186 {dimension_numbers = #tpu.dot_dimension_numbers<[1], [0], [0], [1], [0, 0, 1, 1], [], []>} : vector<8x256xf32>, vector<256x256xf32>, vector<8x256xf32> -> vector<8x256xf32>
    %190 = arith.addf %184, %189 : vector<8x256xf32>
    %c16_187 = arith.constant 16 : index
    %c0_188 = arith.constant 0 : index
    %191 = vector.load %arg5[%c16_187, %c0_188] : memref<72x16xf32, #tpu.memory_space<vmem>>, vector<8x16xf32>
    %cst_189 = arith.constant dense<0.000000e+00> : vector<8x256xf32>
    %192 = tpu.matmul %191, %179, %cst_189 {dimension_numbers = #tpu.dot_dimension_numbers<[1], [0], [0], [1], [0, 0, 1, 1], [], []>} : vector<8x16xf32>, vector<16x256xf32>, vector<8x256xf32> -> vector<8x256xf32>
    %c2_190 = arith.constant 2 : index
    %c0_191 = arith.constant 0 : index
    %c0_192 = arith.constant 0 : index
    %193 = vector.load %arg12[%c2_190, %c0_191, %c0_192] : memref<9x256x256xf32, #tpu.memory_space<vmem>>, vector<1x256x256xf32>
    %194 = vector.shape_cast %193 : vector<1x256x256xf32> to vector<256x256xf32>
    %cst_193 = arith.constant dense<0.000000e+00> : vector<8x256xf32>
    %195 = tpu.matmul %192, %194, %cst_193 {dimension_numbers = #tpu.dot_dimension_numbers<[1], [0], [0], [1], [0, 0, 1, 1], [], []>} : vector<8x256xf32>, vector<256x256xf32>, vector<8x256xf32> -> vector<8x256xf32>
    %196 = arith.addf %190, %195 : vector<8x256xf32>
    %c24 = arith.constant 24 : index
    %c0_194 = arith.constant 0 : index
    %197 = vector.load %arg5[%c24, %c0_194] : memref<72x16xf32, #tpu.memory_space<vmem>>, vector<8x16xf32>
    %cst_195 = arith.constant dense<0.000000e+00> : vector<8x256xf32>
    %198 = tpu.matmul %197, %179, %cst_195 {dimension_numbers = #tpu.dot_dimension_numbers<[1], [0], [0], [1], [0, 0, 1, 1], [], []>} : vector<8x16xf32>, vector<16x256xf32>, vector<8x256xf32> -> vector<8x256xf32>
    %c3_196 = arith.constant 3 : index
    %c0_197 = arith.constant 0 : index
    %c0_198 = arith.constant 0 : index
    %199 = vector.load %arg12[%c3_196, %c0_197, %c0_198] : memref<9x256x256xf32, #tpu.memory_space<vmem>>, vector<1x256x256xf32>
    %200 = vector.shape_cast %199 : vector<1x256x256xf32> to vector<256x256xf32>
    %cst_199 = arith.constant dense<0.000000e+00> : vector<8x256xf32>
    %201 = tpu.matmul %198, %200, %cst_199 {dimension_numbers = #tpu.dot_dimension_numbers<[1], [0], [0], [1], [0, 0, 1, 1], [], []>} : vector<8x256xf32>, vector<256x256xf32>, vector<8x256xf32> -> vector<8x256xf32>
    %202 = arith.addf %196, %201 : vector<8x256xf32>
    %c32_200 = arith.constant 32 : index
    %c0_201 = arith.constant 0 : index
    %203 = vector.load %arg5[%c32_200, %c0_201] : memref<72x16xf32, #tpu.memory_space<vmem>>, vector<8x16xf32>
    %cst_202 = arith.constant dense<0.000000e+00> : vector<8x256xf32>
    %204 = tpu.matmul %203, %179, %cst_202 {dimension_numbers = #tpu.dot_dimension_numbers<[1], [0], [0], [1], [0, 0, 1, 1], [], []>} : vector<8x16xf32>, vector<16x256xf32>, vector<8x256xf32> -> vector<8x256xf32>
    %c4_203 = arith.constant 4 : index
    %c0_204 = arith.constant 0 : index
    %c0_205 = arith.constant 0 : index
    %205 = vector.load %arg12[%c4_203, %c0_204, %c0_205] : memref<9x256x256xf32, #tpu.memory_space<vmem>>, vector<1x256x256xf32>
    %206 = vector.shape_cast %205 : vector<1x256x256xf32> to vector<256x256xf32>
    %cst_206 = arith.constant dense<0.000000e+00> : vector<8x256xf32>
    %207 = tpu.matmul %204, %206, %cst_206 {dimension_numbers = #tpu.dot_dimension_numbers<[1], [0], [0], [1], [0, 0, 1, 1], [], []>} : vector<8x256xf32>, vector<256x256xf32>, vector<8x256xf32> -> vector<8x256xf32>
    %208 = arith.addf %202, %207 : vector<8x256xf32>
    %c40 = arith.constant 40 : index
    %c0_207 = arith.constant 0 : index
    %209 = vector.load %arg5[%c40, %c0_207] : memref<72x16xf32, #tpu.memory_space<vmem>>, vector<8x16xf32>
    %cst_208 = arith.constant dense<0.000000e+00> : vector<8x256xf32>
    %210 = tpu.matmul %209, %179, %cst_208 {dimension_numbers = #tpu.dot_dimension_numbers<[1], [0], [0], [1], [0, 0, 1, 1], [], []>} : vector<8x16xf32>, vector<16x256xf32>, vector<8x256xf32> -> vector<8x256xf32>
    %c5_209 = arith.constant 5 : index
    %c0_210 = arith.constant 0 : index
    %c0_211 = arith.constant 0 : index
    %211 = vector.load %arg12[%c5_209, %c0_210, %c0_211] : memref<9x256x256xf32, #tpu.memory_space<vmem>>, vector<1x256x256xf32>
    %212 = vector.shape_cast %211 : vector<1x256x256xf32> to vector<256x256xf32>
    %cst_212 = arith.constant dense<0.000000e+00> : vector<8x256xf32>
    %213 = tpu.matmul %210, %212, %cst_212 {dimension_numbers = #tpu.dot_dimension_numbers<[1], [0], [0], [1], [0, 0, 1, 1], [], []>} : vector<8x256xf32>, vector<256x256xf32>, vector<8x256xf32> -> vector<8x256xf32>
    %214 = arith.addf %208, %213 : vector<8x256xf32>
    %c48_213 = arith.constant 48 : index
    %c0_214 = arith.constant 0 : index
    %215 = vector.load %arg5[%c48_213, %c0_214] : memref<72x16xf32, #tpu.memory_space<vmem>>, vector<8x16xf32>
    %cst_215 = arith.constant dense<0.000000e+00> : vector<8x256xf32>
    %216 = tpu.matmul %215, %179, %cst_215 {dimension_numbers = #tpu.dot_dimension_numbers<[1], [0], [0], [1], [0, 0, 1, 1], [], []>} : vector<8x16xf32>, vector<16x256xf32>, vector<8x256xf32> -> vector<8x256xf32>
    %c6_216 = arith.constant 6 : index
    %c0_217 = arith.constant 0 : index
    %c0_218 = arith.constant 0 : index
    %217 = vector.load %arg12[%c6_216, %c0_217, %c0_218] : memref<9x256x256xf32, #tpu.memory_space<vmem>>, vector<1x256x256xf32>
    %218 = vector.shape_cast %217 : vector<1x256x256xf32> to vector<256x256xf32>
    %cst_219 = arith.constant dense<0.000000e+00> : vector<8x256xf32>
    %219 = tpu.matmul %216, %218, %cst_219 {dimension_numbers = #tpu.dot_dimension_numbers<[1], [0], [0], [1], [0, 0, 1, 1], [], []>} : vector<8x256xf32>, vector<256x256xf32>, vector<8x256xf32> -> vector<8x256xf32>
    %220 = arith.addf %214, %219 : vector<8x256xf32>
    %c56 = arith.constant 56 : index
    %c0_220 = arith.constant 0 : index
    %221 = vector.load %arg5[%c56, %c0_220] : memref<72x16xf32, #tpu.memory_space<vmem>>, vector<8x16xf32>
    %cst_221 = arith.constant dense<0.000000e+00> : vector<8x256xf32>
    %222 = tpu.matmul %221, %179, %cst_221 {dimension_numbers = #tpu.dot_dimension_numbers<[1], [0], [0], [1], [0, 0, 1, 1], [], []>} : vector<8x16xf32>, vector<16x256xf32>, vector<8x256xf32> -> vector<8x256xf32>
    %c7_222 = arith.constant 7 : index
    %c0_223 = arith.constant 0 : index
    %c0_224 = arith.constant 0 : index
    %223 = vector.load %arg12[%c7_222, %c0_223, %c0_224] : memref<9x256x256xf32, #tpu.memory_space<vmem>>, vector<1x256x256xf32>
    %224 = vector.shape_cast %223 : vector<1x256x256xf32> to vector<256x256xf32>
    %cst_225 = arith.constant dense<0.000000e+00> : vector<8x256xf32>
    %225 = tpu.matmul %222, %224, %cst_225 {dimension_numbers = #tpu.dot_dimension_numbers<[1], [0], [0], [1], [0, 0, 1, 1], [], []>} : vector<8x256xf32>, vector<256x256xf32>, vector<8x256xf32> -> vector<8x256xf32>
    %226 = arith.addf %220, %225 : vector<8x256xf32>
    %c64_226 = arith.constant 64 : index
    %c0_227 = arith.constant 0 : index
    %227 = vector.load %arg5[%c64_226, %c0_227] : memref<72x16xf32, #tpu.memory_space<vmem>>, vector<8x16xf32>
    %cst_228 = arith.constant dense<0.000000e+00> : vector<8x256xf32>
    %228 = tpu.matmul %227, %179, %cst_228 {dimension_numbers = #tpu.dot_dimension_numbers<[1], [0], [0], [1], [0, 0, 1, 1], [], []>} : vector<8x16xf32>, vector<16x256xf32>, vector<8x256xf32> -> vector<8x256xf32>
    %c8_229 = arith.constant 8 : index
    %c0_230 = arith.constant 0 : index
    %c0_231 = arith.constant 0 : index
    %229 = vector.load %arg12[%c8_229, %c0_230, %c0_231] : memref<9x256x256xf32, #tpu.memory_space<vmem>>, vector<1x256x256xf32>
    %230 = vector.shape_cast %229 : vector<1x256x256xf32> to vector<256x256xf32>
    %cst_232 = arith.constant dense<0.000000e+00> : vector<8x256xf32>
    %231 = tpu.matmul %228, %230, %cst_232 {dimension_numbers = #tpu.dot_dimension_numbers<[1], [0], [0], [1], [0, 0, 1, 1], [], []>} : vector<8x256xf32>, vector<256x256xf32>, vector<8x256xf32> -> vector<8x256xf32>
    %232 = arith.addf %226, %231 : vector<8x256xf32>
    %c0_233 = arith.constant 0 : index
    %c0_234 = arith.constant 0 : index
    %233 = vector.load %arg13[%c0_233, %c0_234] : memref<1x256xf32, #tpu.memory_space<vmem>>, vector<1x256xf32>
    %234 = vector.broadcast %233 : vector<1x256xf32> to vector<8x256xf32>
    %235 = arith.addf %232, %234 : vector<8x256xf32>
    %cst_235 = arith.constant 0.000000e+00 : f32
    %236 = vector.broadcast %cst_235 : f32 to vector<8x256xf32>
    %237 = arith.maximumf %235, %236 : vector<8x256xf32>
    %c0_236 = arith.constant 0 : index
    %c0_237 = arith.constant 0 : index
    %238 = vector.load %arg15[%c0_236, %c0_237] : memref<8x1xf32, #tpu.memory_space<vmem>>, vector<8x1xf32>
    %239 = vector.broadcast %238 : vector<8x1xf32> to vector<8x256xf32>
    %240 = arith.mulf %237, %239 : vector<8x256xf32>
    %cst_238 = arith.constant dense<0.000000e+00> : vector<256xf32>
    %241 = vector.multi_reduction <add>, %240, %cst_238 [0] : vector<8x256xf32> to vector<256xf32>
    %242 = vector.shape_cast %241 : vector<256xf32> to vector<1x256xf32>
    %cst_239 = arith.constant 2.500000e-01 : f32
    %243 = vector.broadcast %cst_239 : f32 to vector<1x256xf32>
    %244 = arith.mulf %242, %243 : vector<1x256xf32>
    %c0_240 = arith.constant 0 : index
    %c0_241 = arith.constant 0 : index
    %245 = vector.load %arg16[%c0_240, %c0_241] : memref<256x256xf32, #tpu.memory_space<vmem>>, vector<256x256xf32>
    %cst_242 = arith.constant dense<0.000000e+00> : vector<1x256xf32>
    %246 = tpu.matmul %244, %245, %cst_242 {dimension_numbers = #tpu.dot_dimension_numbers<[1], [0], [0], [1], [0, 0, 1, 1], [], []>} : vector<1x256xf32>, vector<256x256xf32>, vector<1x256xf32> -> vector<1x256xf32>
    %c0_243 = arith.constant 0 : index
    %c0_244 = arith.constant 0 : index
    %247 = vector.load %arg17[%c0_243, %c0_244] : memref<1x256xf32, #tpu.memory_space<vmem>>, vector<1x256xf32>
    %248 = arith.addf %246, %247 : vector<1x256xf32>
    %c0_245 = arith.constant 0 : index
    %c0_246 = arith.constant 0 : index
    %c0_247 = arith.constant 0 : index
    %249 = vector.load %arg19[%c0_245, %c0_246, %c0_247] : memref<1x16x256xf32, #tpu.memory_space<vmem>>, vector<1x8x256xf32>
    %250 = vector.shape_cast %249 : vector<1x8x256xf32> to vector<8x256xf32>
    %251 = vector.shape_cast %240 : vector<8x256xf32> to vector<1x8x256xf32>
    tpu.vector_store %arg19[%c0_245, %c0_246, %c0_247], %251 {strides = array<i32>} : memref<1x16x256xf32, #tpu.memory_space<vmem>>, vector<1x8x256xf32>,
    %cst_248 = arith.constant 0.000000e+00 : f32
    %252 = vector.broadcast %cst_248 : f32 to vector<8x256xf32>
    %c0_249 = arith.constant 0 : index
    %c8_250 = arith.constant 8 : index
    %c0_251 = arith.constant 0 : index
    %253 = vector.load %arg19[%c0_249, %c8_250, %c0_251] : memref<1x16x256xf32, #tpu.memory_space<vmem>>, vector<1x8x256xf32>
    %254 = vector.shape_cast %253 : vector<1x8x256xf32> to vector<8x256xf32>
    %255 = vector.shape_cast %252 : vector<8x256xf32> to vector<1x8x256xf32>
    tpu.vector_store %arg19[%c0_249, %c8_250, %c0_251], %255 {strides = array<i32>} : memref<1x16x256xf32, #tpu.memory_space<vmem>>, vector<1x8x256xf32>,
    %c0_252 = arith.constant 0 : index
    %c8_253 = arith.constant 8 : index
    %c0_254 = arith.constant 0 : index
    %256 = vector.load %arg19[%c0_252, %c8_253, %c0_254] : memref<1x16x256xf32, #tpu.memory_space<vmem>>, vector<1x1x256xf32>
    %257 = vector.shape_cast %256 : vector<1x1x256xf32> to vector<1x256xf32>
    %258 = vector.shape_cast %244 : vector<1x256xf32> to vector<1x1x256xf32>
    tpu.vector_store %arg19[%c0_252, %c8_253, %c0_254], %258 {strides = array<i32>} : memref<1x16x256xf32, #tpu.memory_space<vmem>>, vector<1x1x256xf32>,
    %c0_255 = arith.constant 0 : index
    %c9 = arith.constant 9 : index
    %c0_256 = arith.constant 0 : index
    %259 = vector.load %arg19[%c0_255, %c9, %c0_256] : memref<1x16x256xf32, #tpu.memory_space<vmem>>, vector<1x1x128xf32>
    %260 = vector.shape_cast %259 : vector<1x1x128xf32> to vector<1x128xf32>
    %261 = vector.shape_cast %121 : vector<1x128xf32> to vector<1x1x128xf32>
    tpu.vector_store %arg19[%c0_255, %c9, %c0_256], %261 {strides = array<i32>} : memref<1x16x256xf32, #tpu.memory_space<vmem>>, vector<1x1x128xf32>,
    %c0_257 = arith.constant 0 : index
    %c10 = arith.constant 10 : index
    %c0_258 = arith.constant 0 : index
    %262 = vector.load %arg19[%c0_257, %c10, %c0_258] : memref<1x16x256xf32, #tpu.memory_space<vmem>>, vector<1x1x256xf32>
    %263 = vector.shape_cast %262 : vector<1x1x256xf32> to vector<1x256xf32>
    %264 = vector.shape_cast %248 : vector<1x256xf32> to vector<1x1x256xf32>
    tpu.vector_store %arg19[%c0_257, %c10, %c0_258], %264 {strides = array<i32>} : memref<1x16x256xf32, #tpu.memory_space<vmem>>, vector<1x1x256xf32>,
    return
  }
  func.func @transform_0(%arg0: i32) -> (i32, i32, i32) {
    %c0_i32 = arith.constant 0 : i32
    %c0_i32_0 = arith.constant 0 : i32
    %c0_i32_1 = arith.constant 0 : i32
    return %arg0, %c0_i32, %c0_i32_0 : i32, i32, i32
  }
  func.func @transform_1(%arg0: i32) -> (i32, i32) {
    %c0_i32 = arith.constant 0 : i32
    %c0_i32_0 = arith.constant 0 : i32
    %c0_i32_1 = arith.constant 0 : i32
    return %c0_i32, %c0_i32_0 : i32, i32
  }
  func.func @transform_2(%arg0: i32) -> (i32, i32) {
    %c0_i32 = arith.constant 0 : i32
    %c0_i32_0 = arith.constant 0 : i32
    %c0_i32_1 = arith.constant 0 : i32
    return %c0_i32, %c0_i32_0 : i32, i32
  }
  func.func @transform_3(%arg0: i32) -> (i32, i32) {
    %c0_i32 = arith.constant 0 : i32
    %c0_i32_0 = arith.constant 0 : i32
    %c0_i32_1 = arith.constant 0 : i32
    return %c0_i32, %c0_i32_0 : i32, i32
  }
  func.func @transform_4(%arg0: i32) -> (i32, i32) {
    %c0_i32 = arith.constant 0 : i32
    %c0_i32_0 = arith.constant 0 : i32
    %c0_i32_1 = arith.constant 0 : i32
    return %c0_i32, %c0_i32_0 : i32, i32
  }
  func.func @transform_5(%arg0: i32) -> (i32, i32, i32) {
    %c0_i32 = arith.constant 0 : i32
    %c0_i32_0 = arith.constant 0 : i32
    %c0_i32_1 = arith.constant 0 : i32
    %c0_i32_2 = arith.constant 0 : i32
    return %c0_i32, %c0_i32_0, %c0_i32_1 : i32, i32, i32
  }
  func.func @transform_6(%arg0: i32) -> (i32, i32) {
    %c0_i32 = arith.constant 0 : i32
    %c0_i32_0 = arith.constant 0 : i32
    %c0_i32_1 = arith.constant 0 : i32
    return %c0_i32, %c0_i32_0 : i32, i32
  }
  func.func @transform_7(%arg0: i32) -> (i32, i32, i32) {
    %c0_i32 = arith.constant 0 : i32
    %c0_i32_0 = arith.constant 0 : i32
    %c0_i32_1 = arith.constant 0 : i32
    %c0_i32_2 = arith.constant 0 : i32
    return %c0_i32, %c0_i32_0, %c0_i32_1 : i32, i32, i32
  }
  func.func @transform_8(%arg0: i32) -> (i32, i32) {
    %c0_i32 = arith.constant 0 : i32
    %c0_i32_0 = arith.constant 0 : i32
    %c0_i32_1 = arith.constant 0 : i32
    return %c0_i32, %c0_i32_0 : i32, i32
  }
  func.func @transform_9(%arg0: i32) -> (i32, i32, i32) {
    %c0_i32 = arith.constant 0 : i32
    %c0_i32_0 = arith.constant 0 : i32
    %c0_i32_1 = arith.constant 0 : i32
    %c0_i32_2 = arith.constant 0 : i32
    return %c0_i32, %c0_i32_0, %c0_i32_1 : i32, i32, i32
  }
  func.func @transform_10(%arg0: i32) -> (i32, i32) {
    %c0_i32 = arith.constant 0 : i32
    %c0_i32_0 = arith.constant 0 : i32
    %c0_i32_1 = arith.constant 0 : i32
    return %c0_i32, %c0_i32_0 : i32, i32
  }
  func.func @transform_11(%arg0: i32) -> (i32, i32, i32) {
    %c0_i32 = arith.constant 0 : i32
    %c0_i32_0 = arith.constant 0 : i32
    %c0_i32_1 = arith.constant 0 : i32
    %c0_i32_2 = arith.constant 0 : i32
    return %c0_i32, %c0_i32_0, %c0_i32_1 : i32, i32, i32
  }
  func.func @transform_12(%arg0: i32) -> (i32, i32) {
    %c0_i32 = arith.constant 0 : i32
    %c0_i32_0 = arith.constant 0 : i32
    %c0_i32_1 = arith.constant 0 : i32
    return %c0_i32, %c0_i32_0 : i32, i32
  }
  func.func @transform_13(%arg0: i32) -> (i32, i32) {
    %c0_i32 = arith.constant 0 : i32
    %c0_i32_0 = arith.constant 0 : i32
    %c0_i32_1 = arith.constant 0 : i32
    return %c0_i32, %c0_i32_0 : i32, i32
  }
  func.func @transform_14(%arg0: i32) -> (i32, i32) {
    %c0_i32 = arith.constant 0 : i32
    %c0_i32_0 = arith.constant 0 : i32
    %c0_i32_1 = arith.constant 0 : i32
    return %c0_i32, %c0_i32_0 : i32, i32
  }
  func.func @transform_15(%arg0: i32) -> (i32, i32) {
    %c0_i32 = arith.constant 0 : i32
    %c0_i32_0 = arith.constant 0 : i32
    %c0_i32_1 = arith.constant 0 : i32
    return %c0_i32, %c0_i32_0 : i32, i32
  }
  func.func @transform_16(%arg0: i32) -> (i32, i32) {
    %c0_i32 = arith.constant 0 : i32
    %c0_i32_0 = arith.constant 0 : i32
    %c0_i32_1 = arith.constant 0 : i32
    return %c0_i32, %c0_i32_0 : i32, i32
  }
  func.func @transform_17(%arg0: i32) -> (i32, i32, i32) {
    %c0_i32 = arith.constant 0 : i32
    %c0_i32_0 = arith.constant 0 : i32
    %c0_i32_1 = arith.constant 0 : i32
    return %arg0, %c0_i32, %c0_i32_0 : i32, i32, i32
  }
  func.func @transform_18(%arg0: i32) -> (i32, i32, i32) {
    %c0_i32 = arith.constant 0 : i32
    %c0_i32_0 = arith.constant 0 : i32
    %c0_i32_1 = arith.constant 0 : i32
    return %arg0, %c0_i32, %c0_i32_0 : i32, i32, i32
  }
}

</mosaic_0001>

<bundles_post_ra>
// kernel: tile.23
= control target key start
LH: loop header
LB: loop body
LE: loop exit
PB: predicated region body
PF: predicated region fallthrough
CT: control target
= control target key end

     0   :  { %s22_s0 = inlined_call_operand.vmem [shape: f32[32], index: 0, kind: input, shape index: {}]   ;;  %s23_s1 = inlined_call_operand.vmem [shape: f32[4,32], index: 1, kind: output, shape index: {}]  }
   0x1   :  { %v4_v0 = vld [vmem:[%s22_s0] ss:$0 sm:$0xff] }
   0x2   :  { %5 = vst [vmem:[%s23_s1] sm:$0xf] %v4_v0 }

// kernel: tile.24
= control target key start
LH: loop header
LB: loop body
LE: loop exit
PB: predicated region body
PF: predicated region fallthrough
CT: control target
= control target key end

     0   :  { %vm8_vm0 = vcmask 261120   ;;  %s40_s8 = smov 32   ;;  %s41_s9 = smov 64   ;;  %vm14_vm1 = vcmask 1048320   ;;  %vm20_vm2 = vcmask 785920   ;;  %vm26_vm3 = vcmask 523520   ;;  %s58_s0 = inlined_call_operand.vmem [shape: f32[4,32], index: 0, kind: input, shape index: {}]   ;;  %s59_s1 = inlined_call_operand.vmem [shape: f32[1,128], index: 1, kind: output, shape index: {}]  }
   0x1   :  { %v5_v0 = vld [vmem:[%s58_s0] sm:$0xf]  ;;  %s39_s0 = smov 96  }
   0x2   :  { %6 = vst [vmem:[#allocation1] sm:$0xf] %v5_v0 }
   0x9   :  { %v11_v1 = vld [vmem:[#allocation1 + $0x3] sm:$0x1]   ;;  %v23_v2 = vld [vmem:[#allocation1 + $0x1] sm:$0x1]   ;;  %v7_v3 = vld [vmem:[#allocation1] sm:$0x1]  }
   0xa   :  { %12 = vrot.lane.b32.xlu0 %v11_v1, %s39_s0  ;;  %24 = vrot.lane.b32.xlu1 %v23_v2, %s40_s8  ;;  %v17_v4 = vld [vmem:[#allocation1 + $0x2] sm:$0x1]   ;;  %9 = vst.msk [vmem:[#allocation0] sm:$0x1] %vm8_vm0, %v7_v3  }
   0xe   :  { %18 = vrot.lane.b32.xlu0 %v17_v4, %s41_s9 }
  0x7c   :  { %v13_v5 = vpop.permute.xlu0 %12   ;;  %v25_v6 = vpop.permute.xlu1 %24  }
  0x7d   :  { %15 = vst.msk [vmem:[#allocation0] sm:$0x1] %vm14_vm1, %v13_v5  }
  0x80   :  { %v19_v7 = vpop.permute.xlu0 %18  }
  0x81   :  { %21 = vst.msk [vmem:[#allocation0] sm:$0x1] %vm20_vm2, %v19_v7  }
  0x82   :  { %27 = vst.msk [vmem:[#allocation0] sm:$0x1] %vm26_vm3, %v25_v6  }
  0x89   :  { %v32_v8 = vld [vmem:[#allocation0] sm:$0x1] }
  0x8a   :  { %35 = vst [vmem:[%s59_s1] sm:$0x1] %v32_v8 }

// kernel: squeeze.5
= control target key start
LH: loop header
LB: loop body
LE: loop exit
PB: predicated region body
PF: predicated region fallthrough
CT: control target
= control target key end

     0   :  { %vm8_vm0 = vcmask 523264   ;;  %s42_s0 = inlined_call_operand.vmem [shape: f32[256], index: 0, kind: input, shape index: {}]   ;;  %s43_s1 = inlined_call_operand.vmem [shape: f32[1,4,64], index: 1, kind: output, shape index: {}]  }
   0x1   :  { %v5_v0 = vld [vmem:[%s42_s0] sm:$0x3]  ;;  %s25_s0 = smov 64  }
   0x2   :  { %6 = vst [vmem:[#allocation1] sm:$0x3] %v5_v0 }
   0x9   :  { %v10_v1 = vld [vmem:[#allocation1] sm:$0x3]  }
   0xa   :  { %v7_v2 = vld [vmem:[#allocation1] sm:$0x3]   ;;  %11 = vrot.lane.b32.xlu0 %v10_v1, %s25_s0 }
   0xb   :  { %9 = vst.msk [vmem:[#allocation0] ss:$2 sm:$0x3] %vm8_vm0, %v7_v2  }
  0x7c   :  { %v12_v3 = vpop.permute.xlu0 %11  }
  0x7d   :  { %15 = vst.msk [vmem:[#allocation0 + $0x1] ss:$2 sm:$0x3] %vm8_vm0, %v12_v3  }
  0x84   :  { %v20_v4 = vld [vmem:[#allocation0] sm:$0xf] }
  0x85   :  { %23 = vst [vmem:[%s43_s1] sm:$0xf] %v20_v4 }

// kernel: biased_mnist_cnn_forward.1
= control target key start
LH: loop header
LB: loop body
LE: loop exit
PB: predicated region body
PF: predicated region fallthrough
CT: control target
= control target key end

     0   :  { %vm2452_vm0 = vcmask 523264   ;;  %vm6717_vm1 = vcmask 130048   ;;  %s18662_s5 = inlined_call_operand.vmem [shape: f32[4,128,128], index: 5, kind: input, shape index: {}]   ;;  %s18663_s0 = inlined_call_operand.vmem [shape: f32[4,256,128], index: 0, kind: input, shape index: {}]   ;;  %s18664_s1 = inlined_call_operand.vmem [shape: f32[576,256], index: 1, kind: input, shape index: {}]   ;;  %s18665_s6 = inlined_call_operand.vmem [shape: f32[1,128], index: 6, kind: input, shape index: {}]   ;;  %s18666_s7 = inlined_call_operand.vmem [shape: f32[9,128,128], index: 7, kind: input, shape index: {}]   ;;  %s18667_s2 = inlined_call_operand.vmem [shape: f32[576,64], index: 2, kind: input, shape index: {}]   ;;  %s18668_s13 = inlined_call_operand.vmem [shape: f32[64,1], index: 13, kind: input, shape index: {}]   ;;  %s18669_s9 = inlined_call_operand.vmem [shape: f32[9,128,256], index: 9, kind: input, shape index: {}]   ;;  %s18670_s14 = inlined_call_operand.vmem [shape: f32[8,1], index: 14, kind: input, shape index: {}]   ;;  %s18671_s3 = inlined_call_operand.vmem [shape: f32[144,64], index: 3, kind: input, shape index: {}]   ;;  %s18672_s18 = inlined_call_operand.vmem [shape: f32[1,16,256], index: 18, kind: output, shape index: {1}]   ;;  %s18673_s8 = inlined_call_operand.vmem [shape: f32[1,128], index: 8, kind: input, shape index: {}]   ;;  %s18674_s17 = inlined_call_operand.vmem [shape: f32[1,64,128], index: 17, kind: output, shape index: {0}]   ;;  %s18675_s11 = inlined_call_operand.vmem [shape: f32[9,256,256], index: 11, kind: input, shape index: {}]   ;;  %s18676_s10 = inlined_call_operand.vmem [shape: f32[1,256], index: 10, kind: input, shape index: {}]   ;;  %s18677_s4 = inlined_call_operand.vmem [shape: f32[72,16], index: 4, kind: input, shape index: {}]   ;;  %s18678_s15 = inlined_call_operand.vmem [shape: f32[256,256], index: 15, kind: input, shape index: {}]   ;;  %s18679_s12 = inlined_call_operand.vmem [shape: f32[1,256], index: 12, kind: input, shape index: {}]   ;;  %s18680_s16 = inlined_call_operand.vmem [shape: f32[1,256], index: 16, kind: input, shape index: {}]  }
   0x1   :  { %18684 = sst [smem:[#allocation46_spill]] %s18662_s5 }
   0x2   :  { %18685 = sst [smem:[#allocation47_spill]] %s18663_s0 }
   0x3   :  { %18686 = sst [smem:[#allocation48_spill]] %s18664_s1 }
   0x4   :  { %s18687_s29 = sld [smem:[#allocation46_spill]] }
   0x5   :  { %s18688_s23 = sld [smem:[#allocation47_spill]] }
   0x6   :  { %s18698_s22 = sld [smem:[#allocation48_spill]] }
   0xa   :  { %v8920_v0 = vld [vmem:[%s18687_s29 + $0xf8] sm:$0xff]  ;;  %v8919_v2 = vld [vmem:[%s18687_s29 + $0xf0] sm:$0xff]  ;;  %v8918_v4 = vld [vmem:[%s18687_s29 + $0xe8] sm:$0xff] }
   0xb   :  { %v105_v1 = vld [vmem:[%s18687_s29 + $0x78] sm:$0xff]  ;;  %11162 = vmatprep.subr.mxu0 %v8920_v0  ;;  %v104_v3 = vld [vmem:[%s18687_s29 + $0x70] sm:$0xff]  ;;  %v103_v5 = vld [vmem:[%s18687_s29 + $0x68] sm:$0xff] }
   0xc   :  { %11242 = vmatprep.subr.mxu1 %v105_v1  ;;  %11163 = vmatpush3.msra.mxu0 %v8920_v0  ;;  %v8917_v6 = vld [vmem:[%s18687_s29 + $0xe0] sm:$0xff]  ;;  %v8916_v8 = vld [vmem:[%s18687_s29 + $0xd8] sm:$0xff]  ;;  %v8915_v10 = vld [vmem:[%s18687_s29 + $0xd0] sm:$0xff] }
   0xd   :  { %11243 = vmatpush3.msra.mxu1 %v105_v1  ;;  %11164 = vmatprep.subr.mxu0 %v8919_v2  ;;  %v102_v7 = vld [vmem:[%s18687_s29 + $0x60] sm:$0xff]  ;;  %v101_v9 = vld [vmem:[%s18687_s29 + $0x58] sm:$0xff]  ;;  %v100_v11 = vld [vmem:[%s18687_s29 + $0x50] sm:$0xff] }
   0xe   :  { %11244 = vmatprep.subr.mxu1 %v104_v3  ;;  %11165 = vmatpush3.msra.mxu0 %v8919_v2  ;;  %v8914_v12 = vld [vmem:[%s18687_s29 + $0xc8] sm:$0xff]  ;;  %v8913_v14 = vld [vmem:[%s18687_s29 + $0xc0] sm:$0xff]  ;;  %v8912_v16 = vld [vmem:[%s18687_s29 + $0xb8] sm:$0xff] }
   0xf   :  { %11245 = vmatpush3.msra.mxu1 %v104_v3  ;;  %11166 = vmatprep.subr.mxu0 %v8918_v4  ;;  %v99_v13 = vld [vmem:[%s18687_s29 + $0x48] sm:$0xff]  ;;  %v98_v15 = vld [vmem:[%s18687_s29 + $0x40] sm:$0xff]  ;;  %v97_v17 = vld [vmem:[%s18687_s29 + $0x38] sm:$0xff] }
  0x10   :  { %11246 = vmatprep.subr.mxu1 %v103_v5  ;;  %11167 = vmatpush3.msra.mxu0 %v8918_v4  ;;  %v8911_v18 = vld [vmem:[%s18687_s29 + $0xb0] sm:$0xff]  ;;  %v8910_v20 = vld [vmem:[%s18687_s29 + $0xa8] sm:$0xff]  ;;  %v8909_v22 = vld [vmem:[%s18687_s29 + $0xa0] sm:$0xff] }
  0x11   :  { %11247 = vmatpush3.msra.mxu1 %v103_v5  ;;  %11168 = vmatprep.subr.mxu0 %v8917_v6  ;;  %v96_v19 = vld [vmem:[%s18687_s29 + $0x30] sm:$0xff]  ;;  %v95_v21 = vld [vmem:[%s18687_s29 + $0x28] sm:$0xff]  ;;  %v94_v23 = vld [vmem:[%s18687_s29 + $0x20] sm:$0xff] }
  0x12   :  { %11248 = vmatprep.subr.mxu1 %v102_v7  ;;  %11169 = vmatpush3.msra.mxu0 %v8917_v6  ;;  %v8908_v24 = vld [vmem:[%s18687_s29 + $0x98] sm:$0xff]  ;;  %v8907_v26 = vld [vmem:[%s18687_s29 + $0x90] sm:$0xff]  ;;  %v8906_v28 = vld [vmem:[%s18687_s29 + $0x88] sm:$0xff] }
  0x13   :  { %11249 = vmatpush3.msra.mxu1 %v102_v7  ;;  %11170 = vmatprep.subr.mxu0 %v8916_v8  ;;  %v93_v25 = vld [vmem:[%s18687_s29 + $0x18] sm:$0xff]  ;;  %v92_v27 = vld [vmem:[%s18687_s29 + $0x10] sm:$0xff]  ;;  %v91_v29 = vld [vmem:[%s18687_s29 + $0x8] sm:$0xff] }
  0x14   :  { %11250 = vmatprep.subr.mxu1 %v101_v9  ;;  %11171 = vmatpush3.msra.mxu0 %v8916_v8  ;;  %v8905_v30 = vld [vmem:[%s18687_s29 + $0x80] sm:$0xff]  ;;  %v8874_v34 = vld [vmem:[%s18688_s23 + $0x108] sm:$0xff]  ;;  %v8875_v36 = vld [vmem:[%s18688_s23 + $0x110] sm:$0xff] }
  0x15   :  { %11251 = vmatpush3.msra.mxu1 %v101_v9  ;;  %11172 = vmatprep.subr.mxu0 %v8915_v10  ;;  %v90_v31 = vld [vmem:[%s18687_s29] sm:$0xff]  ;;  %v59_v35 = vld [vmem:[%s18688_s23 + $0x8] sm:$0xff]  ;;  %v60_v37 = vld [vmem:[%s18688_s23 + $0x10] sm:$0xff] }
  0x16   :  { %11252 = vmatprep.subr.mxu1 %v100_v11  ;;  %11173 = vmatpush3.msra.mxu0 %v8915_v10  ;;  %v8873_v32 = vld [vmem:[%s18688_s23 + $0x100] sm:$0xff]  ;;  %v8968_v38 = vld [vmem:[%s18687_s29 + $0x178] sm:$0xff]  ;;  %v8967_v44 = vld [vmem:[%s18687_s29 + $0x170] sm:$0xff] }
  0x17   :  { %11253 = vmatpush3.msra.mxu1 %v100_v11  ;;  %11174 = vmatprep.subr.mxu0 %v8914_v12  ;;  %v58_v33 = vld [vmem:[%s18688_s23] sm:$0xff]  ;;  %v9016_v39 = vld [vmem:[%s18687_s29 + $0x1f8] sm:$0xff]  ;;  %v9015_v45 = vld [vmem:[%s18687_s29 + $0x1f0] sm:$0xff] }
  0x18   :  { %11254 = vmatprep.subr.mxu1 %v99_v13  ;;  %11175 = vmatpush3.msra.mxu0 %v8914_v12  ;;  %v8876_v40 = vld [vmem:[%s18688_s23 + $0x118] sm:$0xff]  ;;  %v8877_v42 = vld [vmem:[%s18688_s23 + $0x120] sm:$0xff]  ;;  %v8878_v46 = vld [vmem:[%s18688_s23 + $0x128] sm:$0xff] }
  0x19   :  { %11255 = vmatpush3.msra.mxu1 %v99_v13  ;;  %11176 = vmatprep.subr.mxu0 %v8913_v14  ;;  %v61_v41 = vld [vmem:[%s18688_s23 + $0x18] sm:$0xff]  ;;  %v62_v43 = vld [vmem:[%s18688_s23 + $0x20] sm:$0xff]  ;;  %v63_v47 = vld [vmem:[%s18688_s23 + $0x28] sm:$0xff] }
  0x1a   :  { %11256 = vmatprep.subr.mxu1 %v98_v15  ;;  %11177 = vmatpush3.msra.mxu0 %v8913_v14  ;;  %v8879_v48 = vld [vmem:[%s18688_s23 + $0x130] sm:$0xff]  ;;  %v8966_v50 = vld [vmem:[%s18687_s29 + $0x168] sm:$0xff]  ;;  %v8880_v52 = vld [vmem:[%s18688_s23 + $0x138] sm:$0xff] }
  0x1b   :  { %11257 = vmatpush3.msra.mxu1 %v98_v15  ;;  %11178 = vmatprep.subr.mxu0 %v8912_v16  ;;  %v64_v49 = vld [vmem:[%s18688_s23 + $0x30] sm:$0xff]  ;;  %v9014_v51 = vld [vmem:[%s18687_s29 + $0x1e8] sm:$0xff]  ;;  %v65_v53 = vld [vmem:[%s18688_s23 + $0x38] sm:$0xff] }
  0x1c   :  { %11258 = vmatprep.subr.mxu1 %v97_v17  ;;  %11179 = vmatpush3.msra.mxu0 %v8912_v16  ;;  %v8881_v54 = vld [vmem:[%s18688_s23 + $0x140] sm:$0xff]  ;;  %v8882_v58 = vld [vmem:[%s18688_s23 + $0x148] sm:$0xff]  ;;  %v8883_v60 = vld [vmem:[%s18688_s23 + $0x150] sm:$0xff] }
  0x1d   :  { %11259 = vmatpush3.msra.mxu1 %v97_v17  ;;  %11180 = vmatprep.subr.mxu0 %v8911_v18  ;;  %v66_v55 = vld [vmem:[%s18688_s23 + $0x40] sm:$0xff]  ;;  %v67_v59 = vld [vmem:[%s18688_s23 + $0x48] sm:$0xff]  ;;  %v68_v61 = vld [vmem:[%s18688_s23 + $0x50] sm:$0xff] }
  0x1e   :  { %11260 = vmatprep.subr.mxu1 %v96_v19  ;;  %11181 = vmatpush3.msra.mxu0 %v8911_v18  ;;  %v8965_v56 = vld [vmem:[%s18687_s29 + $0x160] sm:$0xff]  ;;  %v8964_v62 = vld [vmem:[%s18687_s29 + $0x158] sm:$0xff]  ;;  %v8963_v4 = vld [vmem:[%s18687_s29 + $0x150] sm:$0xff] }
  0x1f   :  { %11261 = vmatpush3.msra.mxu1 %v96_v19  ;;  %11182 = vmatprep.subr.mxu0 %v8910_v20  ;;  %v9013_v57 = vld [vmem:[%s18687_s29 + $0x1e0] sm:$0xff]  ;;  %v9012_v63 = vld [vmem:[%s18687_s29 + $0x1d8] sm:$0xff]  ;;  %v9011_v5 = vld [vmem:[%s18687_s29 + $0x1d0] sm:$0xff] }
  0x20   :  { %11262 = vmatprep.subr.mxu1 %v95_v21  ;;  %11183 = vmatpush3.msra.mxu0 %v8910_v20  ;;  %v8884_v0 = vld [vmem:[%s18688_s23 + $0x158] sm:$0xff]  ;;  %v8885_v2 = vld [vmem:[%s18688_s23 + $0x160] sm:$0xff]  ;;  %v8886_v6 = vld [vmem:[%s18688_s23 + $0x168] sm:$0xff] }
  0x21   :  { %11263 = vmatpush3.msra.mxu1 %v95_v21  ;;  %11184 = vmatprep.subr.mxu0 %v8909_v22  ;;  %v69_v1 = vld [vmem:[%s18688_s23 + $0x58] sm:$0xff]  ;;  %v70_v3 = vld [vmem:[%s18688_s23 + $0x60] sm:$0xff]  ;;  %v71_v7 = vld [vmem:[%s18688_s23 + $0x68] sm:$0xff] }
  0x22   :  { %11264 = vmatprep.subr.mxu1 %v94_v23  ;;  %11185 = vmatpush3.msra.mxu0 %v8909_v22  ;;  %v8887_v8 = vld [vmem:[%s18688_s23 + $0x170] sm:$0xff]  ;;  %v8962_v10 = vld [vmem:[%s18687_s29 + $0x148] sm:$0xff]  ;;  %v8888_v12 = vld [vmem:[%s18688_s23 + $0x178] sm:$0xff] }
  0x23   :  { %11265 = vmatpush3.msra.mxu1 %v94_v23  ;;  %11186 = vmatprep.subr.mxu0 %v8908_v24  ;;  %v72_v9 = vld [vmem:[%s18688_s23 + $0x70] sm:$0xff]  ;;  %v9010_v11 = vld [vmem:[%s18687_s29 + $0x1c8] sm:$0xff]  ;;  %v73_v13 = vld [vmem:[%s18688_s23 + $0x78] sm:$0xff] }
  0x24   :  { %11266 = vmatprep.subr.mxu1 %v93_v25  ;;  %11187 = vmatpush3.msra.mxu0 %v8908_v24  ;;  %v8889_v14 = vld [vmem:[%s18688_s23 + $0x180] sm:$0xff]  ;;  %v8890_v18 = vld [vmem:[%s18688_s23 + $0x188] sm:$0xff]  ;;  %v8891_v20 = vld [vmem:[%s18688_s23 + $0x190] sm:$0xff] }
  0x25   :  { %11267 = vmatpush3.msra.mxu1 %v93_v25  ;;  %11188 = vmatprep.subr.mxu0 %v8907_v26  ;;  %v74_v15 = vld [vmem:[%s18688_s23 + $0x80] sm:$0xff]  ;;  %v75_v19 = vld [vmem:[%s18688_s23 + $0x88] sm:$0xff]  ;;  %v76_v21 = vld [vmem:[%s18688_s23 + $0x90] sm:$0xff] }
  0x26   :  { %11268 = vmatprep.subr.mxu1 %v92_v27  ;;  %11189 = vmatpush3.msra.mxu0 %v8907_v26  ;;  %v8961_v16 = vld [vmem:[%s18687_s29 + $0x140] sm:$0xff]  ;;  %v8960_v22 = vld [vmem:[%s18687_s29 + $0x138] sm:$0xff] }
  0x27   :  { %11269 = vmatpush3.msra.mxu1 %v92_v27  ;;  %11190 = vmatprep.subr.mxu0 %v8906_v28  ;;  %v9009_v17 = vld [vmem:[%s18687_s29 + $0x1c0] sm:$0xff]  ;;  %v9008_v23 = vld [vmem:[%s18687_s29 + $0x1b8] sm:$0xff] }
  0x28   :  { %11270 = vmatprep.subr.mxu1 %v91_v29  ;;  %11191 = vmatpush3.msra.mxu0 %v8906_v28  ;;  %v8892_v24 = vld [vmem:[%s18688_s23 + $0x198] sm:$0xff]  ;;  %v8893_v26 = vld [vmem:[%s18688_s23 + $0x1a0] sm:$0xff]  ;;  %v8959_v28 = vld [vmem:[%s18687_s29 + $0x130] sm:$0xff] }
  0x29   :  { %11271 = vmatpush3.msra.mxu1 %v91_v29  ;;  %11192 = vmatprep.subr.mxu0 %v8905_v30  ;;  %v77_v25 = vld [vmem:[%s18688_s23 + $0x98] sm:$0xff]  ;;  %v78_v27 = vld [vmem:[%s18688_s23 + $0xa0] sm:$0xff]  ;;  %v9007_v29 = vld [vmem:[%s18687_s29 + $0x1b0] sm:$0xff] }
  0x2a   :  { %11272 = vmatprep.subr.mxu1 %v90_v31  ;;  %11193 = vmatpush3.msra.mxu0 %v8905_v30  ;;  %v8894_v30 = vld [vmem:[%s18688_s23 + $0x1a8] sm:$0xff] }
  0x2b   :  { %11194 = vmatprep.mubr.f32.mxu0 %v8873_v32  ;;  %11273 = vmatpush3.msra.mxu1 %v90_v31  ;;  %v79_v31 = vld [vmem:[%s18688_s23 + $0xa8] sm:$0xff]  ;;  %v8895_v32 = vld [vmem:[%s18688_s23 + $0x1b0] sm:$0xff] }
  0x2c   :  { %11274 = vmatprep.mubr.f32.mxu1 %v58_v33  ;;  %11195 = vmatmul.mubr.f32.vlgmr.msra.gmra.mxu0 %v8874_v34  ;;  %v80_v33 = vld [vmem:[%s18688_s23 + $0xb0] sm:$0xff]  ;;  %v8958_v34 = vld [vmem:[%s18687_s29 + $0x128] sm:$0xff] }
  0x2d   :  { %11275 = vmatmul.mubr.f32.vlgmr.msra.gmra.mxu1 %v59_v35  ;;  %11197 = vmatprep.mubr.f32.mxu0 %v8875_v36  ;;  %v9006_v35 = vld [vmem:[%s18687_s29 + $0x1a8] sm:$0xff]  ;;  %v8896_v36 = vld [vmem:[%s18688_s23 + $0x1b8] sm:$0xff] }
  0x2e   :  { %11277 = vmatprep.mubr.f32.mxu1 %v60_v37  ;;  %11322 = vmatprep.subr.mxu0 %v8968_v38  ;;  %v81_v37 = vld [vmem:[%s18688_s23 + $0xb8] sm:$0xff] }
  0x2f   :  { %11402 = vmatprep.subr.mxu1 %v9016_v39  ;;  %11323 = vmatpush3.msra.mxu0 %v8968_v38  ;;  %v8897_v38 = vld [vmem:[%s18688_s23 + $0x1c0] sm:$0xff] }
  0x30   :  { %11403 = vmatpush3.msra.mxu1 %v9016_v39  ;;  %11198 = vmatmul.mubr.f32.gmra.mxu0 %v8876_v40  ;;  %v82_v39 = vld [vmem:[%s18688_s23 + $0xc0] sm:$0xff] }
  0x31   :  { %11278 = vmatmul.mubr.f32.gmra.mxu1 %v61_v41  ;;  %11200 = vmatprep.mubr.f32.mxu0 %v8877_v42  ;;  %v8957_v40 = vld [vmem:[%s18687_s29 + $0x120] sm:$0xff]  ;;  %v8898_v42 = vld [vmem:[%s18688_s23 + $0x1c8] sm:$0xff] }
  0x32   :  { %11280 = vmatprep.mubr.f32.mxu1 %v62_v43  ;;  %11324 = vmatprep.subr.mxu0 %v8967_v44  ;;  %v9005_v41 = vld [vmem:[%s18687_s29 + $0x1a0] sm:$0xff]  ;;  %v83_v43 = vld [vmem:[%s18688_s23 + $0xc8] sm:$0xff] }
  0x33   :  { %11404 = vmatprep.subr.mxu1 %v9015_v45  ;;  %11325 = vmatpush3.msra.mxu0 %v8967_v44  ;;  %v8899_v44 = vld [vmem:[%s18688_s23 + $0x1d0] sm:$0xff] }
  0x34   :  { %11405 = vmatpush3.msra.mxu1 %v9015_v45  ;;  %11201 = vmatmul.mubr.f32.gmra.mxu0 %v8878_v46  ;;  %v84_v45 = vld [vmem:[%s18688_s23 + $0xd0] sm:$0xff]  ;;  %v8956_v46 = vld [vmem:[%s18687_s29 + $0x118] sm:$0xff] }
  0x35   :  { %11281 = vmatmul.mubr.f32.gmra.mxu1 %v63_v47  ;;  %11203 = vmatprep.mubr.f32.mxu0 %v8879_v48  ;;  %v9004_v47 = vld [vmem:[%s18687_s29 + $0x198] sm:$0xff] }
  0x36   :  { %11283 = vmatprep.mubr.f32.mxu1 %v64_v49  ;;  %11326 = vmatprep.subr.mxu0 %v8966_v50  ;;  %v8900_v48 = vld [vmem:[%s18688_s23 + $0x1d8] sm:$0xff] }
  0x37   :  { %11406 = vmatprep.subr.mxu1 %v9014_v51  ;;  %11327 = vmatpush3.msra.mxu0 %v8966_v50  ;;  %v85_v49 = vld [vmem:[%s18688_s23 + $0xd8] sm:$0xff]  ;;  %v8901_v50 = vld [vmem:[%s18688_s23 + $0x1e0] sm:$0xff] }
  0x38   :  { %11407 = vmatpush3.msra.mxu1 %v9014_v51  ;;  %11204 = vmatmul.mubr.f32.gmra.mxu0 %v8880_v52  ;;  %v86_v51 = vld [vmem:[%s18688_s23 + $0xe0] sm:$0xff]  ;;  %v8955_v52 = vld [vmem:[%s18687_s29 + $0x110] sm:$0xff] }
  0x39   :  { %11284 = vmatmul.mubr.f32.gmra.mxu1 %v65_v53  ;;  %11206 = vmatprep.mubr.f32.mxu0 %v8881_v54  ;;  %v9003_v53 = vld [vmem:[%s18687_s29 + $0x190] sm:$0xff]  ;;  %v8902_v54 = vld [vmem:[%s18688_s23 + $0x1e8] sm:$0xff] }
  0x3a   :  { %11286 = vmatprep.mubr.f32.mxu1 %v66_v55  ;;  %11328 = vmatprep.subr.mxu0 %v8965_v56  ;;  %v87_v55 = vld [vmem:[%s18688_s23 + $0xe8] sm:$0xff] }
  0x3b   :  { %11408 = vmatprep.subr.mxu1 %v9013_v57  ;;  %11329 = vmatpush3.msra.mxu0 %v8965_v56  ;;  %v8903_v56 = vld [vmem:[%s18688_s23 + $0x1f0] sm:$0xff] }
  0x3c   :  { %11409 = vmatpush3.msra.mxu1 %v9013_v57  ;;  %11207 = vmatmul.mubr.f32.gmra.mxu0 %v8882_v58  ;;  %v88_v57 = vld [vmem:[%s18688_s23 + $0xf0] sm:$0xff]  ;;  %v8954_v58 = vld [vmem:[%s18687_s29 + $0x108] sm:$0xff] }
  0x3d   :  { %11287 = vmatmul.mubr.f32.gmra.mxu1 %v67_v59  ;;  %11209 = vmatprep.mubr.f32.mxu0 %v8883_v60  ;;  %v9002_v59 = vld [vmem:[%s18687_s29 + $0x188] sm:$0xff]  ;;  %v8904_v60 = vld [vmem:[%s18688_s23 + $0x1f8] sm:$0xff] }
  0x3e   :  { %11289 = vmatprep.mubr.f32.mxu1 %v68_v61  ;;  %11330 = vmatprep.subr.mxu0 %v8964_v62  ;;  %v89_v61 = vld [vmem:[%s18688_s23 + $0xf8] sm:$0xff] }
  0x3f   :  { %11410 = vmatprep.subr.mxu1 %v9012_v63  ;;  %11331 = vmatpush3.msra.mxu0 %v8964_v62  ;;  %v8953_v62 = vld [vmem:[%s18687_s29 + $0x100] sm:$0xff] }
  0x40   :  { %11411 = vmatpush3.msra.mxu1 %v9012_v63  ;;  %11210 = vmatmul.mubr.f32.gmra.mxu0 %v8884_v0  ;;  %v9001_v63 = vld [vmem:[%s18687_s29 + $0x180] sm:$0xff] }
  0x41   :  { %11290 = vmatmul.mubr.f32.gmra.mxu1 %v69_v1  ;;  %11212 = vmatprep.mubr.f32.mxu0 %v8885_v2  ;;  %v8921_v0 = vld [vmem:[%s18688_s23 + $0x200] sm:$0xff]  ;;  %v8922_v2 = vld [vmem:[%s18688_s23 + $0x208] sm:$0xff] }
  0x42   :  { %11292 = vmatprep.mubr.f32.mxu1 %v70_v3  ;;  %11332 = vmatprep.subr.mxu0 %v8963_v4  ;;  %v8969_v1 = vld [vmem:[%s18688_s23 + $0x300] sm:$0xff]  ;;  %v8970_v3 = vld [vmem:[%s18688_s23 + $0x308] sm:$0xff] }
  0x43   :  { %11412 = vmatprep.subr.mxu1 %v9011_v5  ;;  %11333 = vmatpush3.msra.mxu0 %v8963_v4  ;;  %v8923_v4 = vld [vmem:[%s18688_s23 + $0x210] sm:$0xff] }
  0x44   :  { %11413 = vmatpush3.msra.mxu1 %v9011_v5  ;;  %11213 = vmatmul.mubr.f32.gmra.mxu0 %v8886_v6  ;;  %v8971_v5 = vld [vmem:[%s18688_s23 + $0x310] sm:$0xff]  ;;  %v8924_v6 = vld [vmem:[%s18688_s23 + $0x218] sm:$0xff] }
  0x45   :  { %11293 = vmatmul.mubr.f32.gmra.mxu1 %v71_v7  ;;  %11215 = vmatprep.mubr.f32.mxu0 %v8887_v8  ;;  %v8972_v7 = vld [vmem:[%s18688_s23 + $0x318] sm:$0xff]  ;;  %v8925_v8 = vld [vmem:[%s18688_s23 + $0x220] sm:$0xff] }
  0x46   :  { %11295 = vmatprep.mubr.f32.mxu1 %v72_v9  ;;  %11334 = vmatprep.subr.mxu0 %v8962_v10  ;;  %v8973_v9 = vld [vmem:[%s18688_s23 + $0x320] sm:$0xff] }
  0x47   :  { %11414 = vmatprep.subr.mxu1 %v9010_v11  ;;  %11335 = vmatpush3.msra.mxu0 %v8962_v10  ;;  %v8926_v10 = vld [vmem:[%s18688_s23 + $0x228] sm:$0xff] }
  0x48   :  { %11415 = vmatpush3.msra.mxu1 %v9010_v11  ;;  %11216 = vmatmul.mubr.f32.gmra.mxu0 %v8888_v12  ;;  %v8974_v11 = vld [vmem:[%s18688_s23 + $0x328] sm:$0xff]  ;;  %v8927_v12 = vld [vmem:[%s18688_s23 + $0x230] sm:$0xff] }
  0x49   :  { %11296 = vmatmul.mubr.f32.gmra.mxu1 %v73_v13  ;;  %11218 = vmatprep.mubr.f32.mxu0 %v8889_v14  ;;  %v8975_v13 = vld [vmem:[%s18688_s23 + $0x330] sm:$0xff]  ;;  %v8928_v14 = vld [vmem:[%s18688_s23 + $0x238] sm:$0xff] }
  0x4a   :  { %11298 = vmatprep.mubr.f32.mxu1 %v74_v15  ;;  %11336 = vmatprep.subr.mxu0 %v8961_v16  ;;  %v8976_v15 = vld [vmem:[%s18688_s23 + $0x338] sm:$0xff] }
  0x4b   :  { %11416 = vmatprep.subr.mxu1 %v9009_v17  ;;  %11337 = vmatpush3.msra.mxu0 %v8961_v16  ;;  %v8929_v16 = vld [vmem:[%s18688_s23 + $0x240] sm:$0xff] }
  0x4c   :  { %11417 = vmatpush3.msra.mxu1 %v9009_v17  ;;  %11219 = vmatmul.mubr.f32.gmra.mxu0 %v8890_v18  ;;  %v8977_v17 = vld [vmem:[%s18688_s23 + $0x340] sm:$0xff]  ;;  %v8930_v18 = vld [vmem:[%s18688_s23 + $0x248] sm:$0xff] }
  0x4d   :  { %11299 = vmatmul.mubr.f32.gmra.mxu1 %v75_v19  ;;  %11221 = vmatprep.mubr.f32.mxu0 %v8891_v20  ;;  %v8978_v19 = vld [vmem:[%s18688_s23 + $0x348] sm:$0xff]  ;;  %v8931_v20 = vld [vmem:[%s18688_s23 + $0x250] sm:$0xff] }
  0x4e   :  { %11301 = vmatprep.mubr.f32.mxu1 %v76_v21  ;;  %11338 = vmatprep.subr.mxu0 %v8960_v22  ;;  %v8979_v21 = vld [vmem:[%s18688_s23 + $0x350] sm:$0xff] }
  0x4f   :  { %11418 = vmatprep.subr.mxu1 %v9008_v23  ;;  %11339 = vmatpush3.msra.mxu0 %v8960_v22  ;;  %v8932_v22 = vld [vmem:[%s18688_s23 + $0x258] sm:$0xff] }
  0x50   :  { %11419 = vmatpush3.msra.mxu1 %v9008_v23  ;;  %11222 = vmatmul.mubr.f32.gmra.mxu0 %v8892_v24  ;;  %v8980_v23 = vld [vmem:[%s18688_s23 + $0x358] sm:$0xff]  ;;  %v8933_v24 = vld [vmem:[%s18688_s23 + $0x260] sm:$0xff] }
  0x51   :  { %11302 = vmatmul.mubr.f32.gmra.mxu1 %v77_v25  ;;  %11224 = vmatprep.mubr.f32.mxu0 %v8893_v26  ;;  %v8981_v25 = vld [vmem:[%s18688_s23 + $0x360] sm:$0xff]  ;;  %v8934_v26 = vld [vmem:[%s18688_s23 + $0x268] sm:$0xff] }
  0x52   :  { %11304 = vmatprep.mubr.f32.mxu1 %v78_v27  ;;  %11340 = vmatprep.subr.mxu0 %v8959_v28  ;;  %v8982_v27 = vld [vmem:[%s18688_s23 + $0x368] sm:$0xff] }
  0x53   :  { %11420 = vmatprep.subr.mxu1 %v9007_v29  ;;  %11341 = vmatpush3.msra.mxu0 %v8959_v28  ;;  %v8935_v28 = vld [vmem:[%s18688_s23 + $0x270] sm:$0xff] }
  0x54   :  { %11421 = vmatpush3.msra.mxu1 %v9007_v29  ;;  %11225 = vmatmul.mubr.f32.gmra.mxu0 %v8894_v30  ;;  %v8983_v29 = vld [vmem:[%s18688_s23 + $0x370] sm:$0xff]  ;;  %v8936_v30 = vld [vmem:[%s18688_s23 + $0x278] sm:$0xff] }
  0x55   :  { %11305 = vmatmul.mubr.f32.gmra.mxu1 %v79_v31  ;;  %11227 = vmatprep.mubr.f32.mxu0 %v8895_v32  ;;  %v8984_v31 = vld [vmem:[%s18688_s23 + $0x378] sm:$0xff]  ;;  %v8937_v32 = vld [vmem:[%s18688_s23 + $0x280] sm:$0xff] }
  0x56   :  { %11307 = vmatprep.mubr.f32.mxu1 %v80_v33  ;;  %11342 = vmatprep.subr.mxu0 %v8958_v34  ;;  %v8985_v33 = vld [vmem:[%s18688_s23 + $0x380] sm:$0xff] }
  0x57   :  { %11422 = vmatprep.subr.mxu1 %v9006_v35  ;;  %11343 = vmatpush3.msra.mxu0 %v8958_v34  ;;  %v8938_v34 = vld [vmem:[%s18688_s23 + $0x288] sm:$0xff] }
  0x58   :  { %11423 = vmatpush3.msra.mxu1 %v9006_v35  ;;  %11228 = vmatmul.mubr.f32.gmra.mxu0 %v8896_v36  ;;  %v8986_v35 = vld [vmem:[%s18688_s23 + $0x388] sm:$0xff]  ;;  %v8939_v36 = vld [vmem:[%s18688_s23 + $0x290] sm:$0xff] }
  0x59   :  { %11308 = vmatmul.mubr.f32.gmra.mxu1 %v81_v37  ;;  %11230 = vmatprep.mubr.f32.mxu0 %v8897_v38  ;;  %v8987_v37 = vld [vmem:[%s18688_s23 + $0x390] sm:$0xff]  ;;  %v8940_v38 = vld [vmem:[%s18688_s23 + $0x298] sm:$0xff] }
  0x5a   :  { %11310 = vmatprep.mubr.f32.mxu1 %v82_v39  ;;  %11344 = vmatprep.subr.mxu0 %v8957_v40  ;;  %v8988_v39 = vld [vmem:[%s18688_s23 + $0x398] sm:$0xff] }
  0x5b   :  { %11424 = vmatprep.subr.mxu1 %v9005_v41  ;;  %11345 = vmatpush3.msra.mxu0 %v8957_v40  ;;  %v8941_v40 = vld [vmem:[%s18688_s23 + $0x2a0] sm:$0xff] }
  0x5c   :  { %11425 = vmatpush3.msra.mxu1 %v9005_v41  ;;  %11231 = vmatmul.mubr.f32.gmra.mxu0 %v8898_v42  ;;  %v8989_v41 = vld [vmem:[%s18688_s23 + $0x3a0] sm:$0xff]  ;;  %v8942_v42 = vld [vmem:[%s18688_s23 + $0x2a8] sm:$0xff] }
  0x5d   :  { %11311 = vmatmul.mubr.f32.gmra.mxu1 %v83_v43  ;;  %11233 = vmatprep.mubr.f32.mxu0 %v8899_v44  ;;  %v8990_v43 = vld [vmem:[%s18688_s23 + $0x3a8] sm:$0xff]  ;;  %v8943_v44 = vld [vmem:[%s18688_s23 + $0x2b0] sm:$0xff] }
  0x5e   :  { %11313 = vmatprep.mubr.f32.mxu1 %v84_v45  ;;  %11346 = vmatprep.subr.mxu0 %v8956_v46  ;;  %v8991_v45 = vld [vmem:[%s18688_s23 + $0x3b0] sm:$0xff] }
  0x5f   :  { %11426 = vmatprep.subr.mxu1 %v9004_v47  ;;  %11347 = vmatpush3.msra.mxu0 %v8956_v46  ;;  %v8944_v46 = vld [vmem:[%s18688_s23 + $0x2b8] sm:$0xff] }
  0x60   :  { %11427 = vmatpush3.msra.mxu1 %v9004_v47  ;;  %11234 = vmatmul.mubr.f32.gmra.mxu0 %v8900_v48  ;;  %v8992_v47 = vld [vmem:[%s18688_s23 + $0x3b8] sm:$0xff]  ;;  %v8945_v48 = vld [vmem:[%s18688_s23 + $0x2c0] sm:$0xff] }
  0x61   :  { %11314 = vmatmul.mubr.f32.gmra.mxu1 %v85_v49  ;;  %11236 = vmatprep.mubr.f32.mxu0 %v8901_v50  ;;  %v8993_v49 = vld [vmem:[%s18688_s23 + $0x3c0] sm:$0xff]  ;;  %v8946_v50 = vld [vmem:[%s18688_s23 + $0x2c8] sm:$0xff] }
  0x62   :  { %11316 = vmatprep.mubr.f32.mxu1 %v86_v51  ;;  %11348 = vmatprep.subr.mxu0 %v8955_v52  ;;  %v8994_v51 = vld [vmem:[%s18688_s23 + $0x3c8] sm:$0xff] }
  0x63   :  { %11428 = vmatprep.subr.mxu1 %v9003_v53  ;;  %11349 = vmatpush3.msra.mxu0 %v8955_v52  ;;  %v8947_v52 = vld [vmem:[%s18688_s23 + $0x2d0] sm:$0xff] }
  0x64   :  { %11429 = vmatpush3.msra.mxu1 %v9003_v53  ;;  %11237 = vmatmul.mubr.f32.gmra.mxu0 %v8902_v54  ;;  %v8995_v53 = vld [vmem:[%s18688_s23 + $0x3d0] sm:$0xff]  ;;  %v8948_v54 = vld [vmem:[%s18688_s23 + $0x2d8] sm:$0xff] }
  0x65   :  { %11317 = vmatmul.mubr.f32.gmra.mxu1 %v87_v55  ;;  %11239 = vmatprep.mubr.f32.mxu0 %v8903_v56  ;;  %v8996_v55 = vld [vmem:[%s18688_s23 + $0x3d8] sm:$0xff]  ;;  %v8949_v56 = vld [vmem:[%s18688_s23 + $0x2e0] sm:$0xff] }
  0x66   :  { %11319 = vmatprep.mubr.f32.mxu1 %v88_v57  ;;  %11350 = vmatprep.subr.mxu0 %v8954_v58  ;;  %v8997_v57 = vld [vmem:[%s18688_s23 + $0x3e0] sm:$0xff] }
  0x67   :  { %11430 = vmatprep.subr.mxu1 %v9002_v59  ;;  %11351 = vmatpush3.msra.mxu0 %v8954_v58  ;;  %v8950_v58 = vld [vmem:[%s18688_s23 + $0x2e8] sm:$0xff] }
  0x68   :  { %11431 = vmatpush3.msra.mxu1 %v9002_v59  ;;  %11240 = vmatmul.mubr.f32.gmra.mxu0 %v8904_v60  ;;  %v8998_v59 = vld [vmem:[%s18688_s23 + $0x3e8] sm:$0xff]  ;;  %v8951_v60 = vld [vmem:[%s18688_s23 + $0x2f0] sm:$0xff] }
  0x69   :  { %11320 = vmatmul.mubr.f32.gmra.mxu1 %v89_v61  ;;  %11352 = vmatprep.subr.mxu0 %v8953_v62  ;;  %v8999_v61 = vld [vmem:[%s18688_s23 + $0x3f0] sm:$0xff] }
  0x6a   :  { %11432 = vmatprep.subr.mxu1 %v9001_v63  ;;  %11353 = vmatpush3.msra.mxu0 %v8953_v62  ;;  %v8952_v62 = vld [vmem:[%s18688_s23 + $0x2f8] sm:$0xff] }
  0x6b   :  { %11354 = vmatprep.mubr.f32.mxu0 %v8921_v0  ;;  %11433 = vmatpush3.msra.mxu1 %v9001_v63  ;;  %v9000_v63 = vld [vmem:[%s18688_s23 + $0x3f8] sm:$0xff] }
  0x6c   :  { %11434 = vmatprep.mubr.f32.mxu1 %v8969_v1  ;;  %11355 = vmatmul.mubr.f32.vlgmr.msra.gmra.mxu0 %v8922_v2 }
  0x6d   :  { %11435 = vmatmul.mubr.f32.vlgmr.msra.gmra.mxu1 %v8970_v3  ;;  %11357 = vmatprep.mubr.f32.mxu0 %v8923_v4 }
  0x6e   :  { %11437 = vmatprep.mubr.f32.mxu1 %v8971_v5 }
  0x70   :  { %11358 = vmatmul.mubr.f32.gmra.mxu0 %v8924_v6 }
  0x71   :  { %11438 = vmatmul.mubr.f32.gmra.mxu1 %v8972_v7  ;;  %11360 = vmatprep.mubr.f32.mxu0 %v8925_v8 }
  0x72   :  { %11440 = vmatprep.mubr.f32.mxu1 %v8973_v9 }
  0x74   :  { %11361 = vmatmul.mubr.f32.gmra.mxu0 %v8926_v10 }
  0x75   :  { %11441 = vmatmul.mubr.f32.gmra.mxu1 %v8974_v11  ;;  %11363 = vmatprep.mubr.f32.mxu0 %v8927_v12 }
  0x76   :  { %11443 = vmatprep.mubr.f32.mxu1 %v8975_v13 }
  0x78   :  { %11364 = vmatmul.mubr.f32.gmra.mxu0 %v8928_v14 }
  0x79   :  { %11444 = vmatmul.mubr.f32.gmra.mxu1 %v8976_v15  ;;  %11366 = vmatprep.mubr.f32.mxu0 %v8929_v16 }
  0x7a   :  { %11446 = vmatprep.mubr.f32.mxu1 %v8977_v17 }
  0x7c   :  { %11367 = vmatmul.mubr.f32.gmra.mxu0 %v8930_v18 }
  0x7d   :  { %11447 = vmatmul.mubr.f32.gmra.mxu1 %v8978_v19  ;;  %11369 = vmatprep.mubr.f32.mxu0 %v8931_v20 }
  0x7e   :  { %11449 = vmatprep.mubr.f32.mxu1 %v8979_v21 }
  0x80   :  { %11370 = vmatmul.mubr.f32.gmra.mxu0 %v8932_v22 }
  0x81   :  { %11450 = vmatmul.mubr.f32.gmra.mxu1 %v8980_v23  ;;  %11372 = vmatprep.mubr.f32.mxu0 %v8933_v24 }
  0x82   :  { %11452 = vmatprep.mubr.f32.mxu1 %v8981_v25 }
  0x84   :  { %11373 = vmatmul.mubr.f32.gmra.mxu0 %v8934_v26 }
  0x85   :  { %11453 = vmatmul.mubr.f32.gmra.mxu1 %v8982_v27  ;;  %11375 = vmatprep.mubr.f32.mxu0 %v8935_v28 }
  0x86   :  { %11455 = vmatprep.mubr.f32.mxu1 %v8983_v29 }
  0x88   :  { %11376 = vmatmul.mubr.f32.gmra.mxu0 %v8936_v30 }
  0x89   :  { %11456 = vmatmul.mubr.f32.gmra.mxu1 %v8984_v31  ;;  %11378 = vmatprep.mubr.f32.mxu0 %v8937_v32 }
  0x8a   :  { %11458 = vmatprep.mubr.f32.mxu1 %v8985_v33 }
  0x8c   :  { %11379 = vmatmul.mubr.f32.gmra.mxu0 %v8938_v34 }
  0x8d   :  { %11459 = vmatmul.mubr.f32.gmra.mxu1 %v8986_v35  ;;  %11381 = vmatprep.mubr.f32.mxu0 %v8939_v36 }
  0x8e   :  { %11461 = vmatprep.mubr.f32.mxu1 %v8987_v37 }
  0x90   :  { %11382 = vmatmul.mubr.f32.gmra.mxu0 %v8940_v38 }
  0x91   :  { %11462 = vmatmul.mubr.f32.gmra.mxu1 %v8988_v39  ;;  %11384 = vmatprep.mubr.f32.mxu0 %v8941_v40 }
  0x92   :  { %11464 = vmatprep.mubr.f32.mxu1 %v8989_v41 }
  0x94   :  { %11385 = vmatmul.mubr.f32.gmra.mxu0 %v8942_v42 }
  0x95   :  { %11465 = vmatmul.mubr.f32.gmra.mxu1 %v8990_v43  ;;  %11387 = vmatprep.mubr.f32.mxu0 %v8943_v44 }
  0x96   :  { %11467 = vmatprep.mubr.f32.mxu1 %v8991_v45  ;;  %v1292_v45 = vld [vmem:[%s18698_s22 + $0x8] sm:$0xff] }
  0x98   :  { %11388 = vmatmul.mubr.f32.gmra.mxu0 %v8944_v46  ;;  %v1413_v46 = vld [vmem:[%s18698_s22 + $0x88] sm:$0xff] }
  0x99   :  { %11468 = vmatmul.mubr.f32.gmra.mxu1 %v8992_v47  ;;  %11390 = vmatprep.mubr.f32.mxu0 %v8945_v48 }
  0x9a   :  { %11470 = vmatprep.mubr.f32.mxu1 %v8993_v49 }
  0x9c   :  { %11391 = vmatmul.mubr.f32.gmra.mxu0 %v8946_v50 }
  0x9d   :  { %11471 = vmatmul.mubr.f32.gmra.mxu1 %v8994_v51  ;;  %11393 = vmatprep.mubr.f32.mxu0 %v8947_v52 }
  0x9e   :  { %11473 = vmatprep.mubr.f32.mxu1 %v8995_v53 }
  0xa0   :  { %11394 = vmatmul.mubr.f32.gmra.mxu0 %v8948_v54 }
  0xa1   :  { %11474 = vmatmul.mubr.f32.gmra.mxu1 %v8996_v55  ;;  %11396 = vmatprep.mubr.f32.mxu0 %v8949_v56 }
  0xa2   :  { %11476 = vmatprep.mubr.f32.mxu1 %v8997_v57 }
  0xa4   :  { %11397 = vmatmul.mubr.f32.gmra.mxu0 %v8950_v58 }
  0xa5   :  { %11477 = vmatmul.mubr.f32.gmra.mxu1 %v8998_v59  ;;  %11399 = vmatprep.mubr.f32.mxu0 %v8951_v60 }
  0xa6   :  { %11479 = vmatprep.mubr.f32.mxu1 %v8999_v61 }
  0xa8   :  { %11400 = vmatmul.mubr.f32.gmra.mxu0 %v8952_v62 }
  0xa9   :  { %11480 = vmatmul.mubr.f32.gmra.mxu1 %v9000_v63  ;;  %1371 = vmatprep.mubr.f32.mxu0 %v1292_v45 }
  0xaa   :  { %1492 = vmatprep.mubr.f32.mxu1 %v1413_v46 }
  0xec   :  { %v11196_v0 = vpop.f32.mrf.mxu0 }
  0xed   :  { %v11276_v1 = vpop.f32.mrf.mxu1 }
  0xee   :  { %v12991_v2 = vadd.f32 %v11276_v1, %v11196_v0  ;;  %v12993_v3 = vpop.f32.mrf.mxu0 }
  0xef   :  { %18689 = vst [vmem:[#allocation2_spill] sm:$0xff] %v12993_v3  ;;  %v12995_v4 = vpop.f32.mrf.mxu1 }
  0xf0   :  { %18690 = vst [vmem:[#allocation3_spill] sm:$0xff] %v12995_v4  ;;  %v11199_v5 = vpop.f32.mrf.mxu0 }
  0xf1   :  { %v11279_v6 = vpop.f32.mrf.mxu1 }
  0xf2   :  { %v12997_v7 = vadd.f32 %v11279_v6, %v11199_v5  ;;  %v12999_v8 = vpop.f32.mrf.mxu0 }
  0xf3   :  { %18691 = vst [vmem:[#allocation4_spill] sm:$0xff] %v12999_v8  ;;  %v13001_v9 = vpop.f32.mrf.mxu1 }
  0xf4   :  { %18692 = vst [vmem:[#allocation5_spill] sm:$0xff] %v13001_v9  ;;  %v11202_v10 = vpop.f32.mrf.mxu0 }
  0xf5   :  { %v11282_v11 = vpop.f32.mrf.mxu1 }
  0xf6   :  { %v13003_v12 = vadd.f32 %v11282_v11, %v11202_v10  ;;  %v13005_v13 = vpop.f32.mrf.mxu0 }
  0xf7   :  { %18693 = vst [vmem:[#allocation6_spill] sm:$0xff] %v13005_v13  ;;  %v13007_v14 = vpop.f32.mrf.mxu1 }
  0xf8   :  { %18694 = vst [vmem:[#allocation7_spill] sm:$0xff] %v13007_v14  ;;  %v11205_v15 = vpop.f32.mrf.mxu0 }
  0xf9   :  { %v11285_v16 = vpop.f32.mrf.mxu1 }
  0xfa   :  { %v13009_v17 = vadd.f32 %v11285_v16, %v11205_v15  ;;  %v13011_v18 = vpop.f32.mrf.mxu0 }
  0xfb   :  { %v13013_v19 = vpop.f32.mrf.mxu1 }
  0xfc   :  { %v11208_v20 = vpop.f32.mrf.mxu0 }
  0xfd   :  { %v11288_v21 = vpop.f32.mrf.mxu1 }
  0xfe   :  { %v13015_v22 = vadd.f32 %v11288_v21, %v11208_v20  ;;  %v13017_v23 = vpop.f32.mrf.mxu0 }
  0xff   :  { %v13019_v24 = vpop.f32.mrf.mxu1 }
 0x100   :  { %v11211_v25 = vpop.f32.mrf.mxu0 }
 0x101   :  { %v11291_v26 = vpop.f32.mrf.mxu1 }
 0x102   :  { %v13021_v27 = vadd.f32 %v11291_v26, %v11211_v25  ;;  %v13023_v28 = vpop.f32.mrf.mxu0 }
 0x103   :  { %v13025_v29 = vpop.f32.mrf.mxu1 }
 0x104   :  { %v11214_v30 = vpop.f32.mrf.mxu0 }
 0x105   :  { %v11294_v31 = vpop.f32.mrf.mxu1 }
 0x106   :  { %v13027_v32 = vadd.f32 %v11294_v31, %v11214_v30  ;;  %v13029_v33 = vpop.f32.mrf.mxu0 }
 0x107   :  { %v13031_v34 = vpop.f32.mrf.mxu1 }
 0x108   :  { %v11217_v35 = vpop.f32.mrf.mxu0 }
 0x109   :  { %v11297_v36 = vpop.f32.mrf.mxu1 }
 0x10a   :  { %v13033_v37 = vadd.f32 %v11297_v36, %v11217_v35  ;;  %v13035_v38 = vpop.f32.mrf.mxu0 }
 0x10b   :  { %v13037_v39 = vpop.f32.mrf.mxu1 }
 0x10c   :  { %v11220_v40 = vpop.f32.mrf.mxu0 }
 0x10d   :  { %v11300_v41 = vpop.f32.mrf.mxu1 }
 0x10e   :  { %v13039_v42 = vadd.f32 %v11300_v41, %v11220_v40  ;;  %v13041_v43 = vpop.f32.mrf.mxu0 }
 0x10f   :  { %18696 = vst [vmem:[#allocation9_spill] sm:$0xff] %v13041_v43  ;;  %v13043_v44 = vpop.f32.mrf.mxu1 }
 0x110   :  { %18695 = vst [vmem:[#allocation8_spill] sm:$0xff] %v13039_v42  ;;  %18697 = vst [vmem:[#allocation10_spill] sm:$0xff] %v13043_v44  ;;  %v11223_v47 = vpop.f32.mrf.mxu0 }
 0x111   :  { %v11303_v48 = vpop.f32.mrf.mxu1 }
 0x112   :  { %v13051_v49 = vadd.f32 %v11303_v48, %v11223_v47  ;;  %v13053_v50 = vpop.f32.mrf.mxu0 }
 0x113   :  { %18700 = vst [vmem:[#allocation12_spill] sm:$0xff] %v13053_v50  ;;  %v13055_v51 = vpop.f32.mrf.mxu1 }
 0x114   :  { %18699 = vst [vmem:[#allocation11_spill] sm:$0xff] %v13051_v49  ;;  %18701 = vst [vmem:[#allocation13_spill] sm:$0xff] %v13055_v51  ;;  %v11226_v52 = vpop.f32.mrf.mxu0 }
 0x115   :  { %v11306_v53 = vpop.f32.mrf.mxu1 }
 0x116   :  { %v13057_v54 = vadd.f32 %v11306_v53, %v11226_v52  ;;  %v13059_v55 = vpop.f32.mrf.mxu0 }
 0x117   :  { %v13061_v56 = vpop.f32.mrf.mxu1 }
 0x118   :  { %18702 = vst [vmem:[#allocation14_spill] sm:$0xff] %v13057_v54  ;;  %18703 = vst [vmem:[#allocation15_spill] sm:$0xff] %v13061_v56  ;;  %v11229_v57 = vpop.f32.mrf.mxu0 }
 0x119   :  { %v11309_v58 = vpop.f32.mrf.mxu1 }
 0x11a   :  { %v13063_v59 = vadd.f32 %v11309_v58, %v11229_v57  ;;  %v13065_v60 = vpop.f32.mrf.mxu0 }
 0x11b   :  { %v13067_v61 = vpop.f32.mrf.mxu1 }
 0x11c   :  { %v11232_v62 = vpop.f32.mrf.mxu0 }
 0x11d   :  { %v11312_v63 = vpop.f32.mrf.mxu1 }
 0x11e   :  { %v13069_v0 = vadd.f32 %v11312_v63, %v11232_v62  ;;  %v13071_v1 = vpop.f32.mrf.mxu0 }
 0x11f   :  { %v13073_v5 = vpop.f32.mrf.mxu1 }
 0x120   :  { %v11235_v6 = vpop.f32.mrf.mxu0 }
 0x121   :  { %v11315_v10 = vpop.f32.mrf.mxu1 }
 0x122   :  { %v13075_v11 = vadd.f32 %v11315_v10, %v11235_v6  ;;  %v13077_v15 = vpop.f32.mrf.mxu0 }
 0x123   :  { %v13079_v16 = vpop.f32.mrf.mxu1 }
 0x124   :  { %v11238_v20 = vpop.f32.mrf.mxu0 }
 0x125   :  { %v11318_v21 = vpop.f32.mrf.mxu1 }
 0x126   :  { %v13081_v25 = vadd.f32 %v11318_v21, %v11238_v20  ;;  %v13083_v26 = vpop.f32.mrf.mxu0 }
 0x127   :  { %v13085_v30 = vpop.f32.mrf.mxu1 }
 0x128   :  { %v13087_v31 = vpop.f32.mrf.mxu0 }
 0x129   :  { %v13089_v35 = vpop.f32.mrf.mxu1 }
 0x12a   :  { %v13091_v36 = vpop.f32.mrf.mxu0 }
 0x12b   :  { %v13093_v40 = vpop.f32.mrf.mxu1 }
 0x12c   :  { %v11356_v41 = vpop.f32.mrf.mxu0 }
 0x12d   :  { %v11436_v45 = vpop.f32.mrf.mxu1  ;;  %v882_v46 = vadd.f32 %v11356_v41, %v12991_v2 }
 0x12e   :  { %v13096_v47 = vpop.f32.mrf.mxu0 }
 0x12f   :  { %18704 = vst [vmem:[#allocation16_spill] sm:$0xff] %v13096_v47  ;;  %v13098_v48 = vpop.f32.mrf.mxu1  ;;  %v13100_v52 = vadd.f32 %v11436_v45, %v882_v46 }
 0x130   :  { %18705 = vst [vmem:[#allocation17_spill] sm:$0xff] %v13098_v48  ;;  %v11359_v53 = vpop.f32.mrf.mxu0 }
 0x131   :  { %18706 = vst [vmem:[#allocation18_spill] sm:$0xff] %v13100_v52  ;;  %v11439_v57 = vpop.f32.mrf.mxu1  ;;  %v884_v58 = vadd.f32 %v11359_v53, %v12997_v7 }
 0x132   :  { %v13103_v62 = vpop.f32.mrf.mxu0 }
 0x133   :  { %18707 = vst [vmem:[#allocation19_spill] sm:$0xff] %v13103_v62  ;;  %v13105_v63 = vpop.f32.mrf.mxu1  ;;  %v13107_v6 = vadd.f32 %v11439_v57, %v884_v58 }
 0x134   :  { %18708 = vst [vmem:[#allocation20_spill] sm:$0xff] %v13105_v63  ;;  %v11362_v10 = vpop.f32.mrf.mxu0 }
 0x135   :  { %18709 = vst [vmem:[#allocation21_spill] sm:$0xff] %v13107_v6  ;;  %v11442_v20 = vpop.f32.mrf.mxu1  ;;  %v886_v2 = vadd.f32 %v11362_v10, %v13003_v12 }
 0x136   :  { %v13110_v21 = vpop.f32.mrf.mxu0 }
 0x137   :  { %18710 = vst [vmem:[#allocation22_spill] sm:$0xff] %v13110_v21  ;;  %v13112_v41 = vpop.f32.mrf.mxu1  ;;  %v13114_v45 = vadd.f32 %v11442_v20, %v886_v2 }
 0x138   :  { %18711 = vst [vmem:[#allocation23_spill] sm:$0xff] %v13112_v41  ;;  %v11365_v46 = vpop.f32.mrf.mxu0 }
 0x139   :  { %18712 = vst [vmem:[#allocation24_spill] sm:$0xff] %v13114_v45  ;;  %v11445_v52 = vpop.f32.mrf.mxu1  ;;  %v888_v7 = vadd.f32 %v11365_v46, %v13009_v17 }
 0x13a   :  { %v13117_v53 = vpop.f32.mrf.mxu0 }
 0x13b   :  { %18713 = vst [vmem:[#allocation25_spill] sm:$0xff] %v13117_v53  ;;  %v13119_v48 = vpop.f32.mrf.mxu1  ;;  %v13121_v57 = vadd.f32 %v11445_v52, %v888_v7 }
 0x13c   :  { %18714 = vst [vmem:[#allocation26_spill] sm:$0xff] %v13119_v48  ;;  %v13123_v58 = vpop.f32.mrf.mxu0 }
 0x13d   :  { %18715 = vst [vmem:[#allocation27_spill] sm:$0xff] %v13121_v57  ;;  %v13125_v6 = vpop.f32.mrf.mxu1 }
 0x13e   :  { %18716 = vst [vmem:[#allocation28_spill] sm:$0xff] %v13125_v6  ;;  %v13127_v12 = vpop.f32.mrf.mxu0  ;;  %v603_v6 = vadd.f32 %v13089_v35, %v13087_v31  ;;  %v568_v35 = vadd.f32 %v13073_v5, %v13071_v1 }
 0x13f   :  { %v13129_v10 = vpop.f32.mrf.mxu1 }
 0x140   :  { %18717 = vst [vmem:[#allocation29_spill] sm:$0xff] %v13129_v10  ;;  %v13131_v20 = vpop.f32.mrf.mxu0 }
 0x141   :  { %v13133_v2 = vpop.f32.mrf.mxu1 }
 0x142   :  { %v13135_v63 = vpop.f32.mrf.mxu0 }
 0x143   :  { %v13137_v17 = vpop.f32.mrf.mxu1 }
 0x144   :  { %v11374_v46 = vpop.f32.mrf.mxu0 }
 0x145   :  { %v13139_v47 = vpop.f32.mrf.mxu1 }
 0x146   :  { %v782_v52 = vpop.f32.mrf.mxu0 }
 0x147   :  { %v13141_v7 = vpop.f32.mrf.mxu1 }
 0x148   :  { %v11377_v45 = vpop.f32.mrf.mxu0 }
 0x149   :  { %v11457_v4 = vpop.f32.mrf.mxu1 }
 0x14a   :  { %v792_v3 = vpop.f32.mrf.mxu0 }
 0x14b   :  { %v1099_v42 = vpop.f32.mrf.mxu1 }
 0x14c   :  { %v13143_v41 = vpop.f32.mrf.mxu0 }
 0x14d   :  { %18718 = vst [vmem:[#allocation30_spill] sm:$0xff] %v13143_v41  ;;  %v13145_v62 = vpop.f32.mrf.mxu1 }
 0x14e   :  { %18719 = vst [vmem:[#allocation31_spill] sm:$0xff] %v13145_v62  ;;  %v13147_v57 = vpop.f32.mrf.mxu0 }
 0x14f   :  { %18720 = vst [vmem:[#allocation32_spill] sm:$0xff] %v13147_v57  ;;  %v13149_v44 = vpop.f32.mrf.mxu1 }
 0x150   :  { %18721 = vst [vmem:[#allocation33_spill] sm:$0xff] %v13149_v44  ;;  %v13151_v43 = vpop.f32.mrf.mxu0 }
 0x151   :  { %18722 = vst [vmem:[#allocation34_spill] sm:$0xff] %v13151_v43  ;;  %v13153_v9 = vpop.f32.mrf.mxu1 }
 0x152   :  { %18723 = vst [vmem:[#allocation35_spill] sm:$0xff] %v13153_v9  ;;  %v13155_v8 = vpop.f32.mrf.mxu0 }
 0x153   :  { %18724 = vst [vmem:[#allocation36_spill] sm:$0xff] %v13155_v8  ;;  %v13157_v49 = vpop.f32.mrf.mxu1 }
 0x154   :  { %18725 = vst [vmem:[#allocation37_spill] sm:$0xff] %v13157_v49  ;;  %v13159_v48 = vpop.f32.mrf.mxu0 }
 0x155   :  { %18726 = vst [vmem:[#allocation38_spill] sm:$0xff] %v13159_v48  ;;  %v13161_v21 = vpop.f32.mrf.mxu1  ;;  %v896_v48 = vadd.f32 %v11377_v45, %v13033_v37  ;;  %v488_v37 = vadd.f32 %v13019_v24, %v13017_v23  ;;  %v578_v23 = vadd.f32 %v13079_v16, %v13077_v15 }
 0x156   :  { %18727 = vst [vmem:[#allocation39_spill] sm:$0xff] %v13161_v21  ;;  %v13163_v51 = vpop.f32.mrf.mxu0 }
 0x157   :  { %18728 = vst [vmem:[#allocation40_spill] sm:$0xff] %v13163_v51  ;;  %v13165_v41 = vpop.f32.mrf.mxu1 }
 0x158   :  { %18729 = vst [vmem:[#allocation41_spill] sm:$0xff] %v13165_v41  ;;  %v13167_v62 = vpop.f32.mrf.mxu0  ;;  %v518_v41 = vadd.f32 %v13037_v39, %v13035_v38  ;;  %v894_v38 = vadd.f32 %v11374_v46, %v13027_v32  ;;  %v1203_v39 = vadd.f32 %v11457_v4, %v896_v48  ;;  %v13207_v4 = vld [vmem:[%s18665_s6] ss:$0 sm:$0xff] }
 0x159   :  { %v13169_v57 = vpop.f32.mrf.mxu1 }
 0x15a   :  { %18730 = vst [vmem:[#allocation42_spill] sm:$0xff] %v13169_v57  ;;  %v13171_v44 = vpop.f32.mrf.mxu0  ;;  %v895_v10 = vadd.f32 %v792_v3, %v518_v41  ;;  %v508_v3 = vadd.f32 %v13031_v34, %v13029_v33 }
 0x15b   :  { %18731 = vst [vmem:[#allocation43_spill] sm:$0xff] %v13171_v44  ;;  %v13173_v43 = vpop.f32.mrf.mxu1  ;;  %v13184_v44 = vadd.f32 %v13013_v19, %v13011_v18  ;;  %v498_v19 = vadd.f32 %v13025_v29, %v13023_v28 }
 0x15c   :  { %18732 = vst [vmem:[#allocation44_spill] sm:$0xff] %v13173_v43  ;;  %v11392_v9 = vpop.f32.mrf.mxu0  ;;  %v893_v24 = vadd.f32 %v782_v52, %v508_v3  ;;  %v1202_v33 = vadd.f32 %v1099_v42, %v895_v10  ;;  %v1242_v42 = vadd.f32 %v13207_v4, %v1203_v39 }
 0x15d   :  { %v13175_v8 = vpop.f32.mrf.mxu1  ;;  %v906_v1 = vadd.f32 %v11392_v9, %v13069_v0 }
 0x15e   :  { %v842_v49 = vpop.f32.mrf.mxu0 }
 0x15f   :  { %v13177_v50 = vpop.f32.mrf.mxu1  ;;  %v905_v45 = vadd.f32 %v842_v49, %v568_v35  ;;  %v904_v49 = vadd.f32 %v13167_v62, %v13063_v59 }
 0x160   :  { %18733 = vst [vmem:[#allocation45_spill] sm:$0xff] %v13177_v50  ;;  %v11395_v14 = vpop.f32.mrf.mxu0  ;;  %v588_v50 = vadd.f32 %v13085_v30, %v13083_v26  ;;  %v598_v26 = vadd.f32 %v13093_v40, %v13091_v36 }
 0x161   :  { %v11475_v21 = vpop.f32.mrf.mxu1  ;;  %v908_v28 = vadd.f32 %v11395_v14, %v13075_v11  ;;  %v891_v14 = vadd.f32 %v13135_v63, %v498_v19 }
 0x162   :  { %v852_v13 = vpop.f32.mrf.mxu0 }
 0x163   :  { %v1159_v51 = vpop.f32.mrf.mxu1  ;;  %v907_v16 = vadd.f32 %v852_v13, %v578_v23  ;;  %v1215_v5 = vadd.f32 %v11475_v21, %v908_v28  ;;  %v890_v13 = vadd.f32 %v13123_v58, %v13015_v22  ;;  %v889_v21 = vadd.f32 %v13127_v12, %v488_v37  ;;  %v18734_v12 = vld [vmem:[#allocation15_spill] sm:$0xff]  ;;  %v18742_v23 = vld [vmem:[#allocation42_spill] sm:$0xff] }
 0x164   :  { %v11398_v57 = vpop.f32.mrf.mxu0  ;;  %v1198_v22 = vadd.f32 %v13137_v17, %v891_v14  ;;  %v18735_v17 = vld [vmem:[#allocation28_spill] sm:$0xff]  ;;  %v18744_v28 = vld [vmem:[#allocation7_spill] sm:$0xff]  ;;  %v18749_v14 = vld [vmem:[#allocation22_spill] sm:$0xff] }
 0x165   :  { %v11478_v54 = vpop.f32.mrf.mxu1  ;;  %v910_v56 = vadd.f32 %v11398_v57, %v13081_v25  ;;  %v558_v25 = vadd.f32 %v13067_v61, %v13065_v60  ;;  %v892_v60 = vadd.f32 %v13131_v20, %v13021_v27  ;;  %v1201_v61 = vadd.f32 %v13139_v47, %v894_v38 }
 0x166   :  { %v862_v53 = vpop.f32.mrf.mxu0  ;;  %v1254_v10 = vadd.f32 %v13207_v4, %v1215_v5  ;;  %v1197_v46 = vadd.f32 %v18735_v17, %v890_v13  ;;  %v1237_v19 = vadd.f32 %v13207_v4, %v1198_v22  ;;  %v18752_v13 = vld [vmem:[#allocation34_spill] sm:$0xff]  ;;  %v18755_v22 = vld [vmem:[#allocation5_spill] sm:$0xff] }
 0x167   :  { %v1169_v43 = vpop.f32.mrf.mxu1  ;;  %v909_v30 = vadd.f32 %v862_v53, %v588_v50  ;;  %v1217_v29 = vadd.f32 %v11478_v54, %v910_v56  ;;  %v1200_v54 = vadd.f32 %v13141_v7, %v893_v24  ;;  %v1241_v56 = vadd.f32 %v13207_v4, %v1202_v33  ;;  %v18737_v62 = vld [vmem:[#allocation45_spill] sm:$0xff] }
 0x168   :  { %v11401_v41 = vpop.f32.mrf.mxu0  ;;  %v1240_v63 = vadd.f32 %v13207_v4, %v1201_v61  ;;  %v1214_v53 = vadd.f32 %v1159_v51, %v907_v16  ;;  %v1213_v51 = vadd.f32 %v13175_v8, %v906_v1  ;;  %v18736_v8 = vld [vmem:[#allocation43_spill] sm:$0xff]  ;;  %v1212_v37 = vadd.f32 %v18737_v62, %v905_v45  ;;  %v18748_v16 = vld [vmem:[#allocation44_spill] sm:$0xff] }
 0x169   :  { %v11481_v18 = vpop.f32.mrf.mxu1  ;;  %v912_v31 = vadd.f32 %v11401_v41, %v603_v6  ;;  %v1216_v36 = vadd.f32 %v1169_v43, %v909_v30  ;;  %v1256_v27 = vadd.f32 %v13207_v4, %v1217_v29  ;;  %v1199_v43 = vadd.f32 %v13133_v2, %v892_v60  ;;  %v18739_v41 = vld [vmem:[#allocation29_spill] sm:$0xff]  ;;  %v18740_v30 = vld [vmem:[#allocation14_spill] sm:$0xff] }
 0x16a   :  { %v872_v32 = vpop.f32.mrf.mxu0  ;;  %v13229_v6 = vmax.f32 %v1242_v42, 0.0  ;;  %v1239_v57 = vadd.f32 %v13207_v4, %v1200_v54  ;;  %v13239_v58 = vmax.f32 %v1241_v56, 0.0  ;;  %v548_v2 = vadd.f32 %v18734_v12, %v13059_v55  ;;  %v18738_v55 = vld [vmem:[#allocation25_spill] sm:$0xff]  ;;  %v18747_v42 = vld [vmem:[#allocation40_spill] sm:$0xff]  ;;  %v18750_v56 = vld [vmem:[#allocation26_spill] sm:$0xff] }
 0x16b   :  { %v1219_v34 = vadd.f32 %v11481_v18, %v912_v31  ;;  %v911_v50 = vadd.f32 %v872_v32, %v598_v26  ;;  %v1179_v15 = vpop.f32.mrf.mxu1  ;;  %v1255_v9 = vadd.f32 %v13207_v4, %v1216_v36  ;;  %v13247_v20 = vmax.f32 %v1256_v27, 0.0  ;;  %v18741_v31 = vld [vmem:[#allocation38_spill] sm:$0xff]  ;;  %v18758_v12 = vld [vmem:[#allocation27_spill] sm:$0xff] }
 0x16c   :  { %v1238_v52 = vadd.f32 %v13207_v4, %v1199_v43  ;;  %v13255_v7 = vmax.f32 %v1240_v63, 0.0  ;;  %v903_v59 = vadd.f32 %v18736_v8, %v558_v25  ;;  %v1253_v3 = vadd.f32 %v13207_v4, %v1214_v53  ;;  %v18753_v63 = vld [vmem:[#allocation39_spill] sm:$0xff]  ;;  %v18760_v8 = vld [vmem:[#allocation41_spill] sm:$0xff] }
 0x16d   :  { %v1258_v40 = vadd.f32 %v13207_v4, %v1219_v34  ;;  %v1218_v48 = vadd.f32 %v1179_v15, %v911_v50  ;;  %v13262_v38 = vmax.f32 %v1255_v9, 0.0  ;;  %v887_v39 = vadd.f32 %v18738_v55, %v13184_v44  ;;  %v18743_v44 = vld [vmem:[#allocation6_spill] sm:$0xff]  ;;  %v18745_v34 = vld [vmem:[#allocation12_spill] sm:$0xff]  ;;  %v18746_v50 = vld [vmem:[#allocation13_spill] sm:$0xff] }
 0x16e   :  { %v1196_v18 = vadd.f32 %v18739_v41, %v889_v21  ;;  %v13270_v26 = vmax.f32 %v1239_v57, 0.0  ;;  %v902_v25 = vadd.f32 %v18741_v31, %v18740_v30  ;;  %v1211_v24 = vadd.f32 %v18742_v23, %v904_v49  ;;  %v18754_v21 = vld [vmem:[#allocation4_spill] sm:$0xff]  ;;  %v18756_v49 = vld [vmem:[#allocation9_spill] sm:$0xff]  ;;  %v18764_v31 = vld [vmem:[#allocation30_spill] sm:$0xff] }
 0x16f   :  { %v13222_v11 = vmax.f32 %v1258_v40, 0.0  ;;  %v1257_v47 = vadd.f32 %v13207_v4, %v1218_v48  ;;  %v1252_v33 = vadd.f32 %v13207_v4, %v1213_v51  ;;  %v13278_v32 = vmax.f32 %v1254_v10, 0.0  ;;  %v18757_v51 = vld [vmem:[#allocation10_spill] sm:$0xff]  ;;  %v18763_v30 = vld [vmem:[#allocation8_spill] sm:$0xff]  ;;  %v18765_v23 = vld [vmem:[#allocation35_spill] sm:$0xff] }
 0x170   :  { %v468_v29 = vadd.f32 %v18744_v28, %v18743_v44  ;;  %v538_v35 = vadd.f32 %v18746_v50, %v18745_v34  ;;  %v1236_v60 = vadd.f32 %v13207_v4, %v1197_v46  ;;  %v13287_v61 = vmax.f32 %v1238_v52, 0.0  ;;  %v18759_v46 = vld [vmem:[#allocation36_spill] sm:$0xff]  ;;  %v18766_v28 = vld [vmem:[#allocation2_spill] sm:$0xff] }
 0x171   :  { %v13232_v0 = vmax.f32 %v1257_v47, 0.0  ;;  %10208 = vmatprep.subr.mxu0 %v13222_v11  ;;  %10264 = vmatprep.subr.mxu1 %v13222_v11  ;;  %v901_v15 = vadd.f32 %v18747_v42, %v548_v2  ;;  %v1210_v36 = vadd.f32 %v18748_v16, %v903_v59  ;;  %v1251_v40 = vadd.f32 %v13207_v4, %v1212_v37  ;;  %v18751_v47 = vld [vmem:[#allocation11_spill] sm:$0xff]  ;;  %v18768_v50 = vld [vmem:[#allocation24_spill] sm:$0xff]  ;;  %v18770_v16 = vld [vmem:[#allocation37_spill] sm:$0xff] }
 0x172   :  { %10209 = vmatpush3.msra.mxu0 %v13229_v6  ;;  %10265 = vmatpush3.msra.mxu1 %v13229_v6  ;;  %v13294_v48 = vmax.f32 %v1253_v3, 0.0  ;;  %v885_v54 = vadd.f32 %v18749_v14, %v468_v29  ;;  %v1194_v1 = vadd.f32 %v18750_v56, %v887_v39  ;;  %v1235_v5 = vadd.f32 %v13207_v4, %v1196_v18  ;;  %v18761_v3 = vld [vmem:[#allocation19_spill] sm:$0xff]  ;;  %v18769_v42 = vld [vmem:[#allocation32_spill] sm:$0xff] }
 0x173   :  { %10210 = vmatprep.subr.mxu0 %v13232_v0  ;;  %10266 = vmatprep.subr.mxu1 %v13232_v0  ;;  %v13301_v27 = vmax.f32 %v1237_v19, 0.0  ;;  %v900_v43 = vadd.f32 %v18752_v13, %v18751_v47  ;;  %v1209_v45 = vadd.f32 %v18753_v63, %v902_v25  ;;  %v1250_v53 = vadd.f32 %v13207_v4, %v1211_v24  ;;  %v18762_v39 = vld [vmem:[#allocation23_spill] sm:$0xff] }
 0x174   :  { %10211 = vmatpush3.msra.mxu0 %v13239_v58  ;;  %10267 = vmatpush3.msra.mxu1 %v13239_v58  ;;  %v13309_v9 = vmax.f32 %v1252_v33, 0.0  ;;  %v458_v57 = vadd.f32 %v18755_v22, %v18754_v21  ;;  %v528_v10 = vadd.f32 %v18757_v51, %v18756_v49  ;;  %v1234_v2 = vadd.f32 %v13207_v4, %v18758_v12  ;;  %v18767_v29 = vld [vmem:[#allocation3_spill] sm:$0xff]  ;;  %v18774_v21 = vld [vmem:[#allocation21_spill] sm:$0xff] }
 0x175   :  { %10212 = vmatprep.subr.mxu0 %v13247_v20  ;;  %10268 = vmatprep.subr.mxu1 %v13247_v20  ;;  %v13319_v17 = vmax.f32 %v1236_v60, 0.0  ;;  %v899_v52 = vadd.f32 %v18759_v46, %v538_v35  ;;  %v1208_v59 = vadd.f32 %v18760_v8, %v901_v15  ;;  %v1249_v62 = vadd.f32 %v13207_v4, %v1210_v36  ;;  %v18775_v49 = vld [vmem:[#allocation33_spill] sm:$0xff] }
 0x176   :  { %10213 = vmatpush3.msra.mxu0 %v13255_v7  ;;  %10269 = vmatpush3.msra.mxu1 %v13255_v7  ;;  %v13326_v37 = vmax.f32 %v1251_v40, 0.0  ;;  %v883_v55 = vadd.f32 %v18761_v3, %v458_v57  ;;  %v1192_v41 = vadd.f32 %v18762_v39, %v885_v54  ;;  %v1233_v18 = vadd.f32 %v13207_v4, %v1194_v1  ;;  %v18771_v54 = vld [vmem:[#allocation16_spill] sm:$0xff]  ;;  %v18777_v3 = vld [vmem:[#allocation18_spill] sm:$0xff] }
 0x177   :  { %10214 = vmatprep.subr.mxu0 %v13262_v38  ;;  %10270 = vmatprep.subr.mxu1 %v13262_v38  ;;  %v13333_v19 = vmax.f32 %v1235_v5, 0.0  ;;  %v898_v25 = vadd.f32 %v18764_v31, %v18763_v30  ;;  %v1207_v24 = vadd.f32 %v18765_v23, %v900_v43  ;;  %v1248_v33 = vadd.f32 %v13207_v4, %v1209_v45  ;;  %v18772_v1 = vld [vmem:[#allocation20_spill] sm:$0xff]  ;;  %v18773_v43 = vld [vmem:[#allocation31_spill] sm:$0xff] }
 0x178   :  { %10215 = vmatpush3.msra.mxu0 %v13270_v26  ;;  %10271 = vmatpush3.msra.mxu1 %v13270_v26  ;;  %v13341_v44 = vmax.f32 %v1250_v53, 0.0  ;;  %v448_v34 = vadd.f32 %v18767_v29, %v18766_v28  ;;  %v1232_v35 = vadd.f32 %v13207_v4, %v18768_v50  ;;  %v13349_v60 = vmax.f32 %v1234_v2, 0.0  ;;  %v18776_v2 = vld [vmem:[#allocation17_spill] sm:$0xff]  ;;  %v1412_v28 = vld [vmem:[%s18698_s22 + $0x80] sm:$0xff] }
 0x179   :  { %10216 = vmatprep.subr.mxu0 %v13278_v32  ;;  %10272 = vmatprep.subr.mxu1 %v13278_v32  ;;  %v897_v15 = vadd.f32 %v18769_v42, %v528_v10  ;;  %v1206_v36 = vadd.f32 %v18770_v16, %v899_v52  ;;  %v1247_v40 = vadd.f32 %v13207_v4, %v1208_v59  ;;  %v13356_v14 = vmax.f32 %v1249_v62, 0.0  ;;  %v1294_v29 = vld [vmem:[%s18698_s22 + $0x18] sm:$0xff]  ;;  %v1296_v42 = vld [vmem:[%s18698_s22 + $0x28] sm:$0xff] }
 0x17a   :  { %10217 = vmatpush3.msra.mxu0 %v13287_v61  ;;  %10273 = vmatpush3.msra.mxu1 %v13287_v61  ;;  %v881_v56 = vadd.f32 %v18771_v54, %v448_v34  ;;  %v1190_v5 = vadd.f32 %v18772_v1, %v883_v55  ;;  %v1231_v47 = vadd.f32 %v13207_v4, %v1192_v41  ;;  %v13363_v13 = vmax.f32 %v1233_v18, 0.0  ;;  %v1293_v34 = vld [vmem:[%s18698_s22 + $0x10] sm:$0xff]  ;;  %v1415_v50 = vld [vmem:[%s18698_s22 + $0x98] sm:$0xff]  ;;  %v1417_v16 = vld [vmem:[%s18698_s22 + $0xa8] sm:$0xff] }
 0x17b   :  { %10218 = vmatprep.subr.mxu0 %v13294_v48  ;;  %10274 = vmatprep.subr.mxu1 %v13294_v48  ;;  %v1205_v63 = vadd.f32 %v18773_v43, %v898_v25  ;;  %v1246_v45 = vadd.f32 %v13207_v4, %v1207_v24  ;;  %v13369_v53 = vmax.f32 %v1248_v33, 0.0  ;;  %v1230_v22 = vadd.f32 %v13207_v4, %v18774_v21  ;;  %v1291_v33 = vld [vmem:[%s18698_s22] sm:$0xff]  ;;  %v1297_v54 = vld [vmem:[%s18698_s22 + $0x30] sm:$0xff]  ;;  %v1421_v43 = vld [vmem:[%s18698_s22 + $0xc8] sm:$0xff] }
 0x17c   :  { %10219 = vmatpush3.msra.mxu0 %v13301_v27  ;;  %10275 = vmatpush3.msra.mxu1 %v13301_v27  ;;  %v13375_v57 = vmax.f32 %v1232_v35, 0.0  ;;  %v1204_v51 = vadd.f32 %v18775_v49, %v897_v15  ;;  %v1245_v10 = vadd.f32 %v13207_v4, %v1206_v36  ;;  %v13381_v12 = vmax.f32 %v1247_v40, 0.0  ;;  %v1414_v35 = vld [vmem:[%s18698_s22 + $0x90] sm:$0xff]  ;;  %v1295_v15 = vld [vmem:[%s18698_s22 + $0x20] sm:$0xff]  ;;  %v1298_v40 = vld [vmem:[%s18698_s22 + $0x38] sm:$0xff] }
 0x17d   :  { %10220 = vmatprep.subr.mxu0 %v13309_v9  ;;  %10276 = vmatprep.subr.mxu1 %v13309_v9  ;;  %v1188_v46 = vadd.f32 %v18776_v2, %v881_v56  ;;  %v1229_v52 = vadd.f32 %v13207_v4, %v1190_v5  ;;  %v13387_v8 = vmax.f32 %v1231_v47, 0.0  ;;  %v1244_v59 = vadd.f32 %v13207_v4, %v1205_v63  ;;  %v1416_v36 = vld [vmem:[%s18698_s22 + $0xa0] sm:$0xff]  ;;  %v1419_v56 = vld [vmem:[%s18698_s22 + $0xb8] sm:$0xff]  ;;  %v1418_v1 = vld [vmem:[%s18698_s22 + $0xb0] sm:$0xff] }
 0x17e   :  { %10221 = vmatpush3.msra.mxu0 %v13319_v17  ;;  %10277 = vmatpush3.msra.mxu1 %v13319_v17  ;;  %v13392_v62 = vmax.f32 %v1246_v45, 0.0  ;;  %v1228_v55 = vadd.f32 %v13207_v4, %v18777_v3  ;;  %v13398_v39 = vmax.f32 %v1230_v22, 0.0  ;;  %v1243_v41 = vadd.f32 %v13207_v4, %v1204_v51  ;;  %v1300_v5 = vld [vmem:[%s18698_s22 + $0x48] sm:$0xff]  ;;  %v1299_v47 = vld [vmem:[%s18698_s22 + $0x40] sm:$0xff]  ;;  %v1302_v45 = vld [vmem:[%s18698_s22 + $0x58] sm:$0xff] }
 0x17f   :  { %10222 = vmatprep.subr.mxu0 %v13326_v37  ;;  %10278 = vmatprep.subr.mxu1 %v13326_v37  ;;  %v13403_v18 = vmax.f32 %v1245_v10, 0.0  ;;  %v1227_v30 = vadd.f32 %v13207_v4, %v1188_v46  ;;  %v13408_v31 = vmax.f32 %v1229_v52, 0.0  ;;  %v13412_v25 = vmax.f32 %v1244_v59, 0.0  ;;  %v1420_v63 = vld [vmem:[%s18698_s22 + $0xc0] sm:$0xff]  ;;  %v1301_v21 = vld [vmem:[%s18698_s22 + $0x50] sm:$0xff]  ;;  %v1423_v22 = vld [vmem:[%s18698_s22 + $0xd8] sm:$0xff] }
 0x180   :  { %10223 = vmatpush3.msra.mxu0 %v13333_v19  ;;  %10279 = vmatpush3.msra.mxu1 %v13333_v19  ;;  %v13416_v23 = vmax.f32 %v1228_v55, 0.0  ;;  %v13420_v24 = vmax.f32 %v1243_v41, 0.0  ;;  %v1422_v49 = vld [vmem:[%s18698_s22 + $0xd0] sm:$0xff]  ;;  %v1304_v51 = vld [vmem:[%s18698_s22 + $0x68] sm:$0xff]  ;;  %v1303_v10 = vld [vmem:[%s18698_s22 + $0x60] sm:$0xff] }
 0x181   :  { %10224 = vmatprep.subr.mxu0 %v13341_v44  ;;  %10280 = vmatprep.subr.mxu1 %v13341_v44  ;;  %v13424_v4 = vmax.f32 %v1227_v30, 0.0  ;;  %v1425_v2 = vld [vmem:[%s18698_s22 + $0xe8] sm:$0xff]  ;;  %v1424_v46 = vld [vmem:[%s18698_s22 + $0xe0] sm:$0xff]  ;;  %v1306_v52 = vld [vmem:[%s18698_s22 + $0x78] sm:$0xff] }
 0x182   :  { %10225 = vmatpush3.msra.mxu0 %v13349_v60  ;;  %10281 = vmatpush3.msra.mxu1 %v13349_v60  ;;  %v1305_v59 = vld [vmem:[%s18698_s22 + $0x70] sm:$0xff]  ;;  %v1427_v3 = vld [vmem:[%s18698_s22 + $0xf8] sm:$0xff]  ;;  %v1542_v41 = vld [vmem:[%s18698_s22 + $0x108] sm:$0xff] }
 0x183   :  { %10226 = vmatprep.subr.mxu0 %v13356_v14  ;;  %10282 = vmatprep.subr.mxu1 %v13356_v14  ;;  %v1426_v55 = vld [vmem:[%s18698_s22 + $0xf0] sm:$0xff]  ;;  %v1541_v30 = vld [vmem:[%s18698_s22 + $0x100] sm:$0xff] }
 0x184   :  { %10227 = vmatpush3.msra.mxu0 %v13363_v13  ;;  %10283 = vmatpush3.msra.mxu1 %v13363_v13 }
 0x185   :  { %10228 = vmatprep.subr.mxu0 %v13369_v53  ;;  %10284 = vmatprep.subr.mxu1 %v13369_v53 }
 0x186   :  { %10229 = vmatpush3.msra.mxu0 %v13375_v57  ;;  %10285 = vmatpush3.msra.mxu1 %v13375_v57 }
 0x187   :  { %10230 = vmatprep.subr.mxu0 %v13381_v12  ;;  %10286 = vmatprep.subr.mxu1 %v13381_v12 }
 0x188   :  { %10231 = vmatpush3.msra.mxu0 %v13387_v8  ;;  %10287 = vmatpush3.msra.mxu1 %v13387_v8 }
 0x189   :  { %10232 = vmatprep.subr.mxu0 %v13392_v62  ;;  %10288 = vmatprep.subr.mxu1 %v13392_v62 }
 0x18a   :  { %10233 = vmatpush3.msra.mxu0 %v13398_v39  ;;  %10289 = vmatpush3.msra.mxu1 %v13398_v39 }
 0x18b   :  { %10234 = vmatprep.subr.mxu0 %v13403_v18  ;;  %10290 = vmatprep.subr.mxu1 %v13403_v18 }
 0x18c   :  { %10235 = vmatpush3.msra.mxu0 %v13408_v31  ;;  %10291 = vmatpush3.msra.mxu1 %v13408_v31 }
 0x18d   :  { %10236 = vmatprep.subr.mxu0 %v13412_v25  ;;  %10292 = vmatprep.subr.mxu1 %v13412_v25 }
 0x18e   :  { %10237 = vmatpush3.msra.mxu0 %v13416_v23  ;;  %10293 = vmatpush3.msra.mxu1 %v13416_v23 }
 0x18f   :  { %10238 = vmatprep.subr.mxu0 %v13420_v24  ;;  %10294 = vmatprep.subr.mxu1 %v13420_v24 }
 0x190   :  { %10239 = vmatpush3.msra.mxu0 %v13424_v4  ;;  %10295 = vmatpush3.msra.mxu1 %v13424_v4 }
 0x191   :  { %1372 = vmatmul.mubr.f32.vlgmr.msra.gmra.mxu0 %v1291_v33  ;;  %10320 = vmatprep.subr.mxu0 %v13222_v11  ;;  %v1671_v33 = vld [vmem:[%s18698_s22 + $0x188] sm:$0xff] }
 0x192   :  { %10376 = vmatprep.subr.mxu1 %v13222_v11  ;;  %1493 = vmatmul.mubr.f32.vlgmr.msra.gmra.mxu1 %v1412_v28  ;;  %v1670_v28 = vld [vmem:[%s18698_s22 + $0x180] sm:$0xff] }
 0x193   :  { %10321 = vmatpush3.msra.mxu0 %v13229_v6  ;;  %10377 = vmatpush3.msra.mxu1 %v13229_v6 }
 0x194   :  { %10322 = vmatprep.subr.mxu0 %v13232_v0  ;;  %10378 = vmatprep.subr.mxu1 %v13232_v0 }
 0x195   :  { %1376 = vmatprep.mubr.f32.mxu0 %v1294_v29  ;;  %10323 = vmatpush3.msra.mxu0 %v13239_v58  ;;  %v1544_v29 = vld [vmem:[%s18698_s22 + $0x118] sm:$0xff] }
 0x196   :  { %10379 = vmatpush3.msra.mxu1 %v13239_v58  ;;  %1377 = vmatmul.mubr.f32.gmra.mxu0 %v1293_v34  ;;  %v1543_v34 = vld [vmem:[%s18698_s22 + $0x110] sm:$0xff] }
 0x197   :  { %1497 = vmatprep.mubr.f32.mxu1 %v1415_v50  ;;  %10324 = vmatprep.subr.mxu0 %v13247_v20  ;;  %v1673_v50 = vld [vmem:[%s18698_s22 + $0x198] sm:$0xff] }
 0x198   :  { %10380 = vmatprep.subr.mxu1 %v13247_v20  ;;  %1498 = vmatmul.mubr.f32.gmra.mxu1 %v1414_v35  ;;  %v1672_v35 = vld [vmem:[%s18698_s22 + $0x190] sm:$0xff] }
 0x199   :  { %10325 = vmatpush3.msra.mxu0 %v13255_v7  ;;  %10381 = vmatpush3.msra.mxu1 %v13255_v7 }
 0x19a   :  { %10326 = vmatprep.subr.mxu0 %v13262_v38  ;;  %10382 = vmatprep.subr.mxu1 %v13262_v38 }
 0x19b   :  { %1381 = vmatprep.mubr.f32.mxu0 %v1296_v42  ;;  %10327 = vmatpush3.msra.mxu0 %v13270_v26  ;;  %v1546_v42 = vld [vmem:[%s18698_s22 + $0x128] sm:$0xff] }
 0x19c   :  { %10383 = vmatpush3.msra.mxu1 %v13270_v26  ;;  %1382 = vmatmul.mubr.f32.gmra.mxu0 %v1295_v15  ;;  %v1545_v15 = vld [vmem:[%s18698_s22 + $0x120] sm:$0xff] }
 0x19d   :  { %1502 = vmatprep.mubr.f32.mxu1 %v1417_v16  ;;  %10328 = vmatprep.subr.mxu0 %v13278_v32  ;;  %v1675_v16 = vld [vmem:[%s18698_s22 + $0x1a8] sm:$0xff] }
 0x19e   :  { %10384 = vmatprep.subr.mxu1 %v13278_v32  ;;  %1503 = vmatmul.mubr.f32.gmra.mxu1 %v1416_v36  ;;  %v1674_v36 = vld [vmem:[%s18698_s22 + $0x1a0] sm:$0xff] }
 0x19f   :  { %10329 = vmatpush3.msra.mxu0 %v13287_v61  ;;  %10385 = vmatpush3.msra.mxu1 %v13287_v61 }
 0x1a0   :  { %10330 = vmatprep.subr.mxu0 %v13294_v48  ;;  %10386 = vmatprep.subr.mxu1 %v13294_v48 }
 0x1a1   :  { %1386 = vmatprep.mubr.f32.mxu0 %v1298_v40  ;;  %10331 = vmatpush3.msra.mxu0 %v13301_v27  ;;  %v1548_v40 = vld [vmem:[%s18698_s22 + $0x138] sm:$0xff] }
 0x1a2   :  { %10387 = vmatpush3.msra.mxu1 %v13301_v27  ;;  %1387 = vmatmul.mubr.f32.gmra.mxu0 %v1297_v54  ;;  %v1547_v54 = vld [vmem:[%s18698_s22 + $0x130] sm:$0xff] }
 0x1a3   :  { %1507 = vmatprep.mubr.f32.mxu1 %v1419_v56  ;;  %10332 = vmatprep.subr.mxu0 %v13309_v9  ;;  %v1677_v56 = vld [vmem:[%s18698_s22 + $0x1b8] sm:$0xff] }
 0x1a4   :  { %10388 = vmatprep.subr.mxu1 %v13309_v9  ;;  %1508 = vmatmul.mubr.f32.gmra.mxu1 %v1418_v1  ;;  %v1676_v1 = vld [vmem:[%s18698_s22 + $0x1b0] sm:$0xff] }
 0x1a5   :  { %10333 = vmatpush3.msra.mxu0 %v13319_v17  ;;  %10389 = vmatpush3.msra.mxu1 %v13319_v17 }
 0x1a6   :  { %10334 = vmatprep.subr.mxu0 %v13326_v37  ;;  %10390 = vmatprep.subr.mxu1 %v13326_v37 }
 0x1a7   :  { %1391 = vmatprep.mubr.f32.mxu0 %v1300_v5  ;;  %10335 = vmatpush3.msra.mxu0 %v13333_v19  ;;  %v1550_v5 = vld [vmem:[%s18698_s22 + $0x148] sm:$0xff] }
 0x1a8   :  { %10391 = vmatpush3.msra.mxu1 %v13333_v19  ;;  %1392 = vmatmul.mubr.f32.gmra.mxu0 %v1299_v47  ;;  %v1549_v47 = vld [vmem:[%s18698_s22 + $0x140] sm:$0xff] }
 0x1a9   :  { %1512 = vmatprep.mubr.f32.mxu1 %v1421_v43  ;;  %10336 = vmatprep.subr.mxu0 %v13341_v44  ;;  %v1679_v43 = vld [vmem:[%s18698_s22 + $0x1c8] sm:$0xff] }
 0x1aa   :  { %10392 = vmatprep.subr.mxu1 %v13341_v44  ;;  %1513 = vmatmul.mubr.f32.gmra.mxu1 %v1420_v63  ;;  %v1678_v63 = vld [vmem:[%s18698_s22 + $0x1c0] sm:$0xff] }
 0x1ab   :  { %10337 = vmatpush3.msra.mxu0 %v13349_v60  ;;  %10393 = vmatpush3.msra.mxu1 %v13349_v60 }
 0x1ac   :  { %10338 = vmatprep.subr.mxu0 %v13356_v14  ;;  %10394 = vmatprep.subr.mxu1 %v13356_v14 }
 0x1ad   :  { %1396 = vmatprep.mubr.f32.mxu0 %v1302_v45  ;;  %10339 = vmatpush3.msra.mxu0 %v13363_v13  ;;  %v1552_v45 = vld [vmem:[%s18698_s22 + $0x158] sm:$0xff] }
 0x1ae   :  { %10395 = vmatpush3.msra.mxu1 %v13363_v13  ;;  %1397 = vmatmul.mubr.f32.gmra.mxu0 %v1301_v21  ;;  %v1551_v21 = vld [vmem:[%s18698_s22 + $0x150] sm:$0xff] }
 0x1af   :  { %1517 = vmatprep.mubr.f32.mxu1 %v1423_v22  ;;  %10340 = vmatprep.subr.mxu0 %v13369_v53  ;;  %v1681_v22 = vld [vmem:[%s18698_s22 + $0x1d8] sm:$0xff] }
 0x1b0   :  { %10396 = vmatprep.subr.mxu1 %v13369_v53  ;;  %1518 = vmatmul.mubr.f32.gmra.mxu1 %v1422_v49  ;;  %v1680_v49 = vld [vmem:[%s18698_s22 + $0x1d0] sm:$0xff] }
 0x1b1   :  { %10341 = vmatpush3.msra.mxu0 %v13375_v57  ;;  %10397 = vmatpush3.msra.mxu1 %v13375_v57 }
 0x1b2   :  { %10342 = vmatprep.subr.mxu0 %v13381_v12  ;;  %10398 = vmatprep.subr.mxu1 %v13381_v12 }
 0x1b3   :  { %1401 = vmatprep.mubr.f32.mxu0 %v1304_v51  ;;  %10343 = vmatpush3.msra.mxu0 %v13387_v8  ;;  %v1554_v51 = vld [vmem:[%s18698_s22 + $0x168] sm:$0xff] }
 0x1b4   :  { %10399 = vmatpush3.msra.mxu1 %v13387_v8  ;;  %1402 = vmatmul.mubr.f32.gmra.mxu0 %v1303_v10  ;;  %v1553_v10 = vld [vmem:[%s18698_s22 + $0x160] sm:$0xff] }
 0x1b5   :  { %1522 = vmatprep.mubr.f32.mxu1 %v1425_v2  ;;  %10344 = vmatprep.subr.mxu0 %v13392_v62  ;;  %v1683_v2 = vld [vmem:[%s18698_s22 + $0x1e8] sm:$0xff] }
 0x1b6   :  { %10400 = vmatprep.subr.mxu1 %v13392_v62  ;;  %1523 = vmatmul.mubr.f32.gmra.mxu1 %v1424_v46  ;;  %v1682_v46 = vld [vmem:[%s18698_s22 + $0x1e0] sm:$0xff] }
 0x1b7   :  { %10345 = vmatpush3.msra.mxu0 %v13398_v39  ;;  %10401 = vmatpush3.msra.mxu1 %v13398_v39 }
 0x1b8   :  { %10346 = vmatprep.subr.mxu0 %v13403_v18  ;;  %10402 = vmatprep.subr.mxu1 %v13403_v18 }
 0x1b9   :  { %1406 = vmatprep.mubr.f32.mxu0 %v1306_v52  ;;  %10347 = vmatpush3.msra.mxu0 %v13408_v31  ;;  %v1556_v52 = vld [vmem:[%s18698_s22 + $0x178] sm:$0xff] }
 0x1ba   :  { %10403 = vmatpush3.msra.mxu1 %v13408_v31  ;;  %1407 = vmatmul.mubr.f32.gmra.mxu0 %v1305_v59  ;;  %v1555_v59 = vld [vmem:[%s18698_s22 + $0x170] sm:$0xff] }
 0x1bb   :  { %1527 = vmatprep.mubr.f32.mxu1 %v1427_v3  ;;  %10348 = vmatprep.subr.mxu0 %v13412_v25  ;;  %v1685_v3 = vld [vmem:[%s18698_s22 + $0x1f8] sm:$0xff] }
 0x1bc   :  { %10404 = vmatprep.subr.mxu1 %v13412_v25  ;;  %1528 = vmatmul.mubr.f32.gmra.mxu1 %v1426_v55  ;;  %v1684_v55 = vld [vmem:[%s18698_s22 + $0x1f0] sm:$0xff] }
 0x1bd   :  { %10349 = vmatpush3.msra.mxu0 %v13416_v23  ;;  %10405 = vmatpush3.msra.mxu1 %v13416_v23 }
 0x1be   :  { %10350 = vmatprep.subr.mxu0 %v13420_v24  ;;  %10406 = vmatprep.subr.mxu1 %v13420_v24 }
 0x1bf   :  { %10351 = vmatpush3.msra.mxu0 %v13424_v4  ;;  %1621 = vmatprep.mubr.f32.mxu0 %v1542_v41  ;;  %v1800_v41 = vld [vmem:[%s18698_s22 + $0x208] sm:$0xff] }
 0x1c0   :  { %10407 = vmatpush3.msra.mxu1 %v13424_v4  ;;  %1622 = vmatmul.mubr.f32.vlgmr.msra.gmra.mxu0 %v1541_v30  ;;  %v1799_v30 = vld [vmem:[%s18698_s22 + $0x200] sm:$0xff] }
 0x1c1   :  { %1750 = vmatprep.mubr.f32.mxu1 %v1671_v33  ;;  %10432 = vmatprep.subr.mxu0 %v13222_v11  ;;  %v1929_v33 = vld [vmem:[%s18698_s22 + $0x288] sm:$0xff] }
 0x1c2   :  { %10488 = vmatprep.subr.mxu1 %v13222_v11  ;;  %1751 = vmatmul.mubr.f32.vlgmr.msra.gmra.mxu1 %v1670_v28  ;;  %v1928_v28 = vld [vmem:[%s18698_s22 + $0x280] sm:$0xff] }
 0x1c3   :  { %10433 = vmatpush3.msra.mxu0 %v13229_v6  ;;  %10489 = vmatpush3.msra.mxu1 %v13229_v6 }
 0x1c4   :  { %10434 = vmatprep.subr.mxu0 %v13232_v0  ;;  %10490 = vmatprep.subr.mxu1 %v13232_v0 }
 0x1c5   :  { %1626 = vmatprep.mubr.f32.mxu0 %v1544_v29  ;;  %10435 = vmatpush3.msra.mxu0 %v13239_v58  ;;  %v1802_v29 = vld [vmem:[%s18698_s22 + $0x218] sm:$0xff] }
 0x1c6   :  { %10491 = vmatpush3.msra.mxu1 %v13239_v58  ;;  %1627 = vmatmul.mubr.f32.gmra.mxu0 %v1543_v34  ;;  %v1801_v34 = vld [vmem:[%s18698_s22 + $0x210] sm:$0xff] }
 0x1c7   :  { %1755 = vmatprep.mubr.f32.mxu1 %v1673_v50  ;;  %10436 = vmatprep.subr.mxu0 %v13247_v20  ;;  %v1931_v50 = vld [vmem:[%s18698_s22 + $0x298] sm:$0xff] }
 0x1c8   :  { %10492 = vmatprep.subr.mxu1 %v13247_v20  ;;  %1756 = vmatmul.mubr.f32.gmra.mxu1 %v1672_v35  ;;  %v1930_v35 = vld [vmem:[%s18698_s22 + $0x290] sm:$0xff] }
 0x1c9   :  { %10437 = vmatpush3.msra.mxu0 %v13255_v7  ;;  %10493 = vmatpush3.msra.mxu1 %v13255_v7 }
 0x1ca   :  { %10438 = vmatprep.subr.mxu0 %v13262_v38  ;;  %10494 = vmatprep.subr.mxu1 %v13262_v38 }
 0x1cb   :  { %1631 = vmatprep.mubr.f32.mxu0 %v1546_v42  ;;  %10439 = vmatpush3.msra.mxu0 %v13270_v26  ;;  %v1804_v42 = vld [vmem:[%s18698_s22 + $0x228] sm:$0xff] }
 0x1cc   :  { %10495 = vmatpush3.msra.mxu1 %v13270_v26  ;;  %1632 = vmatmul.mubr.f32.gmra.mxu0 %v1545_v15  ;;  %v1803_v15 = vld [vmem:[%s18698_s22 + $0x220] sm:$0xff] }
 0x1cd   :  { %1760 = vmatprep.mubr.f32.mxu1 %v1675_v16  ;;  %10440 = vmatprep.subr.mxu0 %v13278_v32  ;;  %v1933_v16 = vld [vmem:[%s18698_s22 + $0x2a8] sm:$0xff] }
 0x1ce   :  { %10496 = vmatprep.subr.mxu1 %v13278_v32  ;;  %1761 = vmatmul.mubr.f32.gmra.mxu1 %v1674_v36  ;;  %v1932_v36 = vld [vmem:[%s18698_s22 + $0x2a0] sm:$0xff] }
 0x1cf   :  { %10441 = vmatpush3.msra.mxu0 %v13287_v61  ;;  %10497 = vmatpush3.msra.mxu1 %v13287_v61 }
 0x1d0   :  { %10442 = vmatprep.subr.mxu0 %v13294_v48  ;;  %10498 = vmatprep.subr.mxu1 %v13294_v48 }
 0x1d1   :  { %1636 = vmatprep.mubr.f32.mxu0 %v1548_v40  ;;  %10443 = vmatpush3.msra.mxu0 %v13301_v27  ;;  %v1806_v40 = vld [vmem:[%s18698_s22 + $0x238] sm:$0xff] }
 0x1d2   :  { %10499 = vmatpush3.msra.mxu1 %v13301_v27  ;;  %1637 = vmatmul.mubr.f32.gmra.mxu0 %v1547_v54  ;;  %v1805_v54 = vld [vmem:[%s18698_s22 + $0x230] sm:$0xff] }
 0x1d3   :  { %1765 = vmatprep.mubr.f32.mxu1 %v1677_v56  ;;  %10444 = vmatprep.subr.mxu0 %v13309_v9  ;;  %v1935_v56 = vld [vmem:[%s18698_s22 + $0x2b8] sm:$0xff] }
 0x1d4   :  { %10500 = vmatprep.subr.mxu1 %v13309_v9  ;;  %1766 = vmatmul.mubr.f32.gmra.mxu1 %v1676_v1  ;;  %v1934_v1 = vld [vmem:[%s18698_s22 + $0x2b0] sm:$0xff] }
 0x1d5   :  { %10445 = vmatpush3.msra.mxu0 %v13319_v17  ;;  %10501 = vmatpush3.msra.mxu1 %v13319_v17 }
 0x1d6   :  { %10446 = vmatprep.subr.mxu0 %v13326_v37  ;;  %10502 = vmatprep.subr.mxu1 %v13326_v37 }
 0x1d7   :  { %1641 = vmatprep.mubr.f32.mxu0 %v1550_v5  ;;  %10447 = vmatpush3.msra.mxu0 %v13333_v19  ;;  %v1808_v5 = vld [vmem:[%s18698_s22 + $0x248] sm:$0xff] }
 0x1d8   :  { %10503 = vmatpush3.msra.mxu1 %v13333_v19  ;;  %1642 = vmatmul.mubr.f32.gmra.mxu0 %v1549_v47  ;;  %v1807_v47 = vld [vmem:[%s18698_s22 + $0x240] sm:$0xff] }
 0x1d9   :  { %1770 = vmatprep.mubr.f32.mxu1 %v1679_v43  ;;  %10448 = vmatprep.subr.mxu0 %v13341_v44  ;;  %v1937_v43 = vld [vmem:[%s18698_s22 + $0x2c8] sm:$0xff] }
 0x1da   :  { %10504 = vmatprep.subr.mxu1 %v13341_v44  ;;  %1771 = vmatmul.mubr.f32.gmra.mxu1 %v1678_v63  ;;  %v1936_v63 = vld [vmem:[%s18698_s22 + $0x2c0] sm:$0xff] }
 0x1db   :  { %10449 = vmatpush3.msra.mxu0 %v13349_v60  ;;  %10505 = vmatpush3.msra.mxu1 %v13349_v60 }
 0x1dc   :  { %10450 = vmatprep.subr.mxu0 %v13356_v14  ;;  %10506 = vmatprep.subr.mxu1 %v13356_v14 }
 0x1dd   :  { %1646 = vmatprep.mubr.f32.mxu0 %v1552_v45  ;;  %10451 = vmatpush3.msra.mxu0 %v13363_v13  ;;  %v1810_v45 = vld [vmem:[%s18698_s22 + $0x258] sm:$0xff] }
 0x1de   :  { %10507 = vmatpush3.msra.mxu1 %v13363_v13  ;;  %1647 = vmatmul.mubr.f32.gmra.mxu0 %v1551_v21  ;;  %v1809_v21 = vld [vmem:[%s18698_s22 + $0x250] sm:$0xff] }
 0x1df   :  { %1775 = vmatprep.mubr.f32.mxu1 %v1681_v22  ;;  %10452 = vmatprep.subr.mxu0 %v13369_v53  ;;  %v1939_v22 = vld [vmem:[%s18698_s22 + $0x2d8] sm:$0xff] }
 0x1e0   :  { %10508 = vmatprep.subr.mxu1 %v13369_v53  ;;  %1776 = vmatmul.mubr.f32.gmra.mxu1 %v1680_v49  ;;  %v1938_v49 = vld [vmem:[%s18698_s22 + $0x2d0] sm:$0xff] }
 0x1e1   :  { %10453 = vmatpush3.msra.mxu0 %v13375_v57  ;;  %10509 = vmatpush3.msra.mxu1 %v13375_v57 }
 0x1e2   :  { %10454 = vmatprep.subr.mxu0 %v13381_v12  ;;  %10510 = vmatprep.subr.mxu1 %v13381_v12 }
 0x1e3   :  { %1651 = vmatprep.mubr.f32.mxu0 %v1554_v51  ;;  %10455 = vmatpush3.msra.mxu0 %v13387_v8  ;;  %v1812_v51 = vld [vmem:[%s18698_s22 + $0x268] sm:$0xff] }
 0x1e4   :  { %10511 = vmatpush3.msra.mxu1 %v13387_v8  ;;  %1652 = vmatmul.mubr.f32.gmra.mxu0 %v1553_v10  ;;  %v1811_v10 = vld [vmem:[%s18698_s22 + $0x260] sm:$0xff] }
 0x1e5   :  { %1780 = vmatprep.mubr.f32.mxu1 %v1683_v2  ;;  %10456 = vmatprep.subr.mxu0 %v13392_v62  ;;  %v1941_v2 = vld [vmem:[%s18698_s22 + $0x2e8] sm:$0xff] }
 0x1e6   :  { %10512 = vmatprep.subr.mxu1 %v13392_v62  ;;  %1781 = vmatmul.mubr.f32.gmra.mxu1 %v1682_v46  ;;  %v1940_v46 = vld [vmem:[%s18698_s22 + $0x2e0] sm:$0xff] }
 0x1e7   :  { %10457 = vmatpush3.msra.mxu0 %v13398_v39  ;;  %10513 = vmatpush3.msra.mxu1 %v13398_v39 }
 0x1e8   :  { %10458 = vmatprep.subr.mxu0 %v13403_v18  ;;  %10514 = vmatprep.subr.mxu1 %v13403_v18 }
 0x1e9   :  { %1656 = vmatprep.mubr.f32.mxu0 %v1556_v52  ;;  %10459 = vmatpush3.msra.mxu0 %v13408_v31  ;;  %v1814_v52 = vld [vmem:[%s18698_s22 + $0x278] sm:$0xff] }
 0x1ea   :  { %10515 = vmatpush3.msra.mxu1 %v13408_v31  ;;  %1657 = vmatmul.mubr.f32.gmra.mxu0 %v1555_v59  ;;  %v1813_v59 = vld [vmem:[%s18698_s22 + $0x270] sm:$0xff] }
 0x1eb   :  { %1785 = vmatprep.mubr.f32.mxu1 %v1685_v3  ;;  %10460 = vmatprep.subr.mxu0 %v13412_v25  ;;  %v1943_v3 = vld [vmem:[%s18698_s22 + $0x2f8] sm:$0xff] }
 0x1ec   :  { %10516 = vmatprep.subr.mxu1 %v13412_v25  ;;  %1786 = vmatmul.mubr.f32.gmra.mxu1 %v1684_v55  ;;  %v1942_v55 = vld [vmem:[%s18698_s22 + $0x2f0] sm:$0xff] }
 0x1ed   :  { %10461 = vmatpush3.msra.mxu0 %v13416_v23  ;;  %10517 = vmatpush3.msra.mxu1 %v13416_v23 }
 0x1ee   :  { %10462 = vmatprep.subr.mxu0 %v13420_v24  ;;  %10518 = vmatprep.subr.mxu1 %v13420_v24 }
 0x1ef   :  { %10463 = vmatpush3.msra.mxu0 %v13424_v4  ;;  %1879 = vmatprep.mubr.f32.mxu0 %v1800_v41  ;;  %v2058_v41 = vld [vmem:[%s18698_s22 + $0x308] sm:$0xff] }
 0x1f0   :  { %10519 = vmatpush3.msra.mxu1 %v13424_v4  ;;  %1880 = vmatmul.mubr.f32.vlgmr.msra.gmra.mxu0 %v1799_v30  ;;  %v2057_v30 = vld [vmem:[%s18698_s22 + $0x300] sm:$0xff] }
 0x1f1   :  { %2008 = vmatprep.mubr.f32.mxu1 %v1929_v33  ;;  %10544 = vmatprep.subr.mxu0 %v13222_v11  ;;  %v2187_v33 = vld [vmem:[%s18698_s22 + $0x388] sm:$0xff] }
 0x1f2   :  { %10600 = vmatprep.subr.mxu1 %v13222_v11  ;;  %2009 = vmatmul.mubr.f32.vlgmr.msra.gmra.mxu1 %v1928_v28  ;;  %v2186_v28 = vld [vmem:[%s18698_s22 + $0x380] sm:$0xff] }
 0x1f3   :  { %10545 = vmatpush3.msra.mxu0 %v13229_v6  ;;  %10601 = vmatpush3.msra.mxu1 %v13229_v6 }
 0x1f4   :  { %10546 = vmatprep.subr.mxu0 %v13232_v0  ;;  %10602 = vmatprep.subr.mxu1 %v13232_v0 }
 0x1f5   :  { %1884 = vmatprep.mubr.f32.mxu0 %v1802_v29  ;;  %10547 = vmatpush3.msra.mxu0 %v13239_v58  ;;  %v2060_v29 = vld [vmem:[%s18698_s22 + $0x318] sm:$0xff] }
 0x1f6   :  { %10603 = vmatpush3.msra.mxu1 %v13239_v58  ;;  %1885 = vmatmul.mubr.f32.gmra.mxu0 %v1801_v34  ;;  %v2189_v34 = vld [vmem:[%s18698_s22 + $0x398] sm:$0xff] }
 0x1f7   :  { %10548 = vmatprep.subr.mxu0 %v13247_v20  ;;  %10604 = vmatprep.subr.mxu1 %v13247_v20 }
 0x1f8   :  { %2013 = vmatprep.mubr.f32.mxu1 %v1931_v50  ;;  %10549 = vmatpush3.msra.mxu0 %v13255_v7  ;;  %v2059_v50 = vld [vmem:[%s18698_s22 + $0x310] sm:$0xff] }
 0x1f9   :  { %10605 = vmatpush3.msra.mxu1 %v13255_v7  ;;  %10550 = vmatprep.subr.mxu0 %v13262_v38 }
 0x1fa   :  { %2014 = vmatmul.mubr.f32.gmra.mxu1 %v1930_v35  ;;  %10606 = vmatprep.subr.mxu1 %v13262_v38  ;;  %v2188_v35 = vld [vmem:[%s18698_s22 + $0x390] sm:$0xff] }
 0x1fb   :  { %1889 = vmatprep.mubr.f32.mxu0 %v1804_v42  ;;  %10551 = vmatpush3.msra.mxu0 %v13270_v26  ;;  %v2324_v42 = vld [vmem:[%s18698_s22 + $0x448] sm:$0xff] }
 0x1fc   :  { %10607 = vmatpush3.msra.mxu1 %v13270_v26  ;;  %1890 = vmatmul.mubr.f32.gmra.mxu0 %v1803_v15  ;;  %v2323_v15 = vld [vmem:[%s18698_s22 + $0x440] sm:$0xff] }
 0x1fd   :  { %10552 = vmatprep.subr.mxu0 %v13278_v32  ;;  %10608 = vmatprep.subr.mxu1 %v13278_v32 }
 0x1fe   :  { %2018 = vmatprep.mubr.f32.mxu1 %v1933_v16  ;;  %10553 = vmatpush3.msra.mxu0 %v13287_v61  ;;  %v2326_v16 = vld [vmem:[%s18698_s22 + $0x458] sm:$0xff] }
 0x1ff   :  { %10609 = vmatpush3.msra.mxu1 %v13287_v61  ;;  %10554 = vmatprep.subr.mxu0 %v13294_v48 }
 0x200   :  { %2019 = vmatmul.mubr.f32.gmra.mxu1 %v1932_v36  ;;  %10610 = vmatprep.subr.mxu1 %v13294_v48 }
 0x201   :  { %1894 = vmatprep.mubr.f32.mxu0 %v1806_v40  ;;  %10555 = vmatpush3.msra.mxu0 %v13301_v27  ;;  %v2325_v40 = vld [vmem:[%s18698_s22 + $0x450] sm:$0xff] }
 0x202   :  { %10611 = vmatpush3.msra.mxu1 %v13301_v27  ;;  %1895 = vmatmul.mubr.f32.gmra.mxu0 %v1805_v54 }
 0x203   :  { %10556 = vmatprep.subr.mxu0 %v13309_v9  ;;  %10612 = vmatprep.subr.mxu1 %v13309_v9 }
 0x204   :  { %2023 = vmatprep.mubr.f32.mxu1 %v1935_v56  ;;  %10557 = vmatpush3.msra.mxu0 %v13319_v17  ;;  %v2328_v56 = vld [vmem:[%s18698_s22 + $0x468] sm:$0xff] }
 0x205   :  { %10613 = vmatpush3.msra.mxu1 %v13319_v17  ;;  %10558 = vmatprep.subr.mxu0 %v13326_v37 }
 0x206   :  { %2024 = vmatmul.mubr.f32.gmra.mxu1 %v1934_v1  ;;  %10614 = vmatprep.subr.mxu1 %v13326_v37 }
 0x207   :  { %1899 = vmatprep.mubr.f32.mxu0 %v1808_v5  ;;  %10559 = vmatpush3.msra.mxu0 %v13333_v19 }
 0x208   :  { %10615 = vmatpush3.msra.mxu1 %v13333_v19  ;;  %1900 = vmatmul.mubr.f32.gmra.mxu0 %v1807_v47 }
 0x209   :  { %10560 = vmatprep.subr.mxu0 %v13341_v44  ;;  %10616 = vmatprep.subr.mxu1 %v13341_v44 }
 0x20a   :  { %2028 = vmatprep.mubr.f32.mxu1 %v1937_v43  ;;  %10561 = vmatpush3.msra.mxu0 %v13349_v60 }
 0x20b   :  { %10617 = vmatpush3.msra.mxu1 %v13349_v60  ;;  %10562 = vmatprep.subr.mxu0 %v13356_v14 }
 0x20c   :  { %2029 = vmatmul.mubr.f32.gmra.mxu1 %v1936_v63  ;;  %10618 = vmatprep.subr.mxu1 %v13356_v14  ;;  %v2327_v63 = vld [vmem:[%s18698_s22 + $0x460] sm:$0xff] }
 0x20d   :  { %1904 = vmatprep.mubr.f32.mxu0 %v1810_v45  ;;  %10563 = vmatpush3.msra.mxu0 %v13363_v13 }
 0x20e   :  { %10619 = vmatpush3.msra.mxu1 %v13363_v13  ;;  %1905 = vmatmul.mubr.f32.gmra.mxu0 %v1809_v21  ;;  %v2330_v21 = vld [vmem:[%s18698_s22 + $0x478] sm:$0xff] }
 0x20f   :  { %10564 = vmatprep.subr.mxu0 %v13369_v53  ;;  %10620 = vmatprep.subr.mxu1 %v13369_v53 }
 0x210   :  { %2033 = vmatprep.mubr.f32.mxu1 %v1939_v22  ;;  %10565 = vmatpush3.msra.mxu0 %v13375_v57 }
 0x211   :  { %10621 = vmatpush3.msra.mxu1 %v13375_v57  ;;  %10566 = vmatprep.subr.mxu0 %v13381_v12 }
 0x212   :  { %2034 = vmatmul.mubr.f32.gmra.mxu1 %v1938_v49  ;;  %10622 = vmatprep.subr.mxu1 %v13381_v12 }
 0x213   :  { %1909 = vmatprep.mubr.f32.mxu0 %v1812_v51  ;;  %10567 = vmatpush3.msra.mxu0 %v13387_v8 }
 0x214   :  { %10623 = vmatpush3.msra.mxu1 %v13387_v8  ;;  %1910 = vmatmul.mubr.f32.gmra.mxu0 %v1811_v10 }
 0x215   :  { %10568 = vmatprep.subr.mxu0 %v13392_v62  ;;  %10624 = vmatprep.subr.mxu1 %v13392_v62 }
 0x216   :  { %2038 = vmatprep.mubr.f32.mxu1 %v1941_v2  ;;  %10569 = vmatpush3.msra.mxu0 %v13398_v39  ;;  %v2329_v2 = vld [vmem:[%s18698_s22 + $0x470] sm:$0xff] }
 0x217   :  { %10625 = vmatpush3.msra.mxu1 %v13398_v39  ;;  %10570 = vmatprep.subr.mxu0 %v13403_v18 }
 0x218   :  { %2039 = vmatmul.mubr.f32.gmra.mxu1 %v1940_v46  ;;  %10626 = vmatprep.subr.mxu1 %v13403_v18 }
 0x219   :  { %1914 = vmatprep.mubr.f32.mxu0 %v1814_v52  ;;  %10571 = vmatpush3.msra.mxu0 %v13408_v31 }
 0x21a   :  { %10627 = vmatpush3.msra.mxu1 %v13408_v31  ;;  %1915 = vmatmul.mubr.f32.gmra.mxu0 %v1813_v59 }
 0x21b   :  { %10572 = vmatprep.subr.mxu0 %v13412_v25  ;;  %10628 = vmatprep.subr.mxu1 %v13412_v25 }
 0x21c   :  { %2043 = vmatprep.mubr.f32.mxu1 %v1943_v3  ;;  %10573 = vmatpush3.msra.mxu0 %v13416_v23 }
 0x21d   :  { %10629 = vmatpush3.msra.mxu1 %v13416_v23  ;;  %10574 = vmatprep.subr.mxu0 %v13420_v24 }
 0x21e   :  { %2044 = vmatmul.mubr.f32.gmra.mxu1 %v1942_v55  ;;  %10630 = vmatprep.subr.mxu1 %v13420_v24 }
 0x21f   :  { %10575 = vmatpush3.msra.mxu0 %v13424_v4  ;;  %2137 = vmatprep.mubr.f32.mxu0 %v2058_v41 }
 0x220   :  { %10631 = vmatpush3.msra.mxu1 %v13424_v4  ;;  %2138 = vmatmul.mubr.f32.vlgmr.msra.gmra.mxu0 %v2057_v30 }
 0x221   :  { %10656 = vmatprep.subr.mxu0 %v13222_v11  ;;  %2266 = vmatprep.mubr.f32.mxu1 %v2187_v33  ;;  %v2062_v11 = vld [vmem:[%s18698_s22 + $0x328] sm:$0xff] }
 0x222   :  { %10657 = vmatpush3.msra.mxu0 %v13229_v6  ;;  %2267 = vmatmul.mubr.f32.vlgmr.msra.gmra.mxu1 %v2186_v28  ;;  %v2191_v6 = vld [vmem:[%s18698_s22 + $0x3a8] sm:$0xff] }
 0x223   :  { %10658 = vmatprep.subr.mxu0 %v13232_v0  ;;  %2142 = vmatprep.mubr.f32.mxu0 %v2060_v29  ;;  %v2061_v0 = vld [vmem:[%s18698_s22 + $0x320] sm:$0xff] }
 0x224   :  { %10659 = vmatpush3.msra.mxu0 %v13239_v58  ;;  %2271 = vmatprep.mubr.f32.mxu1 %v2189_v34  ;;  %v2190_v58 = vld [vmem:[%s18698_s22 + $0x3a0] sm:$0xff] }
 0x225   :  { %2143 = vmatmul.mubr.f32.gmra.mxu0 %v2059_v50  ;;  %10660 = vmatprep.subr.mxu0 %v13247_v20  ;;  %v2064_v20 = vld [vmem:[%s18698_s22 + $0x338] sm:$0xff] }
 0x226   :  { %10661 = vmatpush3.msra.mxu0 %v13255_v7  ;;  %2272 = vmatmul.mubr.f32.gmra.mxu1 %v2188_v35  ;;  %v2193_v7 = vld [vmem:[%s18698_s22 + $0x3b8] sm:$0xff] }
 0x227   :  { %10662 = vmatprep.subr.mxu0 %v13262_v38  ;;  %2147 = vmatprep.mubr.f32.mxu0 %v2062_v11  ;;  %v2063_v38 = vld [vmem:[%s18698_s22 + $0x330] sm:$0xff] }
 0x228   :  { %10663 = vmatpush3.msra.mxu0 %v13270_v26  ;;  %2276 = vmatprep.mubr.f32.mxu1 %v2191_v6  ;;  %v2192_v26 = vld [vmem:[%s18698_s22 + $0x3b0] sm:$0xff] }
 0x229   :  { %2148 = vmatmul.mubr.f32.gmra.mxu0 %v2061_v0  ;;  %10664 = vmatprep.subr.mxu0 %v13278_v32  ;;  %v2066_v32 = vld [vmem:[%s18698_s22 + $0x348] sm:$0xff] }
 0x22a   :  { %10665 = vmatpush3.msra.mxu0 %v13287_v61  ;;  %2277 = vmatmul.mubr.f32.gmra.mxu1 %v2190_v58  ;;  %v2195_v61 = vld [vmem:[%s18698_s22 + $0x3c8] sm:$0xff] }
 0x22b   :  { %10666 = vmatprep.subr.mxu0 %v13294_v48  ;;  %2152 = vmatprep.mubr.f32.mxu0 %v2064_v20  ;;  %v2065_v48 = vld [vmem:[%s18698_s22 + $0x340] sm:$0xff] }
 0x22c   :  { %10667 = vmatpush3.msra.mxu0 %v13301_v27  ;;  %2281 = vmatprep.mubr.f32.mxu1 %v2193_v7  ;;  %v2194_v27 = vld [vmem:[%s18698_s22 + $0x3c0] sm:$0xff] }
 0x22d   :  { %2153 = vmatmul.mubr.f32.gmra.mxu0 %v2063_v38  ;;  %10668 = vmatprep.subr.mxu0 %v13309_v9  ;;  %v2068_v9 = vld [vmem:[%s18698_s22 + $0x358] sm:$0xff] }
 0x22e   :  { %10669 = vmatpush3.msra.mxu0 %v13319_v17  ;;  %2282 = vmatmul.mubr.f32.gmra.mxu1 %v2192_v26  ;;  %v2197_v17 = vld [vmem:[%s18698_s22 + $0x3d8] sm:$0xff] }
 0x22f   :  { %10670 = vmatprep.subr.mxu0 %v13326_v37  ;;  %2157 = vmatprep.mubr.f32.mxu0 %v2066_v32  ;;  %v2067_v37 = vld [vmem:[%s18698_s22 + $0x350] sm:$0xff] }
 0x230   :  { %10671 = vmatpush3.msra.mxu0 %v13333_v19  ;;  %2286 = vmatprep.mubr.f32.mxu1 %v2195_v61  ;;  %v2196_v19 = vld [vmem:[%s18698_s22 + $0x3d0] sm:$0xff] }
 0x231   :  { %2158 = vmatmul.mubr.f32.gmra.mxu0 %v2065_v48  ;;  %10672 = vmatprep.subr.mxu0 %v13341_v44  ;;  %v2070_v44 = vld [vmem:[%s18698_s22 + $0x368] sm:$0xff] }
 0x232   :  { %10673 = vmatpush3.msra.mxu0 %v13349_v60  ;;  %2287 = vmatmul.mubr.f32.gmra.mxu1 %v2194_v27  ;;  %v2199_v60 = vld [vmem:[%s18698_s22 + $0x3e8] sm:$0xff] }
 0x233   :  { %10674 = vmatprep.subr.mxu0 %v13356_v14  ;;  %2162 = vmatprep.mubr.f32.mxu0 %v2068_v9  ;;  %v2069_v14 = vld [vmem:[%s18698_s22 + $0x360] sm:$0xff] }
 0x234   :  { %10675 = vmatpush3.msra.mxu0 %v13363_v13  ;;  %2291 = vmatprep.mubr.f32.mxu1 %v2197_v17  ;;  %v2198_v13 = vld [vmem:[%s18698_s22 + $0x3e0] sm:$0xff] }
 0x235   :  { %2163 = vmatmul.mubr.f32.gmra.mxu0 %v2067_v37  ;;  %10676 = vmatprep.subr.mxu0 %v13369_v53  ;;  %v2072_v53 = vld [vmem:[%s18698_s22 + $0x378] sm:$0xff] }
 0x236   :  { %10677 = vmatpush3.msra.mxu0 %v13375_v57  ;;  %2292 = vmatmul.mubr.f32.gmra.mxu1 %v2196_v19  ;;  %v2201_v57 = vld [vmem:[%s18698_s22 + $0x3f8] sm:$0xff] }
 0x237   :  { %10678 = vmatprep.subr.mxu0 %v13381_v12  ;;  %2167 = vmatprep.mubr.f32.mxu0 %v2070_v44  ;;  %v2071_v12 = vld [vmem:[%s18698_s22 + $0x370] sm:$0xff] }
 0x238   :  { %10679 = vmatpush3.msra.mxu0 %v13387_v8  ;;  %2296 = vmatprep.mubr.f32.mxu1 %v2199_v60  ;;  %v2200_v8 = vld [vmem:[%s18698_s22 + $0x3f0] sm:$0xff] }
 0x239   :  { %2168 = vmatmul.mubr.f32.gmra.mxu0 %v2069_v14  ;;  %10680 = vmatprep.subr.mxu0 %v13392_v62  ;;  %v2316_v62 = vld [vmem:[%s18698_s22 + $0x408] sm:$0xff] }
 0x23a   :  { %10681 = vmatpush3.msra.mxu0 %v13398_v39  ;;  %2297 = vmatmul.mubr.f32.gmra.mxu1 %v2198_v13  ;;  %v2315_v39 = vld [vmem:[%s18698_s22 + $0x400] sm:$0xff] }
 0x23b   :  { %10682 = vmatprep.subr.mxu0 %v13403_v18  ;;  %2172 = vmatprep.mubr.f32.mxu0 %v2072_v53  ;;  %v2318_v18 = vld [vmem:[%s18698_s22 + $0x418] sm:$0xff] }
 0x23c   :  { %10683 = vmatpush3.msra.mxu0 %v13408_v31  ;;  %2301 = vmatprep.mubr.f32.mxu1 %v2201_v57  ;;  %v2317_v31 = vld [vmem:[%s18698_s22 + $0x410] sm:$0xff] }
 0x23d   :  { %2173 = vmatmul.mubr.f32.gmra.mxu0 %v2071_v12  ;;  %10684 = vmatprep.subr.mxu0 %v13412_v25  ;;  %v2320_v25 = vld [vmem:[%s18698_s22 + $0x428] sm:$0xff] }
 0x23e   :  { %10685 = vmatpush3.msra.mxu0 %v13416_v23  ;;  %2302 = vmatmul.mubr.f32.gmra.mxu1 %v2200_v8  ;;  %v2319_v23 = vld [vmem:[%s18698_s22 + $0x420] sm:$0xff] }
 0x23f   :  { %10686 = vmatprep.subr.mxu0 %v13420_v24  ;;  %2395 = vmatprep.mubr.f32.mxu0 %v2316_v62  ;;  %v2322_v24 = vld [vmem:[%s18698_s22 + $0x438] sm:$0xff] }
 0x240   :  { %10687 = vmatpush3.msra.mxu0 %v13424_v4  ;;  %v2321_v4 = vld [vmem:[%s18698_s22 + $0x430] sm:$0xff] }
 0x241   :  { %2396 = vmatmul.mubr.f32.vlgmr.msra.gmra.mxu0 %v2315_v39 }
 0x242   :  { %2400 = vmatprep.mubr.f32.mxu0 %v2318_v18 }
 0x245   :  { %2401 = vmatmul.mubr.f32.gmra.mxu0 %v2317_v31 }
 0x246   :  { %2405 = vmatprep.mubr.f32.mxu0 %v2320_v25 }
 0x249   :  { %2406 = vmatmul.mubr.f32.gmra.mxu0 %v2319_v23 }
 0x24a   :  { %2410 = vmatprep.mubr.f32.mxu0 %v2322_v24 }
 0x24d   :  { %2411 = vmatmul.mubr.f32.gmra.mxu0 %v2321_v4 }
 0x24e   :  { %2415 = vmatprep.mubr.f32.mxu0 %v2324_v42 }
 0x251   :  { %2416 = vmatmul.mubr.f32.gmra.mxu0 %v2323_v15  ;;  %v10240_v36 = vpop.f32.mrf.mxu0 }
 0x252   :  { %2420 = vmatprep.mubr.f32.mxu0 %v2326_v16  ;;  %v10296_v54 = vpop.f32.mrf.mxu1 }
 0x253   :  { %v10241_v1 = vpop.f32.mrf.mxu0 }
 0x254   :  { %v14073_v5 = vadd.f32 %v10241_v1, %v10240_v36  ;;  %v10297_v47 = vpop.f32.mrf.mxu1 }
 0x255   :  { %2421 = vmatmul.mubr.f32.gmra.mxu0 %v2325_v40  ;;  %v14075_v43 = vadd.f32 %v10297_v47, %v10296_v54  ;;  %v9049_v40 = vld [vmem:[%s18666_s7 + $0xf8] sm:$0xff] }
 0x256   :  { %2425 = vmatprep.mubr.f32.mxu0 %v2328_v56  ;;  %v10243_v45 = vpop.f32.mrf.mxu0  ;;  %11538 = vmatprep.subr.mxu0 %v9049_v40 }
 0x257   :  { %v1533_v22 = vmax.f32 %v14073_v5, %v14075_v43  ;;  %11539 = vmatpush3.msra.mxu0 %v9049_v40  ;;  %v9048_v5 = vld [vmem:[%s18666_s7 + $0xf0] sm:$0xff]  ;;  %v9034_v40 = vld [vmem:[%s18666_s7 + $0x80] sm:$0xff] }
 0x258   :  { %v10244_v49 = vpop.f32.mrf.mxu0  ;;  %v10299_v51 = vpop.f32.mrf.mxu1  ;;  %11540 = vmatprep.subr.mxu0 %v9048_v5 }
 0x259   :  { %2426 = vmatmul.mubr.f32.gmra.mxu0 %v2327_v63  ;;  %v14085_v10 = vadd.f32 %v10244_v49, %v10243_v45  ;;  %v9047_v63 = vld [vmem:[%s18666_s7 + $0xe8] sm:$0xff]  ;;  %v9046_v49 = vld [vmem:[%s18666_s7 + $0xe0] sm:$0xff] }
 0x25a   :  { %2430 = vmatprep.mubr.f32.mxu0 %v2330_v21  ;;  %v10300_v46 = vpop.f32.mrf.mxu1  ;;  %11541 = vmatpush3.msra.mxu0 %v9048_v5 }
 0x25b   :  { %v14090_v52 = vadd.f32 %v10300_v46, %v10299_v51  ;;  %11542 = vmatprep.subr.mxu0 %v9047_v63 }
 0x25c   :  { %v10246_v59 = vpop.f32.mrf.mxu0  ;;  %11543 = vmatpush3.msra.mxu0 %v9047_v63 }
 0x25d   :  { %2431 = vmatmul.mubr.f32.gmra.mxu0 %v2329_v2  ;;  %v1534_v3 = vmax.f32 %v14085_v10, %v14090_v52  ;;  %11544 = vmatprep.subr.mxu0 %v9046_v49 }
 0x25e   :  { %v10247_v55 = vpop.f32.mrf.mxu0  ;;  %v10302_v41 = vpop.f32.mrf.mxu1  ;;  %11545 = vmatpush3.msra.mxu0 %v9046_v49 }
 0x25f   :  { %v14094_v30 = vadd.f32 %v10247_v55, %v10246_v59  ;;  %v9045_v59 = vld [vmem:[%s18666_s7 + $0xd8] sm:$0xff] }
 0x260   :  { %v10303_v33 = vpop.f32.mrf.mxu1  ;;  %11546 = vmatprep.subr.mxu0 %v9045_v59 }
 0x261   :  { %v14096_v28 = vadd.f32 %v10303_v33, %v10302_v41  ;;  %11547 = vmatpush3.msra.mxu0 %v9045_v59  ;;  %v9044_v33 = vld [vmem:[%s18666_s7 + $0xd0] sm:$0xff] }
 0x262   :  { %v10249_v29 = vpop.f32.mrf.mxu0  ;;  %11548 = vmatprep.subr.mxu0 %v9044_v33 }
 0x263   :  { %v1535_v34 = vmax.f32 %v14094_v30, %v14096_v28  ;;  %11549 = vmatpush3.msra.mxu0 %v9044_v33 }
 0x264   :  { %v10250_v50 = vpop.f32.mrf.mxu0  ;;  %v10305_v35 = vpop.f32.mrf.mxu1 }
 0x265   :  { %v14100_v11 = vadd.f32 %v10250_v50, %v10249_v29  ;;  %v9043_v29 = vld [vmem:[%s18666_s7 + $0xc8] sm:$0xff] }
 0x266   :  { %v10306_v6 = vpop.f32.mrf.mxu1  ;;  %11550 = vmatprep.subr.mxu0 %v9043_v29 }
 0x267   :  { %v14102_v0 = vadd.f32 %v10306_v6, %v10305_v35  ;;  %11551 = vmatpush3.msra.mxu0 %v9043_v29 }
 0x268   :  { %v10252_v58 = vpop.f32.mrf.mxu0 }
 0x269   :  { %v1536_v20 = vmax.f32 %v14100_v11, %v14102_v0 }
 0x26a   :  { %v10253_v7 = vpop.f32.mrf.mxu0  ;;  %v10308_v38 = vpop.f32.mrf.mxu1 }
 0x26b   :  { %v14106_v26 = vadd.f32 %v10253_v7, %v10252_v58  ;;  %v9042_v58 = vld [vmem:[%s18666_s7 + $0xc0] sm:$0xff] }
 0x26c   :  { %v10309_v32 = vpop.f32.mrf.mxu1  ;;  %11552 = vmatprep.subr.mxu0 %v9042_v58 }
 0x26d   :  { %v14108_v61 = vadd.f32 %v10309_v32, %v10308_v38  ;;  %11553 = vmatpush3.msra.mxu0 %v9042_v58  ;;  %v9041_v32 = vld [vmem:[%s18666_s7 + $0xb8] sm:$0xff] }
 0x26e   :  { %v10255_v48 = vpop.f32.mrf.mxu0  ;;  %11554 = vmatprep.subr.mxu0 %v9041_v32 }
 0x26f   :  { %v1537_v27 = vmax.f32 %v14106_v26, %v14108_v61  ;;  %11555 = vmatpush3.msra.mxu0 %v9041_v32 }
 0x270   :  { %v10256_v9 = vpop.f32.mrf.mxu0  ;;  %v10311_v17 = vpop.f32.mrf.mxu1 }
 0x271   :  { %v14112_v37 = vadd.f32 %v10256_v9, %v10255_v48  ;;  %v9040_v48 = vld [vmem:[%s18666_s7 + $0xb0] sm:$0xff] }
 0x272   :  { %v10312_v19 = vpop.f32.mrf.mxu1  ;;  %11556 = vmatprep.subr.mxu0 %v9040_v48 }
 0x273   :  { %v14114_v44 = vadd.f32 %v10312_v19, %v10311_v17  ;;  %11557 = vmatpush3.msra.mxu0 %v9040_v48 }
 0x274   :  { %v10258_v60 = vpop.f32.mrf.mxu0 }
 0x275   :  { %v1538_v14 = vmax.f32 %v14112_v37, %v14114_v44 }
 0x276   :  { %v10259_v13 = vpop.f32.mrf.mxu0  ;;  %v10314_v53 = vpop.f32.mrf.mxu1 }
 0x277   :  { %v14118_v57 = vadd.f32 %v10259_v13, %v10258_v60  ;;  %v9039_v60 = vld [vmem:[%s18666_s7 + $0xa8] sm:$0xff] }
 0x278   :  { %v10315_v12 = vpop.f32.mrf.mxu1  ;;  %11558 = vmatprep.subr.mxu0 %v9039_v60 }
 0x279   :  { %v14120_v8 = vadd.f32 %v10315_v12, %v10314_v53  ;;  %11559 = vmatpush3.msra.mxu0 %v9039_v60  ;;  %v9038_v12 = vld [vmem:[%s18666_s7 + $0xa0] sm:$0xff] }
 0x27a   :  { %v10261_v62 = vpop.f32.mrf.mxu0  ;;  %11560 = vmatprep.subr.mxu0 %v9038_v12 }
 0x27b   :  { %v1539_v39 = vmax.f32 %v14118_v57, %v14120_v8  ;;  %11561 = vmatpush3.msra.mxu0 %v9038_v12  ;;  %v2444_v57 = vld [vmem:[%s18667_s2] sm:$0xff] }
 0x27c   :  { %v10262_v18 = vpop.f32.mrf.mxu0  ;;  %v10317_v31 = vpop.f32.mrf.mxu1  ;;  %11498 = vmatprep.mubr.msk.f32.mxu1 %vm2452_vm0, %v2444_v57 }
 0x27d   :  { %v14124_v25 = vadd.f32 %v10262_v18, %v10261_v62  ;;  %v9037_v62 = vld [vmem:[%s18666_s7 + $0x98] sm:$0xff] }
 0x27e   :  { %v10318_v23 = vpop.f32.mrf.mxu1  ;;  %11562 = vmatprep.subr.mxu0 %v9037_v62 }
 0x27f   :  { %v14126_v24 = vadd.f32 %v10318_v23, %v10317_v31  ;;  %11563 = vmatpush3.msra.mxu0 %v9037_v62 }
 0x280   :  { %v10352_v4 = vpop.f32.mrf.mxu0 }
 0x281   :  { %v1540_v42 = vmax.f32 %v14124_v25, %v14126_v24 }
 0x282   :  { %v10353_v15 = vpop.f32.mrf.mxu0  ;;  %v10408_v16 = vpop.f32.mrf.mxu1 }
 0x283   :  { %v10354_v36 = vadd.f32 %v10353_v15, %v10352_v4  ;;  %v9036_v4 = vld [vmem:[%s18666_s7 + $0x90] sm:$0xff] }
 0x284   :  { %v10409_v54 = vpop.f32.mrf.mxu1  ;;  %11564 = vmatprep.subr.mxu0 %v9036_v4 }
 0x285   :  { %v14133_v56 = vmax.f32 %v1533_v22, %v10354_v36  ;;  %v14135_v1 = vadd.f32 %v10409_v54, %v10408_v16  ;;  %11565 = vmatpush3.msra.mxu0 %v9036_v4  ;;  %v9035_v36 = vld [vmem:[%s18666_s7 + $0x88] sm:$0xff] }
 0x286   :  { %v10355_v47 = vpop.f32.mrf.mxu0  ;;  %11566 = vmatprep.subr.mxu0 %v9035_v36 }
 0x287   :  { %v1791_v43 = vmax.f32 %v14133_v56, %v14135_v1  ;;  %11567 = vmatpush3.msra.mxu0 %v9035_v36 }
 0x288   :  { %v10356_v45 = vpop.f32.mrf.mxu0  ;;  %v10411_v21 = vpop.f32.mrf.mxu1  ;;  %11568 = vmatprep.subr.mxu0 %v9034_v40 }
 0x289   :  { %v10357_v22 = vadd.f32 %v10356_v45, %v10355_v47  ;;  %11569 = vmatpush3.msra.mxu0 %v9034_v40 }
 0x28a   :  { %v10412_v51 = vpop.f32.mrf.mxu1 }
 0x28b   :  { %v14151_v2 = vmax.f32 %v1534_v3, %v10357_v22  ;;  %v14153_v46 = vadd.f32 %v10412_v51, %v10411_v21 }
 0x28c   :  { %v10358_v55 = vpop.f32.mrf.mxu0 }
 0x28d   :  { %v1792_v41 = vmax.f32 %v14151_v2, %v14153_v46 }
 0x28e   :  { %v10359_v10 = vpop.f32.mrf.mxu0  ;;  %v10414_v52 = vpop.f32.mrf.mxu1 }
 0x28f   :  { %v10360_v3 = vadd.f32 %v10359_v10, %v10358_v55 }
 0x290   :  { %v10415_v50 = vpop.f32.mrf.mxu1 }
 0x291   :  { %v14169_v35 = vmax.f32 %v1535_v34, %v10360_v3  ;;  %v14171_v6 = vadd.f32 %v10415_v50, %v10414_v52 }
 0x292   :  { %v10361_v7 = vpop.f32.mrf.mxu0 }
 0x293   :  { %v1793_v38 = vmax.f32 %v14169_v35, %v14171_v6 }
 0x294   :  { %v10362_v30 = vpop.f32.mrf.mxu0  ;;  %v10417_v28 = vpop.f32.mrf.mxu1 }
 0x295   :  { %v10363_v34 = vadd.f32 %v10362_v30, %v10361_v7 }
 0x296   :  { %v10418_v9 = vpop.f32.mrf.mxu1 }
 0x297   :  { %v14187_v17 = vmax.f32 %v1536_v20, %v10363_v34  ;;  %v14189_v19 = vadd.f32 %v10418_v9, %v10417_v28 }
 0x298   :  { %v10364_v13 = vpop.f32.mrf.mxu0 }
 0x299   :  { %v1794_v53 = vmax.f32 %v14187_v17, %v14189_v19 }
 0x29a   :  { %v10365_v11 = vpop.f32.mrf.mxu0  ;;  %v10420_v0 = vpop.f32.mrf.mxu1 }
 0x29b   :  { %v10366_v20 = vadd.f32 %v10365_v11, %v10364_v13 }
 0x29c   :  { %v10421_v18 = vpop.f32.mrf.mxu1 }
 0x29d   :  { %v14205_v31 = vmax.f32 %v1537_v27, %v10366_v20  ;;  %v14207_v23 = vadd.f32 %v10421_v18, %v10420_v0 }
 0x29e   :  { %v10367_v15 = vpop.f32.mrf.mxu0 }
 0x29f   :  { %v1795_v16 = vmax.f32 %v14205_v31, %v14207_v23 }
 0x2a0   :  { %v10368_v26 = vpop.f32.mrf.mxu0  ;;  %v10423_v61 = vpop.f32.mrf.mxu1 }
 0x2a1   :  { %v10369_v27 = vadd.f32 %v10368_v26, %v10367_v15 }
 0x2a2   :  { %v10424_v54 = vpop.f32.mrf.mxu1 }
 0x2a3   :  { %v1667_v5 = vmax.f32 %v1538_v14, %v10369_v27  ;;  %v10425_v47 = vadd.f32 %v10424_v54, %v10423_v61 }
 0x2a4   :  { %v10370_v63 = vpop.f32.mrf.mxu0 }
 0x2a5   :  { %v1796_v45 = vmax.f32 %v1667_v5, %v10425_v47 }
 0x2a6   :  { %v10371_v21 = vpop.f32.mrf.mxu0  ;;  %v10426_v22 = vpop.f32.mrf.mxu1 }
 0x2a7   :  { %v10372_v49 = vadd.f32 %v10371_v21, %v10370_v63 }
 0x2a8   :  { %v10427_v51 = vpop.f32.mrf.mxu1 }
 0x2a9   :  { %v1668_v59 = vmax.f32 %v1539_v39, %v10372_v49  ;;  %v10428_v55 = vadd.f32 %v10427_v51, %v10426_v22 }
 0x2aa   :  { %v10373_v33 = vpop.f32.mrf.mxu0 }
 0x2ab   :  { %v1797_v10 = vmax.f32 %v1668_v59, %v10428_v55 }
 0x2ac   :  { %v10374_v52 = vpop.f32.mrf.mxu0  ;;  %v14226_v3 = vpop.f32.mrf.mxu1 }
 0x2ad   :  { %v10375_v37 = vadd.f32 %v10374_v52, %v10373_v33 }
 0x2ae   :  { %v14228_v44 = vpop.f32.mrf.mxu1 }
 0x2af   :  { %v14233_v14 = vmax.f32 %v1540_v42, %v10375_v37 }
 0x2b0   :  { %v10464_v29 = vpop.f32.mrf.mxu0 }
 0x2b2   :  { %v10465_v50 = vpop.f32.mrf.mxu0  ;;  %v10520_v58 = vpop.f32.mrf.mxu1 }
 0x2b3   :  { %v10466_v8 = vadd.f32 %v10465_v50, %v10464_v29 }
 0x2b4   :  { %v10521_v39 = vpop.f32.mrf.mxu1 }
 0x2b5   :  { %v1920_v7 = vmax.f32 %v1791_v43, %v10466_v8  ;;  %v10522_v32 = vadd.f32 %v10521_v39, %v10520_v58 }
 0x2b6   :  { %v10467_v25 = vpop.f32.mrf.mxu0 }
 0x2b7   :  { %v2049_v24 = vmax.f32 %v1920_v7, %v10522_v32 }
 0x2b8   :  { %v10468_v42 = vpop.f32.mrf.mxu0 }
 0x2b9   :  { %v10469_v30 = vadd.f32 %v10468_v42, %v10467_v25 }
 0x2ba   :  { %v10523_v28 = vpop.f32.mrf.mxu1 }
 0x2bb   :  { %v1921_v34 = vmax.f32 %v1792_v41, %v10469_v30 }
 0x2bc   :  { %v10470_v48 = vpop.f32.mrf.mxu0  ;;  %v10524_v9 = vpop.f32.mrf.mxu1 }
 0x2bd   :  { %v10525_v60 = vadd.f32 %v10524_v9, %v10523_v28 }
 0x2be   :  { %v10471_v13 = vpop.f32.mrf.mxu0 }
 0x2bf   :  { %v2050_v12 = vmax.f32 %v1921_v34, %v10525_v60  ;;  %v10472_v11 = vadd.f32 %v10471_v13, %v10470_v48 }
 0x2c0   :  { %v14245_v0 = vpop.f32.mrf.mxu1 }
 0x2c1   :  { %v14250_v56 = vmax.f32 %v1793_v38, %v10472_v11 }
 0x2c2   :  { %v10473_v1 = vpop.f32.mrf.mxu0  ;;  %v14252_v43 = vpop.f32.mrf.mxu1 }
 0x2c4   :  { %v10474_v20 = vpop.f32.mrf.mxu0 }
 0x2c5   :  { %v10475_v62 = vadd.f32 %v10474_v20, %v10473_v1 }
 0x2c6   :  { %v14254_v2 = vpop.f32.mrf.mxu1 }
 0x2c7   :  { %v14259_v46 = vmax.f32 %v1794_v53, %v10475_v62 }
 0x2c8   :  { %v10476_v41 = vpop.f32.mrf.mxu0  ;;  %v14261_v18 = vpop.f32.mrf.mxu1 }
 0x2ca   :  { %v10477_v4 = vpop.f32.mrf.mxu0 }
 0x2cb   :  { %v10478_v15 = vadd.f32 %v10477_v4, %v10476_v41 }
 0x2cc   :  { %v14263_v35 = vpop.f32.mrf.mxu1 }
 0x2cd   :  { %v14268_v6 = vmax.f32 %v1795_v16, %v10478_v15 }
 0x2ce   :  { %v10479_v38 = vpop.f32.mrf.mxu0  ;;  %v14270_v36 = vpop.f32.mrf.mxu1 }
 0x2d0   :  { %v10480_v26 = vpop.f32.mrf.mxu0 }
 0x2d1   :  { %v10481_v61 = vadd.f32 %v10480_v26, %v10479_v38 }
 0x2d2   :  { %v14272_v17 = vpop.f32.mrf.mxu1 }
 0x2d3   :  { %v14274_v19 = vmax.f32 %v1796_v45, %v10481_v61 }
 0x2d4   :  { %v10482_v53 = vpop.f32.mrf.mxu0  ;;  %v14276_v27 = vpop.f32.mrf.mxu1 }
 0x2d6   :  { %v10483_v40 = vpop.f32.mrf.mxu0 }
 0x2d7   :  { %v10484_v54 = vadd.f32 %v10483_v40, %v10482_v53 }
 0x2d8   :  { %v10538_v5 = vpop.f32.mrf.mxu1 }
 0x2d9   :  { %v14278_v47 = vmax.f32 %v1797_v10, %v10484_v54  ;;  %v10431_v54 = vadd.f32 %v14228_v44, %v14226_v3  ;;  %v10534_v44 = vadd.f32 %v14270_v36, %v14263_v35 }
 0x2da   :  { %v10485_v31 = vpop.f32.mrf.mxu0  ;;  %v10539_v23 = vpop.f32.mrf.mxu1 }
 0x2db   :  { %v2053_v35 = vmax.f32 %v14268_v6, %v10534_v44  ;;  %v2446_v44 = vld [vmem:[%s18667_s2 + $0x10] sm:$0xff] }
 0x2dc   :  { %v10486_v16 = vpop.f32.mrf.mxu0 }
 0x2de   :  { %v10541_v63 = vpop.f32.mrf.mxu1 }
 0x2e0   :  { %v10542_v21 = vpop.f32.mrf.mxu1  ;;  %v10576_v22 = vpop.f32.mrf.mxu0 }
 0x2e2   :  { %v10577_v49 = vpop.f32.mrf.mxu0  ;;  %v14280_v51 = vpop.f32.mrf.mxu1 }
 0x2e3   :  { %18778 = vst [vmem:[#allocation15_spill] sm:$0xff] %v14280_v51  ;;  %v10578_v59 = vadd.f32 %v10577_v49, %v10576_v22 }
 0x2e4   :  { %v14282_v45 = vpop.f32.mrf.mxu1 }
 0x2e5   :  { %18779 = vst [vmem:[#allocation28_spill] sm:$0xff] %v14282_v45  ;;  %v14284_v55 = vmax.f32 %v2049_v24, %v10578_v59  ;;  %v10579_v33 = vpop.f32.mrf.mxu0  ;;  %v10487_v59 = vadd.f32 %v10486_v16, %v10485_v31 }
 0x2e6   :  { %v14286_v52 = vpop.f32.mrf.mxu1 }
 0x2e7   :  { %18780 = vst [vmem:[#allocation43_spill] sm:$0xff] %v14284_v55  ;;  %v10580_v37 = vpop.f32.mrf.mxu0 }
 0x2e8   :  { %v10581_v10 = vadd.f32 %v10580_v37, %v10579_v33  ;;  %v14290_v50 = vpop.f32.mrf.mxu1  ;;  %v1798_v37 = vmax.f32 %v14233_v14, %v10431_v54 }
 0x2e9   :  { %v14288_v29 = vpop.f32.mrf.mxu0 }
 0x2ea   :  { %v14292_v58 = vmax.f32 %v2050_v12, %v10581_v10  ;;  %v14296_v8 = vpop.f32.mrf.mxu1 }
 0x2eb   :  { %v14294_v57 = vpop.f32.mrf.mxu0 }
 0x2ec   :  { %18781 = vst [vmem:[#allocation45_spill] sm:$0xff] %v14292_v58  ;;  %v14298_v32 = vpop.f32.mrf.mxu1 }
 0x2ed   :  { %v10585_v39 = vpop.f32.mrf.mxu0 }
 0x2ee   :  { %v14300_v42 = vpop.f32.mrf.mxu1 }
 0x2ef   :  { %v10586_v7 = vpop.f32.mrf.mxu0 }
 0x2f0   :  { %v14302_v34 = vpop.f32.mrf.mxu1  ;;  %v10587_v36 = vadd.f32 %v10586_v7, %v10585_v39 }
 0x2f1   :  { %v10588_v25 = vpop.f32.mrf.mxu0  ;;  %v10643_v6 = vadd.f32 %v14302_v34, %v14300_v42 }
 0x2f2   :  { %v10644_v60 = vpop.f32.mrf.mxu1 }
 0x2f3   :  { %v10589_v24 = vpop.f32.mrf.mxu0 }
 0x2f4   :  { %v10645_v11 = vpop.f32.mrf.mxu1 }
 0x2f5   :  { %v10591_v30 = vpop.f32.mrf.mxu0 }
 0x2f6   :  { %v10647_v62 = vpop.f32.mrf.mxu1 }
 0x2f7   :  { %v10592_v28 = vpop.f32.mrf.mxu0 }
 0x2f8   :  { %v10648_v15 = vpop.f32.mrf.mxu1  ;;  %v10593_v16 = vadd.f32 %v10592_v28, %v10591_v30 }
 0x2f9   :  { %v10594_v48 = vpop.f32.mrf.mxu0 }
 0x2fa   :  { %v10650_v61 = vpop.f32.mrf.mxu1 }
 0x2fb   :  { %v10595_v9 = vpop.f32.mrf.mxu0 }
 0x2fc   :  { %v10651_v22 = vpop.f32.mrf.mxu1  ;;  %v10596_v3 = vadd.f32 %v10595_v9, %v10594_v48  ;;  %v10649_v48 = vadd.f32 %v10648_v15, %v10647_v62 }
 0x2fd   :  { %v10597_v13 = vpop.f32.mrf.mxu0 }
 0x2fe   :  { %v10653_v10 = vpop.f32.mrf.mxu1 }
 0x2ff   :  { %v10598_v12 = vpop.f32.mrf.mxu0 }
 0x300   :  { %v10654_v45 = vpop.f32.mrf.mxu1 }
 0x301   :  { %v14304_v1 = vpop.f32.mrf.mxu0 }
 0x302   :  { %18782 = vst [vmem:[#allocation25_spill] sm:$0xff] %v14304_v1  ;;  %v10543_v1 = vadd.f32 %v10542_v21, %v10541_v63  ;;  %v10590_v21 = vadd.f32 %v10589_v24, %v10588_v25 }
 0x303   :  { %v14306_v20 = vpop.f32.mrf.mxu0 }
 0x304   :  { %18783 = vst [vmem:[#allocation29_spill] sm:$0xff] %v14306_v20  ;;  %v1927_v20 = vmax.f32 %v1798_v37, %v10487_v59  ;;  %v10655_v59 = vadd.f32 %v10654_v45, %v10653_v10  ;;  %v2182_v25 = vmax.f32 %v2053_v35, %v10590_v21  ;;  %v2600_v21 = vld [vmem:[%s18667_s2 + $0x50] sm:$0xff]  ;;  %v2602_v35 = vld [vmem:[%s18667_s2 + $0x60] sm:$0xff] }
 0x305   :  { %v14308_v41 = vpop.f32.mrf.mxu0 }
 0x306   :  { %18784 = vst [vmem:[#allocation14_spill] sm:$0xff] %v14308_v41  ;;  %v10599_v41 = vadd.f32 %v10598_v12, %v10597_v13 }
 0x307   :  { %v14310_v4 = vpop.f32.mrf.mxu0 }
 0x308   :  { %18785 = vst [vmem:[#allocation38_spill] sm:$0xff] %v14310_v4  ;;  %v10540_v4 = vadd.f32 %v10539_v23, %v10538_v5  ;;  %v10531_v5 = vadd.f32 %v14261_v18, %v14254_v2  ;;  %v10584_v18 = vadd.f32 %v14294_v57, %v14288_v29  ;;  %v10637_v57 = vadd.f32 %v14290_v50, %v14286_v52  ;;  %v18794_v52 = vld [vmem:[#allocation45_spill] sm:$0xff] }
 0x309   :  { %v14312_v38 = vpop.f32.mrf.mxu0 }
 0x30a   :  { %18786 = vst [vmem:[#allocation42_spill] sm:$0xff] %v14312_v38  ;;  %v2056_v38 = vmax.f32 %v1927_v20, %v10543_v1  ;;  %v2055_v14 = vmax.f32 %v14278_v47, %v10540_v4  ;;  %v2052_v2 = vmax.f32 %v14259_v46, %v10531_v5  ;;  %v10640_v46 = vadd.f32 %v14298_v32, %v14296_v8  ;;  %v18790_v8 = vld [vmem:[#allocation15_spill] sm:$0xff]  ;;  %v18791_v32 = vld [vmem:[#allocation28_spill] sm:$0xff]  ;;  %v2598_v5 = vld [vmem:[%s18667_s2 + $0x40] sm:$0xff] }
 0x30b   :  { %v14314_v26 = vpop.f32.mrf.mxu0  ;;  %v10634_v62 = vadd.f32 %v18791_v32, %v18790_v8  ;;  %v2308_v50 = vmax.f32 %v18794_v52, %v10637_v57  ;;  %v3230_v32 = vld [vmem:[%s18667_s2 + $0xc8] sm:$0xff] }
 0x30c   :  { %18787 = vst [vmem:[#allocation6_spill] sm:$0xff] %v14314_v26  ;;  %v10537_v26 = vadd.f32 %v14276_v27, %v14272_v17  ;;  %v2185_v54 = vmax.f32 %v2056_v38, %v10599_v41  ;;  %v2184_v13 = vmax.f32 %v2055_v14, %v10596_v3  ;;  %v10652_v17 = vadd.f32 %v10651_v22, %v10650_v61  ;;  %v18795_v61 = vld [vmem:[#allocation25_spill] sm:$0xff]  ;;  %v2445_v3 = vld [vmem:[%s18667_s2 + $0x8] sm:$0xff]  ;;  %v2448_v14 = vld [vmem:[%s18667_s2 + $0x20] sm:$0xff] }
 0x30d   :  { %v10697_v53 = vpop.f32.mrf.mxu0  ;;  %v10528_v27 = vadd.f32 %v14252_v43, %v14245_v0  ;;  %v2181_v43 = vmax.f32 %v2052_v2, %v10587_v36  ;;  %v18792_v4 = vld [vmem:[#allocation14_spill] sm:$0xff] }
 0x30e   :  { %v2054_v63 = vmax.f32 %v14274_v19, %v10537_v26  ;;  %v2314_v28 = vmax.f32 %v2185_v54, %v10655_v59  ;;  %v10646_v19 = vadd.f32 %v10645_v11, %v10644_v60  ;;  %v2313_v24 = vmax.f32 %v2184_v13, %v10652_v17  ;;  %v2450_v54 = vld [vmem:[%s18667_s2 + $0x30] sm:$0xff]  ;;  %v2451_v59 = vld [vmem:[%s18667_s2 + $0x38] sm:$0xff]  ;;  %v2594_v36 = vld [vmem:[%s18666_s7 + $0x60] sm:$0xff] }
 0x30f   :  { %v10698_v40 = vpop.f32.mrf.mxu0  ;;  %v2051_v0 = vmax.f32 %v14250_v56, %v10528_v27  ;;  %v2310_v42 = vmax.f32 %v2181_v43, %v10643_v6  ;;  %v18793_v15 = vld [vmem:[#allocation38_spill] sm:$0xff]  ;;  %v2596_v13 = vld [vmem:[%s18666_s7 + $0x70] sm:$0xff]  ;;  %v2601_v17 = vld [vmem:[%s18667_s2 + $0x58] sm:$0xff] }
 0x310   :  { %v2183_v30 = vmax.f32 %v2054_v63, %v10593_v16  ;;  %v2311_v29 = vmax.f32 %v2182_v25, %v10646_v19  ;;  %v10699_v56 = vadd.f32 %v10698_v40, %v10697_v53  ;;  %v10693_v38 = vadd.f32 %v18793_v15, %v18792_v4  ;;  %v18796_v53 = vld [vmem:[#allocation29_spill] sm:$0xff]  ;;  %v2449_v16 = vld [vmem:[%s18667_s2 + $0x28] sm:$0xff]  ;;  %v2590_v2 = vld [vmem:[%s18666_s7 + $0x40] sm:$0xff] }
 0x311   :  { %v10700_v49 = vpop.f32.mrf.mxu0  ;;  %v18788_v34 = vld [vmem:[#allocation42_spill] sm:$0xff]  ;;  %v10690_v40 = vadd.f32 %v18796_v53, %v18795_v61  ;;  %v2597_v63 = vld [vmem:[%s18666_s7 + $0x78] sm:$0xff]  ;;  %v2595_v27 = vld [vmem:[%s18666_s7 + $0x68] sm:$0xff] }
 0x312   :  { %v2312_v39 = vmax.f32 %v2183_v30, %v10649_v48  ;;  %v14361_v26 = vmax.f32 %v2310_v42, %v10699_v56  ;;  %v14373_v37 = vmax.f32 %v2308_v50, %v10693_v38  ;;  %v2603_v48 = vld [vmem:[%s18667_s2 + $0x68] sm:$0xff]  ;;  %v2604_v30 = vld [vmem:[%s18667_s2 + $0x70] sm:$0xff]  ;;  %v2582_v6 = vld [vmem:[%s18666_s7] sm:$0xff] }
 0x313   :  { %v10701_v33 = vpop.f32.mrf.mxu0  ;;  %v18789_v60 = vld [vmem:[#allocation6_spill] sm:$0xff]  ;;  %v2588_v19 = vld [vmem:[%s18666_s7 + $0x30] sm:$0xff]  ;;  %v2587_v25 = vld [vmem:[%s18666_s7 + $0x28] sm:$0xff] }
 0x314   :  { %v10696_v11 = vadd.f32 %v18789_v60, %v18788_v34  ;;  %v2583_v43 = vld [vmem:[%s18666_s7 + $0x8] sm:$0xff]  ;;  %v3229_v34 = vld [vmem:[%s18667_s2 + $0xc0] sm:$0xff]  ;;  %v3231_v15 = vld [vmem:[%s18667_s2 + $0xd0] sm:$0xff] }
 0x315   :  { %v10703_v55 = vpop.f32.mrf.mxu0  ;;  %v9095_v38 = vld [vmem:[%s18666_s7 + $0x1e8] sm:$0xff]  ;;  %v3232_v50 = vld [vmem:[%s18667_s2 + $0xd8] sm:$0xff]  ;;  %v9094_v61 = vld [vmem:[%s18666_s7 + $0x1e0] sm:$0xff] }
 0x317   :  { %v10704_v58 = vpop.f32.mrf.mxu0 }
 0x318   :  { %v10705_v12 = vadd.f32 %v10704_v58, %v10703_v55  ;;  %v2180_v55 = vmax.f32 %v2051_v0, %v10584_v18  ;;  %v2589_v18 = vld [vmem:[%s18666_s7 + $0x38] sm:$0xff]  ;;  %v2584_v0 = vld [vmem:[%s18666_s7 + $0x10] sm:$0xff] }
 0x319   :  { %v10706_v51 = vpop.f32.mrf.mxu0 }
 0x31a   :  { %v14345_v58 = vmax.f32 %v2312_v39, %v10705_v12  ;;  %v2309_v41 = vmax.f32 %v2180_v55, %v10640_v46  ;;  %v2585_v12 = vld [vmem:[%s18666_s7 + $0x18] sm:$0xff] }
 0x31b   :  { %v10707_v31 = vpop.f32.mrf.mxu0 }
 0x31c   :  { %v10708_v45 = vadd.f32 %v10707_v31, %v10706_v51  ;;  %v10702_v51 = vadd.f32 %v10701_v33, %v10700_v49  ;;  %v14368_v22 = vmax.f32 %v2309_v41, %v10696_v11  ;;  %v18797_v49 = vld [vmem:[#allocation43_spill] sm:$0xff]  ;;  %v2447_v31 = vld [vmem:[%s18667_s2 + $0x18] sm:$0xff]  ;;  %v9096_v41 = vld [vmem:[%s18666_s7 + $0x1f0] sm:$0xff] }
 0x31d   :  { %v10709_v23 = vpop.f32.mrf.mxu0  ;;  %v2307_v33 = vmax.f32 %v18797_v49, %v10634_v62  ;;  %v9097_v11 = vld [vmem:[%s18666_s7 + $0x1f8] sm:$0xff] }
 0x31e   :  { %v14338_v7 = vmax.f32 %v2313_v24, %v10708_v45  ;;  %v14353_v20 = vmax.f32 %v2311_v29, %v10702_v51  ;;  %v2605_v45 = vld [vmem:[%s18667_s2 + $0x78] sm:$0xff]  ;;  %v2586_v24 = vld [vmem:[%s18666_s7 + $0x20] sm:$0xff] }
 0x31f   :  { %v10710_v47 = vpop.f32.mrf.mxu0  ;;  %v14377_v10 = vmax.f32 %v2307_v33, %v10690_v40  ;;  %v3233_v40 = vld [vmem:[%s18667_s2 + $0xe0] sm:$0xff]  ;;  %v9093_v49 = vld [vmem:[%s18666_s7 + $0x1d8] sm:$0xff] }
 0x320   :  { %v10711_v9 = vadd.f32 %v10710_v47, %v10709_v23  ;;  %v2599_v23 = vld [vmem:[%s18667_s2 + $0x48] sm:$0xff]  ;;  %v2593_v47 = vld [vmem:[%s18666_s7 + $0x58] sm:$0xff] }
 0x322   :  { %v14333_v1 = vmax.f32 %v2314_v28, %v10711_v9  ;;  %v2592_v28 = vld [vmem:[%s18666_s7 + $0x50] sm:$0xff]  ;;  %v2591_v9 = vld [vmem:[%s18666_s7 + $0x48] sm:$0xff] }
 0x324   :  { %11482 = vmatprep.subr.mxu1 %v14333_v1  ;;  %11626 = vmatprep.subr.mxu0 %v14333_v1 }
 0x325   :  { %11483 = vmatpush3.msra.mxu1 %v14333_v1 }
 0x326   :  { %11484 = vmatprep.subr.mxu1 %v14338_v7 }
 0x327   :  { %11485 = vmatpush3.msra.mxu1 %v14338_v7 }
 0x328   :  { %11486 = vmatprep.subr.mxu1 %v14345_v58 }
 0x329   :  { %11487 = vmatpush3.msra.mxu1 %v14345_v58 }
 0x32a   :  { %11488 = vmatprep.subr.mxu1 %v14353_v20 }
 0x32b   :  { %11489 = vmatpush3.msra.mxu1 %v14353_v20 }
 0x32c   :  { %11490 = vmatprep.subr.mxu1 %v14361_v26 }
 0x32d   :  { %11491 = vmatpush3.msra.mxu1 %v14361_v26 }
 0x32e   :  { %11492 = vmatprep.subr.mxu1 %v14368_v22 }
 0x32f   :  { %11493 = vmatpush3.msra.mxu1 %v14368_v22 }
 0x330   :  { %11494 = vmatprep.subr.mxu1 %v14373_v37 }
 0x331   :  { %11495 = vmatpush3.msra.mxu1 %v14373_v37 }
 0x332   :  { %11496 = vmatprep.subr.mxu1 %v14377_v10 }
 0x333   :  { %11497 = vmatpush3.msra.mxu1 %v14377_v10 }
 0x334   :  { %11499 = vmatmul.mubr.msk.f32.vlgmr.msra.gmra.mxu1 %vm2452_vm0, %v2445_v3  ;;  %11510 = vmatprep.subr.mxu1 %v14333_v1  ;;  %v3234_v3 = vld [vmem:[%s18667_s2 + $0xe8] sm:$0xff] }
 0x335   :  { %11511 = vmatpush3.msra.mxu1 %v14333_v1  ;;  %11501 = vmatprep.mubr.msk.f32.mxu1 %vm2452_vm0, %v2446_v44  ;;  %v9092_v44 = vld [vmem:[%s18666_s7 + $0x1d0] sm:$0xff] }
 0x336   :  { %11512 = vmatprep.subr.mxu1 %v14338_v7 }
 0x337   :  { %11513 = vmatpush3.msra.mxu1 %v14338_v7 }
 0x338   :  { %11502 = vmatmul.mubr.msk.f32.gmra.mxu1 %vm2452_vm0, %v2447_v31  ;;  %11514 = vmatprep.subr.mxu1 %v14345_v58 }
 0x339   :  { %11515 = vmatpush3.msra.mxu1 %v14345_v58  ;;  %11504 = vmatprep.mubr.msk.f32.mxu1 %vm2452_vm0, %v2448_v14  ;;  %v3235_v14 = vld [vmem:[%s18667_s2 + $0xf0] sm:$0xff] }
 0x33a   :  { %11516 = vmatprep.subr.mxu1 %v14353_v20 }
 0x33b   :  { %11517 = vmatpush3.msra.mxu1 %v14353_v20 }
 0x33c   :  { %11505 = vmatmul.mubr.msk.f32.gmra.mxu1 %vm2452_vm0, %v2449_v16  ;;  %11518 = vmatprep.subr.mxu1 %v14361_v26  ;;  %v9091_v16 = vld [vmem:[%s18666_s7 + $0x1c8] sm:$0xff] }
 0x33d   :  { %11519 = vmatpush3.msra.mxu1 %v14361_v26  ;;  %11507 = vmatprep.mubr.msk.f32.mxu1 %vm2452_vm0, %v2450_v54  ;;  %v3236_v54 = vld [vmem:[%s18667_s2 + $0xf8] sm:$0xff] }
 0x33e   :  { %11520 = vmatprep.subr.mxu1 %v14368_v22 }
 0x33f   :  { %11521 = vmatpush3.msra.mxu1 %v14368_v22 }
 0x340   :  { %11508 = vmatmul.mubr.msk.f32.gmra.mxu1 %vm2452_vm0, %v2451_v59  ;;  %11522 = vmatprep.subr.mxu1 %v14373_v37  ;;  %v9090_v59 = vld [vmem:[%s18666_s7 + $0x1c0] sm:$0xff] }
 0x341   :  { %11523 = vmatpush3.msra.mxu1 %v14373_v37  ;;  %11526 = vmatprep.mubr.msk.f32.mxu1 %vm2452_vm0, %v2598_v5  ;;  %v2962_v5 = vld [vmem:[%s18667_s2 + $0x80] sm:$0xff] }
 0x342   :  { %11524 = vmatprep.subr.mxu1 %v14377_v10 }
 0x343   :  { %11525 = vmatpush3.msra.mxu1 %v14377_v10 }
 0x344   :  { %11527 = vmatmul.mubr.msk.f32.vlgmr.msra.gmra.mxu1 %vm2452_vm0, %v2599_v23  ;;  %11582 = vmatprep.subr.mxu1 %v2597_v63  ;;  %v9073_v23 = vld [vmem:[%s18666_s7 + $0x178] sm:$0xff] }
 0x345   :  { %11583 = vmatpush3.msra.mxu1 %v2597_v63  ;;  %11529 = vmatprep.mubr.msk.f32.mxu1 %vm2452_vm0, %v2600_v21  ;;  %v9089_v63 = vld [vmem:[%s18666_s7 + $0x1b8] sm:$0xff]  ;;  %v2963_v21 = vld [vmem:[%s18667_s2 + $0x88] sm:$0xff] }
 0x346   :  { %11584 = vmatprep.subr.mxu1 %v2596_v13 }
 0x347   :  { %11585 = vmatpush3.msra.mxu1 %v2596_v13  ;;  %v9088_v13 = vld [vmem:[%s18666_s7 + $0x1b0] sm:$0xff] }
 0x348   :  { %11530 = vmatmul.mubr.msk.f32.gmra.mxu1 %vm2452_vm0, %v2601_v17  ;;  %11586 = vmatprep.subr.mxu1 %v2595_v27  ;;  %v9072_v17 = vld [vmem:[%s18666_s7 + $0x170] sm:$0xff] }
 0x349   :  { %11587 = vmatpush3.msra.mxu1 %v2595_v27  ;;  %11532 = vmatprep.mubr.msk.f32.mxu1 %vm2452_vm0, %v2602_v35  ;;  %v2964_v27 = vld [vmem:[%s18667_s2 + $0x90] sm:$0xff]  ;;  %v9071_v35 = vld [vmem:[%s18666_s7 + $0x168] sm:$0xff] }
 0x34a   :  { %11588 = vmatprep.subr.mxu1 %v2594_v36 }
 0x34b   :  { %11589 = vmatpush3.msra.mxu1 %v2594_v36  ;;  %v9087_v36 = vld [vmem:[%s18666_s7 + $0x1a8] sm:$0xff] }
 0x34c   :  { %11533 = vmatmul.mubr.msk.f32.gmra.mxu1 %vm2452_vm0, %v2603_v48  ;;  %11590 = vmatprep.subr.mxu1 %v2593_v47  ;;  %v2965_v48 = vld [vmem:[%s18667_s2 + $0x98] sm:$0xff] }
 0x34d   :  { %11591 = vmatpush3.msra.mxu1 %v2593_v47  ;;  %11535 = vmatprep.mubr.msk.f32.mxu1 %vm2452_vm0, %v2604_v30  ;;  %v9086_v47 = vld [vmem:[%s18666_s7 + $0x1a0] sm:$0xff] }
 0x34e   :  { %11592 = vmatprep.subr.mxu1 %v2592_v28  ;;  %v9070_v30 = vld [vmem:[%s18666_s7 + $0x160] sm:$0xff] }
 0x34f   :  { %11593 = vmatpush3.msra.mxu1 %v2592_v28  ;;  %v2966_v28 = vld [vmem:[%s18667_s2 + $0xa0] sm:$0xff] }
 0x350   :  { %11536 = vmatmul.mubr.msk.f32.gmra.mxu1 %vm2452_vm0, %v2605_v45  ;;  %11594 = vmatprep.subr.mxu1 %v2591_v9  ;;  %v9069_v45 = vld [vmem:[%s18666_s7 + $0x158] sm:$0xff] }
 0x351   :  { %11595 = vmatpush3.msra.mxu1 %v2591_v9  ;;  %v9085_v9 = vld [vmem:[%s18666_s7 + $0x198] sm:$0xff] }
 0x352   :  { %11596 = vmatprep.subr.mxu1 %v2590_v2 }
 0x353   :  { %11597 = vmatpush3.msra.mxu1 %v2590_v2  ;;  %v2967_v2 = vld [vmem:[%s18667_s2 + $0xa8] sm:$0xff] }
 0x354   :  { %11598 = vmatprep.subr.mxu1 %v2589_v18 }
 0x355   :  { %11599 = vmatpush3.msra.mxu1 %v2589_v18  ;;  %v9084_v18 = vld [vmem:[%s18666_s7 + $0x190] sm:$0xff] }
 0x356   :  { %11600 = vmatprep.subr.mxu1 %v2588_v19 }
 0x357   :  { %11601 = vmatpush3.msra.mxu1 %v2588_v19  ;;  %v9068_v19 = vld [vmem:[%s18666_s7 + $0x150] sm:$0xff] }
 0x358   :  { %11602 = vmatprep.subr.mxu1 %v2587_v25 }
 0x359   :  { %11603 = vmatpush3.msra.mxu1 %v2587_v25  ;;  %v2968_v25 = vld [vmem:[%s18667_s2 + $0xb0] sm:$0xff] }
 0x35a   :  { %11604 = vmatprep.subr.mxu1 %v2586_v24 }
 0x35b   :  { %11605 = vmatpush3.msra.mxu1 %v2586_v24  ;;  %v9067_v24 = vld [vmem:[%s18666_s7 + $0x148] sm:$0xff] }
 0x35c   :  { %11606 = vmatprep.subr.mxu1 %v2585_v12 }
 0x35d   :  { %11607 = vmatpush3.msra.mxu1 %v2585_v12  ;;  %v9083_v12 = vld [vmem:[%s18666_s7 + $0x188] sm:$0xff] }
 0x35e   :  { %11608 = vmatprep.subr.mxu1 %v2584_v0 }
 0x35f   :  { %11609 = vmatpush3.msra.mxu1 %v2584_v0  ;;  %v2969_v0 = vld [vmem:[%s18667_s2 + $0xb8] sm:$0xff] }
 0x360   :  { %11610 = vmatprep.subr.mxu1 %v2583_v43 }
 0x361   :  { %11611 = vmatpush3.msra.mxu1 %v2583_v43  ;;  %v9082_v43 = vld [vmem:[%s18666_s7 + $0x180] sm:$0xff] }
 0x362   :  { %11612 = vmatprep.subr.mxu1 %v2582_v6 }
 0x363   :  { %11613 = vmatpush3.msra.mxu1 %v2582_v6  ;;  %v9066_v6 = vld [vmem:[%s18666_s7 + $0x140] sm:$0xff] }
 0x364   :  { %11698 = vmatprep.subr.mxu1 %v14333_v1 }
 0x3f4   :  { %v11500_v39 = vpop.f32.mrf.mxu1 }
 0x3f6   :  { %v2543_v51 = vpop.f32.mrf.mxu1 }
 0x3f7   :  { %11614 = vmatprep.mubr.f32.mxu1 %v2543_v51  ;;  %v9064_v51 = vld [vmem:[%s18666_s7 + $0x130] sm:$0xff] }
 0x3f8   :  { %v11503_v46 = vpop.f32.mrf.mxu1  ;;  %11615 = vmatmul.mubr.f32.vlgmr.msra.gmra.mxu1 %v11500_v39  ;;  %v9065_v39 = vld [vmem:[%s18666_s7 + $0x138] sm:$0xff] }
 0x3f9   :  { %11699 = vmatpush3.msra.mxu1 %v14333_v1 }
 0x3fa   :  { %11700 = vmatprep.subr.mxu1 %v14338_v7  ;;  %v2553_v55 = vpop.f32.mrf.mxu1 }
 0x3fb   :  { %11701 = vmatpush3.msra.mxu1 %v14338_v7  ;;  %11617 = vmatprep.mubr.f32.mxu1 %v2553_v55  ;;  %v9062_v55 = vld [vmem:[%s18666_s7 + $0x120] sm:$0xff] }
 0x3fc   :  { %11702 = vmatprep.subr.mxu1 %v14345_v58  ;;  %v11506_v29 = vpop.f32.mrf.mxu1  ;;  %11618 = vmatmul.mubr.f32.gmra.mxu1 %v11503_v46  ;;  %v9063_v46 = vld [vmem:[%s18666_s7 + $0x128] sm:$0xff] }
 0x3fd   :  { %11703 = vmatpush3.msra.mxu1 %v14345_v58 }
 0x3fe   :  { %11704 = vmatprep.subr.mxu1 %v14353_v20  ;;  %v2563_v56 = vpop.f32.mrf.mxu1 }
 0x3ff   :  { %11705 = vmatpush3.msra.mxu1 %v14353_v20  ;;  %11620 = vmatprep.mubr.f32.mxu1 %v2563_v56  ;;  %v9060_v56 = vld [vmem:[%s18666_s7 + $0x110] sm:$0xff] }
 0x400   :  { %11706 = vmatprep.subr.mxu1 %v14361_v26  ;;  %v11509_v57 = vpop.f32.mrf.mxu1  ;;  %11621 = vmatmul.mubr.f32.gmra.mxu1 %v11506_v29  ;;  %v9061_v29 = vld [vmem:[%s18666_s7 + $0x118] sm:$0xff] }
 0x401   :  { %11707 = vmatpush3.msra.mxu1 %v14361_v26 }
 0x402   :  { %11708 = vmatprep.subr.mxu1 %v14368_v22  ;;  %v2573_v42 = vpop.f32.mrf.mxu1 }
 0x403   :  { %11709 = vmatpush3.msra.mxu1 %v14368_v22  ;;  %11623 = vmatprep.mubr.f32.mxu1 %v2573_v42  ;;  %v9058_v42 = vld [vmem:[%s18666_s7 + $0x100] sm:$0xff] }
 0x404   :  { %11710 = vmatprep.subr.mxu1 %v14373_v37  ;;  %v11528_v60 = vpop.f32.mrf.mxu1  ;;  %11624 = vmatmul.mubr.f32.gmra.mxu1 %v11509_v57  ;;  %v9059_v57 = vld [vmem:[%s18666_s7 + $0x108] sm:$0xff] }
 0x405   :  { %11711 = vmatpush3.msra.mxu1 %v14373_v37  ;;  %11714 = vmatprep.mubr.msk.f32.mxu1 %vm2452_vm0, %v3229_v34 }
 0x406   :  { %11712 = vmatprep.subr.mxu1 %v14377_v10  ;;  %v2696_v8 = vpop.f32.mrf.mxu1 }
 0x407   :  { %11713 = vmatpush3.msra.mxu1 %v14377_v10  ;;  %11570 = vmatprep.mubr.f32.mxu0 %v2696_v8 }
 0x408   :  { %11726 = vmatprep.subr.mxu1 %v9097_v11  ;;  %v11531_v62 = vpop.f32.mrf.mxu1  ;;  %11571 = vmatmul.mubr.f32.vlgmr.msra.gmra.mxu0 %v11528_v60 }
 0x409   :  { %11627 = vmatpush3.msra.mxu0 %v14333_v1  ;;  %11715 = vmatmul.mubr.msk.f32.vlgmr.msra.gmra.mxu1 %vm2452_vm0, %v3230_v32 }
 0x40a   :  { %11727 = vmatpush3.msra.mxu1 %v9097_v11  ;;  %11628 = vmatprep.subr.mxu0 %v14338_v7  ;;  %v2706_v4 = vpop.f32.mrf.mxu1 }
 0x40b   :  { %11728 = vmatprep.subr.mxu1 %v9096_v41  ;;  %11629 = vmatpush3.msra.mxu0 %v14338_v7 }
 0x40c   :  { %11729 = vmatpush3.msra.mxu1 %v9096_v41  ;;  %11573 = vmatprep.mubr.f32.mxu0 %v2706_v4  ;;  %v11534_v52 = vpop.f32.mrf.mxu1 }
 0x40d   :  { %11630 = vmatprep.subr.mxu0 %v14345_v58  ;;  %11717 = vmatprep.mubr.msk.f32.mxu1 %vm2452_vm0, %v3231_v15 }
 0x40e   :  { %11730 = vmatprep.subr.mxu1 %v9095_v38  ;;  %11574 = vmatmul.mubr.f32.gmra.mxu0 %v11531_v62  ;;  %v2716_v53 = vpop.f32.mrf.mxu1 }
 0x40f   :  { %11631 = vmatpush3.msra.mxu0 %v14345_v58  ;;  %11718 = vmatmul.mubr.msk.f32.gmra.mxu1 %vm2452_vm0, %v3232_v50 }
 0x410   :  { %11731 = vmatpush3.msra.mxu1 %v9095_v38  ;;  %11632 = vmatprep.subr.mxu0 %v14353_v20  ;;  %v11537_v33 = vpop.f32.mrf.mxu1 }
 0x411   :  { %11732 = vmatprep.subr.mxu1 %v9094_v61  ;;  %11633 = vmatpush3.msra.mxu0 %v14353_v20 }
 0x412   :  { %11733 = vmatpush3.msra.mxu1 %v9094_v61  ;;  %11576 = vmatprep.mubr.f32.mxu0 %v2716_v53  ;;  %v2726_v31 = vpop.f32.mrf.mxu1 }
 0x413   :  { %11634 = vmatprep.subr.mxu0 %v14361_v26  ;;  %11720 = vmatprep.mubr.msk.f32.mxu1 %vm2452_vm0, %v3233_v40 }
 0x414   :  { %11734 = vmatprep.subr.mxu1 %v9093_v49  ;;  %11577 = vmatmul.mubr.f32.gmra.mxu0 %v11534_v52 }
 0x415   :  { %11635 = vmatpush3.msra.mxu0 %v14361_v26  ;;  %11721 = vmatmul.mubr.msk.f32.gmra.mxu1 %vm2452_vm0, %v3234_v3 }
 0x416   :  { %11735 = vmatpush3.msra.mxu1 %v9093_v49  ;;  %11636 = vmatprep.subr.mxu0 %v14368_v22 }
 0x417   :  { %11736 = vmatprep.subr.mxu1 %v9092_v44  ;;  %11637 = vmatpush3.msra.mxu0 %v14368_v22 }
 0x418   :  { %11737 = vmatpush3.msra.mxu1 %v9092_v44  ;;  %11579 = vmatprep.mubr.f32.mxu0 %v2726_v31 }
 0x419   :  { %11638 = vmatprep.subr.mxu0 %v14373_v37  ;;  %11723 = vmatprep.mubr.msk.f32.mxu1 %vm2452_vm0, %v3235_v14 }
 0x41a   :  { %11738 = vmatprep.subr.mxu1 %v9091_v16  ;;  %11580 = vmatmul.mubr.f32.gmra.mxu0 %v11537_v33 }
 0x41b   :  { %11639 = vmatpush3.msra.mxu0 %v14373_v37  ;;  %11724 = vmatmul.mubr.msk.f32.gmra.mxu1 %vm2452_vm0, %v3236_v54 }
 0x41c   :  { %11739 = vmatpush3.msra.mxu1 %v9091_v16  ;;  %11640 = vmatprep.subr.mxu0 %v14377_v10 }
 0x41d   :  { %11740 = vmatprep.subr.mxu1 %v9090_v59  ;;  %11641 = vmatpush3.msra.mxu0 %v14377_v10 }
 0x41e   :  { %11741 = vmatpush3.msra.mxu1 %v9090_v59  ;;  %11642 = vmatprep.mubr.msk.f32.mxu0 %vm2452_vm0, %v2962_v5  ;;  %v9145_v5 = vld [vmem:[%s18666_s7 + $0x2f8] sm:$0xff] }
 0x41f   :  { %11654 = vmatprep.subr.mxu0 %v9073_v23  ;;  %11742 = vmatprep.subr.mxu1 %v9089_v63 }
 0x420   :  { %11643 = vmatmul.mubr.msk.f32.vlgmr.msra.gmra.mxu0 %vm2452_vm0, %v2963_v21  ;;  %11743 = vmatpush3.msra.mxu1 %v9089_v63 }
 0x421   :  { %11655 = vmatpush3.msra.mxu0 %v9073_v23  ;;  %11744 = vmatprep.subr.mxu1 %v9088_v13 }
 0x422   :  { %11656 = vmatprep.subr.mxu0 %v9072_v17  ;;  %11745 = vmatpush3.msra.mxu1 %v9088_v13 }
 0x423   :  { %11657 = vmatpush3.msra.mxu0 %v9072_v17  ;;  %11645 = vmatprep.mubr.msk.f32.mxu0 %vm2452_vm0, %v2964_v27  ;;  %v3763_v27 = vld [vmem:[%s18667_s2 + $0x140] sm:$0xff] }
 0x424   :  { %11658 = vmatprep.subr.mxu0 %v9071_v35  ;;  %11746 = vmatprep.subr.mxu1 %v9087_v36 }
 0x425   :  { %11646 = vmatmul.mubr.msk.f32.gmra.mxu0 %vm2452_vm0, %v2965_v48  ;;  %11747 = vmatpush3.msra.mxu1 %v9087_v36  ;;  %v3764_v36 = vld [vmem:[%s18667_s2 + $0x148] sm:$0xff] }
 0x426   :  { %11659 = vmatpush3.msra.mxu0 %v9071_v35  ;;  %11748 = vmatprep.subr.mxu1 %v9086_v47 }
 0x427   :  { %11660 = vmatprep.subr.mxu0 %v9070_v30  ;;  %11749 = vmatpush3.msra.mxu1 %v9086_v47  ;;  %v9144_v47 = vld [vmem:[%s18666_s7 + $0x2f0] sm:$0xff] }
 0x428   :  { %11661 = vmatpush3.msra.mxu0 %v9070_v30  ;;  %11648 = vmatprep.mubr.msk.f32.mxu0 %vm2452_vm0, %v2966_v28  ;;  %v9143_v30 = vld [vmem:[%s18666_s7 + $0x2e8] sm:$0xff] }
 0x429   :  { %11662 = vmatprep.subr.mxu0 %v9069_v45  ;;  %11750 = vmatprep.subr.mxu1 %v9085_v9 }
 0x42a   :  { %11649 = vmatmul.mubr.msk.f32.gmra.mxu0 %vm2452_vm0, %v2967_v2  ;;  %11751 = vmatpush3.msra.mxu1 %v9085_v9  ;;  %v9142_v9 = vld [vmem:[%s18666_s7 + $0x2e0] sm:$0xff]  ;;  %v9141_v2 = vld [vmem:[%s18666_s7 + $0x2d8] sm:$0xff] }
 0x42b   :  { %11663 = vmatpush3.msra.mxu0 %v9069_v45  ;;  %11752 = vmatprep.subr.mxu1 %v9084_v18 }
 0x42c   :  { %11664 = vmatprep.subr.mxu0 %v9068_v19  ;;  %11753 = vmatpush3.msra.mxu1 %v9084_v18 }
 0x42d   :  { %11665 = vmatpush3.msra.mxu0 %v9068_v19  ;;  %11651 = vmatprep.mubr.msk.f32.mxu0 %vm2452_vm0, %v2968_v25  ;;  %v9140_v25 = vld [vmem:[%s18666_s7 + $0x2d0] sm:$0xff] }
 0x42e   :  { %11666 = vmatprep.subr.mxu0 %v9067_v24  ;;  %11754 = vmatprep.subr.mxu1 %v9083_v12 }
 0x42f   :  { %11652 = vmatmul.mubr.msk.f32.gmra.mxu0 %vm2452_vm0, %v2969_v0  ;;  %11755 = vmatpush3.msra.mxu1 %v9083_v12 }
 0x430   :  { %11667 = vmatpush3.msra.mxu0 %v9067_v24  ;;  %11756 = vmatprep.subr.mxu1 %v9082_v43  ;;  %v9139_v24 = vld [vmem:[%s18666_s7 + $0x2c8] sm:$0xff] }
 0x431   :  { %11668 = vmatprep.subr.mxu0 %v9066_v6  ;;  %11757 = vmatpush3.msra.mxu1 %v9082_v43  ;;  %v9138_v43 = vld [vmem:[%s18666_s7 + $0x2c0] sm:$0xff] }
 0x432   :  { %11669 = vmatpush3.msra.mxu0 %v9066_v6  ;;  %11842 = vmatprep.subr.mxu1 %v14333_v1  ;;  %v3496_v6 = vld [vmem:[%s18667_s2 + $0x100] sm:$0xff] }
 0x433   :  { %11670 = vmatprep.subr.mxu0 %v9065_v39 }
 0x434   :  { %11671 = vmatpush3.msra.mxu0 %v9065_v39  ;;  %v9121_v39 = vld [vmem:[%s18666_s7 + $0x278] sm:$0xff] }
 0x435   :  { %11672 = vmatprep.subr.mxu0 %v9064_v51 }
 0x436   :  { %11673 = vmatpush3.msra.mxu0 %v9064_v51  ;;  %v9137_v51 = vld [vmem:[%s18666_s7 + $0x2b8] sm:$0xff] }
 0x437   :  { %11674 = vmatprep.subr.mxu0 %v9063_v46 }
 0x438   :  { %11675 = vmatpush3.msra.mxu0 %v9063_v46  ;;  %v3497_v46 = vld [vmem:[%s18667_s2 + $0x108] sm:$0xff] }
 0x439   :  { %11676 = vmatprep.subr.mxu0 %v9062_v55 }
 0x43a   :  { %11677 = vmatpush3.msra.mxu0 %v9062_v55  ;;  %v9136_v55 = vld [vmem:[%s18666_s7 + $0x2b0] sm:$0xff] }
 0x43b   :  { %11678 = vmatprep.subr.mxu0 %v9061_v29 }
 0x43c   :  { %11679 = vmatpush3.msra.mxu0 %v9061_v29  ;;  %v9120_v29 = vld [vmem:[%s18666_s7 + $0x270] sm:$0xff] }
 0x43d   :  { %11680 = vmatprep.subr.mxu0 %v9060_v56 }
 0x43e   :  { %11681 = vmatpush3.msra.mxu0 %v9060_v56  ;;  %v3498_v56 = vld [vmem:[%s18667_s2 + $0x110] sm:$0xff] }
 0x43f   :  { %11682 = vmatprep.subr.mxu0 %v9059_v57 }
 0x440   :  { %11683 = vmatpush3.msra.mxu0 %v9059_v57  ;;  %v9119_v57 = vld [vmem:[%s18666_s7 + $0x268] sm:$0xff] }
 0x441   :  { %11684 = vmatprep.subr.mxu0 %v9058_v42 }
 0x442   :  { %11685 = vmatpush3.msra.mxu0 %v9058_v42  ;;  %v9135_v42 = vld [vmem:[%s18666_s7 + $0x2a8] sm:$0xff] }
 0x443   :  { %11770 = vmatprep.subr.mxu0 %v14333_v1 }
 0x4b8   :  { %v11616_v34 = vpop.f32.mrf.mxu1 }
 0x4ba   :  { %v14700_v60 = vpop.f32.mrf.mxu1 }
 0x4bc   :  { %v11619_v11 = vpop.f32.mrf.mxu1 }
 0x4be   :  { %v14702_v8 = vpop.f32.mrf.mxu1 }
 0x4c0   :  { %v11622_v32 = vpop.f32.mrf.mxu1 }
 0x4c2   :  { %v14704_v62 = vpop.f32.mrf.mxu1 }
 0x4c4   :  { %v11625_v41 = vpop.f32.mrf.mxu1 }
 0x4c6   :  { %v2953_v4 = vpop.f32.mrf.mxu1 }
 0x4c8   :  { %v11572_v15 = vpop.f32.mrf.mxu0 }
 0x4c9   :  { %v14706_v38 = vadd.f32 %v11616_v34, %v11572_v15  ;;  %v11716_v52 = vpop.f32.mrf.mxu1  ;;  %v3499_v34 = vld [vmem:[%s18667_s2 + $0x118] sm:$0xff]  ;;  %v3500_v15 = vld [vmem:[%s18667_s2 + $0x120] sm:$0xff] }
 0x4ca   :  { %v14708_v50 = vpop.f32.mrf.mxu0 }
 0x4cb   :  { %v3327_v61 = vpop.f32.mrf.mxu1 }
 0x4cc   :  { %11758 = vmatprep.mubr.f32.mxu1 %v3327_v61  ;;  %v9133_v61 = vld [vmem:[%s18666_s7 + $0x298] sm:$0xff] }
 0x4cd   :  { %11759 = vmatmul.mubr.f32.vlgmr.msra.gmra.mxu1 %v11716_v52  ;;  %v9117_v52 = vld [vmem:[%s18666_s7 + $0x258] sm:$0xff] }
 0x4ce   :  { %v11575_v53 = vpop.f32.mrf.mxu0  ;;  %11843 = vmatpush3.msra.mxu1 %v14333_v1 }
 0x4cf   :  { %v14711_v40 = vadd.f32 %v11619_v11, %v11575_v53  ;;  %v11719_v49 = vpop.f32.mrf.mxu1  ;;  %11844 = vmatprep.subr.mxu1 %v14338_v7  ;;  %v3765_v11 = vld [vmem:[%s18667_s2 + $0x150] sm:$0xff]  ;;  %v3501_v53 = vld [vmem:[%s18667_s2 + $0x128] sm:$0xff] }
 0x4d0   :  { %v14714_v33 = vpop.f32.mrf.mxu0  ;;  %11845 = vmatpush3.msra.mxu1 %v14338_v7 }
 0x4d1   :  { %v3337_v3 = vpop.f32.mrf.mxu1  ;;  %11846 = vmatprep.subr.mxu1 %v14345_v58 }
 0x4d2   :  { %11761 = vmatprep.mubr.f32.mxu1 %v3337_v3  ;;  %11847 = vmatpush3.msra.mxu1 %v14345_v58  ;;  %v9116_v3 = vld [vmem:[%s18666_s7 + $0x250] sm:$0xff] }
 0x4d3   :  { %11762 = vmatmul.mubr.f32.gmra.mxu1 %v11719_v49  ;;  %11848 = vmatprep.subr.mxu1 %v14353_v20  ;;  %v3767_v49 = vld [vmem:[%s18667_s2 + $0x160] sm:$0xff] }
 0x4d4   :  { %v11578_v44 = vpop.f32.mrf.mxu0  ;;  %11849 = vmatpush3.msra.mxu1 %v14353_v20 }
 0x4d5   :  { %v14721_v31 = vadd.f32 %v11622_v32, %v11578_v44  ;;  %v11722_v14 = vpop.f32.mrf.mxu1  ;;  %11850 = vmatprep.subr.mxu1 %v14361_v26  ;;  %v9118_v32 = vld [vmem:[%s18666_s7 + $0x260] sm:$0xff]  ;;  %v9132_v44 = vld [vmem:[%s18666_s7 + $0x290] sm:$0xff] }
 0x4d6   :  { %v14724_v16 = vpop.f32.mrf.mxu0  ;;  %11851 = vmatpush3.msra.mxu1 %v14361_v26 }
 0x4d7   :  { %v3347_v54 = vpop.f32.mrf.mxu1  ;;  %11852 = vmatprep.subr.mxu1 %v14368_v22 }
 0x4d8   :  { %11764 = vmatprep.mubr.f32.mxu1 %v3347_v54  ;;  %11853 = vmatpush3.msra.mxu1 %v14368_v22  ;;  %v3502_v54 = vld [vmem:[%s18667_s2 + $0x130] sm:$0xff] }
 0x4d9   :  { %11765 = vmatmul.mubr.f32.gmra.mxu1 %v11722_v14  ;;  %11854 = vmatprep.subr.mxu1 %v14373_v37  ;;  %v3768_v14 = vld [vmem:[%s18667_s2 + $0x168] sm:$0xff] }
 0x4da   :  { %v11581_v59 = vpop.f32.mrf.mxu0  ;;  %11855 = vmatpush3.msra.mxu1 %v14373_v37 }
 0x4db   :  { %v14734_v23 = vadd.f32 %v11625_v41, %v11581_v59  ;;  %v11725_v63 = vpop.f32.mrf.mxu1  ;;  %11856 = vmatprep.subr.mxu1 %v14377_v10  ;;  %v9134_v41 = vld [vmem:[%s18666_s7 + $0x2a0] sm:$0xff]  ;;  %v9115_v59 = vld [vmem:[%s18666_s7 + $0x248] sm:$0xff] }
 0x4dc   :  { %v2848_v21 = vpop.f32.mrf.mxu0  ;;  %11857 = vmatpush3.msra.mxu1 %v14377_v10 }
 0x4dd   :  { %v14738_v13 = vadd.f32 %v2953_v4, %v2848_v21  ;;  %v3357_v17 = vpop.f32.mrf.mxu1  ;;  %11870 = vmatprep.subr.mxu1 %v9145_v5  ;;  %v3766_v4 = vld [vmem:[%s18667_s2 + $0x158] sm:$0xff]  ;;  %v3769_v21 = vld [vmem:[%s18667_s2 + $0x170] sm:$0xff] }
 0x4de   :  { %11767 = vmatprep.mubr.f32.mxu1 %v3357_v17  ;;  %v9114_v17 = vld [vmem:[%s18666_s7 + $0x240] sm:$0xff] }
 0x4df   :  { %11768 = vmatmul.mubr.f32.gmra.mxu1 %v11725_v63  ;;  %v3503_v63 = vld [vmem:[%s18667_s2 + $0x138] sm:$0xff] }
 0x4e0   :  { %v11644_v35 = vpop.f32.mrf.mxu0  ;;  %11858 = vmatprep.mubr.msk.f32.mxu1 %vm2452_vm0, %v3763_v27  ;;  %v9130_v27 = vld [vmem:[%s18666_s7 + $0x280] sm:$0xff] }
 0x4e2   :  { %v3060_v48 = vpop.f32.mrf.mxu0 }
 0x4e3   :  { %11686 = vmatprep.mubr.f32.mxu0 %v3060_v48  ;;  %11859 = vmatmul.mubr.msk.f32.vlgmr.msra.gmra.mxu1 %vm2452_vm0, %v3764_v36  ;;  %v9113_v36 = vld [vmem:[%s18666_s7 + $0x238] sm:$0xff]  ;;  %v9112_v48 = vld [vmem:[%s18666_s7 + $0x230] sm:$0xff] }
 0x4e4   :  { %11687 = vmatmul.mubr.f32.vlgmr.msra.gmra.mxu0 %v11644_v35  ;;  %11871 = vmatpush3.msra.mxu1 %v9145_v5  ;;  %v9131_v5 = vld [vmem:[%s18666_s7 + $0x288] sm:$0xff]  ;;  %v3770_v35 = vld [vmem:[%s18667_s2 + $0x178] sm:$0xff] }
 0x4e5   :  { %v11647_v28 = vpop.f32.mrf.mxu0  ;;  %11771 = vmatpush3.msra.mxu0 %v14333_v1  ;;  %11872 = vmatprep.subr.mxu1 %v9144_v47 }
 0x4e6   :  { %11772 = vmatprep.subr.mxu0 %v14338_v7  ;;  %11873 = vmatpush3.msra.mxu1 %v9144_v47  ;;  %v9111_v47 = vld [vmem:[%s18666_s7 + $0x228] sm:$0xff] }
 0x4e7   :  { %v3070_v45 = vpop.f32.mrf.mxu0  ;;  %11773 = vmatpush3.msra.mxu0 %v14338_v7  ;;  %11874 = vmatprep.subr.mxu1 %v9143_v30 }
 0x4e8   :  { %11689 = vmatprep.mubr.f32.mxu0 %v3070_v45  ;;  %11774 = vmatprep.subr.mxu0 %v14345_v58  ;;  %v9108_v45 = vld [vmem:[%s18666_s7 + $0x210] sm:$0xff] }
 0x4e9   :  { %11690 = vmatmul.mubr.f32.gmra.mxu0 %v11647_v28  ;;  %11875 = vmatpush3.msra.mxu1 %v9143_v30  ;;  %v9110_v30 = vld [vmem:[%s18666_s7 + $0x220] sm:$0xff]  ;;  %v9109_v28 = vld [vmem:[%s18666_s7 + $0x218] sm:$0xff] }
 0x4ea   :  { %v11650_v18 = vpop.f32.mrf.mxu0  ;;  %11775 = vmatpush3.msra.mxu0 %v14345_v58  ;;  %11876 = vmatprep.subr.mxu1 %v9142_v9 }
 0x4eb   :  { %11776 = vmatprep.subr.mxu0 %v14353_v20  ;;  %11877 = vmatpush3.msra.mxu1 %v9142_v9  ;;  %v9107_v9 = vld [vmem:[%s18666_s7 + $0x208] sm:$0xff] }
 0x4ec   :  { %v3080_v19 = vpop.f32.mrf.mxu0  ;;  %11777 = vmatpush3.msra.mxu0 %v14353_v20  ;;  %11878 = vmatprep.subr.mxu1 %v9141_v2 }
 0x4ed   :  { %11692 = vmatprep.mubr.f32.mxu0 %v3080_v19  ;;  %11778 = vmatprep.subr.mxu0 %v14361_v26 }
 0x4ee   :  { %11693 = vmatmul.mubr.f32.gmra.mxu0 %v11650_v18  ;;  %11879 = vmatpush3.msra.mxu1 %v9141_v2  ;;  %v9106_v2 = vld [vmem:[%s18666_s7 + $0x200] sm:$0xff] }
 0x4ef   :  { %v11653_v12 = vpop.f32.mrf.mxu0  ;;  %11779 = vmatpush3.msra.mxu0 %v14361_v26  ;;  %11880 = vmatprep.subr.mxu1 %v9140_v25 }
 0x4f0   :  { %11780 = vmatprep.subr.mxu0 %v14368_v22  ;;  %11881 = vmatpush3.msra.mxu1 %v9140_v25 }
 0x4f1   :  { %v3090_v0 = vpop.f32.mrf.mxu0  ;;  %11781 = vmatpush3.msra.mxu0 %v14368_v22  ;;  %11882 = vmatprep.subr.mxu1 %v9139_v24 }
 0x4f2   :  { %11695 = vmatprep.mubr.f32.mxu0 %v3090_v0  ;;  %11782 = vmatprep.subr.mxu0 %v14373_v37 }
 0x4f3   :  { %11696 = vmatmul.mubr.f32.gmra.mxu0 %v11653_v12  ;;  %11883 = vmatpush3.msra.mxu1 %v9139_v24 }
 0x4f4   :  { %11783 = vmatpush3.msra.mxu0 %v14373_v37  ;;  %11884 = vmatprep.subr.mxu1 %v9138_v43 }
 0x4f5   :  { %11784 = vmatprep.subr.mxu0 %v14377_v10  ;;  %11885 = vmatpush3.msra.mxu1 %v9138_v43 }
 0x4f6   :  { %11785 = vmatpush3.msra.mxu0 %v14377_v10  ;;  %11786 = vmatprep.mubr.msk.f32.mxu0 %vm2452_vm0, %v3496_v6 }
 0x4f7   :  { %11798 = vmatprep.subr.mxu0 %v9121_v39  ;;  %11886 = vmatprep.subr.mxu1 %v9137_v51 }
 0x4f8   :  { %11787 = vmatmul.mubr.msk.f32.vlgmr.msra.gmra.mxu0 %vm2452_vm0, %v3497_v46  ;;  %11887 = vmatpush3.msra.mxu1 %v9137_v51  ;;  %v2924_v46 = vadd.f32 %v14700_v60, %v14708_v50 }
 0x4f9   :  { %11799 = vmatpush3.msra.mxu0 %v9121_v39  ;;  %11888 = vmatprep.subr.mxu1 %v9136_v55 }
 0x4fa   :  { %11800 = vmatprep.subr.mxu0 %v9120_v29  ;;  %11889 = vmatpush3.msra.mxu1 %v9136_v55 }
 0x4fb   :  { %11801 = vmatpush3.msra.mxu0 %v9120_v29  ;;  %11789 = vmatprep.mubr.msk.f32.mxu0 %vm2452_vm0, %v3498_v56 }
 0x4fc   :  { %11802 = vmatprep.subr.mxu0 %v9119_v57  ;;  %11890 = vmatprep.subr.mxu1 %v9135_v42 }
 0x4fd   :  { %11790 = vmatmul.mubr.msk.f32.gmra.mxu0 %vm2452_vm0, %v3499_v34  ;;  %11891 = vmatpush3.msra.mxu1 %v9135_v42 }
 0x4fe   :  { %11803 = vmatpush3.msra.mxu0 %v9119_v57  ;;  %11861 = vmatprep.mubr.msk.f32.mxu1 %vm2452_vm0, %v3765_v11 }
 0x4ff   :  { %11804 = vmatprep.subr.mxu0 %v9118_v32  ;;  %11892 = vmatprep.subr.mxu1 %v9134_v41 }
 0x500   :  { %11805 = vmatpush3.msra.mxu0 %v9118_v32  ;;  %11862 = vmatmul.mubr.msk.f32.gmra.mxu1 %vm2452_vm0, %v3766_v4  ;;  %v2934_v32 = vadd.f32 %v14702_v8, %v14714_v33  ;;  %v2944_v8 = vadd.f32 %v14704_v62, %v14724_v16 }
 0x501   :  { %11893 = vmatpush3.msra.mxu1 %v9134_v41  ;;  %11792 = vmatprep.mubr.msk.f32.mxu0 %vm2452_vm0, %v3500_v15 }
 0x502   :  { %11806 = vmatprep.subr.mxu0 %v9117_v52  ;;  %11894 = vmatprep.subr.mxu1 %v9133_v61 }
 0x503   :  { %11793 = vmatmul.mubr.msk.f32.gmra.mxu0 %vm2452_vm0, %v3501_v53  ;;  %11895 = vmatpush3.msra.mxu1 %v9133_v61 }
 0x504   :  { %11807 = vmatpush3.msra.mxu0 %v9117_v52  ;;  %11864 = vmatprep.mubr.msk.f32.mxu1 %vm2452_vm0, %v3767_v49 }
 0x505   :  { %11808 = vmatprep.subr.mxu0 %v9116_v3  ;;  %11896 = vmatprep.subr.mxu1 %v9132_v44 }
 0x506   :  { %11809 = vmatpush3.msra.mxu0 %v9116_v3  ;;  %11865 = vmatmul.mubr.msk.f32.gmra.mxu1 %vm2452_vm0, %v3768_v14 }
 0x507   :  { %11897 = vmatpush3.msra.mxu1 %v9132_v44  ;;  %11795 = vmatprep.mubr.msk.f32.mxu0 %vm2452_vm0, %v3502_v54 }
 0x508   :  { %11810 = vmatprep.subr.mxu0 %v9115_v59  ;;  %11898 = vmatprep.subr.mxu1 %v9131_v5 }
 0x509   :  { %11796 = vmatmul.mubr.msk.f32.gmra.mxu0 %vm2452_vm0, %v3503_v63  ;;  %11899 = vmatpush3.msra.mxu1 %v9131_v5 }
 0x50a   :  { %11811 = vmatpush3.msra.mxu0 %v9115_v59  ;;  %11867 = vmatprep.mubr.msk.f32.mxu1 %vm2452_vm0, %v3769_v21 }
 0x50b   :  { %11812 = vmatprep.subr.mxu0 %v9114_v17  ;;  %11900 = vmatprep.subr.mxu1 %v9130_v27 }
 0x50c   :  { %11813 = vmatpush3.msra.mxu0 %v9114_v17  ;;  %11868 = vmatmul.mubr.msk.f32.gmra.mxu1 %vm2452_vm0, %v3770_v35 }
 0x50d   :  { %11901 = vmatpush3.msra.mxu1 %v9130_v27  ;;  %11814 = vmatprep.subr.mxu0 %v9113_v36 }
 0x50e   :  { %11986 = vmatprep.subr.mxu1 %v14333_v1  ;;  %11815 = vmatpush3.msra.mxu0 %v9113_v36 }
 0x50f   :  { %11816 = vmatprep.subr.mxu0 %v9112_v48 }
 0x510   :  { %11817 = vmatpush3.msra.mxu0 %v9112_v48  ;;  %v9169_v48 = vld [vmem:[%s18666_s7 + $0x378] sm:$0xff] }
 0x511   :  { %11818 = vmatprep.subr.mxu0 %v9111_v47 }
 0x512   :  { %11819 = vmatpush3.msra.mxu0 %v9111_v47 }
 0x513   :  { %11820 = vmatprep.subr.mxu0 %v9110_v30 }
 0x514   :  { %11821 = vmatpush3.msra.mxu0 %v9110_v30  ;;  %v4030_v30 = vld [vmem:[%s18667_s2 + $0x180] sm:$0xff] }
 0x515   :  { %11822 = vmatprep.subr.mxu0 %v9109_v28 }
 0x516   :  { %11823 = vmatpush3.msra.mxu0 %v9109_v28 }
 0x517   :  { %11824 = vmatprep.subr.mxu0 %v9108_v45 }
 0x518   :  { %11825 = vmatpush3.msra.mxu0 %v9108_v45 }
 0x519   :  { %11826 = vmatprep.subr.mxu0 %v9107_v9 }
 0x51a   :  { %11827 = vmatpush3.msra.mxu0 %v9107_v9  ;;  %v4031_v9 = vld [vmem:[%s18667_s2 + $0x188] sm:$0xff] }
 0x51b   :  { %11828 = vmatprep.subr.mxu0 %v9106_v2 }
 0x51c   :  { %11829 = vmatpush3.msra.mxu0 %v9106_v2  ;;  %v4297_v2 = vld [vmem:[%s18667_s2 + $0x1c0] sm:$0xff] }
 0x51d   :  { %11914 = vmatprep.subr.mxu0 %v14333_v1 }
 0x58d   :  { %v11760_v18 = vpop.f32.mrf.mxu1 }
 0x58f   :  { %v3449_v19 = vpop.f32.mrf.mxu1 }
 0x593   :  { %v11763_v25 = vpop.f32.mrf.mxu1 }
 0x595   :  { %v3459_v24 = vpop.f32.mrf.mxu1 }
 0x599   :  { %v11766_v12 = vpop.f32.mrf.mxu1 }
 0x59b   :  { %v3469_v0 = vpop.f32.mrf.mxu1 }
 0x59f   :  { %v11769_v43 = vpop.f32.mrf.mxu1 }
 0x5a1   :  { %v3479_v6 = vpop.f32.mrf.mxu1 }
 0x5a3   :  { %v11860_v39 = vpop.f32.mrf.mxu1 }
 0x5a4   :  { %v11688_v51 = vpop.f32.mrf.mxu0 }
 0x5a5   :  { %v3222_v55 = vadd.f32 %v11688_v51, %v14706_v38  ;;  %v3861_v29 = vpop.f32.mrf.mxu1  ;;  %v9165_v51 = vld [vmem:[%s18666_s7 + $0x358] sm:$0xff] }
 0x5a6   :  { %v3182_v56 = vpop.f32.mrf.mxu0  ;;  %11902 = vmatprep.mubr.f32.mxu1 %v3861_v29  ;;  %v9164_v29 = vld [vmem:[%s18666_s7 + $0x350] sm:$0xff] }
 0x5a7   :  { %v3221_v57 = vadd.f32 %v3182_v56, %v2924_v46  ;;  %11903 = vmatmul.mubr.f32.vlgmr.msra.gmra.mxu1 %v11860_v39  ;;  %v14917_v42 = vadd.f32 %v11760_v18, %v3222_v55  ;;  %v4032_v18 = vld [vmem:[%s18667_s2 + $0x190] sm:$0xff]  ;;  %v4300_v39 = vld [vmem:[%s18667_s2 + $0x1d8] sm:$0xff]  ;;  %v4035_v46 = vld [vmem:[%s18667_s2 + $0x1a8] sm:$0xff] }
 0x5a8   :  { %11987 = vmatpush3.msra.mxu1 %v14333_v1  ;;  %v4301_v55 = vld [vmem:[%s18667_s2 + $0x1e0] sm:$0xff]  ;;  %v4036_v56 = vld [vmem:[%s18667_s2 + $0x1b0] sm:$0xff] }
 0x5a9   :  { %v11691_v34 = vpop.f32.mrf.mxu0  ;;  %11988 = vmatprep.subr.mxu1 %v14338_v7  ;;  %v14921_v11 = vadd.f32 %v3449_v19, %v3221_v57  ;;  %v9168_v19 = vld [vmem:[%s18666_s7 + $0x370] sm:$0xff]  ;;  %v4302_v57 = vld [vmem:[%s18667_s2 + $0x1e8] sm:$0xff] }
 0x5aa   :  { %v3224_v60 = vadd.f32 %v11691_v34, %v14711_v40  ;;  %11989 = vmatpush3.msra.mxu1 %v14338_v7  ;;  %v9163_v34 = vld [vmem:[%s18666_s7 + $0x348] sm:$0xff] }
 0x5ab   :  { %v3192_v38 = vpop.f32.mrf.mxu0  ;;  %11990 = vmatprep.subr.mxu1 %v14345_v58 }
 0x5ac   :  { %v3223_v50 = vadd.f32 %v3192_v38, %v2934_v32  ;;  %11991 = vmatpush3.msra.mxu1 %v14345_v58  ;;  %v14929_v41 = vadd.f32 %v11763_v25, %v3224_v60  ;;  %v4298_v25 = vld [vmem:[%s18667_s2 + $0x1c8] sm:$0xff]  ;;  %v4037_v32 = vld [vmem:[%s18667_s2 + $0x1b8] sm:$0xff]  ;;  %v4303_v60 = vld [vmem:[%s18667_s2 + $0x1f0] sm:$0xff] }
 0x5ad   :  { %11992 = vmatprep.subr.mxu1 %v14353_v20  ;;  %v9162_v38 = vld [vmem:[%s18666_s7 + $0x340] sm:$0xff] }
 0x5ae   :  { %v11694_v4 = vpop.f32.mrf.mxu0  ;;  %11993 = vmatpush3.msra.mxu1 %v14353_v20  ;;  %v14933_v15 = vadd.f32 %v3459_v24, %v3223_v50  ;;  %v9167_v24 = vld [vmem:[%s18666_s7 + $0x368] sm:$0xff]  ;;  %v4304_v50 = vld [vmem:[%s18667_s2 + $0x1f8] sm:$0xff] }
 0x5af   :  { %v3226_v40 = vadd.f32 %v11694_v4, %v14721_v31  ;;  %11994 = vmatprep.subr.mxu1 %v14361_v26  ;;  %v14952_v31 = vld [vmem:[%s18666_s7 + $0x3f8] sm:$0xff] }
 0x5b0   :  { %v3202_v33 = vpop.f32.mrf.mxu0  ;;  %11995 = vmatpush3.msra.mxu1 %v14361_v26  ;;  %v9161_v4 = vld [vmem:[%s18666_s7 + $0x338] sm:$0xff] }
 0x5b1   :  { %v3225_v52 = vadd.f32 %v3202_v33, %v2944_v8  ;;  %11996 = vmatprep.subr.mxu1 %v14368_v22  ;;  %v14941_v61 = vadd.f32 %v11766_v12, %v3226_v40  ;;  %v4033_v12 = vld [vmem:[%s18667_s2 + $0x198] sm:$0xff]  ;;  %v9192_v8 = vld [vmem:[%s18666_s7 + $0x3f0] sm:$0xff]  ;;  %v9191_v33 = vld [vmem:[%s18666_s7 + $0x3e8] sm:$0xff] }
 0x5b2   :  { %11997 = vmatpush3.msra.mxu1 %v14368_v22  ;;  %v9160_v40 = vld [vmem:[%s18666_s7 + $0x330] sm:$0xff] }
 0x5b3   :  { %v11697_v53 = vpop.f32.mrf.mxu0  ;;  %11998 = vmatprep.subr.mxu1 %v14373_v37  ;;  %v14945_v49 = vadd.f32 %v3469_v0, %v3225_v52  ;;  %v4299_v0 = vld [vmem:[%s18667_s2 + $0x1d0] sm:$0xff]  ;;  %v9159_v52 = vld [vmem:[%s18666_s7 + $0x328] sm:$0xff] }
 0x5b4   :  { %v3228_v62 = vadd.f32 %v11697_v53, %v14734_v23  ;;  %11999 = vmatpush3.msra.mxu1 %v14373_v37  ;;  %v9190_v53 = vld [vmem:[%s18666_s7 + $0x3e0] sm:$0xff] }
 0x5b5   :  { %v3212_v16 = vpop.f32.mrf.mxu0  ;;  %12000 = vmatprep.subr.mxu1 %v14377_v10 }
 0x5b6   :  { %v3227_v3 = vadd.f32 %v3212_v16, %v14738_v13  ;;  %12001 = vmatpush3.msra.mxu1 %v14377_v10  ;;  %v14957_v44 = vadd.f32 %v11769_v43, %v3228_v62  ;;  %v9166_v43 = vld [vmem:[%s18666_s7 + $0x360] sm:$0xff]  ;;  %v9157_v16 = vld [vmem:[%s18666_s7 + $0x318] sm:$0xff] }
 0x5b7   :  { %12014 = vmatprep.subr.mxu1 %v14952_v31  ;;  %v9158_v62 = vld [vmem:[%s18666_s7 + $0x320] sm:$0xff] }
 0x5b8   :  { %v11788_v14 = vpop.f32.mrf.mxu0  ;;  %v14960_v23 = vadd.f32 %v3479_v6, %v3227_v3  ;;  %v4034_v6 = vld [vmem:[%s18667_s2 + $0x1a0] sm:$0xff]  ;;  %v9156_v3 = vld [vmem:[%s18666_s7 + $0x310] sm:$0xff] }
 0x5ba   :  { %v3594_v54 = vpop.f32.mrf.mxu0 }
 0x5bb   :  { %11830 = vmatprep.mubr.f32.mxu0 %v3594_v54  ;;  %v9154_v54 = vld [vmem:[%s18666_s7 + $0x300] sm:$0xff] }
 0x5bc   :  { %11831 = vmatmul.mubr.f32.vlgmr.msra.gmra.mxu0 %v11788_v14  ;;  %v9155_v14 = vld [vmem:[%s18666_s7 + $0x308] sm:$0xff] }
 0x5bd   :  { %v11791_v59 = vpop.f32.mrf.mxu0  ;;  %11915 = vmatpush3.msra.mxu0 %v14333_v1 }
 0x5be   :  { %11916 = vmatprep.subr.mxu0 %v14338_v7 }
 0x5bf   :  { %v3604_v5 = vpop.f32.mrf.mxu0  ;;  %11917 = vmatpush3.msra.mxu0 %v14338_v7 }
 0x5c0   :  { %v11863_v13 = vpop.f32.mrf.mxu1  ;;  %11833 = vmatprep.mubr.f32.mxu0 %v3604_v5  ;;  %11918 = vmatprep.subr.mxu0 %v14345_v58  ;;  %v9187_v5 = vld [vmem:[%s18666_s7 + $0x3c8] sm:$0xff] }
 0x5c1   :  { %11834 = vmatmul.mubr.f32.gmra.mxu0 %v11791_v59  ;;  %v9188_v59 = vld [vmem:[%s18666_s7 + $0x3d0] sm:$0xff] }
 0x5c2   :  { %v3871_v63 = vpop.f32.mrf.mxu1  ;;  %11919 = vmatpush3.msra.mxu0 %v14345_v58 }
 0x5c3   :  { %v11794_v21 = vpop.f32.mrf.mxu0  ;;  %11905 = vmatprep.mubr.f32.mxu1 %v3871_v63  ;;  %11920 = vmatprep.subr.mxu0 %v14353_v20  ;;  %v9185_v63 = vld [vmem:[%s18666_s7 + $0x3b8] sm:$0xff] }
 0x5c4   :  { %11906 = vmatmul.mubr.f32.gmra.mxu1 %v11863_v13  ;;  %11921 = vmatpush3.msra.mxu0 %v14353_v20  ;;  %v9186_v13 = vld [vmem:[%s18666_s7 + $0x3c0] sm:$0xff] }
 0x5c5   :  { %v3614_v17 = vpop.f32.mrf.mxu0  ;;  %11922 = vmatprep.subr.mxu0 %v14361_v26 }
 0x5c6   :  { %v11866_v27 = vpop.f32.mrf.mxu1  ;;  %11836 = vmatprep.mubr.f32.mxu0 %v3614_v17  ;;  %11923 = vmatpush3.msra.mxu0 %v14361_v26  ;;  %v9183_v17 = vld [vmem:[%s18666_s7 + $0x3a8] sm:$0xff] }
 0x5c7   :  { %11837 = vmatmul.mubr.f32.gmra.mxu0 %v11794_v21  ;;  %11924 = vmatprep.subr.mxu0 %v14368_v22  ;;  %v9184_v21 = vld [vmem:[%s18666_s7 + $0x3b0] sm:$0xff] }
 0x5c8   :  { %v3881_v35 = vpop.f32.mrf.mxu1  ;;  %11925 = vmatpush3.msra.mxu0 %v14368_v22 }
 0x5c9   :  { %v11797_v36 = vpop.f32.mrf.mxu0  ;;  %11908 = vmatprep.mubr.f32.mxu1 %v3881_v35  ;;  %11926 = vmatprep.subr.mxu0 %v14373_v37  ;;  %v9181_v35 = vld [vmem:[%s18666_s7 + $0x398] sm:$0xff] }
 0x5ca   :  { %11909 = vmatmul.mubr.f32.gmra.mxu1 %v11866_v27  ;;  %11927 = vmatpush3.msra.mxu0 %v14373_v37  ;;  %v9182_v27 = vld [vmem:[%s18666_s7 + $0x3a0] sm:$0xff] }
 0x5cb   :  { %v3624_v47 = vpop.f32.mrf.mxu0  ;;  %11928 = vmatprep.subr.mxu0 %v14377_v10 }
 0x5cc   :  { %v11869_v28 = vpop.f32.mrf.mxu1  ;;  %11839 = vmatprep.mubr.f32.mxu0 %v3624_v47  ;;  %11929 = vmatpush3.msra.mxu0 %v14377_v10  ;;  %v9178_v47 = vld [vmem:[%s18666_s7 + $0x380] sm:$0xff] }
 0x5cd   :  { %11840 = vmatmul.mubr.f32.gmra.mxu0 %v11797_v36  ;;  %11942 = vmatprep.subr.mxu0 %v9169_v48  ;;  %v9180_v36 = vld [vmem:[%s18666_s7 + $0x390] sm:$0xff] }
 0x5ce   :  { %v3891_v45 = vpop.f32.mrf.mxu1  ;;  %11930 = vmatprep.mubr.msk.f32.mxu0 %vm2452_vm0, %v4030_v30 }
 0x5cf   :  { %11911 = vmatprep.mubr.f32.mxu1 %v3891_v45 }
 0x5d0   :  { %11912 = vmatmul.mubr.f32.gmra.mxu1 %v11869_v28 }
 0x5d1   :  { %11931 = vmatmul.mubr.msk.f32.vlgmr.msra.gmra.mxu0 %vm2452_vm0, %v4031_v9  ;;  %12002 = vmatprep.mubr.msk.f32.mxu1 %vm2452_vm0, %v4297_v2 }
 0x5d2   :  { %11943 = vmatpush3.msra.mxu0 %v9169_v48  ;;  %11933 = vmatprep.mubr.msk.f32.mxu0 %vm2452_vm0, %v4032_v18  ;;  %v9179_v48 = vld [vmem:[%s18666_s7 + $0x388] sm:$0xff] }
 0x5d3   :  { %11944 = vmatprep.subr.mxu0 %v9168_v19 }
 0x5d4   :  { %11945 = vmatpush3.msra.mxu0 %v9168_v19  ;;  %12003 = vmatmul.mubr.msk.f32.vlgmr.msra.gmra.mxu1 %vm2452_vm0, %v4298_v25 }
 0x5d5   :  { %11946 = vmatprep.subr.mxu0 %v9167_v24  ;;  %11934 = vmatmul.mubr.msk.f32.gmra.mxu0 %vm2452_vm0, %v4033_v12 }
 0x5d6   :  { %11947 = vmatpush3.msra.mxu0 %v9167_v24  ;;  %12005 = vmatprep.mubr.msk.f32.mxu1 %vm2452_vm0, %v4299_v0 }
 0x5d7   :  { %11948 = vmatprep.subr.mxu0 %v9166_v43  ;;  %11936 = vmatprep.mubr.msk.f32.mxu0 %vm2452_vm0, %v4034_v6 }
 0x5d8   :  { %11949 = vmatpush3.msra.mxu0 %v9166_v43  ;;  %12006 = vmatmul.mubr.msk.f32.gmra.mxu1 %vm2452_vm0, %v4300_v39 }
 0x5d9   :  { %11950 = vmatprep.subr.mxu0 %v9165_v51  ;;  %11937 = vmatmul.mubr.msk.f32.gmra.mxu0 %vm2452_vm0, %v4035_v46 }
 0x5da   :  { %11951 = vmatpush3.msra.mxu0 %v9165_v51  ;;  %12008 = vmatprep.mubr.msk.f32.mxu1 %vm2452_vm0, %v4301_v55 }
 0x5db   :  { %11952 = vmatprep.subr.mxu0 %v9164_v29  ;;  %11939 = vmatprep.mubr.msk.f32.mxu0 %vm2452_vm0, %v4036_v56 }
 0x5dc   :  { %11953 = vmatpush3.msra.mxu0 %v9164_v29  ;;  %12009 = vmatmul.mubr.msk.f32.gmra.mxu1 %vm2452_vm0, %v4302_v57 }
 0x5dd   :  { %11954 = vmatprep.subr.mxu0 %v9163_v34  ;;  %11940 = vmatmul.mubr.msk.f32.gmra.mxu0 %vm2452_vm0, %v4037_v32 }
 0x5de   :  { %11955 = vmatpush3.msra.mxu0 %v9163_v34  ;;  %12011 = vmatprep.mubr.msk.f32.mxu1 %vm2452_vm0, %v4303_v60 }
 0x5df   :  { %11956 = vmatprep.subr.mxu0 %v9162_v38  ;;  %12015 = vmatpush3.msra.mxu1 %v14952_v31  ;;  %v9189_v31 = vld [vmem:[%s18666_s7 + $0x3d8] sm:$0xff] }
 0x5e0   :  { %11957 = vmatpush3.msra.mxu0 %v9162_v38  ;;  %12012 = vmatmul.mubr.msk.f32.gmra.mxu1 %vm2452_vm0, %v4304_v50 }
 0x5e1   :  { %11958 = vmatprep.subr.mxu0 %v9161_v4  ;;  %12016 = vmatprep.subr.mxu1 %v9192_v8 }
 0x5e2   :  { %11959 = vmatpush3.msra.mxu0 %v9161_v4  ;;  %12017 = vmatpush3.msra.mxu1 %v9192_v8 }
 0x5e3   :  { %11960 = vmatprep.subr.mxu0 %v9160_v40  ;;  %12018 = vmatprep.subr.mxu1 %v9191_v33 }
 0x5e4   :  { %11961 = vmatpush3.msra.mxu0 %v9160_v40  ;;  %12019 = vmatpush3.msra.mxu1 %v9191_v33 }
 0x5e5   :  { %11962 = vmatprep.subr.mxu0 %v9159_v52  ;;  %12020 = vmatprep.subr.mxu1 %v9190_v53 }
 0x5e6   :  { %11963 = vmatpush3.msra.mxu0 %v9159_v52  ;;  %12021 = vmatpush3.msra.mxu1 %v9190_v53 }
 0x5e7   :  { %11964 = vmatprep.subr.mxu0 %v9158_v62  ;;  %12022 = vmatprep.subr.mxu1 %v9189_v31 }
 0x5e8   :  { %11965 = vmatpush3.msra.mxu0 %v9158_v62  ;;  %12023 = vmatpush3.msra.mxu1 %v9189_v31 }
 0x5e9   :  { %11966 = vmatprep.subr.mxu0 %v9157_v16  ;;  %12024 = vmatprep.subr.mxu1 %v9188_v59 }
 0x5ea   :  { %11967 = vmatpush3.msra.mxu0 %v9157_v16  ;;  %12025 = vmatpush3.msra.mxu1 %v9188_v59  ;;  %v4566_v59 = vld [vmem:[%s18667_s2 + $0x210] sm:$0xff] }
 0x5eb   :  { %11968 = vmatprep.subr.mxu0 %v9156_v3  ;;  %12026 = vmatprep.subr.mxu1 %v9187_v5 }
 0x5ec   :  { %11969 = vmatpush3.msra.mxu0 %v9156_v3  ;;  %12027 = vmatpush3.msra.mxu1 %v9187_v5  ;;  %v4567_v5 = vld [vmem:[%s18667_s2 + $0x218] sm:$0xff] }
 0x5ed   :  { %11970 = vmatprep.subr.mxu0 %v9155_v14  ;;  %12028 = vmatprep.subr.mxu1 %v9186_v13 }
 0x5ee   :  { %11971 = vmatpush3.msra.mxu0 %v9155_v14  ;;  %12029 = vmatpush3.msra.mxu1 %v9186_v13  ;;  %v4568_v13 = vld [vmem:[%s18667_s2 + $0x220] sm:$0xff] }
 0x5ef   :  { %11972 = vmatprep.subr.mxu0 %v9154_v54  ;;  %12030 = vmatprep.subr.mxu1 %v9185_v63 }
 0x5f0   :  { %11973 = vmatpush3.msra.mxu0 %v9154_v54  ;;  %12031 = vmatpush3.msra.mxu1 %v9185_v63  ;;  %v4564_v54 = vld [vmem:[%s18667_s2 + $0x200] sm:$0xff] }
 0x5f1   :  { %12058 = vmatprep.subr.mxu0 %v14333_v1  ;;  %12032 = vmatprep.subr.mxu1 %v9184_v21  ;;  %v9214_v63 = vld [vmem:[%s18666_s7 + $0x460] sm:$0xff] }
 0x5f2   :  { %12033 = vmatpush3.msra.mxu1 %v9184_v21  ;;  %v4569_v21 = vld [vmem:[%s18667_s2 + $0x228] sm:$0xff] }
 0x5f3   :  { %12034 = vmatprep.subr.mxu1 %v9183_v17 }
 0x5f4   :  { %12035 = vmatpush3.msra.mxu1 %v9183_v17  ;;  %v9213_v17 = vld [vmem:[%s18666_s7 + $0x458] sm:$0xff] }
 0x5f5   :  { %12036 = vmatprep.subr.mxu1 %v9182_v27 }
 0x5f6   :  { %12037 = vmatpush3.msra.mxu1 %v9182_v27  ;;  %v4570_v27 = vld [vmem:[%s18667_s2 + $0x230] sm:$0xff] }
 0x5f7   :  { %12038 = vmatprep.subr.mxu1 %v9181_v35 }
 0x5f8   :  { %12039 = vmatpush3.msra.mxu1 %v9181_v35  ;;  %v9212_v35 = vld [vmem:[%s18666_s7 + $0x450] sm:$0xff] }
 0x5f9   :  { %12040 = vmatprep.subr.mxu1 %v9180_v36 }
 0x5fa   :  { %12041 = vmatpush3.msra.mxu1 %v9180_v36  ;;  %v4571_v36 = vld [vmem:[%s18667_s2 + $0x238] sm:$0xff] }
 0x5fb   :  { %12042 = vmatprep.subr.mxu1 %v9179_v48 }
 0x5fc   :  { %12043 = vmatpush3.msra.mxu1 %v9179_v48  ;;  %v9211_v48 = vld [vmem:[%s18666_s7 + $0x448] sm:$0xff] }
 0x5fd   :  { %12044 = vmatprep.subr.mxu1 %v9178_v47 }
 0x5fe   :  { %12045 = vmatpush3.msra.mxu1 %v9178_v47  ;;  %v9210_v47 = vld [vmem:[%s18666_s7 + $0x440] sm:$0xff] }
 0x667   :  { %v11904_v30 = vpop.f32.mrf.mxu1 }
 0x669   :  { %v3983_v2 = vpop.f32.mrf.mxu1 }
 0x67c   :  { %v11832_v28 = vpop.f32.mrf.mxu0 }
 0x67d   :  { %v3756_v45 = vadd.f32 %v11832_v28, %v14917_v42  ;;  %v9208_v28 = vld [vmem:[%s18666_s7 + $0x430] sm:$0xff] }
 0x67e   :  { %v3716_v9 = vpop.f32.mrf.mxu0 }
 0x67f   :  { %v3755_v18 = vadd.f32 %v3716_v9, %v14921_v11  ;;  %v15138_v19 = vadd.f32 %v11904_v30, %v3756_v45  ;;  %v9209_v30 = vld [vmem:[%s18666_s7 + $0x438] sm:$0xff]  ;;  %v9207_v45 = vld [vmem:[%s18666_s7 + $0x428] sm:$0xff]  ;;  %v9206_v9 = vld [vmem:[%s18666_s7 + $0x420] sm:$0xff] }
 0x681   :  { %v11835_v25 = vpop.f32.mrf.mxu0  ;;  %v15140_v24 = vadd.f32 %v3983_v2, %v3755_v18  ;;  %v9205_v2 = vld [vmem:[%s18666_s7 + $0x418] sm:$0xff]  ;;  %v9204_v18 = vld [vmem:[%s18666_s7 + $0x410] sm:$0xff] }
 0x682   :  { %v3758_v12 = vadd.f32 %v11835_v25, %v14929_v41  ;;  %v9203_v25 = vld [vmem:[%s18666_s7 + $0x408] sm:$0xff] }
 0x683   :  { %v3726_v0 = vpop.f32.mrf.mxu0 }
 0x684   :  { %v3757_v43 = vadd.f32 %v3726_v0, %v14933_v15  ;;  %v11907_v6 = vpop.f32.mrf.mxu1  ;;  %v12317_v0 = vmov 0  }
 0x685   :  { %v15144_v39 = vadd.f32 %v11907_v6, %v3758_v12  ;;  %v9202_v12 = vld [vmem:[%s18666_s7 + $0x400] sm:$0xff]  ;;  %12304 = vset.pattern.permute.xlu0 %v12317_v0  ;;  %12305 = vset.pattern.permute.xlu1 %v12317_v0  ;;  %v4859_v6 = vld [vmem:[%s18668_s13 + $0x28] sm:$0xff] }
 0x686   :  { %v3993_v51 = vpop.f32.mrf.mxu1  ;;  %4889 = vperm.xlu1 %12305, %v4859_v6   ;;  %v9224_v0 = vld [vmem:[%s18669_s9 + $0x108] sm:$0xff]  ;;  %v4932_v6 = vld [vmem:[%s18671_s3] sm:$0xff] }
 0x687   :  { %v11838_v46 = vpop.f32.mrf.mxu0  ;;  %v15146_v42 = vadd.f32 %v3993_v51, %v3757_v43  ;;  %v4861_v43 = vld [vmem:[%s18668_s13 + $0x38] sm:$0xff]  ;;  %v4860_v51 = vld [vmem:[%s18668_s13 + $0x30] sm:$0xff] }
 0x688   :  { %v3760_v55 = vadd.f32 %v11838_v46, %v14941_v61  ;;  %4899 = vperm.xlu0 %12304, %v4861_v43   ;;  %v4858_v46 = vld [vmem:[%s18668_s13 + $0x20] sm:$0xff] }
 0x689   :  { %v3736_v11 = vpop.f32.mrf.mxu0  ;;  %v9223_v43 = vld [vmem:[%s18669_s9 + $0x100] sm:$0xff] }
 0x68a   :  { %v3759_v29 = vadd.f32 %v3736_v11, %v14945_v49  ;;  %v11910_v56 = vpop.f32.mrf.mxu1  ;;  %4884 = vperm.xlu1 %12305, %v4858_v46   ;;  %v4857_v11 = vld [vmem:[%s18668_s13 + $0x18] sm:$0xff] }
 0x68b   :  { %v15150_v57 = vadd.f32 %v11910_v56, %v3760_v55  ;;  %v9254_v55 = vld [vmem:[%s18669_s9 + $0x1f8] sm:$0xff]  ;;  %v4855_v56 = vld [vmem:[%s18668_s13 + $0x8] sm:$0xff] }
 0x68c   :  { %v4003_v34 = vpop.f32.mrf.mxu1  ;;  %4894 = vperm.xlu0 %12304, %v4860_v51   ;;  %v12318_v51 = vmov 0.0  }
 0x68d   :  { %v11841_v41 = vpop.f32.mrf.mxu0  ;;  %v15152_v32 = vadd.f32 %v4003_v34, %v3759_v29  ;;  %v4856_v29 = vld [vmem:[%s18668_s13 + $0x10] sm:$0xff]  ;;  %v4854_v34 = vld [vmem:[%s18668_s13] sm:$0xff]  ;;  %8816 = vst [vmem:[%s18672_s18 + $0x10] sm:$0xff] %v12318_v51  ;;  %8817 = vst [vmem:[%s18672_s18 + $0x18] sm:$0xff] %v12318_v51 }
 0x68e   :  { %v3762_v15 = vadd.f32 %v11841_v41, %v14957_v44  ;;  %4874 = vperm.xlu1 %12305, %v4856_v29   ;;  %v8645_v41 = vld [vmem:[%s18670_s14] sm:$0xff] }
 0x68f   :  { %v3746_v60 = vpop.f32.mrf.mxu0 }
 0x690   :  { %v3761_v38 = vadd.f32 %v3746_v60, %v14960_v23  ;;  %v11913_v50 = vpop.f32.mrf.mxu1  ;;  %4879 = vperm.xlu0 %12304, %v4857_v11  }
 0x691   :  { %v15156_v4 = vadd.f32 %v11913_v50, %v3762_v15  ;;  %v11932_v8 = vpop.f32.mrf.mxu0 }
 0x692   :  { %v4013_v61 = vpop.f32.mrf.mxu1  ;;  %4864 = vperm.xlu1 %12305, %v4854_v34  }
 0x693   :  { %v15158_v40 = vadd.f32 %v4013_v61, %v3761_v38  ;;  %v4128_v49 = vpop.f32.mrf.mxu0 }
 0x694   :  { %v12004_v33 = vpop.f32.mrf.mxu1  ;;  %11974 = vmatprep.mubr.f32.mxu0 %v4128_v49  ;;  %4869 = vperm.xlu0 %12304, %v4855_v56  }
 0x695   :  { %v11935_v52 = vpop.f32.mrf.mxu0  ;;  %11975 = vmatmul.mubr.f32.vlgmr.msra.gmra.mxu0 %v11932_v8 }
 0x696   :  { %v4395_v53 = vpop.f32.mrf.mxu1  ;;  %12059 = vmatpush3.msra.mxu0 %v14333_v1 }
 0x697   :  { %12046 = vmatprep.mubr.f32.mxu1 %v4395_v53  ;;  %12060 = vmatprep.subr.mxu0 %v14338_v7  ;;  %v4138_v44 = vpop.f32.mrf.mxu0 }
 0x698   :  { %v12007_v23 = vpop.f32.mrf.mxu1  ;;  %12047 = vmatmul.mubr.f32.vlgmr.msra.gmra.mxu1 %v12004_v33  ;;  %12061 = vmatpush3.msra.mxu0 %v14338_v7 }
 0x699   :  { %11977 = vmatprep.mubr.f32.mxu0 %v4138_v44  ;;  %12062 = vmatprep.subr.mxu0 %v14345_v58  ;;  %v11938_v62 = vpop.f32.mrf.mxu0 }
 0x69a   :  { %11978 = vmatmul.mubr.f32.gmra.mxu0 %v11935_v52  ;;  %v4405_v31 = vpop.f32.mrf.mxu1  ;;  %8648 = vperm.xlu0 %12304, %v8645_v41  }
 0x69b   :  { %12063 = vmatpush3.msra.mxu0 %v14345_v58  ;;  %12049 = vmatprep.mubr.f32.mxu1 %v4405_v31  ;;  %v4148_v16 = vpop.f32.mrf.mxu0 }
 0x69c   :  { %12064 = vmatprep.subr.mxu0 %v14353_v20  ;;  %v12010_v1 = vpop.f32.mrf.mxu1  ;;  %12050 = vmatmul.mubr.f32.gmra.mxu1 %v12007_v23 }
 0x69d   :  { %12065 = vmatpush3.msra.mxu0 %v14353_v20  ;;  %11980 = vmatprep.mubr.f32.mxu0 %v4148_v16  ;;  %v11941_v3 = vpop.f32.mrf.mxu0 }
 0x69e   :  { %12066 = vmatprep.subr.mxu0 %v14361_v26  ;;  %11981 = vmatmul.mubr.f32.gmra.mxu0 %v11938_v62  ;;  %v4415_v7 = vpop.f32.mrf.mxu1 }
 0x69f   :  { %12067 = vmatpush3.msra.mxu0 %v14361_v26  ;;  %12052 = vmatprep.mubr.f32.mxu1 %v4415_v7  ;;  %v4158_v14 = vpop.f32.mrf.mxu0  ;;  %v4565_v26 = vld [vmem:[%s18667_s2 + $0x208] sm:$0xff] }
 0x6a0   :  { %12068 = vmatprep.subr.mxu0 %v14368_v22  ;;  %v12013_v58 = vpop.f32.mrf.mxu1  ;;  %12053 = vmatmul.mubr.f32.gmra.mxu1 %v12010_v1  ;;  %v9248_v7 = vld [vmem:[%s18669_s9 + $0x1c8] sm:$0xff] }
 0x6a1   :  { %12069 = vmatpush3.msra.mxu0 %v14368_v22  ;;  %11983 = vmatprep.mubr.f32.mxu0 %v4158_v14  ;;  %v9217_v22 = vld [vmem:[%s18666_s7 + $0x478] sm:$0xff] }
 0x6a2   :  { %12070 = vmatprep.subr.mxu0 %v14373_v37  ;;  %11984 = vmatmul.mubr.f32.gmra.mxu0 %v11941_v3  ;;  %v4425_v20 = vpop.f32.mrf.mxu1  ;;  %v9249_v3 = vld [vmem:[%s18669_s9 + $0x1d0] sm:$0xff] }
 0x6a3   :  { %12071 = vmatpush3.msra.mxu0 %v14373_v37  ;;  %12055 = vmatprep.mubr.f32.mxu1 %v4425_v20  ;;  %v9216_v37 = vld [vmem:[%s18666_s7 + $0x470] sm:$0xff]  ;;  %v9246_v20 = vld [vmem:[%s18669_s9 + $0x1b8] sm:$0xff] }
 0x6a4   :  { %12072 = vmatprep.subr.mxu0 %v14377_v10  ;;  %12056 = vmatmul.mubr.f32.gmra.mxu1 %v12013_v58  ;;  %v9247_v58 = vld [vmem:[%s18669_s9 + $0x1c0] sm:$0xff] }
 0x6a5   :  { %12073 = vmatpush3.msra.mxu0 %v14377_v10  ;;  %12074 = vmatprep.mubr.msk.f32.mxu0 %vm2452_vm0, %v4564_v54  ;;  %v9215_v10 = vld [vmem:[%s18666_s7 + $0x468] sm:$0xff] }
 0x6a6   :  { %12075 = vmatmul.mubr.msk.f32.vlgmr.msra.gmra.mxu0 %vm2452_vm0, %v4565_v26  ;;  %12086 = vmatprep.subr.mxu0 %v9217_v22  ;;  %v9245_v26 = vld [vmem:[%s18669_s9 + $0x1b0] sm:$0xff] }
 0x6a7   :  { %12077 = vmatprep.mubr.msk.f32.mxu0 %vm2452_vm0, %v4566_v59  ;;  %12087 = vmatpush3.msra.mxu0 %v9217_v22  ;;  %v9244_v22 = vld [vmem:[%s18669_s9 + $0x1a8] sm:$0xff] }
 0x6a8   :  { %12088 = vmatprep.subr.mxu0 %v9216_v37  ;;  %12146 = vmatprep.mubr.msk.f32.mxu1 %vm2452_vm0, %v4932_v6 }
 0x6a9   :  { %12089 = vmatpush3.msra.mxu0 %v9216_v37 }
 0x6aa   :  { %12078 = vmatmul.mubr.msk.f32.gmra.mxu0 %vm2452_vm0, %v4567_v5  ;;  %12090 = vmatprep.subr.mxu0 %v9215_v10  ;;  %v9243_v5 = vld [vmem:[%s18669_s9 + $0x1a0] sm:$0xff] }
 0x6ab   :  { %12080 = vmatprep.mubr.msk.f32.mxu0 %vm2452_vm0, %v4568_v13  ;;  %12091 = vmatpush3.msra.mxu0 %v9215_v10  ;;  %v9242_v10 = vld [vmem:[%s18669_s9 + $0x198] sm:$0xff]  ;;  %v9241_v13 = vld [vmem:[%s18669_s9 + $0x190] sm:$0xff] }
 0x6ac   :  { %12092 = vmatprep.subr.mxu0 %v9214_v63 }
 0x6ad   :  { %12093 = vmatpush3.msra.mxu0 %v9214_v63  ;;  %v9240_v63 = vld [vmem:[%s18669_s9 + $0x188] sm:$0xff] }
 0x6ae   :  { %12081 = vmatmul.mubr.msk.f32.gmra.mxu0 %vm2452_vm0, %v4569_v21  ;;  %12094 = vmatprep.subr.mxu0 %v9213_v17  ;;  %v9239_v21 = vld [vmem:[%s18669_s9 + $0x180] sm:$0xff] }
 0x6af   :  { %12083 = vmatprep.mubr.msk.f32.mxu0 %vm2452_vm0, %v4570_v27  ;;  %12095 = vmatpush3.msra.mxu0 %v9213_v17  ;;  %v9238_v17 = vld [vmem:[%s18669_s9 + $0x178] sm:$0xff]  ;;  %v9237_v27 = vld [vmem:[%s18669_s9 + $0x170] sm:$0xff] }
 0x6b0   :  { %12096 = vmatprep.subr.mxu0 %v9212_v35 }
 0x6b1   :  { %12097 = vmatpush3.msra.mxu0 %v9212_v35  ;;  %v9236_v35 = vld [vmem:[%s18669_s9 + $0x168] sm:$0xff] }
 0x6b2   :  { %12084 = vmatmul.mubr.msk.f32.gmra.mxu0 %vm2452_vm0, %v4571_v36  ;;  %12098 = vmatprep.subr.mxu0 %v9211_v48  ;;  %v9235_v36 = vld [vmem:[%s18669_s9 + $0x160] sm:$0xff] }
 0x6b3   :  { %12099 = vmatpush3.msra.mxu0 %v9211_v48  ;;  %v9234_v48 = vld [vmem:[%s18669_s9 + $0x158] sm:$0xff] }
 0x6b4   :  { %12100 = vmatprep.subr.mxu0 %v9210_v47 }
 0x6b5   :  { %12101 = vmatpush3.msra.mxu0 %v9210_v47  ;;  %v9233_v47 = vld [vmem:[%s18669_s9 + $0x150] sm:$0xff] }
 0x6b6   :  { %12102 = vmatprep.subr.mxu0 %v9209_v30 }
 0x6b7   :  { %12103 = vmatpush3.msra.mxu0 %v9209_v30  ;;  %v9232_v30 = vld [vmem:[%s18669_s9 + $0x148] sm:$0xff] }
 0x6b8   :  { %12104 = vmatprep.subr.mxu0 %v9208_v28 }
 0x6b9   :  { %12105 = vmatpush3.msra.mxu0 %v9208_v28  ;;  %v9231_v28 = vld [vmem:[%s18669_s9 + $0x140] sm:$0xff] }
 0x6ba   :  { %12106 = vmatprep.subr.mxu0 %v9207_v45 }
 0x6bb   :  { %12107 = vmatpush3.msra.mxu0 %v9207_v45  ;;  %v9230_v45 = vld [vmem:[%s18669_s9 + $0x138] sm:$0xff] }
 0x6bc   :  { %12108 = vmatprep.subr.mxu0 %v9206_v9 }
 0x6bd   :  { %12109 = vmatpush3.msra.mxu0 %v9206_v9  ;;  %v9229_v9 = vld [vmem:[%s18669_s9 + $0x130] sm:$0xff] }
 0x6be   :  { %12110 = vmatprep.subr.mxu0 %v9205_v2 }
 0x6bf   :  { %12111 = vmatpush3.msra.mxu0 %v9205_v2  ;;  %v9228_v2 = vld [vmem:[%s18669_s9 + $0x128] sm:$0xff] }
 0x6c0   :  { %12112 = vmatprep.subr.mxu0 %v9204_v18 }
 0x6c1   :  { %12113 = vmatpush3.msra.mxu0 %v9204_v18  ;;  %v9227_v18 = vld [vmem:[%s18669_s9 + $0x120] sm:$0xff] }
 0x6c2   :  { %12114 = vmatprep.subr.mxu0 %v9203_v25 }
 0x6c3   :  { %12115 = vmatpush3.msra.mxu0 %v9203_v25  ;;  %v9226_v25 = vld [vmem:[%s18669_s9 + $0x118] sm:$0xff] }
 0x6c4   :  { %12116 = vmatprep.subr.mxu0 %v9202_v12 }
 0x6c5   :  { %12117 = vmatpush3.msra.mxu0 %v9202_v12  ;;  %v9225_v12 = vld [vmem:[%s18669_s9 + $0x110] sm:$0xff] }
 0x6c6   :  { %5163 = vmatprep.subr.mxu0 %v9254_v55 }
 0x701   :  { %v4890_v29 = vpop.permute.xlu1 %4889 }
 0x703   :  { %v15415_v11 = vpop.permute.xlu0 %4899 }
 0x707   :  { %v15417_v34 = vpop.permute.xlu0 %4894 }
 0x755   :  { %v11976_v15 = vpop.f32.mrf.mxu0 }
 0x756   :  { %v15286_v60 = vadd.f32 %v11976_v15, %v15138_v19  ;;  %v4885_v15 = vpop.permute.xlu1 %4884 }
 0x757   :  { %v4250_v38 = vpop.f32.mrf.mxu0 }
 0x758   :  { %v15289_v50 = vadd.f32 %v4250_v38, %v15140_v24  ;;  %v12048_v46 = vpop.f32.mrf.mxu1 }
 0x75a   :  { %v11979_v8 = vpop.f32.mrf.mxu0  ;;  %v4517_v55 = vpop.f32.mrf.mxu1 }
 0x75b   :  { %v15292_v61 = vadd.f32 %v11979_v8, %v15144_v39  ;;  %v4880_v8 = vpop.permute.xlu0 %4879 }
 0x75c   :  { %v4260_v49 = vpop.f32.mrf.mxu0  ;;  %v12051_v56 = vpop.f32.mrf.mxu1 }
 0x75d   :  { %v15295_v33 = vadd.f32 %v4260_v49, %v15146_v42  ;;  %v9253_v42 = vld [vmem:[%s18669_s9 + $0x1f0] sm:$0xff]  ;;  %v4557_v49 = vadd.f32 %v12048_v46, %v15286_v60 }
 0x75e   :  { %v11982_v52 = vpop.f32.mrf.mxu0  ;;  %v4527_v41 = vpop.f32.mrf.mxu1 }
 0x75f   :  { %v15298_v53 = vadd.f32 %v11982_v52, %v15150_v57  ;;  %v9252_v57 = vld [vmem:[%s18669_s9 + $0x1e8] sm:$0xff] }
 0x760   :  { %v4270_v44 = vpop.f32.mrf.mxu0  ;;  %v12054_v38 = vpop.f32.mrf.mxu1 }
 0x761   :  { %v15301_v19 = vadd.f32 %v4270_v44, %v15152_v32  ;;  %v9218_v44 = vld [vmem:[%s18673_s8] ss:$0 sm:$0xff] }
 0x762   :  { %v11985_v23 = vpop.f32.mrf.mxu0 }
 0x763   :  { %v15304_v24 = vadd.f32 %v11985_v23, %v15156_v4  ;;  %v9251_v4 = vld [vmem:[%s18669_s9 + $0x1e0] sm:$0xff]  ;;  %v4875_v23 = vpop.permute.xlu1 %4874 }
 0x764   :  { %v4280_v62 = vpop.f32.mrf.mxu0 }
 0x765   :  { %v15307_v39 = vadd.f32 %v4280_v62, %v15158_v40  ;;  %v9250_v40 = vld [vmem:[%s18669_s9 + $0x1d8] sm:$0xff]  ;;  %v4556_v62 = vadd.f32 %v4517_v55, %v15289_v50 }
 0x766   :  { %v12076_v31 = vpop.f32.mrf.mxu0 }
 0x768   :  { %v4662_v16 = vpop.f32.mrf.mxu0 }
 0x769   :  { %12118 = vmatprep.mubr.f32.mxu0 %v4662_v16 }
 0x76a   :  { %v12079_v32 = vpop.f32.mrf.mxu0  ;;  %12119 = vmatmul.mubr.f32.vlgmr.msra.gmra.mxu0 %v12076_v31  ;;  %v4537_v31 = vpop.f32.mrf.mxu1 }
 0x76b   :  { %5164 = vmatpush1.msra.mxu0 %v9253_v42 }
 0x76c   :  { %v4672_v1 = vpop.f32.mrf.mxu0  ;;  %5165 = vmatprep.subr.mxu0 %v9252_v57  ;;  %v4559_v57 = vadd.f32 %v12051_v56, %v15292_v61  ;;  %v12057_v60 = vpop.f32.mrf.mxu1  ;;  %v4560_v61 = vadd.f32 %v4537_v31, %v15301_v19 }
 0x76d   :  { %12121 = vmatprep.mubr.f32.mxu0 %v4672_v1  ;;  %5166 = vmatpush1.msra.mxu0 %v9251_v4  ;;  %v4870_v1 = vpop.permute.xlu0 %4869 }
 0x76e   :  { %v12082_v14 = vpop.f32.mrf.mxu0  ;;  %12122 = vmatmul.mubr.f32.gmra.mxu0 %v12079_v32  ;;  %5167 = vmatprep.subr.mxu0 %v9250_v40 }
 0x76f   :  { %5168 = vmatpush1.msra.mxu0 %v9249_v3  ;;  %v4558_v3 = vadd.f32 %v4527_v41, %v15295_v33 }
 0x770   :  { %v4682_v54 = vpop.f32.mrf.mxu0  ;;  %5169 = vmatprep.subr.mxu0 %v9248_v7 }
 0x771   :  { %12124 = vmatprep.mubr.f32.mxu0 %v4682_v54  ;;  %5170 = vmatpush1.msra.mxu0 %v9247_v58 }
 0x772   :  { %v12085_v59 = vpop.f32.mrf.mxu0  ;;  %12125 = vmatmul.mubr.f32.gmra.mxu0 %v12082_v14  ;;  %5171 = vmatprep.subr.mxu0 %v9246_v20  ;;  %v4561_v20 = vadd.f32 %v12054_v38, %v15298_v53 }
 0x773   :  { %5172 = vmatpush1.msra.mxu0 %v9245_v26  ;;  %v4865_v26 = vpop.permute.xlu1 %4864 }
 0x774   :  { %v4692_v37 = vpop.f32.mrf.mxu0  ;;  %5173 = vmatprep.subr.mxu0 %v9244_v22 }
 0x775   :  { %12127 = vmatprep.mubr.f32.mxu0 %v4692_v37  ;;  %5174 = vmatpush1.msra.mxu0 %v9243_v5 }
 0x776   :  { %12128 = vmatmul.mubr.f32.gmra.mxu0 %v12085_v59  ;;  %5175 = vmatprep.subr.mxu0 %v9242_v10  ;;  %v4547_v10 = vpop.f32.mrf.mxu1 }
 0x777   :  { %5176 = vmatpush1.msra.mxu0 %v9241_v13  ;;  %5227 = vmatprep.mubr.f32.mxu0 %v12318_v51 }
 0x778   :  { %5177 = vmatprep.subr.mxu0 %v9240_v63 }
 0x779   :  { %5178 = vmatpush1.msra.mxu0 %v9239_v21  ;;  %v4563_v21 = vadd.f32 %v12057_v60, %v15304_v24  ;;  %v5041_v60 = vld [vmem:[%s18669_s9 + $0xd0] sm:$0xff] }
 0x77a   :  { %5179 = vmatprep.subr.mxu0 %v9238_v17 }
 0x77b   :  { %5180 = vmatpush1.msra.mxu0 %v9237_v27 }
 0x77c   :  { %5181 = vmatprep.subr.mxu0 %v9236_v35 }
 0x77d   :  { %5182 = vmatpush1.msra.mxu0 %v9235_v36 }
 0x77e   :  { %5183 = vmatprep.subr.mxu0 %v9234_v48  ;;  %v4562_v48 = vadd.f32 %v4547_v10, %v15307_v39  ;;  %v5029_v10 = vld [vmem:[%s18669_s9 + $0x70] sm:$0xff] }
 0x77f   :  { %5184 = vmatpush1.msra.mxu0 %v9233_v47 }
 0x780   :  { %5185 = vmatprep.subr.mxu0 %v9232_v30 }
 0x781   :  { %5186 = vmatpush1.msra.mxu0 %v9231_v28 }
 0x782   :  { %5187 = vmatprep.subr.mxu0 %v9230_v45 }
 0x783   :  { %5188 = vmatpush1.msra.mxu0 %v9229_v9 }
 0x784   :  { %5189 = vmatprep.subr.mxu0 %v9228_v2 }
 0x785   :  { %5190 = vmatpush1.msra.mxu0 %v9227_v18 }
 0x786   :  { %5191 = vmatprep.subr.mxu0 %v9226_v25 }
 0x787   :  { %5192 = vmatpush1.msra.mxu0 %v9225_v12 }
 0x788   :  { %5193 = vmatprep.subr.mxu0 %v9224_v0 }
 0x789   :  { %5194 = vmatpush1.msra.mxu0 %v9223_v43 }
 0x82a   :  { %v12120_v52 = vpop.f32.mrf.mxu0 }
 0x82b   :  { %v4824_v16 = vadd.f32 %v12120_v52, %v4557_v49 }
 0x82c   :  { %v4784_v42 = vpop.f32.mrf.mxu0 }
 0x82d   :  { %v4839_v32 = vadd.f32 %v9218_v44, %v4824_v16  ;;  %v4823_v4 = vadd.f32 %v4784_v42, %v4556_v62  ;;  %v5047_v62 = vld [vmem:[%s18671_s3 + $0x10] sm:$0xff] }
 0x82e   :  { %v12123_v40 = vpop.f32.mrf.mxu0 }
 0x82f   :  { %v4838_v7 = vadd.f32 %v9218_v44, %v4823_v4  ;;  %v4826_v14 = vadd.f32 %v12123_v40, %v4559_v57  ;;  %v4847_v58 = vmax.f32 %v4839_v32, 0.0  ;;  %v5048_v57 = vld [vmem:[%s18671_s3 + $0x18] sm:$0xff]  ;;  %v5045_v4 = vld [vmem:[%s18669_s9 + $0xf0] sm:$0xff]  ;;  %v5044_v40 = vld [vmem:[%s18669_s9 + $0xe8] sm:$0xff] }
 0x830   :  { %v4794_v54 = vpop.f32.mrf.mxu0  ;;  %v5046_v32 = vld [vmem:[%s18669_s9 + $0xf8] sm:$0xff] }
 0x831   :  { %v4841_v50 = vadd.f32 %v9218_v44, %v4826_v14  ;;  %v15427_v22 = vmul.f32 %v4870_v1, %v4847_v58  ;;  %v4825_v59 = vadd.f32 %v4794_v54, %v4558_v3  ;;  %v4846_v37 = vmax.f32 %v4838_v7, 0.0  ;;  %v5043_v1 = vld [vmem:[%s18669_s9 + $0xe0] sm:$0xff]  ;;  %v5042_v3 = vld [vmem:[%s18669_s9 + $0xd8] sm:$0xff]  ;;  %v5040_v7 = vld [vmem:[%s18669_s9 + $0xc8] sm:$0xff] }
 0x832   :  { %v12126_v5 = vpop.f32.mrf.mxu0  ;;  %v5039_v14 = vld [vmem:[%s18669_s9 + $0xc0] sm:$0xff]  ;;  %v5038_v58 = vld [vmem:[%s18669_s9 + $0xb8] sm:$0xff]  ;;  %v5036_v54 = vld [vmem:[%s18669_s9 + $0xa8] sm:$0xff] }
 0x833   :  { %v4849_v13 = vmax.f32 %v4841_v50, 0.0  ;;  %4911 = vst [vmem:[%s18674_s17 + $0x8] sm:$0xff] %v15427_v22  ;;  %v4840_v33 = vadd.f32 %v9218_v44, %v4825_v59  ;;  %v15434_v63 = vmul.f32 %v4865_v26, %v4846_v37  ;;  %v4828_v53 = vadd.f32 %v12126_v5, %v4561_v20  ;;  %v5037_v20 = vld [vmem:[%s18669_s9 + $0xb0] sm:$0xff]  ;;  %v5035_v26 = vld [vmem:[%s18669_s9 + $0xa0] sm:$0xff]  ;;  %v5034_v50 = vld [vmem:[%s18669_s9 + $0x98] sm:$0xff] }
 0x834   :  { %v4804_v17 = vpop.f32.mrf.mxu0  ;;  %v5033_v59 = vld [vmem:[%s18669_s9 + $0x90] sm:$0xff]  ;;  %v5032_v37 = vld [vmem:[%s18669_s9 + $0x88] sm:$0xff]  ;;  %v5030_v5 = vld [vmem:[%s18669_s9 + $0x78] sm:$0xff] }
 0x835   :  { %v15437_v27 = vmul.f32 %v4880_v8, %v4849_v13  ;;  %v4848_v35 = vmax.f32 %v4840_v33, 0.0  ;;  %4910 = vst [vmem:[%s18674_s17] sm:$0xff] %v15434_v63  ;;  %v4843_v19 = vadd.f32 %v9218_v44, %v4828_v53  ;;  %v4827_v36 = vadd.f32 %v4804_v17, %v4560_v61  ;;  %v5031_v61 = vld [vmem:[%s18669_s9 + $0x80] sm:$0xff]  ;;  %v5028_v13 = vld [vmem:[%s18669_s9 + $0x68] sm:$0xff]  ;;  %v5026_v53 = vld [vmem:[%s18669_s9 + $0x58] sm:$0xff] }
 0x836   :  { %v12129_v47 = vpop.f32.mrf.mxu0  ;;  %v4918_v2 = vadd.f32 %v15427_v22, %v15434_v63  ;;  %v5027_v33 = vld [vmem:[%s18669_s9 + $0x60] sm:$0xff]  ;;  %v5024_v17 = vld [vmem:[%s18669_s9 + $0x48] sm:$0xff] }
 0x837   :  { %4913 = vst [vmem:[%s18674_s17 + $0x18] sm:$0xff] %v15437_v27  ;;  %v15448_v24 = vmul.f32 %v4875_v23, %v4848_v35  ;;  %v4851_v30 = vmax.f32 %v4843_v19, 0.0  ;;  %v4842_v28 = vadd.f32 %v9218_v44, %v4827_v36  ;;  %v4830_v45 = vadd.f32 %v12129_v47, %v4563_v21  ;;  %v5025_v21 = vld [vmem:[%s18669_s9 + $0x50] sm:$0xff]  ;;  %v5023_v35 = vld [vmem:[%s18669_s9 + $0x40] sm:$0xff]  ;;  %v5022_v19 = vld [vmem:[%s18669_s9 + $0x38] sm:$0xff] }
 0x838   :  { %v4814_v9 = vpop.f32.mrf.mxu0  ;;  %v5021_v36 = vld [vmem:[%s18669_s9 + $0x30] sm:$0xff]  ;;  %v5019_v47 = vld [vmem:[%s18669_s9 + $0x20] sm:$0xff] }
 0x839   :  { %4912 = vst [vmem:[%s18674_s17 + $0x10] sm:$0xff] %v15448_v24  ;;  %v15456_v39 = vmul.f32 %v4890_v29, %v4851_v30  ;;  %v4850_v18 = vmax.f32 %v4842_v28, 0.0  ;;  %v4845_v25 = vadd.f32 %v9218_v44, %v4830_v45  ;;  %v4829_v12 = vadd.f32 %v4814_v9, %v4562_v48  ;;  %v5020_v48 = vld [vmem:[%s18669_s9 + $0x28] sm:$0xff]  ;;  %v5018_v30 = vld [vmem:[%s18669_s9 + $0x18] sm:$0xff]  ;;  %v5017_v28 = vld [vmem:[%s18669_s9 + $0x10] sm:$0xff] }
 0x83a   :  { %v4919_v0 = vadd.f32 %v4918_v2, %v15448_v24  ;;  %v5016_v45 = vld [vmem:[%s18669_s9 + $0x8] sm:$0xff]  ;;  %v5015_v9 = vld [vmem:[%s18669_s9] sm:$0xff]  ;;  %v9288_v2 = vld [vmem:[%s18669_s9 + $0x2f8] sm:$0xff] }
 0x83b   :  { %4915 = vst [vmem:[%s18674_s17 + $0x28] sm:$0xff] %v15456_v39  ;;  %v15463_v43 = vmul.f32 %v4885_v15, %v4850_v18  ;;  %v4853_v6 = vmax.f32 %v4845_v25, 0.0  ;;  %v4844_v46 = vadd.f32 %v9218_v44, %v4829_v12  ;;  %v4933_v44 = vld [vmem:[%s18671_s3 + $0x8] sm:$0xff]  ;;  %v9287_v25 = vld [vmem:[%s18669_s9 + $0x2f0] sm:$0xff] }
 0x83c   :  { %v4920_v55 = vadd.f32 %v4919_v0, %v15437_v27  ;;  %v9286_v0 = vld [vmem:[%s18669_s9 + $0x2e8] sm:$0xff] }
 0x83d   :  { %4914 = vst [vmem:[%s18674_s17 + $0x20] sm:$0xff] %v15463_v43  ;;  %v15471_v29 = vmul.f32 %v15415_v11, %v4853_v6  ;;  %v4852_v56 = vmax.f32 %v4844_v46, 0.0  ;;  %v9285_v6 = vld [vmem:[%s18669_s9 + $0x2e0] sm:$0xff]  ;;  %v9284_v46 = vld [vmem:[%s18669_s9 + $0x2d8] sm:$0xff] }
 0x83e   :  { %v4921_v41 = vadd.f32 %v4920_v55, %v15463_v43  ;;  %v9283_v55 = vld [vmem:[%s18669_s9 + $0x2d0] sm:$0xff] }
 0x83f   :  { %4917 = vst [vmem:[%s18674_s17 + $0x38] sm:$0xff] %v15471_v29  ;;  %v15479_v15 = vmul.f32 %v15417_v34, %v4852_v56  ;;  %12130 = vmatprep.subr.mxu1 %v15471_v29  ;;  %12168 = vmatprep.subr.mxu0 %v15471_v29  ;;  %v9282_v56 = vld [vmem:[%s18669_s9 + $0x2c8] sm:$0xff] }
 0x840   :  { %12131 = vmatpush3.msra.mxu1 %v15471_v29  ;;  %v4922_v11 = vadd.f32 %v4921_v41, %v15456_v39  ;;  %v9281_v41 = vld [vmem:[%s18669_s9 + $0x2c0] sm:$0xff] }
 0x841   :  { %4916 = vst [vmem:[%s18674_s17 + $0x30] sm:$0xff] %v15479_v15  ;;  %12132 = vmatprep.subr.mxu1 %v15479_v15 }
 0x842   :  { %12133 = vmatpush3.msra.mxu1 %v15479_v15  ;;  %v4923_v34 = vadd.f32 %v4922_v11, %v15479_v15  ;;  %v9280_v11 = vld [vmem:[%s18669_s9 + $0x2b8] sm:$0xff] }
 0x843   :  { %12134 = vmatprep.subr.mxu1 %v15456_v39 }
 0x844   :  { %12135 = vmatpush3.msra.mxu1 %v15456_v39  ;;  %v4924_v38 = vadd.f32 %v4923_v34, %v15471_v29  ;;  %v9279_v34 = vld [vmem:[%s18669_s9 + $0x2b0] sm:$0xff] }
 0x845   :  { %12136 = vmatprep.subr.mxu1 %v15463_v43 }
 0x846   :  { %12137 = vmatpush3.msra.mxu1 %v15463_v43  ;;  %v4925_v8 = vrot.slane %v4924_v38, 4 }
 0x847   :  { %12138 = vmatprep.subr.mxu1 %v15437_v27 }
 0x848   :  { %12139 = vmatpush3.msra.mxu1 %v15437_v27  ;;  %v4926_v49 = vadd.f32 %v4925_v8, %v4924_v38  ;;  %v9278_v38 = vld [vmem:[%s18669_s9 + $0x2a8] sm:$0xff]  ;;  %v9277_v8 = vld [vmem:[%s18669_s9 + $0x2a0] sm:$0xff] }
 0x849   :  { %12140 = vmatprep.subr.mxu1 %v15448_v24 }
 0x84a   :  { %12141 = vmatpush3.msra.mxu1 %v15448_v24  ;;  %v4927_v52 = vrot.slane %v4926_v49, 2 }
 0x84b   :  { %12142 = vmatprep.subr.mxu1 %v15427_v22 }
 0x84c   :  { %12143 = vmatpush3.msra.mxu1 %v15427_v22  ;;  %v4928_v23 = vadd.f32 %v4927_v52, %v4926_v49  ;;  %v9276_v49 = vld [vmem:[%s18669_s9 + $0x298] sm:$0xff]  ;;  %v9275_v52 = vld [vmem:[%s18669_s9 + $0x290] sm:$0xff] }
 0x84d   :  { %12144 = vmatprep.subr.mxu1 %v15434_v63 }
 0x84e   :  { %12145 = vmatpush3.msra.mxu1 %v15434_v63  ;;  %v4929_v31 = vrot.slane %v4928_v23, 1 }
 0x84f   :  { %12147 = vmatmul.mubr.msk.f32.vlgmr.msra.gmra.mxu1 %vm2452_vm0, %v4933_v44  ;;  %12149 = vmatprep.subr.mxu1 %v15471_v29  ;;  %v9274_v44 = vld [vmem:[%s18669_s9 + $0x288] sm:$0xff] }
 0x850   :  { %12150 = vmatpush3.msra.mxu1 %v15471_v29  ;;  %12165 = vmatprep.mubr.msk.f32.mxu1 %vm2452_vm0, %v5047_v62  ;;  %v4930_v16 = vadd.f32 %v4929_v31, %v4928_v23  ;;  %v9273_v23 = vld [vmem:[%s18669_s9 + $0x280] sm:$0xff]  ;;  %v9272_v31 = vld [vmem:[%s18669_s9 + $0x278] sm:$0xff] }
 0x851   :  { %12151 = vmatprep.subr.mxu1 %v15479_v15 }
 0x852   :  { %12152 = vmatpush3.msra.mxu1 %v15479_v15  ;;  %v4931_v42 = vmul.f32 0.015625, %v4930_v16  ;;  %v9271_v16 = vld [vmem:[%s18669_s9 + $0x270] sm:$0xff] }
 0x853   :  { %12153 = vmatprep.subr.mxu1 %v15456_v39 }
 0x854   :  { %12154 = vmatpush3.msra.mxu1 %v15456_v39  ;;  %8843 = vst [vmem:[%s18672_s18 + $0x11] sm:$0x1] %v4931_v42 }
 0x855   :  { %12155 = vmatprep.subr.mxu1 %v15463_v43 }
 0x856   :  { %12156 = vmatpush3.msra.mxu1 %v15463_v43 }
 0x857   :  { %12157 = vmatprep.subr.mxu1 %v15437_v27 }
 0x858   :  { %12158 = vmatpush3.msra.mxu1 %v15437_v27 }
 0x859   :  { %12159 = vmatprep.subr.mxu1 %v15448_v24 }
 0x85a   :  { %12160 = vmatpush3.msra.mxu1 %v15448_v24 }
 0x85b   :  { %12161 = vmatprep.subr.mxu1 %v15427_v22 }
 0x85c   :  { %12162 = vmatpush3.msra.mxu1 %v15427_v22 }
 0x85d   :  { %12163 = vmatprep.subr.mxu1 %v15434_v63 }
 0x85e   :  { %12164 = vmatpush3.msra.mxu1 %v15434_v63 }
 0x85f   :  { %12166 = vmatmul.mubr.msk.f32.vlgmr.msra.gmra.mxu1 %vm2452_vm0, %v5048_v57  ;;  %5240 = vmatprep.subr.mxu1 %v5046_v32  ;;  %v9270_v57 = vld [vmem:[%s18669_s9 + $0x268] sm:$0xff]  ;;  %v9269_v32 = vld [vmem:[%s18669_s9 + $0x260] sm:$0xff] }
 0x860   :  { %5241 = vmatpush1.msra.mxu1 %v5045_v4  ;;  %5304 = vmatprep.mubr.f32.mxu1 %v12318_v51  ;;  %v9268_v4 = vld [vmem:[%s18669_s9 + $0x258] sm:$0xff] }
 0x861   :  { %5242 = vmatprep.subr.mxu1 %v5044_v40  ;;  %v9267_v40 = vld [vmem:[%s18669_s9 + $0x250] sm:$0xff] }
 0x862   :  { %5243 = vmatpush1.msra.mxu1 %v5043_v1  ;;  %v9266_v1 = vld [vmem:[%s18669_s9 + $0x248] sm:$0xff] }
 0x863   :  { %5244 = vmatprep.subr.mxu1 %v5042_v3  ;;  %v9265_v3 = vld [vmem:[%s18669_s9 + $0x240] sm:$0xff] }
 0x864   :  { %5245 = vmatpush1.msra.mxu1 %v5041_v60  ;;  %v9264_v60 = vld [vmem:[%s18669_s9 + $0x238] sm:$0xff] }
 0x865   :  { %5246 = vmatprep.subr.mxu1 %v5040_v7  ;;  %v9263_v7 = vld [vmem:[%s18669_s9 + $0x230] sm:$0xff] }
 0x866   :  { %5247 = vmatpush1.msra.mxu1 %v5039_v14  ;;  %v9262_v14 = vld [vmem:[%s18669_s9 + $0x228] sm:$0xff] }
 0x867   :  { %5248 = vmatprep.subr.mxu1 %v5038_v58  ;;  %v9261_v58 = vld [vmem:[%s18669_s9 + $0x220] sm:$0xff] }
 0x868   :  { %5249 = vmatpush1.msra.mxu1 %v5037_v20  ;;  %v9260_v20 = vld [vmem:[%s18669_s9 + $0x218] sm:$0xff] }
 0x869   :  { %5250 = vmatprep.subr.mxu1 %v5036_v54  ;;  %v9259_v54 = vld [vmem:[%s18669_s9 + $0x210] sm:$0xff] }
 0x86a   :  { %5251 = vmatpush1.msra.mxu1 %v5035_v26  ;;  %v9258_v26 = vld [vmem:[%s18669_s9 + $0x208] sm:$0xff] }
 0x86b   :  { %5252 = vmatprep.subr.mxu1 %v5034_v50  ;;  %v5317_v50 = vld [vmem:[%s18671_s3 + $0x20] sm:$0xff] }
 0x86c   :  { %5253 = vmatpush1.msra.mxu1 %v5033_v59  ;;  %v9257_v59 = vld [vmem:[%s18669_s9 + $0x200] sm:$0xff] }
 0x86d   :  { %5254 = vmatprep.subr.mxu1 %v5032_v37  ;;  %v5318_v37 = vld [vmem:[%s18671_s3 + $0x28] sm:$0xff] }
 0x86e   :  { %5255 = vmatpush1.msra.mxu1 %v5031_v61  ;;  %v5514_v61 = vld [vmem:[%s18671_s3 + $0x30] sm:$0xff] }
 0x86f   :  { %5256 = vmatprep.subr.mxu1 %v5030_v5  ;;  %v5515_v5 = vld [vmem:[%s18671_s3 + $0x38] sm:$0xff] }
 0x870   :  { %5257 = vmatpush1.msra.mxu1 %v5029_v10  ;;  %v9322_v10 = vld [vmem:[%s18669_s9 + $0x3f8] sm:$0xff] }
 0x871   :  { %5258 = vmatprep.subr.mxu1 %v5028_v13  ;;  %v9321_v13 = vld [vmem:[%s18669_s9 + $0x3f0] sm:$0xff] }
 0x872   :  { %5259 = vmatpush1.msra.mxu1 %v5027_v33  ;;  %v9320_v33 = vld [vmem:[%s18669_s9 + $0x3e8] sm:$0xff] }
 0x873   :  { %5260 = vmatprep.subr.mxu1 %v5026_v53  ;;  %v9319_v53 = vld [vmem:[%s18669_s9 + $0x3e0] sm:$0xff] }
 0x874   :  { %5261 = vmatpush1.msra.mxu1 %v5025_v21  ;;  %v9318_v21 = vld [vmem:[%s18669_s9 + $0x3d8] sm:$0xff] }
 0x875   :  { %5262 = vmatprep.subr.mxu1 %v5024_v17  ;;  %v9317_v17 = vld [vmem:[%s18669_s9 + $0x3d0] sm:$0xff] }
 0x876   :  { %5263 = vmatpush1.msra.mxu1 %v5023_v35  ;;  %v9316_v35 = vld [vmem:[%s18669_s9 + $0x3c8] sm:$0xff] }
 0x877   :  { %5264 = vmatprep.subr.mxu1 %v5022_v19  ;;  %v9315_v19 = vld [vmem:[%s18669_s9 + $0x3c0] sm:$0xff] }
 0x878   :  { %5265 = vmatpush1.msra.mxu1 %v5021_v36  ;;  %v9314_v36 = vld [vmem:[%s18669_s9 + $0x3b8] sm:$0xff] }
 0x879   :  { %5266 = vmatprep.subr.mxu1 %v5020_v48  ;;  %v9313_v48 = vld [vmem:[%s18669_s9 + $0x3b0] sm:$0xff] }
 0x87a   :  { %5267 = vmatpush1.msra.mxu1 %v5019_v47  ;;  %v9312_v47 = vld [vmem:[%s18669_s9 + $0x3a8] sm:$0xff] }
 0x87b   :  { %5268 = vmatprep.subr.mxu1 %v5018_v30  ;;  %v9311_v30 = vld [vmem:[%s18669_s9 + $0x3a0] sm:$0xff] }
 0x87c   :  { %5269 = vmatpush1.msra.mxu1 %v5017_v28  ;;  %v9310_v28 = vld [vmem:[%s18669_s9 + $0x398] sm:$0xff] }
 0x87d   :  { %5270 = vmatprep.subr.mxu1 %v5016_v45  ;;  %v9309_v45 = vld [vmem:[%s18669_s9 + $0x390] sm:$0xff] }
 0x87e   :  { %5271 = vmatpush1.msra.mxu1 %v5015_v9  ;;  %v9308_v9 = vld [vmem:[%s18669_s9 + $0x388] sm:$0xff] }
 0x87f   :  { %5433 = vmatprep.subr.mxu1 %v9288_v2  ;;  %v9307_v2 = vld [vmem:[%s18669_s9 + $0x380] sm:$0xff] }
 0x90f   :  { %v12148_v18 = vpop.f32.mrf.mxu1 }
 0x911   :  { %v5006_v12 = vpop.f32.mrf.mxu1 }
 0x912   :  { %5305 = vmatmul.mubr.f32.vlgmr.msra.gmra.mxu1 %v5006_v12  ;;  %v9304_v12 = vld [vmem:[%s18669_s9 + $0x368] sm:$0xff] }
 0x913   :  { %5434 = vmatpush1.msra.mxu1 %v9287_v25  ;;  %5310 = vmatprep.mubr.f32.mxu1 %v12318_v51  ;;  %v9305_v25 = vld [vmem:[%s18669_s9 + $0x370] sm:$0xff] }
 0x914   :  { %5435 = vmatprep.subr.mxu1 %v9286_v0  ;;  %v9303_v0 = vld [vmem:[%s18669_s9 + $0x360] sm:$0xff] }
 0x915   :  { %5436 = vmatpush1.msra.mxu1 %v9285_v6  ;;  %v9302_v6 = vld [vmem:[%s18669_s9 + $0x358] sm:$0xff] }
 0x916   :  { %5437 = vmatprep.subr.mxu1 %v9284_v46  ;;  %5311 = vmatmul.mubr.f32.gmra.mxu1 %v12148_v18  ;;  %v9306_v18 = vld [vmem:[%s18669_s9 + $0x378] sm:$0xff]  ;;  %v9301_v46 = vld [vmem:[%s18669_s9 + $0x350] sm:$0xff] }
 0x917   :  { %5438 = vmatpush1.msra.mxu1 %v9283_v55  ;;  %5497 = vmatprep.mubr.f32.mxu1 %v12318_v51  ;;  %v9300_v55 = vld [vmem:[%s18669_s9 + $0x348] sm:$0xff] }
 0x918   :  { %5439 = vmatprep.subr.mxu1 %v9282_v56  ;;  %v9299_v56 = vld [vmem:[%s18669_s9 + $0x340] sm:$0xff] }
 0x919   :  { %5440 = vmatpush1.msra.mxu1 %v9281_v41  ;;  %v9298_v41 = vld [vmem:[%s18669_s9 + $0x338] sm:$0xff] }
 0x91a   :  { %5441 = vmatprep.subr.mxu1 %v9280_v11  ;;  %v9297_v11 = vld [vmem:[%s18669_s9 + $0x330] sm:$0xff] }
 0x91b   :  { %5442 = vmatpush1.msra.mxu1 %v9279_v34  ;;  %v9296_v34 = vld [vmem:[%s18669_s9 + $0x328] sm:$0xff] }
 0x91c   :  { %5443 = vmatprep.subr.mxu1 %v9278_v38  ;;  %v9295_v38 = vld [vmem:[%s18669_s9 + $0x320] sm:$0xff] }
 0x91d   :  { %5444 = vmatpush1.msra.mxu1 %v9277_v8  ;;  %v9294_v8 = vld [vmem:[%s18669_s9 + $0x318] sm:$0xff] }
 0x91e   :  { %5445 = vmatprep.subr.mxu1 %v9276_v49  ;;  %v9293_v49 = vld [vmem:[%s18669_s9 + $0x310] sm:$0xff] }
 0x91f   :  { %5446 = vmatpush1.msra.mxu1 %v9275_v52  ;;  %v12167_v62 = vpop.f32.mrf.mxu1  ;;  %v9292_v52 = vld [vmem:[%s18669_s9 + $0x308] sm:$0xff] }
 0x920   :  { %5447 = vmatprep.subr.mxu1 %v9274_v44  ;;  %v9291_v44 = vld [vmem:[%s18669_s9 + $0x300] sm:$0xff] }
 0x921   :  { %5448 = vmatpush1.msra.mxu1 %v9273_v23  ;;  %v5121_v42 = vpop.f32.mrf.mxu1 }
 0x922   :  { %5449 = vmatprep.subr.mxu1 %v9272_v31  ;;  %5228 = vmatmul.mubr.f32.vlgmr.msra.gmra.mxu0 %v5121_v42 }
 0x923   :  { %12169 = vmatpush3.msra.mxu0 %v15471_v29  ;;  %5450 = vmatpush1.msra.mxu1 %v9271_v16 }
 0x924   :  { %12170 = vmatprep.subr.mxu0 %v15479_v15  ;;  %5451 = vmatprep.subr.mxu1 %v9270_v57 }
 0x925   :  { %12171 = vmatpush3.msra.mxu0 %v15479_v15  ;;  %5452 = vmatpush1.msra.mxu1 %v9269_v32 }
 0x926   :  { %12172 = vmatprep.subr.mxu0 %v15456_v39  ;;  %5453 = vmatprep.subr.mxu1 %v9268_v4 }
 0x927   :  { %12173 = vmatpush3.msra.mxu0 %v15456_v39  ;;  %5454 = vmatpush1.msra.mxu1 %v9267_v40 }
 0x928   :  { %12174 = vmatprep.subr.mxu0 %v15463_v43  ;;  %5455 = vmatprep.subr.mxu1 %v9266_v1 }
 0x929   :  { %12175 = vmatpush3.msra.mxu0 %v15463_v43  ;;  %5456 = vmatpush1.msra.mxu1 %v9265_v3 }
 0x92a   :  { %12176 = vmatprep.subr.mxu0 %v15437_v27  ;;  %5457 = vmatprep.subr.mxu1 %v9264_v60 }
 0x92b   :  { %5233 = vmatprep.mubr.f32.mxu0 %v12318_v51  ;;  %12177 = vmatpush3.msra.mxu0 %v15437_v27 }
 0x92c   :  { %5458 = vmatpush1.msra.mxu1 %v9263_v7  ;;  %5234 = vmatmul.mubr.f32.gmra.mxu0 %v12167_v62  ;;  %v5711_v7 = vld [vmem:[%s18671_s3 + $0x40] sm:$0xff] }
 0x92d   :  { %12178 = vmatprep.subr.mxu0 %v15448_v24  ;;  %5459 = vmatprep.subr.mxu1 %v9262_v14  ;;  %v5712_v14 = vld [vmem:[%s18671_s3 + $0x48] sm:$0xff] }
 0x92e   :  { %12179 = vmatpush3.msra.mxu0 %v15448_v24  ;;  %5460 = vmatpush1.msra.mxu1 %v9261_v58  ;;  %v9356_v58 = vld [vmem:[%s18669_s9 + $0x4f8] sm:$0xff] }
 0x92f   :  { %12180 = vmatprep.subr.mxu0 %v15427_v22  ;;  %5461 = vmatprep.subr.mxu1 %v9260_v20 }
 0x930   :  { %12181 = vmatpush3.msra.mxu0 %v15427_v22  ;;  %5462 = vmatpush1.msra.mxu1 %v9259_v54  ;;  %v9355_v54 = vld [vmem:[%s18669_s9 + $0x4f0] sm:$0xff] }
 0x931   :  { %12182 = vmatprep.subr.mxu0 %v15434_v63  ;;  %5463 = vmatprep.subr.mxu1 %v9258_v26  ;;  %v9354_v26 = vld [vmem:[%s18669_s9 + $0x4e8] sm:$0xff] }
 0x932   :  { %12183 = vmatpush3.msra.mxu0 %v15434_v63  ;;  %12184 = vmatprep.mubr.msk.f32.mxu0 %vm2452_vm0, %v5317_v50 }
 0x933   :  { %5464 = vmatpush1.msra.mxu1 %v9257_v59  ;;  %12185 = vmatmul.mubr.msk.f32.vlgmr.msra.gmra.mxu0 %vm2452_vm0, %v5318_v37  ;;  %v9353_v59 = vld [vmem:[%s18669_s9 + $0x4e0] sm:$0xff]  ;;  %v9352_v37 = vld [vmem:[%s18669_s9 + $0x4d8] sm:$0xff] }
 0x934   :  { %12187 = vmatprep.subr.mxu0 %v15471_v29  ;;  %12206 = vmatprep.subr.mxu1 %v15471_v29 }
 0x935   :  { %12188 = vmatpush3.msra.mxu0 %v15471_v29  ;;  %12203 = vmatprep.mubr.msk.f32.mxu0 %vm2452_vm0, %v5514_v61  ;;  %v9351_v61 = vld [vmem:[%s18669_s9 + $0x4d0] sm:$0xff] }
 0x936   :  { %12189 = vmatprep.subr.mxu0 %v15479_v15 }
 0x937   :  { %12190 = vmatpush3.msra.mxu0 %v15479_v15 }
 0x938   :  { %12191 = vmatprep.subr.mxu0 %v15456_v39 }
 0x939   :  { %12192 = vmatpush3.msra.mxu0 %v15456_v39 }
 0x93a   :  { %12193 = vmatprep.subr.mxu0 %v15463_v43 }
 0x93b   :  { %12194 = vmatpush3.msra.mxu0 %v15463_v43 }
 0x93c   :  { %12195 = vmatprep.subr.mxu0 %v15437_v27 }
 0x93d   :  { %12196 = vmatpush3.msra.mxu0 %v15437_v27 }
 0x93e   :  { %12197 = vmatprep.subr.mxu0 %v15448_v24 }
 0x93f   :  { %12198 = vmatpush3.msra.mxu0 %v15448_v24 }
 0x940   :  { %12199 = vmatprep.subr.mxu0 %v15427_v22 }
 0x941   :  { %12200 = vmatpush3.msra.mxu0 %v15427_v22 }
 0x942   :  { %12201 = vmatprep.subr.mxu0 %v15434_v63 }
 0x943   :  { %12202 = vmatpush3.msra.mxu0 %v15434_v63 }
 0x944   :  { %12204 = vmatmul.mubr.msk.f32.vlgmr.msra.gmra.mxu0 %vm2452_vm0, %v5515_v5  ;;  %5630 = vmatprep.subr.mxu0 %v9322_v10  ;;  %v9350_v5 = vld [vmem:[%s18669_s9 + $0x4c8] sm:$0xff]  ;;  %v9349_v10 = vld [vmem:[%s18669_s9 + $0x4c0] sm:$0xff] }
 0x945   :  { %5631 = vmatpush1.msra.mxu0 %v9321_v13  ;;  %5694 = vmatprep.mubr.f32.mxu0 %v12318_v51  ;;  %v9348_v13 = vld [vmem:[%s18669_s9 + $0x4b8] sm:$0xff] }
 0x946   :  { %5632 = vmatprep.subr.mxu0 %v9320_v33  ;;  %v9346_v33 = vld [vmem:[%s18669_s9 + $0x4a8] sm:$0xff] }
 0x947   :  { %5633 = vmatpush1.msra.mxu0 %v9319_v53  ;;  %v9345_v53 = vld [vmem:[%s18669_s9 + $0x4a0] sm:$0xff] }
 0x948   :  { %5634 = vmatprep.subr.mxu0 %v9318_v21  ;;  %v9343_v21 = vld [vmem:[%s18669_s9 + $0x490] sm:$0xff] }
 0x949   :  { %5635 = vmatpush1.msra.mxu0 %v9317_v17  ;;  %v9341_v17 = vld [vmem:[%s18669_s9 + $0x480] sm:$0xff] }
 0x94a   :  { %5636 = vmatprep.subr.mxu0 %v9316_v35  ;;  %v9340_v35 = vld [vmem:[%s18669_s9 + $0x478] sm:$0xff] }
 0x94b   :  { %5637 = vmatpush1.msra.mxu0 %v9315_v19  ;;  %v9390_v19 = vld [vmem:[%s18669_s9 + $0x5f8] sm:$0xff] }
 0x94c   :  { %5638 = vmatprep.subr.mxu0 %v9314_v36  ;;  %v9389_v36 = vld [vmem:[%s18669_s9 + $0x5f0] sm:$0xff] }
 0x94d   :  { %5639 = vmatpush1.msra.mxu0 %v9313_v48  ;;  %v9338_v48 = vld [vmem:[%s18669_s9 + $0x468] sm:$0xff] }
 0x94e   :  { %5640 = vmatprep.subr.mxu0 %v9312_v47  ;;  %v9388_v47 = vld [vmem:[%s18669_s9 + $0x5e8] sm:$0xff] }
 0x94f   :  { %5641 = vmatpush1.msra.mxu0 %v9311_v30  ;;  %v9387_v30 = vld [vmem:[%s18669_s9 + $0x5e0] sm:$0xff] }
 0x950   :  { %5642 = vmatprep.subr.mxu0 %v9310_v28  ;;  %v9336_v28 = vld [vmem:[%s18669_s9 + $0x458] sm:$0xff] }
 0x951   :  { %5643 = vmatpush1.msra.mxu0 %v9309_v45  ;;  %v9386_v45 = vld [vmem:[%s18669_s9 + $0x5d8] sm:$0xff] }
 0x952   :  { %5644 = vmatprep.subr.mxu0 %v9308_v9  ;;  %v9335_v9 = vld [vmem:[%s18669_s9 + $0x450] sm:$0xff] }
 0x953   :  { %5645 = vmatpush1.msra.mxu0 %v9307_v2  ;;  %v9385_v2 = vld [vmem:[%s18669_s9 + $0x5d0] sm:$0xff] }
 0x954   :  { %5646 = vmatprep.subr.mxu0 %v9306_v18  ;;  %v9334_v18 = vld [vmem:[%s18669_s9 + $0x448] sm:$0xff] }
 0x955   :  { %5647 = vmatpush1.msra.mxu0 %v9305_v25  ;;  %v9384_v25 = vld [vmem:[%s18669_s9 + $0x5c8] sm:$0xff] }
 0x956   :  { %5648 = vmatprep.subr.mxu0 %v9304_v12  ;;  %v9333_v12 = vld [vmem:[%s18669_s9 + $0x440] sm:$0xff] }
 0x957   :  { %5649 = vmatpush1.msra.mxu0 %v9303_v0  ;;  %v9383_v0 = vld [vmem:[%s18669_s9 + $0x5c0] sm:$0xff] }
 0x958   :  { %5650 = vmatprep.subr.mxu0 %v9302_v6  ;;  %v9332_v6 = vld [vmem:[%s18669_s9 + $0x438] sm:$0xff] }
 0x959   :  { %5651 = vmatpush1.msra.mxu0 %v9301_v46  ;;  %v9382_v46 = vld [vmem:[%s18669_s9 + $0x5b8] sm:$0xff] }
 0x95a   :  { %5652 = vmatprep.subr.mxu0 %v9300_v55  ;;  %v9331_v55 = vld [vmem:[%s18669_s9 + $0x430] sm:$0xff] }
 0x95b   :  { %5653 = vmatpush1.msra.mxu0 %v9299_v56  ;;  %v9381_v56 = vld [vmem:[%s18669_s9 + $0x5b0] sm:$0xff] }
 0x95c   :  { %5654 = vmatprep.subr.mxu0 %v9298_v41  ;;  %v9330_v41 = vld [vmem:[%s18669_s9 + $0x428] sm:$0xff] }
 0x95d   :  { %5655 = vmatpush1.msra.mxu0 %v9297_v11  ;;  %v9380_v11 = vld [vmem:[%s18669_s9 + $0x5a8] sm:$0xff] }
 0x95e   :  { %5656 = vmatprep.subr.mxu0 %v9296_v34  ;;  %v9329_v34 = vld [vmem:[%s18669_s9 + $0x420] sm:$0xff] }
 0x95f   :  { %5657 = vmatpush1.msra.mxu0 %v9295_v38  ;;  %v9379_v38 = vld [vmem:[%s18669_s9 + $0x5a0] sm:$0xff] }
 0x960   :  { %5658 = vmatprep.subr.mxu0 %v9294_v8  ;;  %v9328_v8 = vld [vmem:[%s18669_s9 + $0x418] sm:$0xff] }
 0x961   :  { %5659 = vmatpush1.msra.mxu0 %v9293_v49  ;;  %v9378_v49 = vld [vmem:[%s18669_s9 + $0x598] sm:$0xff] }
 0x962   :  { %5660 = vmatprep.subr.mxu0 %v9292_v52  ;;  %v9327_v52 = vld [vmem:[%s18669_s9 + $0x410] sm:$0xff] }
 0x963   :  { %5661 = vmatpush1.msra.mxu0 %v9291_v44  ;;  %v9377_v44 = vld [vmem:[%s18669_s9 + $0x590] sm:$0xff] }
 0x964   :  { %12225 = vmatprep.subr.mxu0 %v15471_v29 }
 0x9d2   :  { %v5306_v23 = vpop.f32.mrf.mxu1 }
 0x9d4   :  { %v5308_v42 = vpop.f32.mrf.mxu1 }
 0x9d6   :  { %v5312_v4 = vpop.f32.mrf.mxu1 }
 0x9e2   :  { %v5229_v62 = vpop.f32.mrf.mxu0 }
 0x9e3   :  { %v15878_v31 = vadd.f32 %v5306_v23, %v5229_v62  ;;  %v9326_v23 = vld [vmem:[%s18669_s9 + $0x408] sm:$0xff] }
 0x9e4   :  { %v5231_v16 = vpop.f32.mrf.mxu0  ;;  %v9376_v62 = vld [vmem:[%s18669_s9 + $0x588] sm:$0xff] }
 0x9e5   :  { %v15880_v57 = vadd.f32 %v5308_v42, %v5231_v16  ;;  %v9325_v16 = vld [vmem:[%s18669_s9 + $0x400] sm:$0xff] }
 0x9e6   :  { %v9375_v42 = vld [vmem:[%s18669_s9 + $0x580] sm:$0xff] }
 0x9ec   :  { %v5235_v32 = vpop.f32.mrf.mxu0 }
 0x9ed   :  { %v15882_v40 = vadd.f32 %v5312_v4, %v5235_v32  ;;  %v9374_v32 = vld [vmem:[%s18669_s9 + $0x578] sm:$0xff]  ;;  %v9373_v4 = vld [vmem:[%s18669_s9 + $0x570] sm:$0xff] }
 0x9ee   :  { %v15884_v1 = vpop.f32.mrf.mxu0 }
 0x9f3   :  { %v12186_v3 = vpop.f32.mrf.mxu0 }
 0x9f5   :  { %v5391_v60 = vpop.f32.mrf.mxu0 }
 0x9f6   :  { %5498 = vmatmul.mubr.f32.vlgmr.msra.gmra.mxu1 %v5391_v60  ;;  %v9371_v60 = vld [vmem:[%s18669_s9 + $0x560] sm:$0xff] }
 0x9f7   :  { %12207 = vmatpush3.msra.mxu1 %v15471_v29  ;;  %5503 = vmatprep.mubr.f32.mxu1 %v12318_v51 }
 0x9f8   :  { %12208 = vmatprep.subr.mxu1 %v15479_v15 }
 0x9f9   :  { %12209 = vmatpush3.msra.mxu1 %v15479_v15 }
 0x9fa   :  { %12210 = vmatprep.subr.mxu1 %v15456_v39  ;;  %5504 = vmatmul.mubr.f32.gmra.mxu1 %v12186_v3  ;;  %v9372_v3 = vld [vmem:[%s18669_s9 + $0x568] sm:$0xff] }
 0x9fb   :  { %12211 = vmatpush3.msra.mxu1 %v15456_v39  ;;  %12222 = vmatprep.mubr.msk.f32.mxu1 %vm2452_vm0, %v5711_v7  ;;  %v16094_v7 = vld [vmem:[%s18672_s18 + $0x18] sm:$0xff] }
 0x9fc   :  { %12212 = vmatprep.subr.mxu1 %v15463_v43 }
 0x9fd   :  { %12213 = vmatpush3.msra.mxu1 %v15463_v43 }
 0x9fe   :  { %12214 = vmatprep.subr.mxu1 %v15437_v27 }
 0x9ff   :  { %12215 = vmatpush3.msra.mxu1 %v15437_v27 }
 0xa00   :  { %12216 = vmatprep.subr.mxu1 %v15448_v24 }
 0xa01   :  { %12217 = vmatpush3.msra.mxu1 %v15448_v24 }
 0xa02   :  { %12218 = vmatprep.subr.mxu1 %v15427_v22 }
 0xa03   :  { %12219 = vmatpush3.msra.mxu1 %v15427_v22 }
 0xa04   :  { %v12205_v20 = vpop.f32.mrf.mxu0  ;;  %12220 = vmatprep.subr.mxu1 %v15434_v63 }
 0xa05   :  { %12221 = vmatpush3.msra.mxu1 %v15434_v63 }
 0xa06   :  { %v5588_v50 = vpop.f32.mrf.mxu0  ;;  %12223 = vmatmul.mubr.msk.f32.vlgmr.msra.gmra.mxu1 %vm2452_vm0, %v5712_v14  ;;  %5827 = vmatprep.subr.mxu1 %v9356_v58  ;;  %v9370_v14 = vld [vmem:[%s18669_s9 + $0x558] sm:$0xff]  ;;  %v9369_v58 = vld [vmem:[%s18669_s9 + $0x550] sm:$0xff] }
 0xa07   :  { %5695 = vmatmul.mubr.f32.vlgmr.msra.gmra.mxu0 %v5588_v50  ;;  %5828 = vmatpush1.msra.mxu1 %v9355_v54  ;;  %v9367_v54 = vld [vmem:[%s18669_s9 + $0x540] sm:$0xff]  ;;  %v9365_v50 = vld [vmem:[%s18669_s9 + $0x530] sm:$0xff] }
 0xa08   :  { %12226 = vmatpush3.msra.mxu0 %v15471_v29  ;;  %5829 = vmatprep.subr.mxu1 %v9354_v26  ;;  %v9366_v26 = vld [vmem:[%s18669_s9 + $0x538] sm:$0xff] }
 0xa09   :  { %12227 = vmatprep.subr.mxu0 %v15479_v15  ;;  %5830 = vmatpush1.msra.mxu1 %v9353_v59  ;;  %v9364_v59 = vld [vmem:[%s18669_s9 + $0x528] sm:$0xff] }
 0xa0a   :  { %12228 = vmatpush3.msra.mxu0 %v15479_v15  ;;  %5700 = vmatprep.mubr.f32.mxu0 %v12318_v51  ;;  %v9347_v51 = vld [vmem:[%s18669_s9 + $0x4b0] sm:$0xff] }
 0xa0b   :  { %5831 = vmatprep.subr.mxu1 %v9352_v37  ;;  %12229 = vmatprep.subr.mxu0 %v15456_v39  ;;  %v9363_v37 = vld [vmem:[%s18669_s9 + $0x520] sm:$0xff] }
 0xa0c   :  { %5701 = vmatmul.mubr.f32.gmra.mxu0 %v12205_v20  ;;  %5832 = vmatpush1.msra.mxu1 %v9351_v61  ;;  %v9368_v20 = vld [vmem:[%s18669_s9 + $0x548] sm:$0xff]  ;;  %v9362_v61 = vld [vmem:[%s18669_s9 + $0x518] sm:$0xff] }
 0xa0d   :  { %12230 = vmatpush3.msra.mxu0 %v15456_v39  ;;  %5833 = vmatprep.subr.mxu1 %v9350_v5  ;;  %v9344_v39 = vld [vmem:[%s18669_s9 + $0x498] sm:$0xff]  ;;  %v9361_v5 = vld [vmem:[%s18669_s9 + $0x510] sm:$0xff] }
 0xa0e   :  { %12231 = vmatprep.subr.mxu0 %v15463_v43  ;;  %5834 = vmatpush1.msra.mxu1 %v9349_v10  ;;  %v9360_v10 = vld [vmem:[%s18669_s9 + $0x508] sm:$0xff] }
 0xa0f   :  { %12232 = vmatpush3.msra.mxu0 %v15463_v43  ;;  %5835 = vmatprep.subr.mxu1 %v9348_v13  ;;  %v9342_v43 = vld [vmem:[%s18669_s9 + $0x488] sm:$0xff]  ;;  %v9359_v13 = vld [vmem:[%s18669_s9 + $0x500] sm:$0xff] }
 0xa10   :  { %12233 = vmatprep.subr.mxu0 %v15437_v27  ;;  %5836 = vmatpush1.msra.mxu1 %v9347_v51  ;;  %v5314_v51 = vpop.f32.mrf.mxu1 }
 0xa11   :  { %12234 = vmatpush3.msra.mxu0 %v15437_v27  ;;  %5837 = vmatprep.subr.mxu1 %v9346_v33  ;;  %v5908_v27 = vld [vmem:[%s18671_s3 + $0x50] sm:$0xff] }
 0xa12   :  { %12235 = vmatprep.subr.mxu0 %v15448_v24  ;;  %5838 = vmatpush1.msra.mxu1 %v9345_v53 }
 0xa13   :  { %12236 = vmatpush3.msra.mxu0 %v15448_v24  ;;  %5839 = vmatprep.subr.mxu1 %v9344_v39  ;;  %v5909_v24 = vld [vmem:[%s18671_s3 + $0x58] sm:$0xff] }
 0xa14   :  { %12237 = vmatprep.subr.mxu0 %v15427_v22  ;;  %5840 = vmatpush1.msra.mxu1 %v9343_v21 }
 0xa15   :  { %12238 = vmatpush3.msra.mxu0 %v15427_v22  ;;  %5841 = vmatprep.subr.mxu1 %v9342_v43  ;;  %v9339_v22 = vld [vmem:[%s18669_s9 + $0x470] sm:$0xff] }
 0xa16   :  { %12239 = vmatprep.subr.mxu0 %v15434_v63  ;;  %5842 = vmatpush1.msra.mxu1 %v9341_v17  ;;  %v5315_v17 = vadd.f32 %v5314_v51, %v15884_v1  ;;  %v16155_v1 = vld [vmem:[%s18674_s17 + $0x28] sm:$0xff]  ;;  %v9395_v51 = vld [vmem:[%s18669_s9 + $0x610] sm:$0xff] }
 0xa17   :  { %12240 = vmatpush3.msra.mxu0 %v15434_v63  ;;  %12241 = vmatprep.mubr.msk.f32.mxu0 %vm2452_vm0, %v5908_v27  ;;  %v9337_v63 = vld [vmem:[%s18669_s9 + $0x460] sm:$0xff] }
 0xa18   :  { %5843 = vmatprep.subr.mxu1 %v9340_v35  ;;  %12242 = vmatmul.mubr.msk.f32.vlgmr.msra.gmra.mxu0 %vm2452_vm0, %v5909_v24 }
 0xa19   :  { %6024 = vmatprep.subr.mxu0 %v9390_v19  ;;  %5844 = vmatpush1.msra.mxu1 %v9339_v22 }
 0xa1a   :  { %6025 = vmatpush1.msra.mxu0 %v9389_v36  ;;  %5845 = vmatprep.subr.mxu1 %v9338_v48 }
 0xa1b   :  { %6026 = vmatprep.subr.mxu0 %v9388_v47  ;;  %5846 = vmatpush1.msra.mxu1 %v9337_v63 }
 0xa1c   :  { %6027 = vmatpush1.msra.mxu0 %v9387_v30  ;;  %5847 = vmatprep.subr.mxu1 %v9336_v28  ;;  %v16172_v28 = vld [vmem:[%s18674_s17 + $0x18] sm:$0xff] }
 0xa1d   :  { %6028 = vmatprep.subr.mxu0 %v9386_v45  ;;  %5848 = vmatpush1.msra.mxu1 %v9335_v9  ;;  %v16179_v45 = vld [vmem:[%s18674_s17 + $0x10] sm:$0xff]  ;;  %v16186_v9 = vld [vmem:[%s18674_s17 + $0x8] sm:$0xff] }
 0xa1e   :  { %6029 = vmatpush1.msra.mxu0 %v9385_v2  ;;  %5849 = vmatprep.subr.mxu1 %v9334_v18  ;;  %v6106_v2 = vld [vmem:[%s18671_s3 + $0x68] sm:$0xff]  ;;  %v9424_v18 = vld [vmem:[%s18669_s9 + $0x6f8] sm:$0xff] }
 0xa1f   :  { %6030 = vmatprep.subr.mxu0 %v9384_v25  ;;  %5850 = vmatpush1.msra.mxu1 %v9333_v12  ;;  %v16199_v25 = vld [vmem:[%s18674_s17] sm:$0xff]  ;;  %v9423_v12 = vld [vmem:[%s18669_s9 + $0x6f0] sm:$0xff] }
 0xa20   :  { %6031 = vmatpush1.msra.mxu0 %v9383_v0  ;;  %5851 = vmatprep.subr.mxu1 %v9332_v6  ;;  %v9422_v6 = vld [vmem:[%s18669_s9 + $0x6e8] sm:$0xff] }
 0xa21   :  { %6032 = vmatprep.subr.mxu0 %v9382_v46  ;;  %5852 = vmatpush1.msra.mxu1 %v9331_v55  ;;  %v9421_v46 = vld [vmem:[%s18669_s9 + $0x6e0] sm:$0xff] }
 0xa22   :  { %6033 = vmatpush1.msra.mxu0 %v9381_v56  ;;  %5853 = vmatprep.subr.mxu1 %v9330_v41  ;;  %v9420_v56 = vld [vmem:[%s18669_s9 + $0x6d8] sm:$0xff] }
 0xa23   :  { %6034 = vmatprep.subr.mxu0 %v9380_v11  ;;  %5854 = vmatpush1.msra.mxu1 %v9329_v34  ;;  %v16220_v41 = vld [vmem:[%s18674_s17 + $0x38] sm:$0xff]  ;;  %v16226_v11 = vld [vmem:[%s18674_s17 + $0x30] sm:$0xff] }
 0xa24   :  { %6035 = vmatpush1.msra.mxu0 %v9379_v38  ;;  %5855 = vmatprep.subr.mxu1 %v9328_v8  ;;  %v9419_v34 = vld [vmem:[%s18669_s9 + $0x6d0] sm:$0xff]  ;;  %v9418_v38 = vld [vmem:[%s18669_s9 + $0x6c8] sm:$0xff]  ;;  %v9417_v8 = vld [vmem:[%s18669_s9 + $0x6c0] sm:$0xff] }
 0xa25   :  { %6036 = vmatprep.subr.mxu0 %v9378_v49  ;;  %5856 = vmatpush1.msra.mxu1 %v9327_v52  ;;  %v9416_v49 = vld [vmem:[%s18669_s9 + $0x6b8] sm:$0xff]  ;;  %v9415_v52 = vld [vmem:[%s18669_s9 + $0x6b0] sm:$0xff] }
 0xa26   :  { %6037 = vmatpush1.msra.mxu0 %v9377_v44  ;;  %5857 = vmatprep.subr.mxu1 %v9326_v23  ;;  %v9414_v44 = vld [vmem:[%s18669_s9 + $0x6a8] sm:$0xff]  ;;  %v9413_v23 = vld [vmem:[%s18669_s9 + $0x6a0] sm:$0xff] }
 0xa27   :  { %6038 = vmatprep.subr.mxu0 %v9376_v62  ;;  %5858 = vmatpush1.msra.mxu1 %v9325_v16  ;;  %v9412_v62 = vld [vmem:[%s18669_s9 + $0x698] sm:$0xff]  ;;  %v9411_v16 = vld [vmem:[%s18669_s9 + $0x690] sm:$0xff] }
 0xa28   :  { %6039 = vmatpush1.msra.mxu0 %v9375_v42  ;;  %12244 = vmatprep.subr.mxu1 %v15471_v29  ;;  %v9410_v42 = vld [vmem:[%s18669_s9 + $0x688] sm:$0xff] }
 0xa29   :  { %6040 = vmatprep.subr.mxu0 %v9374_v32  ;;  %5891 = vmatprep.mubr.f32.mxu1 %v16094_v7  ;;  %v9409_v32 = vld [vmem:[%s18669_s9 + $0x680] sm:$0xff] }
 0xa2a   :  { %6041 = vmatpush1.msra.mxu0 %v9373_v4  ;;  %6088 = vmatprep.mubr.f32.mxu0 %v16094_v7  ;;  %v6302_v4 = vld [vmem:[%s18671_s3 + $0x70] sm:$0xff] }
 0xa2b   :  { %6042 = vmatprep.subr.mxu0 %v9372_v3  ;;  %v9408_v3 = vld [vmem:[%s18669_s9 + $0x678] sm:$0xff] }
 0xa2c   :  { %6043 = vmatpush1.msra.mxu0 %v9371_v60  ;;  %v6303_v60 = vld [vmem:[%s18671_s3 + $0x78] sm:$0xff] }
 0xa2d   :  { %6044 = vmatprep.subr.mxu0 %v9370_v14  ;;  %v9407_v14 = vld [vmem:[%s18669_s9 + $0x670] sm:$0xff] }
 0xa2e   :  { %6045 = vmatpush1.msra.mxu0 %v9369_v58  ;;  %v9406_v58 = vld [vmem:[%s18669_s9 + $0x668] sm:$0xff] }
 0xa2f   :  { %6046 = vmatprep.subr.mxu0 %v9368_v20  ;;  %v9405_v20 = vld [vmem:[%s18669_s9 + $0x660] sm:$0xff] }
 0xa30   :  { %6047 = vmatpush1.msra.mxu0 %v9367_v54  ;;  %v9404_v54 = vld [vmem:[%s18669_s9 + $0x658] sm:$0xff] }
 0xa31   :  { %6048 = vmatprep.subr.mxu0 %v9366_v26  ;;  %v9403_v26 = vld [vmem:[%s18669_s9 + $0x650] sm:$0xff] }
 0xa32   :  { %6049 = vmatpush1.msra.mxu0 %v9365_v50  ;;  %v9402_v50 = vld [vmem:[%s18669_s9 + $0x648] sm:$0xff] }
 0xa33   :  { %6050 = vmatprep.subr.mxu0 %v9364_v59  ;;  %v9401_v59 = vld [vmem:[%s18669_s9 + $0x640] sm:$0xff] }
 0xa34   :  { %6051 = vmatpush1.msra.mxu0 %v9363_v37  ;;  %v9400_v37 = vld [vmem:[%s18669_s9 + $0x638] sm:$0xff] }
 0xa35   :  { %6052 = vmatprep.subr.mxu0 %v9362_v61  ;;  %v9399_v61 = vld [vmem:[%s18669_s9 + $0x630] sm:$0xff] }
 0xa36   :  { %6053 = vmatpush1.msra.mxu0 %v9361_v5  ;;  %v9398_v5 = vld [vmem:[%s18669_s9 + $0x628] sm:$0xff] }
 0xa37   :  { %6054 = vmatprep.subr.mxu0 %v9360_v10  ;;  %v9397_v10 = vld [vmem:[%s18669_s9 + $0x620] sm:$0xff] }
 0xa38   :  { %6055 = vmatpush1.msra.mxu0 %v9359_v13  ;;  %v9396_v13 = vld [vmem:[%s18669_s9 + $0x618] sm:$0xff] }
 0xa39   :  { %12263 = vmatprep.subr.mxu0 %v15471_v29 }
 0xab6   :  { %v5499_v33 = vpop.f32.mrf.mxu1 }
 0xab7   :  { %v5510_v53 = vadd.f32 %v5499_v33, %v15878_v31  ;;  %v6105_v31 = vld [vmem:[%s18671_s3 + $0x60] sm:$0xff]  ;;  %v9394_v33 = vld [vmem:[%s18669_s9 + $0x608] sm:$0xff] }
 0xab8   :  { %v5501_v39 = vpop.f32.mrf.mxu1 }
 0xab9   :  { %v5511_v21 = vadd.f32 %v5501_v39, %v15880_v57  ;;  %v9458_v39 = vld [vmem:[%s18669_s9 + $0x7f8] sm:$0xff] }
 0xaba   :  { %v5505_v43 = vpop.f32.mrf.mxu1 }
 0xabb   :  { %v5512_v27 = vadd.f32 %v5505_v43, %v15882_v40  ;;  %v9456_v43 = vld [vmem:[%s18669_s9 + $0x7e8] sm:$0xff] }
 0xabc   :  { %v5507_v35 = vpop.f32.mrf.mxu1 }
 0xabd   :  { %v5513_v24 = vadd.f32 %v5507_v35, %v5315_v17  ;;  %v9455_v17 = vld [vmem:[%s18669_s9 + $0x7e0] sm:$0xff]  ;;  %v9453_v35 = vld [vmem:[%s18669_s9 + $0x7d0] sm:$0xff] }
 0xac6   :  { %v12224_v19 = vpop.f32.mrf.mxu1 }
 0xac7   :  { %v5696_v22 = vpop.f32.mrf.mxu0 }
 0xac8   :  { %v16139_v36 = vadd.f32 %v5696_v22, %v5510_v53  ;;  %v5785_v48 = vpop.f32.mrf.mxu1  ;;  %v9393_v53 = vld [vmem:[%s18669_s9 + $0x600] sm:$0xff]  ;;  %v9450_v22 = vld [vmem:[%s18669_s9 + $0x7b8] sm:$0xff] }
 0xac9   :  { %v5698_v47 = vpop.f32.mrf.mxu0  ;;  %5892 = vmatmul.mubr.f32.vlgmr.msra.gmra.mxu1 %v5785_v48  ;;  %v9449_v48 = vld [vmem:[%s18669_s9 + $0x7b0] sm:$0xff] }
 0xaca   :  { %v16141_v63 = vadd.f32 %v5698_v47, %v5511_v21  ;;  %12245 = vmatpush3.msra.mxu1 %v15471_v29  ;;  %5897 = vmatprep.mubr.f32.mxu1 %v16094_v7  ;;  %v9457_v21 = vld [vmem:[%s18669_s9 + $0x7f0] sm:$0xff]  ;;  %v9448_v47 = vld [vmem:[%s18669_s9 + $0x7a8] sm:$0xff] }
 0xacb   :  { %12246 = vmatprep.subr.mxu1 %v15479_v15 }
 0xacc   :  { %v5702_v57 = vpop.f32.mrf.mxu0  ;;  %12247 = vmatpush3.msra.mxu1 %v15479_v15  ;;  %v16165_v15 = vld [vmem:[%s18674_s17 + $0x20] sm:$0xff] }
 0xacd   :  { %v16150_v40 = vadd.f32 %v5702_v57, %v5512_v27  ;;  %12248 = vmatprep.subr.mxu1 %v16155_v1  ;;  %5898 = vmatmul.mubr.f32.gmra.mxu1 %v12224_v19  ;;  %v9454_v27 = vld [vmem:[%s18669_s9 + $0x7d8] sm:$0xff]  ;;  %v9451_v19 = vld [vmem:[%s18669_s9 + $0x7c0] sm:$0xff] }
 0xace   :  { %v5704_v29 = vpop.f32.mrf.mxu0  ;;  %12249 = vmatpush3.msra.mxu1 %v16155_v1  ;;  %12260 = vmatprep.mubr.msk.f32.mxu1 %vm2452_vm0, %v6105_v31  ;;  %v9447_v31 = vld [vmem:[%s18669_s9 + $0x7a0] sm:$0xff]  ;;  %v9446_v57 = vld [vmem:[%s18669_s9 + $0x798] sm:$0xff] }
 0xacf   :  { %v16160_v30 = vadd.f32 %v5704_v29, %v5513_v24  ;;  %12250 = vmatprep.subr.mxu1 %v16165_v15  ;;  %v9452_v24 = vld [vmem:[%s18669_s9 + $0x7c8] sm:$0xff]  ;;  %v9445_v29 = vld [vmem:[%s18669_s9 + $0x790] sm:$0xff] }
 0xad0   :  { %12251 = vmatpush3.msra.mxu1 %v16165_v15 }
 0xad1   :  { %12252 = vmatprep.subr.mxu1 %v16172_v28 }
 0xad2   :  { %12253 = vmatpush3.msra.mxu1 %v16172_v28 }
 0xad3   :  { %12254 = vmatprep.subr.mxu1 %v16179_v45 }
 0xad4   :  { %12255 = vmatpush3.msra.mxu1 %v16179_v45 }
 0xad5   :  { %12256 = vmatprep.subr.mxu1 %v16186_v9 }
 0xad6   :  { %12257 = vmatpush3.msra.mxu1 %v16186_v9 }
 0xad7   :  { %12258 = vmatprep.subr.mxu1 %v16199_v25 }
 0xad8   :  { %v12243_v0 = vpop.f32.mrf.mxu0  ;;  %12259 = vmatpush3.msra.mxu1 %v16199_v25 }
 0xad9   :  { %12261 = vmatmul.mubr.msk.f32.vlgmr.msra.gmra.mxu1 %vm2452_vm0, %v6106_v2  ;;  %6221 = vmatprep.subr.mxu1 %v9424_v18  ;;  %v9444_v2 = vld [vmem:[%s18669_s9 + $0x788] sm:$0xff]  ;;  %v9443_v18 = vld [vmem:[%s18669_s9 + $0x780] sm:$0xff] }
 0xada   :  { %v5982_v55 = vpop.f32.mrf.mxu0  ;;  %6222 = vmatpush1.msra.mxu1 %v9423_v12  ;;  %6285 = vmatprep.mubr.f32.mxu1 %v16094_v7  ;;  %v9442_v12 = vld [vmem:[%s18669_s9 + $0x778] sm:$0xff] }
 0xadb   :  { %6089 = vmatmul.mubr.f32.vlgmr.msra.gmra.mxu0 %v5982_v55  ;;  %6223 = vmatprep.subr.mxu1 %v9422_v6  ;;  %v9440_v6 = vld [vmem:[%s18669_s9 + $0x768] sm:$0xff]  ;;  %v9438_v55 = vld [vmem:[%s18669_s9 + $0x758] sm:$0xff] }
 0xadc   :  { %12264 = vmatpush3.msra.mxu0 %v16220_v41  ;;  %6224 = vmatpush1.msra.mxu1 %v9421_v46  ;;  %v9439_v46 = vld [vmem:[%s18669_s9 + $0x760] sm:$0xff] }
 0xadd   :  { %12265 = vmatprep.subr.mxu0 %v16226_v11  ;;  %6094 = vmatprep.mubr.f32.mxu0 %v16094_v7 }
 0xade   :  { %12266 = vmatpush3.msra.mxu0 %v16226_v11  ;;  %6225 = vmatprep.subr.mxu1 %v9420_v56  ;;  %v9437_v56 = vld [vmem:[%s18669_s9 + $0x750] sm:$0xff] }
 0xadf   :  { %12267 = vmatprep.subr.mxu0 %v16155_v1  ;;  %6095 = vmatmul.mubr.f32.gmra.mxu0 %v12243_v0  ;;  %v9441_v0 = vld [vmem:[%s18669_s9 + $0x770] sm:$0xff] }
 0xae0   :  { %6226 = vmatpush1.msra.mxu1 %v9419_v34  ;;  %12268 = vmatpush3.msra.mxu0 %v16155_v1  ;;  %v9436_v34 = vld [vmem:[%s18669_s9 + $0x748] sm:$0xff] }
 0xae1   :  { %6227 = vmatprep.subr.mxu1 %v9418_v38  ;;  %12269 = vmatprep.subr.mxu0 %v16165_v15  ;;  %v9435_v38 = vld [vmem:[%s18669_s9 + $0x740] sm:$0xff] }
 0xae2   :  { %6228 = vmatpush1.msra.mxu1 %v9417_v8  ;;  %12270 = vmatpush3.msra.mxu0 %v16165_v15  ;;  %v9434_v8 = vld [vmem:[%s18669_s9 + $0x738] sm:$0xff] }
 0xae3   :  { %6229 = vmatprep.subr.mxu1 %v9416_v49  ;;  %12271 = vmatprep.subr.mxu0 %v16172_v28  ;;  %v9433_v49 = vld [vmem:[%s18669_s9 + $0x730] sm:$0xff] }
 0xae4   :  { %6230 = vmatpush1.msra.mxu1 %v9415_v52  ;;  %12272 = vmatpush3.msra.mxu0 %v16172_v28  ;;  %v9432_v52 = vld [vmem:[%s18669_s9 + $0x728] sm:$0xff] }
 0xae5   :  { %6231 = vmatprep.subr.mxu1 %v9414_v44  ;;  %12273 = vmatprep.subr.mxu0 %v16179_v45  ;;  %v9431_v44 = vld [vmem:[%s18669_s9 + $0x720] sm:$0xff] }
 0xae6   :  { %6232 = vmatpush1.msra.mxu1 %v9413_v23  ;;  %12274 = vmatpush3.msra.mxu0 %v16179_v45  ;;  %v9430_v23 = vld [vmem:[%s18669_s9 + $0x718] sm:$0xff] }
 0xae7   :  { %6233 = vmatprep.subr.mxu1 %v9412_v62  ;;  %12275 = vmatprep.subr.mxu0 %v16186_v9  ;;  %v9429_v62 = vld [vmem:[%s18669_s9 + $0x710] sm:$0xff] }
 0xae8   :  { %6234 = vmatpush1.msra.mxu1 %v9411_v16  ;;  %12276 = vmatpush3.msra.mxu0 %v16186_v9  ;;  %v9428_v16 = vld [vmem:[%s18669_s9 + $0x708] sm:$0xff] }
 0xae9   :  { %6235 = vmatprep.subr.mxu1 %v9410_v42  ;;  %12277 = vmatprep.subr.mxu0 %v16199_v25  ;;  %v9427_v42 = vld [vmem:[%s18669_s9 + $0x700] sm:$0xff] }
 0xaea   :  { %6236 = vmatpush1.msra.mxu1 %v9409_v32  ;;  %12278 = vmatpush3.msra.mxu0 %v16199_v25 }
 0xaeb   :  { %12279 = vmatprep.mubr.msk.f32.mxu0 %vm2452_vm0, %v6302_v4  ;;  %6237 = vmatprep.subr.mxu1 %v9408_v3 }
 0xaec   :  { %12280 = vmatmul.mubr.msk.f32.vlgmr.msra.gmra.mxu0 %vm2452_vm0, %v6303_v60  ;;  %6238 = vmatpush1.msra.mxu1 %v9407_v14 }
 0xaed   :  { %6239 = vmatprep.subr.mxu1 %v9406_v58  ;;  %6482 = vmatprep.mubr.f32.mxu0 %v16094_v7 }
 0xaee   :  { %6240 = vmatpush1.msra.mxu1 %v9405_v20  ;;  %6418 = vmatprep.subr.mxu0 %v9458_v39  ;;  %v9483_v39 = vld [vmem:[%s18669_s9 + $0x8b0] sm:$0xff] }
 0xaef   :  { %6241 = vmatprep.subr.mxu1 %v9404_v54  ;;  %6419 = vmatpush1.msra.mxu0 %v9457_v21  ;;  %v9482_v21 = vld [vmem:[%s18669_s9 + $0x8a8] sm:$0xff] }
 0xaf0   :  { %6242 = vmatpush1.msra.mxu1 %v9403_v26  ;;  %6420 = vmatprep.subr.mxu0 %v9456_v43  ;;  %v9481_v43 = vld [vmem:[%s18669_s9 + $0x8a0] sm:$0xff] }
 0xaf1   :  { %6243 = vmatprep.subr.mxu1 %v9402_v50  ;;  %6421 = vmatpush1.msra.mxu0 %v9455_v17  ;;  %v9480_v17 = vld [vmem:[%s18669_s9 + $0x898] sm:$0xff] }
 0xaf2   :  { %6244 = vmatpush1.msra.mxu1 %v9401_v59  ;;  %6422 = vmatprep.subr.mxu0 %v9454_v27  ;;  %v9479_v27 = vld [vmem:[%s18669_s9 + $0x890] sm:$0xff] }
 0xaf3   :  { %6245 = vmatprep.subr.mxu1 %v9400_v37  ;;  %6423 = vmatpush1.msra.mxu0 %v9453_v35  ;;  %v9478_v35 = vld [vmem:[%s18669_s9 + $0x888] sm:$0xff] }
 0xaf4   :  { %6246 = vmatpush1.msra.mxu1 %v9399_v61  ;;  %6424 = vmatprep.subr.mxu0 %v9452_v24  ;;  %v9477_v24 = vld [vmem:[%s18669_s9 + $0x880] sm:$0xff] }
 0xaf5   :  { %6247 = vmatprep.subr.mxu1 %v9398_v5  ;;  %6425 = vmatpush1.msra.mxu0 %v9451_v19  ;;  %v9476_v19 = vld [vmem:[%s18669_s9 + $0x878] sm:$0xff] }
 0xaf6   :  { %6248 = vmatpush1.msra.mxu1 %v9397_v10  ;;  %6426 = vmatprep.subr.mxu0 %v9450_v22  ;;  %v9488_v10 = vld [vmem:[%s18669_s9 + $0x8d8] sm:$0xff]  ;;  %v9475_v22 = vld [vmem:[%s18669_s9 + $0x870] sm:$0xff] }
 0xaf7   :  { %6249 = vmatprep.subr.mxu1 %v9396_v13  ;;  %6427 = vmatpush1.msra.mxu0 %v9449_v48  ;;  %v9487_v13 = vld [vmem:[%s18669_s9 + $0x8d0] sm:$0xff]  ;;  %v9474_v48 = vld [vmem:[%s18669_s9 + $0x868] sm:$0xff] }
 0xaf8   :  { %6250 = vmatpush1.msra.mxu1 %v9395_v51  ;;  %6428 = vmatprep.subr.mxu0 %v9448_v47  ;;  %v9486_v51 = vld [vmem:[%s18669_s9 + $0x8c8] sm:$0xff]  ;;  %v9473_v47 = vld [vmem:[%s18669_s9 + $0x860] sm:$0xff] }
 0xaf9   :  { %6251 = vmatprep.subr.mxu1 %v9394_v33  ;;  %6429 = vmatpush1.msra.mxu0 %v9447_v31  ;;  %v9485_v33 = vld [vmem:[%s18669_s9 + $0x8c0] sm:$0xff]  ;;  %v9472_v31 = vld [vmem:[%s18669_s9 + $0x858] sm:$0xff] }
 0xafa   :  { %6252 = vmatpush1.msra.mxu1 %v9393_v53  ;;  %6430 = vmatprep.subr.mxu0 %v9446_v57  ;;  %v9484_v53 = vld [vmem:[%s18669_s9 + $0x8b8] sm:$0xff]  ;;  %v9471_v57 = vld [vmem:[%s18669_s9 + $0x850] sm:$0xff] }
 0xafb   :  { %12282 = vmatprep.subr.mxu1 %v16220_v41  ;;  %6431 = vmatpush1.msra.mxu0 %v9445_v29  ;;  %v9470_v29 = vld [vmem:[%s18669_s9 + $0x848] sm:$0xff] }
 0xafc   :  { %6432 = vmatprep.subr.mxu0 %v9444_v2  ;;  %v9469_v2 = vld [vmem:[%s18669_s9 + $0x840] sm:$0xff] }
 0xafd   :  { %6433 = vmatpush1.msra.mxu0 %v9443_v18  ;;  %v9468_v18 = vld [vmem:[%s18669_s9 + $0x838] sm:$0xff] }
 0xafe   :  { %6434 = vmatprep.subr.mxu0 %v9442_v12  ;;  %v9467_v12 = vld [vmem:[%s18669_s9 + $0x830] sm:$0xff] }
 0xaff   :  { %6435 = vmatpush1.msra.mxu0 %v9441_v0  ;;  %v9466_v0 = vld [vmem:[%s18669_s9 + $0x828] sm:$0xff] }
 0xb00   :  { %6436 = vmatprep.subr.mxu0 %v9440_v6  ;;  %v9465_v6 = vld [vmem:[%s18669_s9 + $0x820] sm:$0xff] }
 0xb01   :  { %6437 = vmatpush1.msra.mxu0 %v9439_v46  ;;  %v9464_v46 = vld [vmem:[%s18669_s9 + $0x818] sm:$0xff] }
 0xb02   :  { %6438 = vmatprep.subr.mxu0 %v9438_v55  ;;  %v9463_v55 = vld [vmem:[%s18669_s9 + $0x810] sm:$0xff] }
 0xb03   :  { %6439 = vmatpush1.msra.mxu0 %v9437_v56  ;;  %v9462_v56 = vld [vmem:[%s18669_s9 + $0x808] sm:$0xff] }
 0xb04   :  { %6440 = vmatprep.subr.mxu0 %v9436_v34  ;;  %v9461_v34 = vld [vmem:[%s18669_s9 + $0x800] sm:$0xff] }
 0xb05   :  { %6441 = vmatpush1.msra.mxu0 %v9435_v38  ;;  %v6823_v38 = vld [vmem:[%s18675_s11 + $0xf8] sm:$0xff] }
 0xb06   :  { %6442 = vmatprep.subr.mxu0 %v9434_v8 }
 0xb07   :  { %6443 = vmatpush1.msra.mxu0 %v9433_v49 }
 0xb08   :  { %6444 = vmatprep.subr.mxu0 %v9432_v52 }
 0xb09   :  { %6445 = vmatpush1.msra.mxu0 %v9431_v44 }
 0xb0a   :  { %6446 = vmatprep.subr.mxu0 %v9430_v23 }
 0xb0b   :  { %6447 = vmatpush1.msra.mxu0 %v9429_v62 }
 0xb0c   :  { %6448 = vmatprep.subr.mxu0 %v9428_v16 }
 0xb0d   :  { %6449 = vmatpush1.msra.mxu0 %v9427_v42 }
 0xb89   :  { %v5893_v32 = vpop.f32.mrf.mxu1 }
 0xb8a   :  { %v5904_v4 = vadd.f32 %v5893_v32, %v16139_v36 }
 0xb8b   :  { %v5895_v3 = vpop.f32.mrf.mxu1 }
 0xb8c   :  { %v5905_v60 = vadd.f32 %v5895_v3, %v16141_v63  ;;  %v6499_v63 = vld [vmem:[%s18671_s3 + $0x80] sm:$0xff] }
 0xb8d   :  { %v5899_v14 = vpop.f32.mrf.mxu1 }
 0xb8e   :  { %v5906_v58 = vadd.f32 %v5899_v14, %v16150_v40  ;;  %v6820_v14 = vld [vmem:[%s18675_s11 + $0xe0] sm:$0xff] }
 0xb8f   :  { %v5901_v20 = vpop.f32.mrf.mxu1 }
 0xb90   :  { %v5907_v54 = vadd.f32 %v5901_v20, %v16160_v30  ;;  %v6818_v20 = vld [vmem:[%s18675_s11 + $0xd0] sm:$0xff] }
 0xb99   :  { %v12262_v26 = vpop.f32.mrf.mxu1 }
 0xb9b   :  { %v6090_v50 = vpop.f32.mrf.mxu0  ;;  %v6179_v59 = vpop.f32.mrf.mxu1 }
 0xb9c   :  { %v16434_v37 = vadd.f32 %v6090_v50, %v5904_v4  ;;  %6286 = vmatmul.mubr.f32.vlgmr.msra.gmra.mxu1 %v6179_v59  ;;  %v6822_v4 = vld [vmem:[%s18675_s11 + $0xf0] sm:$0xff]  ;;  %v6813_v59 = vld [vmem:[%s18675_s11 + $0xa8] sm:$0xff] }
 0xb9d   :  { %v6092_v61 = vpop.f32.mrf.mxu0  ;;  %12283 = vmatpush3.msra.mxu1 %v16220_v41  ;;  %6291 = vmatprep.mubr.f32.mxu1 %v16094_v7  ;;  %v6814_v50 = vld [vmem:[%s18675_s11 + $0xb0] sm:$0xff] }
 0xb9e   :  { %v16438_v36 = vadd.f32 %v6092_v61, %v5905_v60  ;;  %12284 = vmatprep.subr.mxu1 %v16226_v11  ;;  %v6821_v60 = vld [vmem:[%s18675_s11 + $0xe8] sm:$0xff]  ;;  %v6811_v61 = vld [vmem:[%s18675_s11 + $0x98] sm:$0xff] }
 0xb9f   :  { %v6096_v40 = vpop.f32.mrf.mxu0  ;;  %12285 = vmatpush3.msra.mxu1 %v16226_v11  ;;  %v9489_v11 = vld [vmem:[%s18669_s9 + $0x8e0] sm:$0xff] }
 0xba0   :  { %v16445_v30 = vadd.f32 %v6096_v40, %v5906_v58  ;;  %12286 = vmatprep.subr.mxu1 %v16155_v1  ;;  %6292 = vmatmul.mubr.f32.gmra.mxu1 %v12262_v26  ;;  %v6819_v58 = vld [vmem:[%s18675_s11 + $0xd8] sm:$0xff]  ;;  %v6808_v40 = vld [vmem:[%s18675_s11 + $0x80] sm:$0xff] }
 0xba1   :  { %v6098_v5 = vpop.f32.mrf.mxu0  ;;  %12287 = vmatpush3.msra.mxu1 %v16155_v1  ;;  %12298 = vmatprep.mubr.msk.f32.mxu1 %vm2452_vm0, %v6499_v63  ;;  %v6500_v1 = vld [vmem:[%s18671_s3 + $0x88] sm:$0xff]  ;;  %v6815_v26 = vld [vmem:[%s18675_s11 + $0xb8] sm:$0xff] }
 0xba2   :  { %v16450_v41 = vadd.f32 %v6098_v5, %v5907_v54  ;;  %12288 = vmatprep.subr.mxu1 %v16165_v15  ;;  %v6817_v54 = vld [vmem:[%s18675_s11 + $0xc8] sm:$0xff]  ;;  %v6806_v5 = vld [vmem:[%s18675_s11 + $0x70] sm:$0xff] }
 0xba3   :  { %12289 = vmatpush3.msra.mxu1 %v16165_v15  ;;  %v9492_v15 = vld [vmem:[%s18669_s9 + $0x8f8] sm:$0xff]  ;;  %v6809_v63 = vld [vmem:[%s18675_s11 + $0x88] sm:$0xff] }
 0xba4   :  { %12290 = vmatprep.subr.mxu1 %v16172_v28 }
 0xba5   :  { %12291 = vmatpush3.msra.mxu1 %v16172_v28  ;;  %v9491_v28 = vld [vmem:[%s18669_s9 + $0x8f0] sm:$0xff] }
 0xba6   :  { %12292 = vmatprep.subr.mxu1 %v16179_v45 }
 0xba7   :  { %12293 = vmatpush3.msra.mxu1 %v16179_v45  ;;  %v9490_v45 = vld [vmem:[%s18669_s9 + $0x8e8] sm:$0xff] }
 0xba8   :  { %12294 = vmatprep.subr.mxu1 %v16186_v9 }
 0xba9   :  { %12295 = vmatpush3.msra.mxu1 %v16186_v9 }
 0xbaa   :  { %12296 = vmatprep.subr.mxu1 %v16199_v25 }
 0xbab   :  { %12297 = vmatpush3.msra.mxu1 %v16199_v25 }
 0xbac   :  { %v12281_v9 = vpop.f32.mrf.mxu0  ;;  %12299 = vmatmul.mubr.msk.f32.vlgmr.msra.gmra.mxu1 %vm2452_vm0, %v6500_v1  ;;  %6615 = vmatprep.subr.mxu1 %v9492_v15  ;;  %v6804_v1 = vld [vmem:[%s18675_s11 + $0x60] sm:$0xff]  ;;  %v6803_v15 = vld [vmem:[%s18675_s11 + $0x58] sm:$0xff] }
 0xbad   :  { %6616 = vmatpush1.msra.mxu1 %v9491_v28  ;;  %6679 = vmatprep.mubr.f32.mxu1 %v16094_v7  ;;  %v6802_v28 = vld [vmem:[%s18675_s11 + $0x50] sm:$0xff] }
 0xbae   :  { %v6376_v25 = vpop.f32.mrf.mxu0  ;;  %6617 = vmatprep.subr.mxu1 %v9490_v45  ;;  %v6801_v45 = vld [vmem:[%s18675_s11 + $0x48] sm:$0xff] }
 0xbaf   :  { %6483 = vmatmul.mubr.f32.vlgmr.msra.gmra.mxu0 %v6376_v25  ;;  %6618 = vmatpush1.msra.mxu1 %v9489_v11  ;;  %v6799_v11 = vld [vmem:[%s18675_s11 + $0x38] sm:$0xff]  ;;  %v6797_v25 = vld [vmem:[%s18675_s11 + $0x28] sm:$0xff] }
 0xbb0   :  { %6488 = vmatprep.mubr.f32.mxu0 %v16094_v7  ;;  %6619 = vmatprep.subr.mxu1 %v9488_v10  ;;  %v6798_v10 = vld [vmem:[%s18675_s11 + $0x30] sm:$0xff] }
 0xbb1   :  { %6620 = vmatpush1.msra.mxu1 %v9487_v13  ;;  %v6796_v13 = vld [vmem:[%s18675_s11 + $0x20] sm:$0xff] }
 0xbb2   :  { %6621 = vmatprep.subr.mxu1 %v9486_v51  ;;  %v6795_v51 = vld [vmem:[%s18675_s11 + $0x18] sm:$0xff] }
 0xbb3   :  { %6489 = vmatmul.mubr.f32.gmra.mxu0 %v12281_v9  ;;  %6622 = vmatpush1.msra.mxu1 %v9485_v33  ;;  %v6800_v9 = vld [vmem:[%s18675_s11 + $0x40] sm:$0xff]  ;;  %v6794_v33 = vld [vmem:[%s18675_s11 + $0x10] sm:$0xff] }
 0xbb4   :  { %6623 = vmatprep.subr.mxu1 %v9484_v53  ;;  %6785 = vmatprep.mubr.f32.mxu0 %v16094_v7  ;;  %v6793_v53 = vld [vmem:[%s18675_s11 + $0x8] sm:$0xff] }
 0xbb5   :  { %6624 = vmatpush1.msra.mxu1 %v9483_v39  ;;  %v6792_v39 = vld [vmem:[%s18675_s11] sm:$0xff] }
 0xbb6   :  { %6625 = vmatprep.subr.mxu1 %v9482_v21  ;;  %v6855_v21 = vld [vmem:[%s18675_s11 + $0x1f8] sm:$0xff] }
 0xbb7   :  { %6626 = vmatpush1.msra.mxu1 %v9481_v43  ;;  %v6854_v43 = vld [vmem:[%s18675_s11 + $0x1f0] sm:$0xff] }
 0xbb8   :  { %6627 = vmatprep.subr.mxu1 %v9480_v17  ;;  %v6853_v17 = vld [vmem:[%s18675_s11 + $0x1e8] sm:$0xff] }
 0xbb9   :  { %6628 = vmatpush1.msra.mxu1 %v9479_v27  ;;  %v6852_v27 = vld [vmem:[%s18675_s11 + $0x1e0] sm:$0xff] }
 0xbba   :  { %6629 = vmatprep.subr.mxu1 %v9478_v35  ;;  %v6851_v35 = vld [vmem:[%s18675_s11 + $0x1d8] sm:$0xff] }
 0xbbb   :  { %6630 = vmatpush1.msra.mxu1 %v9477_v24  ;;  %v6850_v24 = vld [vmem:[%s18675_s11 + $0x1d0] sm:$0xff] }
 0xbbc   :  { %6631 = vmatprep.subr.mxu1 %v9476_v19  ;;  %v6849_v19 = vld [vmem:[%s18675_s11 + $0x1c8] sm:$0xff] }
 0xbbd   :  { %6632 = vmatpush1.msra.mxu1 %v9475_v22  ;;  %v6848_v22 = vld [vmem:[%s18675_s11 + $0x1c0] sm:$0xff] }
 0xbbe   :  { %6633 = vmatprep.subr.mxu1 %v9474_v48  ;;  %v6847_v48 = vld [vmem:[%s18675_s11 + $0x1b8] sm:$0xff] }
 0xbbf   :  { %6634 = vmatpush1.msra.mxu1 %v9473_v47  ;;  %v6846_v47 = vld [vmem:[%s18675_s11 + $0x1b0] sm:$0xff] }
 0xbc0   :  { %6635 = vmatprep.subr.mxu1 %v9472_v31  ;;  %v6845_v31 = vld [vmem:[%s18675_s11 + $0x1a8] sm:$0xff] }
 0xbc1   :  { %6636 = vmatpush1.msra.mxu1 %v9471_v57  ;;  %v6844_v57 = vld [vmem:[%s18675_s11 + $0x1a0] sm:$0xff] }
 0xbc2   :  { %6637 = vmatprep.subr.mxu1 %v9470_v29  ;;  %v6843_v29 = vld [vmem:[%s18675_s11 + $0x198] sm:$0xff] }
 0xbc3   :  { %6638 = vmatpush1.msra.mxu1 %v9469_v2  ;;  %v6842_v2 = vld [vmem:[%s18675_s11 + $0x190] sm:$0xff] }
 0xbc4   :  { %6639 = vmatprep.subr.mxu1 %v9468_v18  ;;  %v6841_v18 = vld [vmem:[%s18675_s11 + $0x188] sm:$0xff] }
 0xbc5   :  { %6640 = vmatpush1.msra.mxu1 %v9467_v12  ;;  %v6840_v12 = vld [vmem:[%s18675_s11 + $0x180] sm:$0xff] }
 0xbc6   :  { %6641 = vmatprep.subr.mxu1 %v9466_v0  ;;  %v6839_v0 = vld [vmem:[%s18675_s11 + $0x178] sm:$0xff] }
 0xbc7   :  { %6642 = vmatpush1.msra.mxu1 %v9465_v6  ;;  %v6838_v6 = vld [vmem:[%s18675_s11 + $0x170] sm:$0xff] }
 0xbc8   :  { %6643 = vmatprep.subr.mxu1 %v9464_v46  ;;  %v6837_v46 = vld [vmem:[%s18675_s11 + $0x168] sm:$0xff] }
 0xbc9   :  { %6644 = vmatpush1.msra.mxu1 %v9463_v55  ;;  %v6836_v55 = vld [vmem:[%s18675_s11 + $0x160] sm:$0xff] }
 0xbca   :  { %6645 = vmatprep.subr.mxu1 %v9462_v56  ;;  %v6835_v56 = vld [vmem:[%s18675_s11 + $0x158] sm:$0xff] }
 0xbcb   :  { %6646 = vmatpush1.msra.mxu1 %v9461_v34  ;;  %v6834_v34 = vld [vmem:[%s18675_s11 + $0x150] sm:$0xff] }
 0xbcc   :  { %7067 = vmatprep.subr.mxu1 %v6823_v38  ;;  %v6833_v38 = vld [vmem:[%s18675_s11 + $0x148] sm:$0xff] }
 0xc5c   :  { %v6287_v8 = vpop.f32.mrf.mxu1 }
 0xc5d   :  { %v16569_v49 = vadd.f32 %v6287_v8, %v16434_v37  ;;  %v6812_v37 = vld [vmem:[%s18675_s11 + $0xa0] sm:$0xff] }
 0xc5e   :  { %v6289_v52 = vpop.f32.mrf.mxu1  ;;  %v6832_v8 = vld [vmem:[%s18675_s11 + $0x140] sm:$0xff] }
 0xc5f   :  { %v16572_v44 = vadd.f32 %v6289_v52, %v16438_v36  ;;  %v6810_v36 = vld [vmem:[%s18675_s11 + $0x90] sm:$0xff]  ;;  %v6831_v52 = vld [vmem:[%s18675_s11 + $0x138] sm:$0xff] }
 0xc60   :  { %v6293_v23 = vpop.f32.mrf.mxu1 }
 0xc61   :  { %v16575_v62 = vadd.f32 %v6293_v23, %v16445_v30  ;;  %v6807_v30 = vld [vmem:[%s18675_s11 + $0x78] sm:$0xff]  ;;  %v6830_v23 = vld [vmem:[%s18675_s11 + $0x130] sm:$0xff] }
 0xc62   :  { %v6295_v16 = vpop.f32.mrf.mxu1 }
 0xc63   :  { %v16578_v42 = vadd.f32 %v6295_v16, %v16450_v41  ;;  %v6805_v41 = vld [vmem:[%s18675_s11 + $0x68] sm:$0xff] }
 0xc64   :  { %v6829_v16 = vld [vmem:[%s18675_s11 + $0x128] sm:$0xff] }
 0xc6c   :  { %v12300_v32 = vpop.f32.mrf.mxu1 }
 0xc6e   :  { %v6573_v3 = vpop.f32.mrf.mxu1 }
 0xc6f   :  { %6680 = vmatmul.mubr.f32.vlgmr.msra.gmra.mxu1 %v6573_v3  ;;  %v6826_v3 = vld [vmem:[%s18675_s11 + $0x110] sm:$0xff] }
 0xc70   :  { %6685 = vmatprep.mubr.f32.mxu1 %v16094_v7  ;;  %7068 = vmatpush1.msra.mxu1 %v6822_v4  ;;  %v6816_v7 = vld [vmem:[%s18675_s11 + $0xc0] sm:$0xff]  ;;  %v6827_v4 = vld [vmem:[%s18675_s11 + $0x118] sm:$0xff] }
 0xc71   :  { %7069 = vmatprep.subr.mxu1 %v6821_v60  ;;  %v6825_v60 = vld [vmem:[%s18675_s11 + $0x108] sm:$0xff] }
 0xc72   :  { %7070 = vmatpush1.msra.mxu1 %v6820_v14  ;;  %v6824_v14 = vld [vmem:[%s18675_s11 + $0x100] sm:$0xff] }
 0xc73   :  { %6686 = vmatmul.mubr.f32.gmra.mxu1 %v12300_v32  ;;  %7071 = vmatprep.subr.mxu1 %v6819_v58  ;;  %v6828_v32 = vld [vmem:[%s18675_s11 + $0x120] sm:$0xff]  ;;  %v6484_v58 = vpop.f32.mrf.mxu0 }
 0xc74   :  { %7072 = vmatpush1.msra.mxu1 %v6818_v20 }
 0xc75   :  { %7073 = vmatprep.subr.mxu1 %v6817_v54  ;;  %v6486_v20 = vpop.f32.mrf.mxu0  ;;  %v6698_v54 = vlaneseq }
 0xc76   :  { %7074 = vmatpush1.msra.mxu1 %v6816_v7 }
 0xc77   :  { %7075 = vmatprep.subr.mxu1 %v6815_v26  ;;  %v6490_v7 = vpop.f32.mrf.mxu0  ;;  %v16771_v26 = vshrl.u32 %v6698_v54, 7  ;;  %vm8838_vm2 = vcmp.lt.s32.totalorder %v6698_v54, 256 }
 0xc78   :  { %7076 = vmatpush1.msra.mxu1 %v6814_v50 }
 0xc79   :  { %7077 = vmatprep.subr.mxu1 %v6813_v59  ;;  %v16774_v59 = vsub.s32 1, %v16771_v26 }
 0xc7a   :  { %7078 = vmatpush1.msra.mxu1 %v6812_v37  ;;  %v6492_v37 = vpop.f32.mrf.mxu0 }
 0xc7b   :  { %7079 = vmatprep.subr.mxu1 %v6811_v61  ;;  %v16777_v61 = vsub.s32 0, %v16771_v26 }
 0xc7c   :  { %7080 = vmatpush1.msra.mxu1 %v6810_v36 }
 0xc7d   :  { %7081 = vmatprep.subr.mxu1 %v6809_v63  ;;  %v6496_v63 = vadd.f32 %v6486_v20, %v16572_v44  ;;  %v9495_v20 = vld [vmem:[%s18675_s11 + $0x200] sm:$0xff] }
 0xc7e   :  { %7082 = vmatpush1.msra.mxu1 %v6808_v40  ;;  %v6497_v40 = vadd.f32 %v6490_v7, %v16575_v62  ;;  %v9558_v7 = vld [vmem:[%s18675_s11 + $0x3f8] sm:$0xff] }
 0xc7f   :  { %7083 = vmatprep.subr.mxu1 %v6807_v30  ;;  %v6696_v30 = vld [vmem:[%s18676_s10] sm:$0x3] }
 0xc80   :  { %7084 = vmatpush1.msra.mxu1 %v6806_v5  ;;  %v6495_v5 = vadd.f32 %v6484_v58, %v16569_v49  ;;  %v9496_v58 = vld [vmem:[%s18675_s11 + $0x208] sm:$0xff] }
 0xc81   :  { %7085 = vmatprep.subr.mxu1 %v6805_v41 }
 0xc82   :  { %7086 = vmatpush1.msra.mxu1 %v6804_v1  ;;  %v6498_v1 = vadd.f32 %v6492_v37, %v16578_v42  ;;  %v9556_v37 = vld [vmem:[%s18675_s11 + $0x3e8] sm:$0xff] }
 0xc83   :  { %7087 = vmatprep.subr.mxu1 %v6803_v15 }
 0xc84   :  { %7088 = vmatpush1.msra.mxu1 %v6802_v28  ;;  %v6705_v28 = vrot.slane %v6696_v30, %v16774_v59 }
 0xc85   :  { %7089 = vmatprep.subr.mxu1 %v6801_v45 }
 0xc86   :  { %7090 = vmatpush1.msra.mxu1 %v6800_v9 }
 0xc87   :  { %7091 = vmatprep.subr.mxu1 %v6799_v11  ;;  %v6701_v11 = vrot.slane %v6696_v30, %v16777_v61  ;;  %v9552_v30 = vld [vmem:[%s18675_s11 + $0x3c8] sm:$0xff] }
 0xc88   :  { %7092 = vmatpush1.msra.mxu1 %v6798_v10 }
 0xc89   :  { %7093 = vmatprep.subr.mxu1 %v6797_v25 }
 0xc8a   :  { %7094 = vmatpush1.msra.mxu1 %v6796_v13 }
 0xc8b   :  { %7095 = vmatprep.subr.mxu1 %v6795_v51 }
 0xc8c   :  { %7096 = vmatpush1.msra.mxu1 %v6794_v33 }
 0xc8d   :  { %7097 = vmatprep.subr.mxu1 %v6793_v53 }
 0xc8e   :  { %7098 = vmatpush1.msra.mxu1 %v6792_v39  ;;  %v6716_v39 = vld [vmem:[%s18677_s4] sm:$0xff] }
 0xc8f   :  { %7099 = vmatprep.subr.mxu1 %v6855_v21  ;;  %v16810_v21 = vld [vmem:[%s18672_s18 + $0x18] sm:$0xff] }
 0xc90   :  { %7100 = vmatpush2.msra.mxu1 %v6854_v43  ;;  %v6856_v43 = vld [vmem:[%s18677_s4 + $0x8] sm:$0xff] }
 0xc91   :  { %7101 = vmatprep.subr.mxu1 %v6853_v17  ;;  %v9526_v17 = vld [vmem:[%s18675_s11 + $0x2f8] sm:$0xff] }
 0xc92   :  { %7102 = vmatpush2.msra.mxu1 %v6852_v27  ;;  %v9525_v27 = vld [vmem:[%s18675_s11 + $0x2f0] sm:$0xff] }
 0xc93   :  { %7103 = vmatprep.subr.mxu1 %v6851_v35  ;;  %v9524_v35 = vld [vmem:[%s18675_s11 + $0x2e8] sm:$0xff] }
 0xc94   :  { %7104 = vmatpush2.msra.mxu1 %v6850_v24  ;;  %v9523_v24 = vld [vmem:[%s18675_s11 + $0x2e0] sm:$0xff] }
 0xc95   :  { %7105 = vmatprep.subr.mxu1 %v6849_v19  ;;  %v9522_v19 = vld [vmem:[%s18675_s11 + $0x2d8] sm:$0xff] }
 0xc96   :  { %7106 = vmatpush2.msra.mxu1 %v6848_v22  ;;  %v9521_v22 = vld [vmem:[%s18675_s11 + $0x2d0] sm:$0xff] }
 0xc97   :  { %7107 = vmatprep.subr.mxu1 %v6847_v48  ;;  %v9520_v48 = vld [vmem:[%s18675_s11 + $0x2c8] sm:$0xff] }
 0xc98   :  { %7108 = vmatpush2.msra.mxu1 %v6846_v47  ;;  %v9519_v47 = vld [vmem:[%s18675_s11 + $0x2c0] sm:$0xff] }
 0xc99   :  { %7109 = vmatprep.subr.mxu1 %v6845_v31  ;;  %v9518_v31 = vld [vmem:[%s18675_s11 + $0x2b8] sm:$0xff] }
 0xc9a   :  { %7110 = vmatpush2.msra.mxu1 %v6844_v57  ;;  %v9517_v57 = vld [vmem:[%s18675_s11 + $0x2b0] sm:$0xff] }
 0xc9b   :  { %7111 = vmatprep.subr.mxu1 %v6843_v29  ;;  %v9516_v29 = vld [vmem:[%s18675_s11 + $0x2a8] sm:$0xff] }
 0xc9c   :  { %7112 = vmatpush2.msra.mxu1 %v6842_v2  ;;  %v9515_v2 = vld [vmem:[%s18675_s11 + $0x2a0] sm:$0xff] }
 0xc9d   :  { %7113 = vmatprep.subr.mxu1 %v6841_v18  ;;  %v9514_v18 = vld [vmem:[%s18675_s11 + $0x298] sm:$0xff] }
 0xc9e   :  { %7114 = vmatpush2.msra.mxu1 %v6840_v12  ;;  %v9513_v12 = vld [vmem:[%s18675_s11 + $0x290] sm:$0xff] }
 0xc9f   :  { %7115 = vmatprep.subr.mxu1 %v6839_v0  ;;  %v9512_v0 = vld [vmem:[%s18675_s11 + $0x288] sm:$0xff] }
 0xca0   :  { %7116 = vmatpush2.msra.mxu1 %v6838_v6  ;;  %v9511_v6 = vld [vmem:[%s18675_s11 + $0x280] sm:$0xff] }
 0xca1   :  { %7117 = vmatprep.subr.mxu1 %v6837_v46  ;;  %v9510_v46 = vld [vmem:[%s18675_s11 + $0x278] sm:$0xff] }
 0xca2   :  { %7118 = vmatpush2.msra.mxu1 %v6836_v55  ;;  %v9509_v55 = vld [vmem:[%s18675_s11 + $0x270] sm:$0xff] }
 0xca3   :  { %7119 = vmatprep.subr.mxu1 %v6835_v56  ;;  %v9508_v56 = vld [vmem:[%s18675_s11 + $0x268] sm:$0xff] }
 0xca4   :  { %7120 = vmatpush2.msra.mxu1 %v6834_v34  ;;  %v9507_v34 = vld [vmem:[%s18675_s11 + $0x260] sm:$0xff] }
 0xca5   :  { %7121 = vmatprep.subr.mxu1 %v6833_v38  ;;  %v9506_v38 = vld [vmem:[%s18675_s11 + $0x258] sm:$0xff] }
 0xca6   :  { %7122 = vmatpush2.msra.mxu1 %v6832_v8  ;;  %v9505_v8 = vld [vmem:[%s18675_s11 + $0x250] sm:$0xff] }
 0xca7   :  { %7123 = vmatprep.subr.mxu1 %v6831_v52  ;;  %v9504_v52 = vld [vmem:[%s18675_s11 + $0x248] sm:$0xff] }
 0xca8   :  { %7124 = vmatpush2.msra.mxu1 %v6830_v23  ;;  %v9503_v23 = vld [vmem:[%s18675_s11 + $0x240] sm:$0xff] }
 0xca9   :  { %7125 = vmatprep.subr.mxu1 %v6829_v16  ;;  %v9502_v16 = vld [vmem:[%s18675_s11 + $0x238] sm:$0xff] }
 0xcaa   :  { %7126 = vmatpush2.msra.mxu1 %v6828_v32  ;;  %v9501_v32 = vld [vmem:[%s18675_s11 + $0x230] sm:$0xff] }
 0xcab   :  { %7127 = vmatprep.subr.mxu1 %v6827_v4  ;;  %v9500_v4 = vld [vmem:[%s18675_s11 + $0x228] sm:$0xff] }
 0xcac   :  { %7128 = vmatpush2.msra.mxu1 %v6826_v3  ;;  %v9499_v3 = vld [vmem:[%s18675_s11 + $0x220] sm:$0xff] }
 0xcad   :  { %7129 = vmatprep.subr.mxu1 %v6825_v60  ;;  %v9498_v60 = vld [vmem:[%s18675_s11 + $0x218] sm:$0xff] }
 0xcae   :  { %7130 = vmatpush2.msra.mxu1 %v6824_v14  ;;  %v9497_v14 = vld [vmem:[%s18675_s11 + $0x210] sm:$0xff] }
 0xd2f   :  { %v6681_v50 = vpop.f32.mrf.mxu1 }
 0xd30   :  { %v6692_v9 = vadd.f32 %v6681_v50, %v6495_v5  ;;  %v9557_v50 = vld [vmem:[%s18675_s11 + $0x3f0] sm:$0xff]  ;;  %v9551_v5 = vld [vmem:[%s18675_s11 + $0x3c0] sm:$0xff] }
 0xd31   :  { %v6683_v36 = vpop.f32.mrf.mxu1 }
 0xd32   :  { %v6693_v15 = vadd.f32 %v6683_v36, %v6496_v63  ;;  %v6708_v51 = vadd.f32 %v6701_v11, %v6692_v9  ;;  %v9555_v36 = vld [vmem:[%s18675_s11 + $0x3e0] sm:$0xff]  ;;  %v9554_v63 = vld [vmem:[%s18675_s11 + $0x3d8] sm:$0xff]  ;;  %v9545_v9 = vld [vmem:[%s18675_s11 + $0x390] sm:$0xff] }
 0xd33   :  { %v6687_v41 = vpop.f32.mrf.mxu1 }
 0xd34   :  { %v6694_v45 = vadd.f32 %v6687_v41, %v6497_v40  ;;  %v6709_v62 = vadd.f32 %v6705_v28, %v6693_v15  ;;  %v16796_v42 = vmax.f32 %v6708_v51, 0.0  ;;  %v9553_v40 = vld [vmem:[%s18675_s11 + $0x3d0] sm:$0xff]  ;;  %v9550_v41 = vld [vmem:[%s18675_s11 + $0x3b8] sm:$0xff]  ;;  %v9548_v15 = vld [vmem:[%s18675_s11 + $0x3a8] sm:$0xff] }
 0xd35   :  { %v6689_v10 = vpop.f32.mrf.mxu1  ;;  %v9538_v51 = vld [vmem:[%s18675_s11 + $0x358] sm:$0xff] }
 0xd36   :  { %v6695_v44 = vadd.f32 %v6689_v10, %v6498_v1  ;;  %v6710_v25 = vadd.f32 %v6701_v11, %v6694_v45  ;;  %v16792_v49 = vmax.f32 %v6709_v62, 0.0  ;;  %v9549_v1 = vld [vmem:[%s18675_s11 + $0x3b0] sm:$0xff]  ;;  %v9546_v45 = vld [vmem:[%s18675_s11 + $0x398] sm:$0xff]  ;;  %v9544_v11 = vld [vmem:[%s18675_s11 + $0x388] sm:$0xff] }
 0xd37   :  { %v9543_v10 = vld [vmem:[%s18675_s11 + $0x380] sm:$0xff]  ;;  %v9540_v62 = vld [vmem:[%s18675_s11 + $0x368] sm:$0xff] }
 0xd38   :  { %v6711_v13 = vadd.f32 %v6705_v28, %v6695_v44  ;;  %v16790_v53 = vmax.f32 %v6710_v25, 0.0  ;;  %v9547_v28 = vld [vmem:[%s18675_s11 + $0x3a0] sm:$0xff]  ;;  %v9542_v44 = vld [vmem:[%s18675_s11 + $0x378] sm:$0xff]  ;;  %v9541_v25 = vld [vmem:[%s18675_s11 + $0x370] sm:$0xff] }
 0xd3a   :  { %v16788_v33 = vmax.f32 %v6711_v13, 0.0  ;;  %v9539_v13 = vld [vmem:[%s18675_s11 + $0x360] sm:$0xff] }
 0xd3c   :  { %6749 = vmatprep.subr.mxu0 %v16788_v33  ;;  %7383 = vmatprep.subr.mxu1 %v16788_v33 }
 0xd3d   :  { %6750 = vmatpush1.msra.mxu0 %v16790_v53 }
 0xd3e   :  { %6751 = vmatprep.subr.mxu0 %v16792_v49 }
 0xd3f   :  { %6752 = vmatpush1.msra.mxu0 %v16796_v42 }
 0xd40   :  { %9493 = vmatmul.mubr.msk.f32.vlgmr.msra.gmra.mxu0 %vm6717_vm1, %v6716_v39  ;;  %6888 = vmatprep.subr.mxu0 %v16788_v33  ;;  %v9537_v39 = vld [vmem:[%s18675_s11 + $0x350] sm:$0xff] }
 0xd41   :  { %6889 = vmatpush1.msra.mxu0 %v16790_v53  ;;  %6924 = vmatprep.mubr.f32.mxu0 %v16810_v21 }
 0xd42   :  { %6890 = vmatprep.subr.mxu0 %v16792_v49 }
 0xd43   :  { %6891 = vmatpush1.msra.mxu0 %v16796_v42 }
 0xd44   :  { %9494 = vmatmul.mubr.msk.f32.vlgmr.msra.gmra.mxu0 %vm6717_vm1, %v6856_v43  ;;  %6996 = vmatprep.subr.mxu0 %v9526_v17  ;;  %v9536_v43 = vld [vmem:[%s18675_s11 + $0x348] sm:$0xff]  ;;  %v9535_v17 = vld [vmem:[%s18675_s11 + $0x340] sm:$0xff] }
 0xd45   :  { %6997 = vmatpush1.msra.mxu0 %v9525_v27  ;;  %v9534_v27 = vld [vmem:[%s18675_s11 + $0x338] sm:$0xff] }
 0xd46   :  { %6998 = vmatprep.subr.mxu0 %v9524_v35  ;;  %v9533_v35 = vld [vmem:[%s18675_s11 + $0x330] sm:$0xff] }
 0xd47   :  { %6999 = vmatpush1.msra.mxu0 %v9523_v24  ;;  %v9532_v24 = vld [vmem:[%s18675_s11 + $0x328] sm:$0xff] }
 0xd48   :  { %7000 = vmatprep.subr.mxu0 %v9522_v19  ;;  %v9531_v19 = vld [vmem:[%s18675_s11 + $0x320] sm:$0xff] }
 0xd49   :  { %7001 = vmatpush1.msra.mxu0 %v9521_v22  ;;  %v9530_v22 = vld [vmem:[%s18675_s11 + $0x318] sm:$0xff] }
 0xd4a   :  { %7002 = vmatprep.subr.mxu0 %v9520_v48  ;;  %v9529_v48 = vld [vmem:[%s18675_s11 + $0x310] sm:$0xff] }
 0xd4b   :  { %7003 = vmatpush1.msra.mxu0 %v9519_v47  ;;  %v9528_v47 = vld [vmem:[%s18675_s11 + $0x308] sm:$0xff] }
 0xd4c   :  { %7004 = vmatprep.subr.mxu0 %v9518_v31  ;;  %v9527_v31 = vld [vmem:[%s18675_s11 + $0x300] sm:$0xff] }
 0xd4d   :  { %7005 = vmatpush1.msra.mxu0 %v9517_v57 }
 0xd4e   :  { %7006 = vmatprep.subr.mxu0 %v9516_v29 }
 0xd4f   :  { %7007 = vmatpush1.msra.mxu0 %v9515_v2 }
 0xd50   :  { %7008 = vmatprep.subr.mxu0 %v9514_v18  ;;  %v9656_v18 = vld [vmem:[%s18675_s11 + $0x6f8] sm:$0xff] }
 0xd51   :  { %7009 = vmatpush1.msra.mxu0 %v9513_v12 }
 0xd52   :  { %7010 = vmatprep.subr.mxu0 %v9512_v0  ;;  %v7351_v0 = vld [vmem:[%s18677_s4 + $0x18] sm:$0xff] }
 0xd53   :  { %7011 = vmatpush1.msra.mxu0 %v9511_v6  ;;  %v9655_v6 = vld [vmem:[%s18675_s11 + $0x6f0] sm:$0xff] }
 0xd54   :  { %7012 = vmatprep.subr.mxu0 %v9510_v46  ;;  %v9654_v46 = vld [vmem:[%s18675_s11 + $0x6e8] sm:$0xff] }
 0xd55   :  { %7013 = vmatpush1.msra.mxu0 %v9509_v55  ;;  %v9653_v55 = vld [vmem:[%s18675_s11 + $0x6e0] sm:$0xff] }
 0xd56   :  { %7014 = vmatprep.subr.mxu0 %v9508_v56  ;;  %v9591_v56 = vld [vmem:[%s18675_s11 + $0x4f8] sm:$0xff] }
 0xd57   :  { %7015 = vmatpush1.msra.mxu0 %v9507_v34  ;;  %v9652_v34 = vld [vmem:[%s18675_s11 + $0x6d8] sm:$0xff] }
 0xd58   :  { %7016 = vmatprep.subr.mxu0 %v9506_v38  ;;  %v7138_v38 = vld [vmem:[%s18677_s4 + $0x10] sm:$0xff] }
 0xd59   :  { %7017 = vmatpush1.msra.mxu0 %v9505_v8  ;;  %v9651_v8 = vld [vmem:[%s18675_s11 + $0x6d0] sm:$0xff] }
 0xd5a   :  { %7018 = vmatprep.subr.mxu0 %v9504_v52  ;;  %v9590_v52 = vld [vmem:[%s18675_s11 + $0x4f0] sm:$0xff] }
 0xd5b   :  { %7019 = vmatpush1.msra.mxu0 %v9503_v23  ;;  %v9650_v23 = vld [vmem:[%s18675_s11 + $0x6c8] sm:$0xff] }
 0xd5c   :  { %7020 = vmatprep.subr.mxu0 %v9502_v16  ;;  %v9589_v16 = vld [vmem:[%s18675_s11 + $0x4e8] sm:$0xff] }
 0xd5d   :  { %7021 = vmatpush1.msra.mxu0 %v9501_v32  ;;  %v9649_v32 = vld [vmem:[%s18675_s11 + $0x6c0] sm:$0xff] }
 0xd5e   :  { %7022 = vmatprep.subr.mxu0 %v9500_v4  ;;  %v9588_v4 = vld [vmem:[%s18675_s11 + $0x4e0] sm:$0xff] }
 0xd5f   :  { %7023 = vmatpush1.msra.mxu0 %v9499_v3  ;;  %v9648_v3 = vld [vmem:[%s18675_s11 + $0x6b8] sm:$0xff] }
 0xd60   :  { %7024 = vmatprep.subr.mxu0 %v9498_v60  ;;  %v9587_v60 = vld [vmem:[%s18675_s11 + $0x4d8] sm:$0xff] }
 0xd61   :  { %7025 = vmatpush1.msra.mxu0 %v9497_v14  ;;  %v9647_v14 = vld [vmem:[%s18675_s11 + $0x6b0] sm:$0xff] }
 0xd62   :  { %7026 = vmatprep.subr.mxu0 %v9496_v58  ;;  %v9586_v58 = vld [vmem:[%s18675_s11 + $0x4d0] sm:$0xff] }
 0xd63   :  { %7027 = vmatpush1.msra.mxu0 %v9495_v20  ;;  %v9646_v20 = vld [vmem:[%s18675_s11 + $0x6a8] sm:$0xff] }
 0xd64   :  { %7028 = vmatprep.subr.mxu0 %v9558_v7  ;;  %v9585_v7 = vld [vmem:[%s18675_s11 + $0x4c8] sm:$0xff] }
 0xd65   :  { %7029 = vmatpush2.msra.mxu0 %v9557_v50  ;;  %v9645_v50 = vld [vmem:[%s18675_s11 + $0x6a0] sm:$0xff] }
 0xd66   :  { %7030 = vmatprep.subr.mxu0 %v9556_v37  ;;  %v9584_v37 = vld [vmem:[%s18675_s11 + $0x4c0] sm:$0xff] }
 0xd67   :  { %7031 = vmatpush2.msra.mxu0 %v9555_v36  ;;  %v9644_v36 = vld [vmem:[%s18675_s11 + $0x698] sm:$0xff] }
 0xd68   :  { %7032 = vmatprep.subr.mxu0 %v9554_v63  ;;  %v9583_v63 = vld [vmem:[%s18675_s11 + $0x4b8] sm:$0xff] }
 0xd69   :  { %7033 = vmatpush2.msra.mxu0 %v9553_v40  ;;  %v9643_v40 = vld [vmem:[%s18675_s11 + $0x690] sm:$0xff] }
 0xd6a   :  { %7034 = vmatprep.subr.mxu0 %v9552_v30  ;;  %v9582_v30 = vld [vmem:[%s18675_s11 + $0x4b0] sm:$0xff] }
 0xd6b   :  { %7035 = vmatpush2.msra.mxu0 %v9551_v5  ;;  %v9642_v5 = vld [vmem:[%s18675_s11 + $0x688] sm:$0xff] }
 0xd6c   :  { %7036 = vmatprep.subr.mxu0 %v9550_v41  ;;  %v9581_v41 = vld [vmem:[%s18675_s11 + $0x4a8] sm:$0xff] }
 0xd6d   :  { %7037 = vmatpush2.msra.mxu0 %v9549_v1  ;;  %v9641_v1 = vld [vmem:[%s18675_s11 + $0x680] sm:$0xff] }
 0xd6e   :  { %7038 = vmatprep.subr.mxu0 %v9548_v15  ;;  %v9580_v15 = vld [vmem:[%s18675_s11 + $0x4a0] sm:$0xff] }
 0xd6f   :  { %7039 = vmatpush2.msra.mxu0 %v9547_v28  ;;  %v9640_v28 = vld [vmem:[%s18675_s11 + $0x678] sm:$0xff] }
 0xd70   :  { %7040 = vmatprep.subr.mxu0 %v9546_v45  ;;  %v9579_v45 = vld [vmem:[%s18675_s11 + $0x498] sm:$0xff] }
 0xd71   :  { %7041 = vmatpush2.msra.mxu0 %v9545_v9  ;;  %v9639_v9 = vld [vmem:[%s18675_s11 + $0x670] sm:$0xff] }
 0xd72   :  { %7042 = vmatprep.subr.mxu0 %v9544_v11  ;;  %v9578_v11 = vld [vmem:[%s18675_s11 + $0x490] sm:$0xff] }
 0xd73   :  { %7043 = vmatpush2.msra.mxu0 %v9543_v10  ;;  %v9638_v10 = vld [vmem:[%s18675_s11 + $0x668] sm:$0xff] }
 0xd74   :  { %7044 = vmatprep.subr.mxu0 %v9542_v44  ;;  %v9577_v44 = vld [vmem:[%s18675_s11 + $0x488] sm:$0xff] }
 0xd75   :  { %7045 = vmatpush2.msra.mxu0 %v9541_v25  ;;  %v9637_v25 = vld [vmem:[%s18675_s11 + $0x660] sm:$0xff] }
 0xd76   :  { %7046 = vmatprep.subr.mxu0 %v9540_v62  ;;  %v9576_v62 = vld [vmem:[%s18675_s11 + $0x480] sm:$0xff] }
 0xd77   :  { %7047 = vmatpush2.msra.mxu0 %v9539_v13  ;;  %v9636_v13 = vld [vmem:[%s18675_s11 + $0x658] sm:$0xff] }
 0xd78   :  { %7048 = vmatprep.subr.mxu0 %v9538_v51  ;;  %v9575_v51 = vld [vmem:[%s18675_s11 + $0x478] sm:$0xff] }
 0xd79   :  { %7049 = vmatpush2.msra.mxu0 %v9537_v39  ;;  %v9635_v39 = vld [vmem:[%s18675_s11 + $0x650] sm:$0xff] }
 0xd7a   :  { %7050 = vmatprep.subr.mxu0 %v9536_v43  ;;  %v9574_v43 = vld [vmem:[%s18675_s11 + $0x470] sm:$0xff] }
 0xd7b   :  { %7051 = vmatpush2.msra.mxu0 %v9535_v17  ;;  %v9634_v17 = vld [vmem:[%s18675_s11 + $0x648] sm:$0xff] }
 0xd7c   :  { %7052 = vmatprep.subr.mxu0 %v9534_v27  ;;  %v9573_v27 = vld [vmem:[%s18675_s11 + $0x468] sm:$0xff] }
 0xd7d   :  { %7053 = vmatpush2.msra.mxu0 %v9533_v35  ;;  %v9633_v35 = vld [vmem:[%s18675_s11 + $0x640] sm:$0xff] }
 0xd7e   :  { %7054 = vmatprep.subr.mxu0 %v9532_v24  ;;  %v9572_v24 = vld [vmem:[%s18675_s11 + $0x460] sm:$0xff] }
 0xd7f   :  { %7055 = vmatpush2.msra.mxu0 %v9531_v19  ;;  %v9632_v19 = vld [vmem:[%s18675_s11 + $0x638] sm:$0xff] }
 0xd80   :  { %7056 = vmatprep.subr.mxu0 %v9530_v22  ;;  %v9571_v22 = vld [vmem:[%s18675_s11 + $0x458] sm:$0xff] }
 0xd81   :  { %7057 = vmatpush2.msra.mxu0 %v9529_v48  ;;  %v9631_v48 = vld [vmem:[%s18675_s11 + $0x630] sm:$0xff] }
 0xd82   :  { %7058 = vmatprep.subr.mxu0 %v9528_v47  ;;  %v9570_v47 = vld [vmem:[%s18675_s11 + $0x450] sm:$0xff] }
 0xd83   :  { %7059 = vmatpush2.msra.mxu0 %v9527_v31  ;;  %v9630_v31 = vld [vmem:[%s18675_s11 + $0x628] sm:$0xff] }
 0xd84   :  { %7170 = vmatprep.subr.mxu0 %v16788_v33 }
 0xe00   :  { %v6787_v57 = vpop.f32.mrf.mxu0 }
 0xe02   :  { %v6789_v29 = vpop.f32.mrf.mxu0 }
 0xe03   :  { %7131 = vmatprep.mubr.f32.mxu1 %v6789_v29  ;;  %v9629_v29 = vld [vmem:[%s18675_s11 + $0x620] sm:$0xff] }
 0xe04   :  { %v6926_v2 = vpop.f32.mrf.mxu0  ;;  %7132 = vmatmul.mubr.f32.vlgmr.msra.gmra.mxu1 %v6787_v57  ;;  %v9569_v57 = vld [vmem:[%s18675_s11 + $0x448] sm:$0xff] }
 0xe05   :  { %7384 = vmatpush1.msra.mxu1 %v16790_v53  ;;  %7419 = vmatprep.mubr.f32.mxu1 %v16810_v21 }
 0xe06   :  { %7385 = vmatprep.subr.mxu1 %v16792_v49  ;;  %v6928_v12 = vpop.f32.mrf.mxu0 }
 0xe07   :  { %7386 = vmatpush1.msra.mxu1 %v16796_v42  ;;  %7060 = vmatprep.mubr.f32.mxu0 %v6928_v12  ;;  %v9567_v12 = vld [vmem:[%s18675_s11 + $0x438] sm:$0xff] }
 0xe08   :  { %7491 = vmatprep.subr.mxu1 %v9656_v18  ;;  %7061 = vmatmul.mubr.f32.vlgmr.msra.gmra.mxu0 %v6926_v2  ;;  %v9568_v2 = vld [vmem:[%s18675_s11 + $0x440] sm:$0xff]  ;;  %v9628_v18 = vld [vmem:[%s18675_s11 + $0x618] sm:$0xff] }
 0xe09   :  { %7171 = vmatpush1.msra.mxu0 %v16790_v53  ;;  %9624 = vmatmul.mubr.msk.f32.vlgmr.msra.gmra.mxu1 %vm6717_vm1, %v7351_v0  ;;  %v9627_v0 = vld [vmem:[%s18675_s11 + $0x610] sm:$0xff] }
 0xe0a   :  { %7492 = vmatpush1.msra.mxu1 %v9655_v6  ;;  %7172 = vmatprep.subr.mxu0 %v16792_v49  ;;  %v9566_v6 = vld [vmem:[%s18675_s11 + $0x430] sm:$0xff] }
 0xe0b   :  { %7493 = vmatprep.subr.mxu1 %v9654_v46  ;;  %7173 = vmatpush1.msra.mxu0 %v16796_v42  ;;  %v9626_v46 = vld [vmem:[%s18675_s11 + $0x608] sm:$0xff] }
 0xe0c   :  { %7494 = vmatpush1.msra.mxu1 %v9653_v55  ;;  %7206 = vmatprep.mubr.f32.mxu0 %v16810_v21  ;;  %v9565_v55 = vld [vmem:[%s18675_s11 + $0x428] sm:$0xff] }
 0xe0d   :  { %7278 = vmatprep.subr.mxu0 %v9591_v56  ;;  %7495 = vmatprep.subr.mxu1 %v9652_v34  ;;  %v9625_v56 = vld [vmem:[%s18675_s11 + $0x600] sm:$0xff] }
 0xe0e   :  { %9559 = vmatmul.mubr.msk.f32.vlgmr.msra.gmra.mxu0 %vm6717_vm1, %v7138_v38  ;;  %7496 = vmatpush1.msra.mxu1 %v9651_v8  ;;  %v9564_v34 = vld [vmem:[%s18675_s11 + $0x420] sm:$0xff]  ;;  %v9688_v38 = vld [vmem:[%s18675_s11 + $0x7f8] sm:$0xff] }
 0xe0f   :  { %7279 = vmatpush1.msra.mxu0 %v9590_v52  ;;  %7497 = vmatprep.subr.mxu1 %v9650_v23  ;;  %v9563_v8 = vld [vmem:[%s18675_s11 + $0x418] sm:$0xff]  ;;  %v9687_v52 = vld [vmem:[%s18675_s11 + $0x7f0] sm:$0xff] }
 0xe10   :  { %7280 = vmatprep.subr.mxu0 %v9589_v16  ;;  %7498 = vmatpush1.msra.mxu1 %v9649_v32  ;;  %v9562_v23 = vld [vmem:[%s18675_s11 + $0x410] sm:$0xff]  ;;  %v9686_v16 = vld [vmem:[%s18675_s11 + $0x7e8] sm:$0xff] }
 0xe11   :  { %7281 = vmatpush1.msra.mxu0 %v9588_v4  ;;  %7499 = vmatprep.subr.mxu1 %v9648_v3  ;;  %v9561_v32 = vld [vmem:[%s18675_s11 + $0x408] sm:$0xff]  ;;  %v9685_v4 = vld [vmem:[%s18675_s11 + $0x7e0] sm:$0xff] }
 0xe12   :  { %7282 = vmatprep.subr.mxu0 %v9587_v60  ;;  %7500 = vmatpush1.msra.mxu1 %v9647_v14  ;;  %v9560_v3 = vld [vmem:[%s18675_s11 + $0x400] sm:$0xff]  ;;  %v9684_v60 = vld [vmem:[%s18675_s11 + $0x7d8] sm:$0xff] }
 0xe13   :  { %7283 = vmatpush1.msra.mxu0 %v9586_v58  ;;  %7501 = vmatprep.subr.mxu1 %v9646_v20  ;;  %v9623_v14 = vld [vmem:[%s18675_s11 + $0x5f8] sm:$0xff]  ;;  %v9683_v58 = vld [vmem:[%s18675_s11 + $0x7d0] sm:$0xff] }
 0xe14   :  { %7284 = vmatprep.subr.mxu0 %v9585_v7  ;;  %7502 = vmatpush1.msra.mxu1 %v9645_v50  ;;  %v9622_v20 = vld [vmem:[%s18675_s11 + $0x5f0] sm:$0xff]  ;;  %v9682_v7 = vld [vmem:[%s18675_s11 + $0x7c8] sm:$0xff] }
 0xe15   :  { %7285 = vmatpush1.msra.mxu0 %v9584_v37  ;;  %7503 = vmatprep.subr.mxu1 %v9644_v36  ;;  %v9621_v50 = vld [vmem:[%s18675_s11 + $0x5e8] sm:$0xff]  ;;  %v9681_v37 = vld [vmem:[%s18675_s11 + $0x7c0] sm:$0xff] }
 0xe16   :  { %7286 = vmatprep.subr.mxu0 %v9583_v63  ;;  %7504 = vmatpush1.msra.mxu1 %v9643_v40  ;;  %v9620_v36 = vld [vmem:[%s18675_s11 + $0x5e0] sm:$0xff]  ;;  %v9680_v63 = vld [vmem:[%s18675_s11 + $0x7b8] sm:$0xff] }
 0xe17   :  { %7287 = vmatpush1.msra.mxu0 %v9582_v30  ;;  %7505 = vmatprep.subr.mxu1 %v9642_v5  ;;  %v9619_v40 = vld [vmem:[%s18675_s11 + $0x5d8] sm:$0xff]  ;;  %v9679_v30 = vld [vmem:[%s18675_s11 + $0x7b0] sm:$0xff] }
 0xe18   :  { %7288 = vmatprep.subr.mxu0 %v9581_v41  ;;  %7506 = vmatpush1.msra.mxu1 %v9641_v1  ;;  %v9618_v5 = vld [vmem:[%s18675_s11 + $0x5d0] sm:$0xff]  ;;  %v9678_v41 = vld [vmem:[%s18675_s11 + $0x7a8] sm:$0xff] }
 0xe19   :  { %7289 = vmatpush1.msra.mxu0 %v9580_v15  ;;  %7507 = vmatprep.subr.mxu1 %v9640_v28  ;;  %v9617_v1 = vld [vmem:[%s18675_s11 + $0x5c8] sm:$0xff]  ;;  %v9677_v15 = vld [vmem:[%s18675_s11 + $0x7a0] sm:$0xff] }
 0xe1a   :  { %7290 = vmatprep.subr.mxu0 %v9579_v45  ;;  %7508 = vmatpush1.msra.mxu1 %v9639_v9  ;;  %v9616_v28 = vld [vmem:[%s18675_s11 + $0x5c0] sm:$0xff]  ;;  %v9676_v45 = vld [vmem:[%s18675_s11 + $0x798] sm:$0xff] }
 0xe1b   :  { %7291 = vmatpush1.msra.mxu0 %v9578_v11  ;;  %7509 = vmatprep.subr.mxu1 %v9638_v10  ;;  %v9615_v9 = vld [vmem:[%s18675_s11 + $0x5b8] sm:$0xff]  ;;  %v9675_v11 = vld [vmem:[%s18675_s11 + $0x790] sm:$0xff] }
 0xe1c   :  { %7292 = vmatprep.subr.mxu0 %v9577_v44  ;;  %7510 = vmatpush1.msra.mxu1 %v9637_v25  ;;  %v9614_v10 = vld [vmem:[%s18675_s11 + $0x5b0] sm:$0xff]  ;;  %v9674_v44 = vld [vmem:[%s18675_s11 + $0x788] sm:$0xff] }
 0xe1d   :  { %7293 = vmatpush1.msra.mxu0 %v9576_v62  ;;  %7511 = vmatprep.subr.mxu1 %v9636_v13  ;;  %v9613_v25 = vld [vmem:[%s18675_s11 + $0x5a8] sm:$0xff]  ;;  %v9673_v62 = vld [vmem:[%s18675_s11 + $0x780] sm:$0xff] }
 0xe1e   :  { %7294 = vmatprep.subr.mxu0 %v9575_v51  ;;  %7512 = vmatpush1.msra.mxu1 %v9635_v39  ;;  %v9612_v13 = vld [vmem:[%s18675_s11 + $0x5a0] sm:$0xff]  ;;  %v9672_v51 = vld [vmem:[%s18675_s11 + $0x778] sm:$0xff] }
 0xe1f   :  { %7295 = vmatpush1.msra.mxu0 %v9574_v43  ;;  %7513 = vmatprep.subr.mxu1 %v9634_v17  ;;  %v9611_v39 = vld [vmem:[%s18675_s11 + $0x598] sm:$0xff]  ;;  %v9671_v43 = vld [vmem:[%s18675_s11 + $0x770] sm:$0xff] }
 0xe20   :  { %7296 = vmatprep.subr.mxu0 %v9573_v27  ;;  %7514 = vmatpush1.msra.mxu1 %v9633_v35  ;;  %v9610_v17 = vld [vmem:[%s18675_s11 + $0x590] sm:$0xff]  ;;  %v9670_v27 = vld [vmem:[%s18675_s11 + $0x768] sm:$0xff] }
 0xe21   :  { %7297 = vmatpush1.msra.mxu0 %v9572_v24  ;;  %7515 = vmatprep.subr.mxu1 %v9632_v19  ;;  %v9609_v35 = vld [vmem:[%s18675_s11 + $0x588] sm:$0xff]  ;;  %v9669_v24 = vld [vmem:[%s18675_s11 + $0x760] sm:$0xff] }
 0xe22   :  { %7298 = vmatprep.subr.mxu0 %v9571_v22  ;;  %7516 = vmatpush1.msra.mxu1 %v9631_v48  ;;  %v9608_v19 = vld [vmem:[%s18675_s11 + $0x580] sm:$0xff]  ;;  %v9668_v22 = vld [vmem:[%s18675_s11 + $0x758] sm:$0xff] }
 0xe23   :  { %7299 = vmatpush1.msra.mxu0 %v9570_v47  ;;  %7517 = vmatprep.subr.mxu1 %v9630_v31  ;;  %v9607_v48 = vld [vmem:[%s18675_s11 + $0x578] sm:$0xff]  ;;  %v9667_v47 = vld [vmem:[%s18675_s11 + $0x750] sm:$0xff] }
 0xe24   :  { %7300 = vmatprep.subr.mxu0 %v9569_v57  ;;  %7518 = vmatpush1.msra.mxu1 %v9629_v29  ;;  %v9606_v31 = vld [vmem:[%s18675_s11 + $0x570] sm:$0xff]  ;;  %v9666_v57 = vld [vmem:[%s18675_s11 + $0x748] sm:$0xff] }
 0xe25   :  { %7301 = vmatpush1.msra.mxu0 %v9568_v2  ;;  %7519 = vmatprep.subr.mxu1 %v9628_v18  ;;  %v9605_v29 = vld [vmem:[%s18675_s11 + $0x568] sm:$0xff]  ;;  %v9665_v2 = vld [vmem:[%s18675_s11 + $0x740] sm:$0xff] }
 0xe26   :  { %7302 = vmatprep.subr.mxu0 %v9567_v12  ;;  %7520 = vmatpush1.msra.mxu1 %v9627_v0  ;;  %v9604_v18 = vld [vmem:[%s18675_s11 + $0x560] sm:$0xff]  ;;  %v9664_v12 = vld [vmem:[%s18675_s11 + $0x738] sm:$0xff] }
 0xe27   :  { %7303 = vmatpush1.msra.mxu0 %v9566_v6  ;;  %7521 = vmatprep.subr.mxu1 %v9626_v46  ;;  %v9603_v0 = vld [vmem:[%s18675_s11 + $0x558] sm:$0xff]  ;;  %v9663_v6 = vld [vmem:[%s18675_s11 + $0x730] sm:$0xff] }
 0xe28   :  { %7304 = vmatprep.subr.mxu0 %v9565_v55  ;;  %7522 = vmatpush1.msra.mxu1 %v9625_v56  ;;  %v9602_v46 = vld [vmem:[%s18675_s11 + $0x550] sm:$0xff]  ;;  %v9662_v55 = vld [vmem:[%s18675_s11 + $0x728] sm:$0xff] }
 0xe29   :  { %7305 = vmatpush1.msra.mxu0 %v9564_v34  ;;  %7523 = vmatprep.subr.mxu1 %v9688_v38  ;;  %v9601_v56 = vld [vmem:[%s18675_s11 + $0x548] sm:$0xff]  ;;  %v9661_v34 = vld [vmem:[%s18675_s11 + $0x720] sm:$0xff] }
 0xe2a   :  { %7306 = vmatprep.subr.mxu0 %v9563_v8  ;;  %7524 = vmatpush2.msra.mxu1 %v9687_v52  ;;  %v9600_v38 = vld [vmem:[%s18675_s11 + $0x540] sm:$0xff]  ;;  %v9660_v8 = vld [vmem:[%s18675_s11 + $0x718] sm:$0xff] }
 0xe2b   :  { %7307 = vmatpush1.msra.mxu0 %v9562_v23  ;;  %7525 = vmatprep.subr.mxu1 %v9686_v16  ;;  %v9599_v52 = vld [vmem:[%s18675_s11 + $0x538] sm:$0xff]  ;;  %v9659_v23 = vld [vmem:[%s18675_s11 + $0x710] sm:$0xff] }
 0xe2c   :  { %7308 = vmatprep.subr.mxu0 %v9561_v32  ;;  %7526 = vmatpush2.msra.mxu1 %v9685_v4  ;;  %v9598_v16 = vld [vmem:[%s18675_s11 + $0x530] sm:$0xff]  ;;  %v9658_v32 = vld [vmem:[%s18675_s11 + $0x708] sm:$0xff] }
 0xe2d   :  { %7309 = vmatpush1.msra.mxu0 %v9560_v3  ;;  %7527 = vmatprep.subr.mxu1 %v9684_v60  ;;  %v9597_v4 = vld [vmem:[%s18675_s11 + $0x528] sm:$0xff]  ;;  %v9657_v3 = vld [vmem:[%s18675_s11 + $0x700] sm:$0xff] }
 0xe2e   :  { %7310 = vmatprep.subr.mxu0 %v9623_v14  ;;  %7528 = vmatpush2.msra.mxu1 %v9683_v58  ;;  %v9596_v60 = vld [vmem:[%s18675_s11 + $0x520] sm:$0xff]  ;;  %v9595_v14 = vld [vmem:[%s18675_s11 + $0x518] sm:$0xff]  ;;  %v9594_v58 = vld [vmem:[%s18675_s11 + $0x510] sm:$0xff] }
 0xe2f   :  { %7311 = vmatpush2.msra.mxu0 %v9622_v20  ;;  %7529 = vmatprep.subr.mxu1 %v9682_v7  ;;  %v9593_v20 = vld [vmem:[%s18675_s11 + $0x508] sm:$0xff]  ;;  %v9592_v7 = vld [vmem:[%s18675_s11 + $0x500] sm:$0xff] }
 0xe30   :  { %7312 = vmatprep.subr.mxu0 %v9621_v50  ;;  %7530 = vmatpush2.msra.mxu1 %v9681_v37 }
 0xe31   :  { %7313 = vmatpush2.msra.mxu0 %v9620_v36  ;;  %7531 = vmatprep.subr.mxu1 %v9680_v63 }
 0xe32   :  { %7314 = vmatprep.subr.mxu0 %v9619_v40  ;;  %7532 = vmatpush2.msra.mxu1 %v9679_v30 }
 0xe33   :  { %7315 = vmatpush2.msra.mxu0 %v9618_v5  ;;  %7533 = vmatprep.subr.mxu1 %v9678_v41 }
 0xe34   :  { %7316 = vmatprep.subr.mxu0 %v9617_v1  ;;  %7534 = vmatpush2.msra.mxu1 %v9677_v15  ;;  %v9786_v15 = vld [vmem:[%s18675_s11 + $0xaf8] sm:$0xff] }
 0xe35   :  { %7317 = vmatpush2.msra.mxu0 %v9616_v28  ;;  %7535 = vmatprep.subr.mxu1 %v9676_v45  ;;  %v7777_v28 = vld [vmem:[%s18677_s4 + $0x28] sm:$0xff] }
 0xe36   :  { %7318 = vmatprep.subr.mxu0 %v9615_v9  ;;  %7536 = vmatpush2.msra.mxu1 %v9675_v11  ;;  %v9785_v9 = vld [vmem:[%s18675_s11 + $0xaf0] sm:$0xff]  ;;  %v9784_v11 = vld [vmem:[%s18675_s11 + $0xae8] sm:$0xff] }
 0xe37   :  { %7319 = vmatpush2.msra.mxu0 %v9614_v10  ;;  %7537 = vmatprep.subr.mxu1 %v9674_v44  ;;  %v9783_v10 = vld [vmem:[%s18675_s11 + $0xae0] sm:$0xff]  ;;  %v9721_v44 = vld [vmem:[%s18675_s11 + $0x8f8] sm:$0xff] }
 0xe38   :  { %7320 = vmatprep.subr.mxu0 %v9613_v25  ;;  %7538 = vmatpush2.msra.mxu1 %v9673_v62  ;;  %v9782_v25 = vld [vmem:[%s18675_s11 + $0xad8] sm:$0xff]  ;;  %v7564_v62 = vld [vmem:[%s18677_s4 + $0x20] sm:$0xff] }
 0xe39   :  { %7321 = vmatpush2.msra.mxu0 %v9612_v13  ;;  %7539 = vmatprep.subr.mxu1 %v9672_v51  ;;  %v9720_v13 = vld [vmem:[%s18675_s11 + $0x8f0] sm:$0xff] }
 0xe3a   :  { %7322 = vmatprep.subr.mxu0 %v9611_v39  ;;  %7540 = vmatpush2.msra.mxu1 %v9671_v43  ;;  %v9781_v51 = vld [vmem:[%s18675_s11 + $0xad0] sm:$0xff]  ;;  %v9719_v39 = vld [vmem:[%s18675_s11 + $0x8e8] sm:$0xff] }
 0xe3b   :  { %7323 = vmatpush2.msra.mxu0 %v9610_v17  ;;  %7541 = vmatprep.subr.mxu1 %v9670_v27  ;;  %v9780_v43 = vld [vmem:[%s18675_s11 + $0xac8] sm:$0xff]  ;;  %v9718_v17 = vld [vmem:[%s18675_s11 + $0x8e0] sm:$0xff]  ;;  %v9717_v27 = vld [vmem:[%s18675_s11 + $0x8d8] sm:$0xff] }
 0xe3c   :  { %7324 = vmatprep.subr.mxu0 %v9609_v35  ;;  %7542 = vmatpush2.msra.mxu1 %v9669_v24  ;;  %v9778_v35 = vld [vmem:[%s18675_s11 + $0xab8] sm:$0xff]  ;;  %v9716_v24 = vld [vmem:[%s18675_s11 + $0x8d0] sm:$0xff] }
 0xe3d   :  { %7325 = vmatpush2.msra.mxu0 %v9608_v19  ;;  %7543 = vmatprep.subr.mxu1 %v9668_v22  ;;  %v9777_v19 = vld [vmem:[%s18675_s11 + $0xab0] sm:$0xff]  ;;  %v9715_v22 = vld [vmem:[%s18675_s11 + $0x8c8] sm:$0xff] }
 0xe3e   :  { %7326 = vmatprep.subr.mxu0 %v9607_v48  ;;  %7544 = vmatpush2.msra.mxu1 %v9667_v47  ;;  %v9776_v48 = vld [vmem:[%s18675_s11 + $0xaa8] sm:$0xff]  ;;  %v9714_v47 = vld [vmem:[%s18675_s11 + $0x8c0] sm:$0xff] }
 0xe3f   :  { %7327 = vmatpush2.msra.mxu0 %v9606_v31  ;;  %7545 = vmatprep.subr.mxu1 %v9666_v57  ;;  %v9775_v31 = vld [vmem:[%s18675_s11 + $0xaa0] sm:$0xff]  ;;  %v9713_v57 = vld [vmem:[%s18675_s11 + $0x8b8] sm:$0xff] }
 0xe40   :  { %7328 = vmatprep.subr.mxu0 %v9605_v29  ;;  %7546 = vmatpush2.msra.mxu1 %v9665_v2  ;;  %v9774_v29 = vld [vmem:[%s18675_s11 + $0xa98] sm:$0xff]  ;;  %v9712_v2 = vld [vmem:[%s18675_s11 + $0x8b0] sm:$0xff] }
 0xe41   :  { %7329 = vmatpush2.msra.mxu0 %v9604_v18  ;;  %7547 = vmatprep.subr.mxu1 %v9664_v12  ;;  %v9773_v18 = vld [vmem:[%s18675_s11 + $0xa90] sm:$0xff]  ;;  %v9711_v12 = vld [vmem:[%s18675_s11 + $0x8a8] sm:$0xff] }
 0xe42   :  { %7330 = vmatprep.subr.mxu0 %v9603_v0  ;;  %7548 = vmatpush2.msra.mxu1 %v9663_v6  ;;  %v9772_v0 = vld [vmem:[%s18675_s11 + $0xa88] sm:$0xff]  ;;  %v9710_v6 = vld [vmem:[%s18675_s11 + $0x8a0] sm:$0xff] }
 0xe43   :  { %7331 = vmatpush2.msra.mxu0 %v9602_v46  ;;  %7549 = vmatprep.subr.mxu1 %v9662_v55  ;;  %v9771_v46 = vld [vmem:[%s18675_s11 + $0xa80] sm:$0xff]  ;;  %v9709_v55 = vld [vmem:[%s18675_s11 + $0x898] sm:$0xff] }
 0xe44   :  { %7332 = vmatprep.subr.mxu0 %v9601_v56  ;;  %7550 = vmatpush2.msra.mxu1 %v9661_v34  ;;  %v9770_v56 = vld [vmem:[%s18675_s11 + $0xa78] sm:$0xff]  ;;  %v9708_v34 = vld [vmem:[%s18675_s11 + $0x890] sm:$0xff] }
 0xe45   :  { %7333 = vmatpush2.msra.mxu0 %v9600_v38  ;;  %7551 = vmatprep.subr.mxu1 %v9660_v8  ;;  %v9769_v38 = vld [vmem:[%s18675_s11 + $0xa70] sm:$0xff]  ;;  %v9707_v8 = vld [vmem:[%s18675_s11 + $0x888] sm:$0xff] }
 0xe46   :  { %7334 = vmatprep.subr.mxu0 %v9599_v52  ;;  %7552 = vmatpush2.msra.mxu1 %v9659_v23  ;;  %v9768_v52 = vld [vmem:[%s18675_s11 + $0xa68] sm:$0xff]  ;;  %v9706_v23 = vld [vmem:[%s18675_s11 + $0x880] sm:$0xff] }
 0xe47   :  { %7335 = vmatpush2.msra.mxu0 %v9598_v16  ;;  %7553 = vmatprep.subr.mxu1 %v9658_v32  ;;  %v9767_v16 = vld [vmem:[%s18675_s11 + $0xa60] sm:$0xff]  ;;  %v9705_v32 = vld [vmem:[%s18675_s11 + $0x878] sm:$0xff] }
 0xe48   :  { %7336 = vmatprep.subr.mxu0 %v9597_v4  ;;  %7554 = vmatpush2.msra.mxu1 %v9657_v3  ;;  %v9766_v4 = vld [vmem:[%s18675_s11 + $0xa58] sm:$0xff]  ;;  %v9704_v3 = vld [vmem:[%s18675_s11 + $0x870] sm:$0xff] }
 0xe49   :  { %7337 = vmatpush2.msra.mxu0 %v9596_v60  ;;  %7809 = vmatprep.subr.mxu1 %v16788_v33  ;;  %v9765_v60 = vld [vmem:[%s18675_s11 + $0xa50] sm:$0xff] }
 0xe4a   :  { %7338 = vmatprep.subr.mxu0 %v9595_v14  ;;  %v9703_v14 = vld [vmem:[%s18675_s11 + $0x868] sm:$0xff] }
 0xe4b   :  { %7339 = vmatpush2.msra.mxu0 %v9594_v58  ;;  %v9764_v58 = vld [vmem:[%s18675_s11 + $0xa48] sm:$0xff] }
 0xe4c   :  { %7340 = vmatprep.subr.mxu0 %v9593_v20  ;;  %v9702_v20 = vld [vmem:[%s18675_s11 + $0x860] sm:$0xff] }
 0xe4d   :  { %7341 = vmatpush2.msra.mxu0 %v9592_v7  ;;  %v9763_v7 = vld [vmem:[%s18675_s11 + $0xa40] sm:$0xff] }
 0xe4e   :  { %7596 = vmatprep.subr.mxu0 %v16788_v33 }
 0xec4   :  { %v7133_v50 = vpop.f32.mrf.mxu1 }
 0xec6   :  { %v7135_v37 = vpop.f32.mrf.mxu1 }
 0xec8   :  { %v7062_v36 = vpop.f32.mrf.mxu0 }
 0xec9   :  { %v17414_v63 = vadd.f32 %v7133_v50, %v7062_v36  ;;  %v7421_v40 = vpop.f32.mrf.mxu1  ;;  %v9701_v50 = vld [vmem:[%s18675_s11 + $0x858] sm:$0xff]  ;;  %v9700_v36 = vld [vmem:[%s18675_s11 + $0x850] sm:$0xff] }
 0xeca   :  { %v7064_v30 = vpop.f32.mrf.mxu0 }
 0xecb   :  { %v17416_v5 = vadd.f32 %v7135_v37, %v7064_v30  ;;  %v7423_v41 = vpop.f32.mrf.mxu1  ;;  %v9762_v37 = vld [vmem:[%s18675_s11 + $0xa38] sm:$0xff]  ;;  %v9699_v30 = vld [vmem:[%s18675_s11 + $0x848] sm:$0xff] }
 0xecc   :  { %7555 = vmatprep.mubr.f32.mxu1 %v7423_v41  ;;  %v9760_v41 = vld [vmem:[%s18675_s11 + $0xa28] sm:$0xff] }
 0xecd   :  { %7556 = vmatmul.mubr.f32.vlgmr.msra.gmra.mxu1 %v7421_v40  ;;  %v9761_v40 = vld [vmem:[%s18675_s11 + $0xa30] sm:$0xff] }
 0xece   :  { %v7208_v1 = vpop.f32.mrf.mxu0  ;;  %7810 = vmatpush1.msra.mxu1 %v16790_v53  ;;  %7845 = vmatprep.mubr.f32.mxu1 %v16810_v21 }
 0xecf   :  { %7811 = vmatprep.subr.mxu1 %v16792_v49 }
 0xed0   :  { %v7210_v45 = vpop.f32.mrf.mxu0  ;;  %7812 = vmatpush1.msra.mxu1 %v16796_v42 }
 0xed1   :  { %7342 = vmatprep.mubr.f32.mxu0 %v7210_v45  ;;  %7917 = vmatprep.subr.mxu1 %v9786_v15  ;;  %v9759_v15 = vld [vmem:[%s18675_s11 + $0xa20] sm:$0xff]  ;;  %v9758_v45 = vld [vmem:[%s18675_s11 + $0xa18] sm:$0xff] }
 0xed2   :  { %7343 = vmatmul.mubr.f32.vlgmr.msra.gmra.mxu0 %v7208_v1  ;;  %9754 = vmatmul.mubr.msk.f32.vlgmr.msra.gmra.mxu1 %vm6717_vm1, %v7777_v28  ;;  %v9698_v1 = vld [vmem:[%s18675_s11 + $0x840] sm:$0xff]  ;;  %v9697_v28 = vld [vmem:[%s18675_s11 + $0x838] sm:$0xff] }
 0xed3   :  { %7597 = vmatpush1.msra.mxu0 %v16790_v53  ;;  %7918 = vmatpush1.msra.mxu1 %v9785_v9  ;;  %v9696_v9 = vld [vmem:[%s18675_s11 + $0x830] sm:$0xff] }
 0xed4   :  { %7598 = vmatprep.subr.mxu0 %v16792_v49  ;;  %7919 = vmatprep.subr.mxu1 %v9784_v11  ;;  %v9757_v11 = vld [vmem:[%s18675_s11 + $0xa10] sm:$0xff] }
 0xed5   :  { %7599 = vmatpush1.msra.mxu0 %v16796_v42  ;;  %7920 = vmatpush1.msra.mxu1 %v9783_v10  ;;  %v9695_v10 = vld [vmem:[%s18675_s11 + $0x828] sm:$0xff] }
 0xed6   :  { %7632 = vmatprep.mubr.f32.mxu0 %v16810_v21  ;;  %7704 = vmatprep.subr.mxu0 %v9721_v44  ;;  %v9779_v21 = vld [vmem:[%s18675_s11 + $0xac0] sm:$0xff]  ;;  %v9756_v44 = vld [vmem:[%s18675_s11 + $0xa08] sm:$0xff] }
 0xed7   :  { %7921 = vmatprep.subr.mxu1 %v9782_v25  ;;  %9689 = vmatmul.mubr.msk.f32.vlgmr.msra.gmra.mxu0 %vm6717_vm1, %v7564_v62  ;;  %v9694_v25 = vld [vmem:[%s18675_s11 + $0x820] sm:$0xff] }
 0xed8   :  { %7705 = vmatpush1.msra.mxu0 %v9720_v13  ;;  %7922 = vmatpush1.msra.mxu1 %v9781_v51  ;;  %v9755_v62 = vld [vmem:[%s18675_s11 + $0xa00] sm:$0xff]  ;;  %v9693_v13 = vld [vmem:[%s18675_s11 + $0x818] sm:$0xff] }
 0xed9   :  { %7706 = vmatprep.subr.mxu0 %v9719_v39  ;;  %7923 = vmatprep.subr.mxu1 %v9780_v43  ;;  %v9818_v51 = vld [vmem:[%s18675_s11 + $0xbf8] sm:$0xff]  ;;  %v9692_v39 = vld [vmem:[%s18675_s11 + $0x810] sm:$0xff] }
 0xeda   :  { %7707 = vmatpush1.msra.mxu0 %v9718_v17  ;;  %7924 = vmatpush1.msra.mxu1 %v9779_v21  ;;  %v9817_v43 = vld [vmem:[%s18675_s11 + $0xbf0] sm:$0xff]  ;;  %v9691_v17 = vld [vmem:[%s18675_s11 + $0x808] sm:$0xff] }
 0xedb   :  { %7708 = vmatprep.subr.mxu0 %v9717_v27  ;;  %7925 = vmatprep.subr.mxu1 %v9778_v35  ;;  %v9816_v21 = vld [vmem:[%s18675_s11 + $0xbe8] sm:$0xff]  ;;  %v9690_v27 = vld [vmem:[%s18675_s11 + $0x800] sm:$0xff] }
 0xedc   :  { %7709 = vmatpush1.msra.mxu0 %v9716_v24  ;;  %7926 = vmatpush1.msra.mxu1 %v9777_v19  ;;  %v9815_v35 = vld [vmem:[%s18675_s11 + $0xbe0] sm:$0xff]  ;;  %v9753_v24 = vld [vmem:[%s18675_s11 + $0x9f8] sm:$0xff] }
 0xedd   :  { %7710 = vmatprep.subr.mxu0 %v9715_v22  ;;  %7927 = vmatprep.subr.mxu1 %v9776_v48  ;;  %v9814_v19 = vld [vmem:[%s18675_s11 + $0xbd8] sm:$0xff]  ;;  %v9752_v22 = vld [vmem:[%s18675_s11 + $0x9f0] sm:$0xff] }
 0xede   :  { %7711 = vmatpush1.msra.mxu0 %v9714_v47  ;;  %7928 = vmatpush1.msra.mxu1 %v9775_v31  ;;  %v9813_v48 = vld [vmem:[%s18675_s11 + $0xbd0] sm:$0xff]  ;;  %v9751_v47 = vld [vmem:[%s18675_s11 + $0x9e8] sm:$0xff] }
 0xedf   :  { %7712 = vmatprep.subr.mxu0 %v9713_v57  ;;  %7929 = vmatprep.subr.mxu1 %v9774_v29  ;;  %v9812_v31 = vld [vmem:[%s18675_s11 + $0xbc8] sm:$0xff]  ;;  %v9750_v57 = vld [vmem:[%s18675_s11 + $0x9e0] sm:$0xff] }
 0xee0   :  { %7713 = vmatpush1.msra.mxu0 %v9712_v2  ;;  %7930 = vmatpush1.msra.mxu1 %v9773_v18  ;;  %v9811_v29 = vld [vmem:[%s18675_s11 + $0xbc0] sm:$0xff]  ;;  %v9749_v2 = vld [vmem:[%s18675_s11 + $0x9d8] sm:$0xff] }
 0xee1   :  { %7714 = vmatprep.subr.mxu0 %v9711_v12  ;;  %7931 = vmatprep.subr.mxu1 %v9772_v0  ;;  %v9810_v18 = vld [vmem:[%s18675_s11 + $0xbb8] sm:$0xff]  ;;  %v9748_v12 = vld [vmem:[%s18675_s11 + $0x9d0] sm:$0xff] }
 0xee2   :  { %7715 = vmatpush1.msra.mxu0 %v9710_v6  ;;  %7932 = vmatpush1.msra.mxu1 %v9771_v46  ;;  %v9809_v0 = vld [vmem:[%s18675_s11 + $0xbb0] sm:$0xff]  ;;  %v9747_v6 = vld [vmem:[%s18675_s11 + $0x9c8] sm:$0xff] }
 0xee3   :  { %7716 = vmatprep.subr.mxu0 %v9709_v55  ;;  %7933 = vmatprep.subr.mxu1 %v9770_v56  ;;  %v9808_v46 = vld [vmem:[%s18675_s11 + $0xba8] sm:$0xff]  ;;  %v9746_v55 = vld [vmem:[%s18675_s11 + $0x9c0] sm:$0xff] }
 0xee4   :  { %7717 = vmatpush1.msra.mxu0 %v9708_v34  ;;  %7934 = vmatpush1.msra.mxu1 %v9769_v38  ;;  %v9807_v56 = vld [vmem:[%s18675_s11 + $0xba0] sm:$0xff]  ;;  %v9745_v34 = vld [vmem:[%s18675_s11 + $0x9b8] sm:$0xff] }
 0xee5   :  { %7718 = vmatprep.subr.mxu0 %v9707_v8  ;;  %7935 = vmatprep.subr.mxu1 %v9768_v52  ;;  %v9806_v38 = vld [vmem:[%s18675_s11 + $0xb98] sm:$0xff]  ;;  %v9744_v8 = vld [vmem:[%s18675_s11 + $0x9b0] sm:$0xff] }
 0xee6   :  { %7719 = vmatpush1.msra.mxu0 %v9706_v23  ;;  %7936 = vmatpush1.msra.mxu1 %v9767_v16  ;;  %v9805_v52 = vld [vmem:[%s18675_s11 + $0xb90] sm:$0xff]  ;;  %v9743_v23 = vld [vmem:[%s18675_s11 + $0x9a8] sm:$0xff] }
 0xee7   :  { %7720 = vmatprep.subr.mxu0 %v9705_v32  ;;  %7937 = vmatprep.subr.mxu1 %v9766_v4  ;;  %v9804_v16 = vld [vmem:[%s18675_s11 + $0xb88] sm:$0xff]  ;;  %v9742_v32 = vld [vmem:[%s18675_s11 + $0x9a0] sm:$0xff] }
 0xee8   :  { %7721 = vmatpush1.msra.mxu0 %v9704_v3  ;;  %7938 = vmatpush1.msra.mxu1 %v9765_v60  ;;  %v9803_v4 = vld [vmem:[%s18675_s11 + $0xb80] sm:$0xff]  ;;  %v9741_v3 = vld [vmem:[%s18675_s11 + $0x998] sm:$0xff] }
 0xee9   :  { %7722 = vmatprep.subr.mxu0 %v9703_v14  ;;  %7939 = vmatprep.subr.mxu1 %v9764_v58  ;;  %v9802_v60 = vld [vmem:[%s18675_s11 + $0xb78] sm:$0xff]  ;;  %v9740_v14 = vld [vmem:[%s18675_s11 + $0x990] sm:$0xff] }
 0xeea   :  { %7723 = vmatpush1.msra.mxu0 %v9702_v20  ;;  %7940 = vmatpush1.msra.mxu1 %v9763_v7  ;;  %v9801_v58 = vld [vmem:[%s18675_s11 + $0xb70] sm:$0xff]  ;;  %v9739_v20 = vld [vmem:[%s18675_s11 + $0x988] sm:$0xff] }
 0xeeb   :  { %7724 = vmatprep.subr.mxu0 %v9701_v50  ;;  %7941 = vmatprep.subr.mxu1 %v9762_v37  ;;  %v9800_v7 = vld [vmem:[%s18675_s11 + $0xb68] sm:$0xff]  ;;  %v9738_v50 = vld [vmem:[%s18675_s11 + $0x980] sm:$0xff] }
 0xeec   :  { %7725 = vmatpush1.msra.mxu0 %v9700_v36  ;;  %7942 = vmatpush1.msra.mxu1 %v9761_v40  ;;  %v9799_v37 = vld [vmem:[%s18675_s11 + $0xb60] sm:$0xff]  ;;  %v9737_v36 = vld [vmem:[%s18675_s11 + $0x978] sm:$0xff] }
 0xeed   :  { %7726 = vmatprep.subr.mxu0 %v9699_v30  ;;  %7943 = vmatprep.subr.mxu1 %v9760_v41  ;;  %v9798_v40 = vld [vmem:[%s18675_s11 + $0xb58] sm:$0xff]  ;;  %v9736_v30 = vld [vmem:[%s18675_s11 + $0x970] sm:$0xff] }
 0xeee   :  { %7727 = vmatpush1.msra.mxu0 %v9698_v1  ;;  %7944 = vmatpush1.msra.mxu1 %v9759_v15  ;;  %v9797_v41 = vld [vmem:[%s18675_s11 + $0xb50] sm:$0xff]  ;;  %v9735_v1 = vld [vmem:[%s18675_s11 + $0x968] sm:$0xff] }
 0xeef   :  { %7728 = vmatprep.subr.mxu0 %v9697_v28  ;;  %7945 = vmatprep.subr.mxu1 %v9758_v45  ;;  %v9796_v15 = vld [vmem:[%s18675_s11 + $0xb48] sm:$0xff]  ;;  %v9734_v28 = vld [vmem:[%s18675_s11 + $0x960] sm:$0xff] }
 0xef0   :  { %7729 = vmatpush1.msra.mxu0 %v9696_v9  ;;  %7946 = vmatpush1.msra.mxu1 %v9757_v11  ;;  %v9795_v45 = vld [vmem:[%s18675_s11 + $0xb40] sm:$0xff]  ;;  %v9733_v9 = vld [vmem:[%s18675_s11 + $0x958] sm:$0xff] }
 0xef1   :  { %7730 = vmatprep.subr.mxu0 %v9695_v10  ;;  %7947 = vmatprep.subr.mxu1 %v9756_v44  ;;  %v9794_v11 = vld [vmem:[%s18675_s11 + $0xb38] sm:$0xff]  ;;  %v9732_v10 = vld [vmem:[%s18675_s11 + $0x950] sm:$0xff] }
 0xef2   :  { %7731 = vmatpush1.msra.mxu0 %v9694_v25  ;;  %7948 = vmatpush1.msra.mxu1 %v9755_v62  ;;  %v9793_v44 = vld [vmem:[%s18675_s11 + $0xb30] sm:$0xff]  ;;  %v9731_v25 = vld [vmem:[%s18675_s11 + $0x948] sm:$0xff] }
 0xef3   :  { %7732 = vmatprep.subr.mxu0 %v9693_v13  ;;  %7949 = vmatprep.subr.mxu1 %v9818_v51  ;;  %v9792_v62 = vld [vmem:[%s18675_s11 + $0xb28] sm:$0xff]  ;;  %v9730_v13 = vld [vmem:[%s18675_s11 + $0x940] sm:$0xff] }
 0xef4   :  { %7733 = vmatpush1.msra.mxu0 %v9692_v39  ;;  %7950 = vmatpush2.msra.mxu1 %v9817_v43  ;;  %v9791_v51 = vld [vmem:[%s18675_s11 + $0xb20] sm:$0xff]  ;;  %v9729_v39 = vld [vmem:[%s18675_s11 + $0x938] sm:$0xff] }
 0xef5   :  { %7734 = vmatprep.subr.mxu0 %v9691_v17  ;;  %7951 = vmatprep.subr.mxu1 %v9816_v21  ;;  %v9790_v43 = vld [vmem:[%s18675_s11 + $0xb18] sm:$0xff]  ;;  %v9728_v17 = vld [vmem:[%s18675_s11 + $0x930] sm:$0xff] }
 0xef6   :  { %7735 = vmatpush1.msra.mxu0 %v9690_v27  ;;  %7952 = vmatpush2.msra.mxu1 %v9815_v35  ;;  %v9789_v21 = vld [vmem:[%s18675_s11 + $0xb10] sm:$0xff]  ;;  %v9727_v27 = vld [vmem:[%s18675_s11 + $0x928] sm:$0xff] }
 0xef7   :  { %7736 = vmatprep.subr.mxu0 %v9753_v24  ;;  %7953 = vmatprep.subr.mxu1 %v9814_v19  ;;  %v9788_v35 = vld [vmem:[%s18675_s11 + $0xb08] sm:$0xff]  ;;  %v9726_v24 = vld [vmem:[%s18675_s11 + $0x920] sm:$0xff] }
 0xef8   :  { %7737 = vmatpush2.msra.mxu0 %v9752_v22  ;;  %7954 = vmatpush2.msra.mxu1 %v9813_v48  ;;  %v9787_v19 = vld [vmem:[%s18675_s11 + $0xb00] sm:$0xff]  ;;  %v9725_v22 = vld [vmem:[%s18675_s11 + $0x918] sm:$0xff]  ;;  %v9724_v48 = vld [vmem:[%s18675_s11 + $0x910] sm:$0xff] }
 0xef9   :  { %7738 = vmatprep.subr.mxu0 %v9751_v47  ;;  %7955 = vmatprep.subr.mxu1 %v9812_v31  ;;  %v9723_v47 = vld [vmem:[%s18675_s11 + $0x908] sm:$0xff]  ;;  %v9722_v31 = vld [vmem:[%s18675_s11 + $0x900] sm:$0xff] }
 0xefa   :  { %7739 = vmatpush2.msra.mxu0 %v9750_v57  ;;  %7956 = vmatpush2.msra.mxu1 %v9811_v29 }
 0xefb   :  { %7740 = vmatprep.subr.mxu0 %v9749_v2  ;;  %7957 = vmatprep.subr.mxu1 %v9810_v18 }
 0xefc   :  { %7741 = vmatpush2.msra.mxu0 %v9748_v12  ;;  %7958 = vmatpush2.msra.mxu1 %v9809_v0 }
 0xefd   :  { %7742 = vmatprep.subr.mxu0 %v9747_v6  ;;  %7959 = vmatprep.subr.mxu1 %v9808_v46 }
 0xefe   :  { %7743 = vmatpush2.msra.mxu0 %v9746_v55  ;;  %7960 = vmatpush2.msra.mxu1 %v9807_v56 }
 0xeff   :  { %7744 = vmatprep.subr.mxu0 %v9745_v34  ;;  %7961 = vmatprep.subr.mxu1 %v9806_v38  ;;  %v17828_v34 = vld [vmem:[%s18672_s18 + $0x18] sm:$0xff] }
 0xf00   :  { %7745 = vmatpush2.msra.mxu0 %v9744_v8  ;;  %7962 = vmatpush2.msra.mxu1 %v9805_v52  ;;  %v9915_v52 = vld [vmem:[%s18675_s11 + $0xef0] sm:$0xff] }
 0xf01   :  { %7746 = vmatprep.subr.mxu0 %v9743_v23  ;;  %7963 = vmatprep.subr.mxu1 %v9804_v16  ;;  %v9914_v23 = vld [vmem:[%s18675_s11 + $0xee8] sm:$0xff]  ;;  %v9851_v16 = vld [vmem:[%s18675_s11 + $0xcf8] sm:$0xff] }
 0xf02   :  { %7747 = vmatpush2.msra.mxu0 %v9742_v32  ;;  %7964 = vmatpush2.msra.mxu1 %v9803_v4  ;;  %v7990_v32 = vld [vmem:[%s18677_s4 + $0x30] sm:$0xff] }
 0xf03   :  { %7748 = vmatprep.subr.mxu0 %v9741_v3  ;;  %7965 = vmatprep.subr.mxu1 %v9802_v60  ;;  %v9850_v4 = vld [vmem:[%s18675_s11 + $0xcf0] sm:$0xff]  ;;  %v9913_v3 = vld [vmem:[%s18675_s11 + $0xee0] sm:$0xff]  ;;  %v9849_v60 = vld [vmem:[%s18675_s11 + $0xce8] sm:$0xff] }
 0xf04   :  { %7749 = vmatpush2.msra.mxu0 %v9740_v14  ;;  %7966 = vmatpush2.msra.mxu1 %v9801_v58  ;;  %v9912_v14 = vld [vmem:[%s18675_s11 + $0xed8] sm:$0xff]  ;;  %v9848_v58 = vld [vmem:[%s18675_s11 + $0xce0] sm:$0xff] }
 0xf05   :  { %7750 = vmatprep.subr.mxu0 %v9739_v20  ;;  %7967 = vmatprep.subr.mxu1 %v9800_v7  ;;  %v9911_v20 = vld [vmem:[%s18675_s11 + $0xed0] sm:$0xff]  ;;  %v9847_v7 = vld [vmem:[%s18675_s11 + $0xcd8] sm:$0xff] }
 0xf06   :  { %7751 = vmatpush2.msra.mxu0 %v9738_v50  ;;  %7968 = vmatpush2.msra.mxu1 %v9799_v37  ;;  %v9910_v50 = vld [vmem:[%s18675_s11 + $0xec8] sm:$0xff]  ;;  %v9846_v37 = vld [vmem:[%s18675_s11 + $0xcd0] sm:$0xff] }
 0xf07   :  { %7752 = vmatprep.subr.mxu0 %v9737_v36  ;;  %7969 = vmatprep.subr.mxu1 %v9798_v40  ;;  %v9909_v36 = vld [vmem:[%s18675_s11 + $0xec0] sm:$0xff]  ;;  %v9845_v40 = vld [vmem:[%s18675_s11 + $0xcc8] sm:$0xff] }
 0xf08   :  { %7753 = vmatpush2.msra.mxu0 %v9736_v30  ;;  %7970 = vmatpush2.msra.mxu1 %v9797_v41  ;;  %v9908_v30 = vld [vmem:[%s18675_s11 + $0xeb8] sm:$0xff]  ;;  %v9844_v41 = vld [vmem:[%s18675_s11 + $0xcc0] sm:$0xff] }
 0xf09   :  { %7754 = vmatprep.subr.mxu0 %v9735_v1  ;;  %7971 = vmatprep.subr.mxu1 %v9796_v15  ;;  %v9907_v1 = vld [vmem:[%s18675_s11 + $0xeb0] sm:$0xff]  ;;  %v9843_v15 = vld [vmem:[%s18675_s11 + $0xcb8] sm:$0xff] }
 0xf0a   :  { %7755 = vmatpush2.msra.mxu0 %v9734_v28  ;;  %7972 = vmatpush2.msra.mxu1 %v9795_v45  ;;  %v9906_v28 = vld [vmem:[%s18675_s11 + $0xea8] sm:$0xff]  ;;  %v9842_v45 = vld [vmem:[%s18675_s11 + $0xcb0] sm:$0xff] }
 0xf0b   :  { %7756 = vmatprep.subr.mxu0 %v9733_v9  ;;  %7973 = vmatprep.subr.mxu1 %v9794_v11  ;;  %v9905_v9 = vld [vmem:[%s18675_s11 + $0xea0] sm:$0xff]  ;;  %v9841_v11 = vld [vmem:[%s18675_s11 + $0xca8] sm:$0xff] }
 0xf0c   :  { %7757 = vmatpush2.msra.mxu0 %v9732_v10  ;;  %7974 = vmatpush2.msra.mxu1 %v9793_v44  ;;  %v9904_v10 = vld [vmem:[%s18675_s11 + $0xe98] sm:$0xff]  ;;  %v9840_v44 = vld [vmem:[%s18675_s11 + $0xca0] sm:$0xff] }
 0xf0d   :  { %7758 = vmatprep.subr.mxu0 %v9731_v25  ;;  %7975 = vmatprep.subr.mxu1 %v9792_v62  ;;  %v9903_v25 = vld [vmem:[%s18675_s11 + $0xe90] sm:$0xff]  ;;  %v9839_v62 = vld [vmem:[%s18675_s11 + $0xc98] sm:$0xff] }
 0xf0e   :  { %7759 = vmatpush2.msra.mxu0 %v9730_v13  ;;  %7976 = vmatpush2.msra.mxu1 %v9791_v51  ;;  %v9902_v13 = vld [vmem:[%s18675_s11 + $0xe88] sm:$0xff]  ;;  %v9838_v51 = vld [vmem:[%s18675_s11 + $0xc90] sm:$0xff] }
 0xf0f   :  { %7760 = vmatprep.subr.mxu0 %v9729_v39  ;;  %7977 = vmatprep.subr.mxu1 %v9790_v43  ;;  %v9901_v39 = vld [vmem:[%s18675_s11 + $0xe80] sm:$0xff]  ;;  %v9837_v43 = vld [vmem:[%s18675_s11 + $0xc88] sm:$0xff] }
 0xf10   :  { %7761 = vmatpush2.msra.mxu0 %v9728_v17  ;;  %7978 = vmatpush2.msra.mxu1 %v9789_v21  ;;  %v9900_v17 = vld [vmem:[%s18675_s11 + $0xe78] sm:$0xff]  ;;  %v9836_v21 = vld [vmem:[%s18675_s11 + $0xc80] sm:$0xff] }
 0xf11   :  { %7762 = vmatprep.subr.mxu0 %v9727_v27  ;;  %7979 = vmatprep.subr.mxu1 %v9788_v35  ;;  %v9899_v27 = vld [vmem:[%s18675_s11 + $0xe70] sm:$0xff]  ;;  %v9835_v35 = vld [vmem:[%s18675_s11 + $0xc78] sm:$0xff] }
 0xf12   :  { %7763 = vmatpush2.msra.mxu0 %v9726_v24  ;;  %7980 = vmatpush2.msra.mxu1 %v9787_v19  ;;  %v9898_v24 = vld [vmem:[%s18675_s11 + $0xe68] sm:$0xff]  ;;  %v9834_v19 = vld [vmem:[%s18675_s11 + $0xc70] sm:$0xff] }
 0xf13   :  { %7764 = vmatprep.subr.mxu0 %v9725_v22  ;;  %8235 = vmatprep.subr.mxu1 %v16788_v33  ;;  %v9897_v22 = vld [vmem:[%s18675_s11 + $0xe60] sm:$0xff] }
 0xf14   :  { %7765 = vmatpush2.msra.mxu0 %v9724_v48  ;;  %v9833_v48 = vld [vmem:[%s18675_s11 + $0xc68] sm:$0xff] }
 0xf15   :  { %7766 = vmatprep.subr.mxu0 %v9723_v47  ;;  %v9896_v47 = vld [vmem:[%s18675_s11 + $0xe58] sm:$0xff] }
 0xf16   :  { %7767 = vmatpush2.msra.mxu0 %v9722_v31  ;;  %v9832_v31 = vld [vmem:[%s18675_s11 + $0xc60] sm:$0xff] }
 0xf17   :  { %8022 = vmatprep.subr.mxu0 %v16788_v33 }
 0xf8d   :  { %v7557_v57 = vpop.f32.mrf.mxu1 }
 0xf8f   :  { %v7559_v29 = vpop.f32.mrf.mxu1 }
 0xf92   :  { %v7344_v2 = vpop.f32.mrf.mxu0  ;;  %v7847_v18 = vpop.f32.mrf.mxu1 }
 0xf93   :  { %v7349_v12 = vadd.f32 %v7344_v2, %v17414_v63  ;;  %v8203_v63 = vld [vmem:[%s18677_s4 + $0x38] sm:$0xff]  ;;  %v9894_v2 = vld [vmem:[%s18675_s11 + $0xe48] sm:$0xff] }
 0xf94   :  { %v7346_v0 = vpop.f32.mrf.mxu0  ;;  %v7849_v6 = vpop.f32.mrf.mxu1 }
 0xf95   :  { %v7350_v46 = vadd.f32 %v7346_v0, %v17416_v5  ;;  %7981 = vmatprep.mubr.f32.mxu1 %v7849_v6  ;;  %v17822_v55 = vadd.f32 %v7557_v57, %v7349_v12  ;;  %v9916_v5 = vld [vmem:[%s18675_s11 + $0xef8] sm:$0xff]  ;;  %v9895_v57 = vld [vmem:[%s18675_s11 + $0xe50] sm:$0xff]  ;;  %v9893_v12 = vld [vmem:[%s18675_s11 + $0xe40] sm:$0xff] }
 0xf96   :  { %7982 = vmatmul.mubr.f32.vlgmr.msra.gmra.mxu1 %v7847_v18  ;;  %v9830_v18 = vld [vmem:[%s18675_s11 + $0xc50] sm:$0xff]  ;;  %v9829_v0 = vld [vmem:[%s18675_s11 + $0xc48] sm:$0xff]  ;;  %v9892_v6 = vld [vmem:[%s18675_s11 + $0xe38] sm:$0xff] }
 0xf97   :  { %v7634_v56 = vpop.f32.mrf.mxu0  ;;  %8236 = vmatpush1.msra.mxu1 %v16790_v53  ;;  %8271 = vmatprep.mubr.f32.mxu1 %v17828_v34  ;;  %v17834_v38 = vadd.f32 %v7559_v29, %v7350_v46  ;;  %v9831_v29 = vld [vmem:[%s18675_s11 + $0xc58] sm:$0xff]  ;;  %v9828_v46 = vld [vmem:[%s18675_s11 + $0xc40] sm:$0xff] }
 0xf98   :  { %8237 = vmatprep.subr.mxu1 %v16792_v49 }
 0xf99   :  { %v7636_v8 = vpop.f32.mrf.mxu0  ;;  %8238 = vmatpush1.msra.mxu1 %v16796_v42 }
 0xf9a   :  { %7768 = vmatprep.mubr.f32.mxu0 %v7636_v8  ;;  %9884 = vmatmul.mubr.msk.f32.vlgmr.msra.gmra.mxu1 %vm6717_vm1, %v8203_v63  ;;  %v9827_v63 = vld [vmem:[%s18675_s11 + $0xc38] sm:$0xff]  ;;  %v9826_v8 = vld [vmem:[%s18675_s11 + $0xc30] sm:$0xff] }
 0xf9b   :  { %7769 = vmatmul.mubr.f32.vlgmr.msra.gmra.mxu0 %v7634_v56  ;;  %8343 = vmatprep.subr.mxu1 %v9916_v5  ;;  %v9891_v56 = vld [vmem:[%s18675_s11 + $0xe30] sm:$0xff]  ;;  %v9890_v5 = vld [vmem:[%s18675_s11 + $0xe28] sm:$0xff] }
 0xf9c   :  { %8023 = vmatpush1.msra.mxu0 %v16790_v53  ;;  %8058 = vmatprep.mubr.f32.mxu0 %v17828_v34 }
 0xf9d   :  { %8024 = vmatprep.subr.mxu0 %v16792_v49  ;;  %8344 = vmatpush1.msra.mxu1 %v9915_v52  ;;  %v9889_v52 = vld [vmem:[%s18675_s11 + $0xe20] sm:$0xff] }
 0xf9e   :  { %8025 = vmatpush1.msra.mxu0 %v16796_v42  ;;  %8345 = vmatprep.subr.mxu1 %v9914_v23  ;;  %v9825_v23 = vld [vmem:[%s18675_s11 + $0xc28] sm:$0xff] }
 0xf9f   :  { %8130 = vmatprep.subr.mxu0 %v9851_v16  ;;  %9819 = vmatmul.mubr.msk.f32.vlgmr.msra.gmra.mxu0 %vm6717_vm1, %v7990_v32  ;;  %v9888_v16 = vld [vmem:[%s18675_s11 + $0xe18] sm:$0xff]  ;;  %v9824_v32 = vld [vmem:[%s18675_s11 + $0xc20] sm:$0xff] }
 0xfa0   :  { %8131 = vmatpush1.msra.mxu0 %v9850_v4  ;;  %8346 = vmatpush1.msra.mxu1 %v9913_v3  ;;  %v9887_v4 = vld [vmem:[%s18675_s11 + $0xe10] sm:$0xff]  ;;  %v9823_v3 = vld [vmem:[%s18675_s11 + $0xc18] sm:$0xff] }
 0xfa1   :  { %8132 = vmatprep.subr.mxu0 %v9849_v60  ;;  %8347 = vmatprep.subr.mxu1 %v9912_v14  ;;  %v9886_v60 = vld [vmem:[%s18675_s11 + $0xe08] sm:$0xff]  ;;  %v9822_v14 = vld [vmem:[%s18675_s11 + $0xc10] sm:$0xff] }
 0xfa2   :  { %8133 = vmatpush1.msra.mxu0 %v9848_v58  ;;  %8348 = vmatpush1.msra.mxu1 %v9911_v20  ;;  %v9885_v58 = vld [vmem:[%s18675_s11 + $0xe00] sm:$0xff]  ;;  %v9821_v20 = vld [vmem:[%s18675_s11 + $0xc08] sm:$0xff] }
 0xfa3   :  { %8134 = vmatprep.subr.mxu0 %v9847_v7  ;;  %8349 = vmatprep.subr.mxu1 %v9910_v50  ;;  %v9948_v7 = vld [vmem:[%s18675_s11 + $0xff8] sm:$0xff]  ;;  %v9820_v50 = vld [vmem:[%s18675_s11 + $0xc00] sm:$0xff] }
 0xfa4   :  { %8135 = vmatpush1.msra.mxu0 %v9846_v37  ;;  %8350 = vmatpush1.msra.mxu1 %v9909_v36  ;;  %v9947_v37 = vld [vmem:[%s18675_s11 + $0xff0] sm:$0xff]  ;;  %v9883_v36 = vld [vmem:[%s18675_s11 + $0xdf8] sm:$0xff] }
 0xfa5   :  { %8136 = vmatprep.subr.mxu0 %v9845_v40  ;;  %8351 = vmatprep.subr.mxu1 %v9908_v30  ;;  %v9946_v40 = vld [vmem:[%s18675_s11 + $0xfe8] sm:$0xff]  ;;  %v9882_v30 = vld [vmem:[%s18675_s11 + $0xdf0] sm:$0xff] }
 0xfa6   :  { %8137 = vmatpush1.msra.mxu0 %v9844_v41  ;;  %8352 = vmatpush1.msra.mxu1 %v9907_v1  ;;  %v9945_v41 = vld [vmem:[%s18675_s11 + $0xfe0] sm:$0xff]  ;;  %v9881_v1 = vld [vmem:[%s18675_s11 + $0xde8] sm:$0xff] }
 0xfa7   :  { %8138 = vmatprep.subr.mxu0 %v9843_v15  ;;  %8353 = vmatprep.subr.mxu1 %v9906_v28  ;;  %v9944_v15 = vld [vmem:[%s18675_s11 + $0xfd8] sm:$0xff]  ;;  %v9880_v28 = vld [vmem:[%s18675_s11 + $0xde0] sm:$0xff] }
 0xfa8   :  { %8139 = vmatpush1.msra.mxu0 %v9842_v45  ;;  %8354 = vmatpush1.msra.mxu1 %v9905_v9  ;;  %v9943_v45 = vld [vmem:[%s18675_s11 + $0xfd0] sm:$0xff]  ;;  %v9879_v9 = vld [vmem:[%s18675_s11 + $0xdd8] sm:$0xff] }
 0xfa9   :  { %8140 = vmatprep.subr.mxu0 %v9841_v11  ;;  %8355 = vmatprep.subr.mxu1 %v9904_v10  ;;  %v9942_v11 = vld [vmem:[%s18675_s11 + $0xfc8] sm:$0xff]  ;;  %v9878_v10 = vld [vmem:[%s18675_s11 + $0xdd0] sm:$0xff] }
 0xfaa   :  { %8141 = vmatpush1.msra.mxu0 %v9840_v44  ;;  %8356 = vmatpush1.msra.mxu1 %v9903_v25  ;;  %v9941_v44 = vld [vmem:[%s18675_s11 + $0xfc0] sm:$0xff]  ;;  %v9877_v25 = vld [vmem:[%s18675_s11 + $0xdc8] sm:$0xff] }
 0xfab   :  { %8142 = vmatprep.subr.mxu0 %v9839_v62  ;;  %8357 = vmatprep.subr.mxu1 %v9902_v13  ;;  %v9940_v62 = vld [vmem:[%s18675_s11 + $0xfb8] sm:$0xff]  ;;  %v9876_v13 = vld [vmem:[%s18675_s11 + $0xdc0] sm:$0xff] }
 0xfac   :  { %8143 = vmatpush1.msra.mxu0 %v9838_v51  ;;  %8358 = vmatpush1.msra.mxu1 %v9901_v39  ;;  %v9939_v51 = vld [vmem:[%s18675_s11 + $0xfb0] sm:$0xff]  ;;  %v9875_v39 = vld [vmem:[%s18675_s11 + $0xdb8] sm:$0xff] }
 0xfad   :  { %8144 = vmatprep.subr.mxu0 %v9837_v43  ;;  %8359 = vmatprep.subr.mxu1 %v9900_v17  ;;  %v9938_v43 = vld [vmem:[%s18675_s11 + $0xfa8] sm:$0xff]  ;;  %v9874_v17 = vld [vmem:[%s18675_s11 + $0xdb0] sm:$0xff] }
 0xfae   :  { %8145 = vmatpush1.msra.mxu0 %v9836_v21  ;;  %8360 = vmatpush1.msra.mxu1 %v9899_v27  ;;  %v9937_v21 = vld [vmem:[%s18675_s11 + $0xfa0] sm:$0xff]  ;;  %v9873_v27 = vld [vmem:[%s18675_s11 + $0xda8] sm:$0xff] }
 0xfaf   :  { %8146 = vmatprep.subr.mxu0 %v9835_v35  ;;  %8361 = vmatprep.subr.mxu1 %v9898_v24  ;;  %v9936_v35 = vld [vmem:[%s18675_s11 + $0xf98] sm:$0xff]  ;;  %v9872_v24 = vld [vmem:[%s18675_s11 + $0xda0] sm:$0xff] }
 0xfb0   :  { %8147 = vmatpush1.msra.mxu0 %v9834_v19  ;;  %8362 = vmatpush1.msra.mxu1 %v9897_v22  ;;  %v9935_v19 = vld [vmem:[%s18675_s11 + $0xf90] sm:$0xff]  ;;  %v9871_v22 = vld [vmem:[%s18675_s11 + $0xd98] sm:$0xff] }
 0xfb1   :  { %8148 = vmatprep.subr.mxu0 %v9833_v48  ;;  %8363 = vmatprep.subr.mxu1 %v9896_v47  ;;  %v9934_v48 = vld [vmem:[%s18675_s11 + $0xf88] sm:$0xff]  ;;  %v9870_v47 = vld [vmem:[%s18675_s11 + $0xd90] sm:$0xff] }
 0xfb2   :  { %8149 = vmatpush1.msra.mxu0 %v9832_v31  ;;  %8364 = vmatpush1.msra.mxu1 %v9895_v57  ;;  %v9933_v31 = vld [vmem:[%s18675_s11 + $0xf80] sm:$0xff]  ;;  %v9869_v57 = vld [vmem:[%s18675_s11 + $0xd88] sm:$0xff] }
 0xfb3   :  { %8150 = vmatprep.subr.mxu0 %v9831_v29  ;;  %8365 = vmatprep.subr.mxu1 %v9894_v2  ;;  %v9932_v29 = vld [vmem:[%s18675_s11 + $0xf78] sm:$0xff]  ;;  %v9868_v2 = vld [vmem:[%s18675_s11 + $0xd80] sm:$0xff] }
 0xfb4   :  { %8151 = vmatpush1.msra.mxu0 %v9830_v18  ;;  %8366 = vmatpush1.msra.mxu1 %v9893_v12  ;;  %v9931_v18 = vld [vmem:[%s18675_s11 + $0xf70] sm:$0xff]  ;;  %v9867_v12 = vld [vmem:[%s18675_s11 + $0xd78] sm:$0xff] }
 0xfb5   :  { %8152 = vmatprep.subr.mxu0 %v9829_v0  ;;  %8367 = vmatprep.subr.mxu1 %v9892_v6  ;;  %v9930_v0 = vld [vmem:[%s18675_s11 + $0xf68] sm:$0xff]  ;;  %v9866_v6 = vld [vmem:[%s18675_s11 + $0xd70] sm:$0xff] }
 0xfb6   :  { %8153 = vmatpush1.msra.mxu0 %v9828_v46  ;;  %8368 = vmatpush1.msra.mxu1 %v9891_v56  ;;  %v9929_v46 = vld [vmem:[%s18675_s11 + $0xf60] sm:$0xff]  ;;  %v9865_v56 = vld [vmem:[%s18675_s11 + $0xd68] sm:$0xff] }
 0xfb7   :  { %8154 = vmatprep.subr.mxu0 %v9827_v63  ;;  %8369 = vmatprep.subr.mxu1 %v9890_v5  ;;  %v9928_v63 = vld [vmem:[%s18675_s11 + $0xf58] sm:$0xff]  ;;  %v9864_v5 = vld [vmem:[%s18675_s11 + $0xd60] sm:$0xff] }
 0xfb8   :  { %8155 = vmatpush1.msra.mxu0 %v9826_v8  ;;  %8370 = vmatpush1.msra.mxu1 %v9889_v52  ;;  %v9927_v8 = vld [vmem:[%s18675_s11 + $0xf50] sm:$0xff]  ;;  %v9863_v52 = vld [vmem:[%s18675_s11 + $0xd58] sm:$0xff] }
 0xfb9   :  { %8156 = vmatprep.subr.mxu0 %v9825_v23  ;;  %8371 = vmatprep.subr.mxu1 %v9888_v16  ;;  %v9862_v23 = vld [vmem:[%s18675_s11 + $0xd50] sm:$0xff]  ;;  %v9861_v16 = vld [vmem:[%s18675_s11 + $0xd48] sm:$0xff] }
 0xfba   :  { %8157 = vmatpush1.msra.mxu0 %v9824_v32  ;;  %8372 = vmatpush1.msra.mxu1 %v9887_v4  ;;  %v9860_v32 = vld [vmem:[%s18675_s11 + $0xd40] sm:$0xff]  ;;  %v9859_v4 = vld [vmem:[%s18675_s11 + $0xd38] sm:$0xff] }
 0xfbb   :  { %8158 = vmatprep.subr.mxu0 %v9823_v3  ;;  %8373 = vmatprep.subr.mxu1 %v9886_v60  ;;  %v9858_v3 = vld [vmem:[%s18675_s11 + $0xd30] sm:$0xff]  ;;  %v9857_v60 = vld [vmem:[%s18675_s11 + $0xd28] sm:$0xff] }
 0xfbc   :  { %8159 = vmatpush1.msra.mxu0 %v9822_v14  ;;  %8374 = vmatpush1.msra.mxu1 %v9885_v58  ;;  %v9856_v14 = vld [vmem:[%s18675_s11 + $0xd20] sm:$0xff]  ;;  %v9855_v58 = vld [vmem:[%s18675_s11 + $0xd18] sm:$0xff] }
 0xfbd   :  { %8160 = vmatprep.subr.mxu0 %v9821_v20  ;;  %8375 = vmatprep.subr.mxu1 %v9948_v7  ;;  %v9854_v20 = vld [vmem:[%s18675_s11 + $0xd10] sm:$0xff]  ;;  %v9853_v7 = vld [vmem:[%s18675_s11 + $0xd08] sm:$0xff] }
 0xfbe   :  { %8161 = vmatpush1.msra.mxu0 %v9820_v50  ;;  %8376 = vmatpush2.msra.mxu1 %v9947_v37  ;;  %v9852_v50 = vld [vmem:[%s18675_s11 + $0xd00] sm:$0xff]  ;;  %v9926_v37 = vld [vmem:[%s18675_s11 + $0xf48] sm:$0xff] }
 0xfbf   :  { %8162 = vmatprep.subr.mxu0 %v9883_v36  ;;  %8377 = vmatprep.subr.mxu1 %v9946_v40  ;;  %v9925_v36 = vld [vmem:[%s18675_s11 + $0xf40] sm:$0xff]  ;;  %v9924_v40 = vld [vmem:[%s18675_s11 + $0xf38] sm:$0xff] }
 0xfc0   :  { %8163 = vmatpush2.msra.mxu0 %v9882_v30  ;;  %8378 = vmatpush2.msra.mxu1 %v9945_v41  ;;  %v9923_v30 = vld [vmem:[%s18675_s11 + $0xf30] sm:$0xff]  ;;  %v9922_v41 = vld [vmem:[%s18675_s11 + $0xf28] sm:$0xff] }
 0xfc1   :  { %8164 = vmatprep.subr.mxu0 %v9881_v1  ;;  %8379 = vmatprep.subr.mxu1 %v9944_v15  ;;  %v9921_v1 = vld [vmem:[%s18675_s11 + $0xf20] sm:$0xff]  ;;  %v9920_v15 = vld [vmem:[%s18675_s11 + $0xf18] sm:$0xff] }
 0xfc2   :  { %8165 = vmatpush2.msra.mxu0 %v9880_v28  ;;  %8380 = vmatpush2.msra.mxu1 %v9943_v45  ;;  %v9918_v28 = vld [vmem:[%s18675_s11 + $0xf08] sm:$0xff]  ;;  %v9917_v45 = vld [vmem:[%s18675_s11 + $0xf00] sm:$0xff] }
 0xfc3   :  { %8166 = vmatprep.subr.mxu0 %v9879_v9  ;;  %8381 = vmatprep.subr.mxu1 %v9942_v11 }
 0xfc4   :  { %8167 = vmatpush2.msra.mxu0 %v9878_v10  ;;  %8382 = vmatpush2.msra.mxu1 %v9941_v44 }
 0xfc5   :  { %8168 = vmatprep.subr.mxu0 %v9877_v25  ;;  %8383 = vmatprep.subr.mxu1 %v9940_v62 }
 0xfc6   :  { %8169 = vmatpush2.msra.mxu0 %v9876_v13  ;;  %8384 = vmatpush2.msra.mxu1 %v9939_v51 }
 0xfc7   :  { %8170 = vmatprep.subr.mxu0 %v9875_v39  ;;  %8385 = vmatprep.subr.mxu1 %v9938_v43 }
 0xfc8   :  { %8171 = vmatpush2.msra.mxu0 %v9874_v17  ;;  %8386 = vmatpush2.msra.mxu1 %v9937_v21 }
 0xfc9   :  { %8172 = vmatprep.subr.mxu0 %v9873_v27  ;;  %8387 = vmatprep.subr.mxu1 %v9936_v35  ;;  %v9980_v27 = vld [vmem:[%s18675_s11 + $0x10f0] sm:$0xff]  ;;  %v9975_v35 = vld [vmem:[%s18675_s11 + $0x10c8] sm:$0xff] }
 0xfca   :  { %8173 = vmatpush2.msra.mxu0 %v9872_v24  ;;  %8388 = vmatpush2.msra.mxu1 %v9935_v19  ;;  %v9974_v24 = vld [vmem:[%s18675_s11 + $0x10c0] sm:$0xff]  ;;  %v9973_v19 = vld [vmem:[%s18675_s11 + $0x10b8] sm:$0xff] }
 0xfcb   :  { %8174 = vmatprep.subr.mxu0 %v9871_v22  ;;  %8389 = vmatprep.subr.mxu1 %v9934_v48  ;;  %v9972_v22 = vld [vmem:[%s18675_s11 + $0x10b0] sm:$0xff]  ;;  %v9971_v48 = vld [vmem:[%s18675_s11 + $0x10a8] sm:$0xff] }
 0xfcc   :  { %8175 = vmatpush2.msra.mxu0 %v9870_v47  ;;  %8390 = vmatpush2.msra.mxu1 %v9933_v31  ;;  %v9970_v47 = vld [vmem:[%s18675_s11 + $0x10a0] sm:$0xff]  ;;  %v9969_v31 = vld [vmem:[%s18675_s11 + $0x1098] sm:$0xff] }
 0xfcd   :  { %8176 = vmatprep.subr.mxu0 %v9869_v57  ;;  %8391 = vmatprep.subr.mxu1 %v9932_v29  ;;  %v9968_v57 = vld [vmem:[%s18675_s11 + $0x1090] sm:$0xff]  ;;  %v9967_v29 = vld [vmem:[%s18675_s11 + $0x1088] sm:$0xff] }
 0xfce   :  { %8177 = vmatpush2.msra.mxu0 %v9868_v2  ;;  %8392 = vmatpush2.msra.mxu1 %v9931_v18  ;;  %v9966_v2 = vld [vmem:[%s18675_s11 + $0x1080] sm:$0xff]  ;;  %v9965_v18 = vld [vmem:[%s18675_s11 + $0x1078] sm:$0xff] }
 0xfcf   :  { %8178 = vmatprep.subr.mxu0 %v9867_v12  ;;  %8393 = vmatprep.subr.mxu1 %v9930_v0  ;;  %v9964_v12 = vld [vmem:[%s18675_s11 + $0x1070] sm:$0xff]  ;;  %v9963_v0 = vld [vmem:[%s18675_s11 + $0x1068] sm:$0xff] }
 0xfd0   :  { %8179 = vmatpush2.msra.mxu0 %v9866_v6  ;;  %8394 = vmatpush2.msra.mxu1 %v9929_v46  ;;  %v9962_v6 = vld [vmem:[%s18675_s11 + $0x1060] sm:$0xff]  ;;  %v9961_v46 = vld [vmem:[%s18675_s11 + $0x1058] sm:$0xff] }
 0xfd1   :  { %8180 = vmatprep.subr.mxu0 %v9865_v56  ;;  %8395 = vmatprep.subr.mxu1 %v9928_v63  ;;  %v9960_v56 = vld [vmem:[%s18675_s11 + $0x1050] sm:$0xff]  ;;  %v9959_v63 = vld [vmem:[%s18675_s11 + $0x1048] sm:$0xff] }
 0xfd2   :  { %8181 = vmatpush2.msra.mxu0 %v9864_v5  ;;  %8396 = vmatpush2.msra.mxu1 %v9927_v8  ;;  %v9958_v5 = vld [vmem:[%s18675_s11 + $0x1040] sm:$0xff]  ;;  %v9957_v8 = vld [vmem:[%s18675_s11 + $0x1038] sm:$0xff] }
 0xfd3   :  { %8182 = vmatprep.subr.mxu0 %v9863_v52  ;;  %8397 = vmatprep.subr.mxu1 %v9926_v37  ;;  %v9956_v52 = vld [vmem:[%s18675_s11 + $0x1030] sm:$0xff] }
 0xfd4   :  { %8183 = vmatpush2.msra.mxu0 %v9862_v23  ;;  %8398 = vmatpush2.msra.mxu1 %v9925_v36  ;;  %v9955_v23 = vld [vmem:[%s18675_s11 + $0x1028] sm:$0xff]  ;;  %v10008_v37 = vld [vmem:[%s18675_s11 + $0x11d0] sm:$0xff] }
 0xfd5   :  { %8184 = vmatprep.subr.mxu0 %v9861_v16  ;;  %8399 = vmatprep.subr.mxu1 %v9924_v40  ;;  %v9954_v16 = vld [vmem:[%s18675_s11 + $0x1020] sm:$0xff]  ;;  %v10007_v36 = vld [vmem:[%s18675_s11 + $0x11c8] sm:$0xff] }
 0xfd6   :  { %8185 = vmatpush2.msra.mxu0 %v9860_v32  ;;  %8400 = vmatpush2.msra.mxu1 %v9923_v30  ;;  %v9953_v32 = vld [vmem:[%s18675_s11 + $0x1018] sm:$0xff]  ;;  %v10006_v40 = vld [vmem:[%s18675_s11 + $0x11c0] sm:$0xff] }
 0xfd7   :  { %8186 = vmatprep.subr.mxu0 %v9859_v4  ;;  %8401 = vmatprep.subr.mxu1 %v9922_v41  ;;  %v9952_v4 = vld [vmem:[%s18675_s11 + $0x1010] sm:$0xff]  ;;  %v10005_v30 = vld [vmem:[%s18675_s11 + $0x11b8] sm:$0xff] }
 0xfd8   :  { %8187 = vmatpush2.msra.mxu0 %v9858_v3  ;;  %8402 = vmatpush2.msra.mxu1 %v9921_v1  ;;  %v9951_v3 = vld [vmem:[%s18675_s11 + $0x1008] sm:$0xff]  ;;  %v10004_v41 = vld [vmem:[%s18675_s11 + $0x11b0] sm:$0xff] }
 0xfd9   :  { %8188 = vmatprep.subr.mxu0 %v9857_v60  ;;  %8403 = vmatprep.subr.mxu1 %v9920_v15  ;;  %v9950_v60 = vld [vmem:[%s18675_s11 + $0x1000] sm:$0xff]  ;;  %v10003_v1 = vld [vmem:[%s18675_s11 + $0x11a8] sm:$0xff] }
 0xfda   :  { %8189 = vmatpush2.msra.mxu0 %v9856_v14  ;;  %v10013_v14 = vld [vmem:[%s18675_s11 + $0x11f8] sm:$0xff]  ;;  %v10002_v15 = vld [vmem:[%s18675_s11 + $0x11a0] sm:$0xff] }
 0xfdb   :  { %8190 = vmatprep.subr.mxu0 %v9855_v58  ;;  %v10012_v58 = vld [vmem:[%s18675_s11 + $0x11f0] sm:$0xff] }
 0xfdc   :  { %8191 = vmatpush2.msra.mxu0 %v9854_v20  ;;  %v10011_v20 = vld [vmem:[%s18675_s11 + $0x11e8] sm:$0xff] }
 0xfdd   :  { %8192 = vmatprep.subr.mxu0 %v9853_v7  ;;  %v10010_v7 = vld [vmem:[%s18675_s11 + $0x11e0] sm:$0xff] }
 0xfde   :  { %8193 = vmatpush2.msra.mxu0 %v9852_v50  ;;  %v10009_v50 = vld [vmem:[%s18675_s11 + $0x11d8] sm:$0xff] }
 0xfdf   :  { %8448 = vmatprep.subr.mxu0 %v16788_v33  ;;  %v9919_v33 = vld [vmem:[%s18675_s11 + $0xf10] sm:$0xff] }
 0xfe0   :  { %8404 = vmatpush2.msra.mxu1 %v9919_v33  ;;  %v10001_v33 = vld [vmem:[%s18675_s11 + $0x1198] sm:$0xff] }
 0xfe1   :  { %8405 = vmatprep.subr.mxu1 %v9918_v28  ;;  %v10000_v28 = vld [vmem:[%s18675_s11 + $0x1190] sm:$0xff] }
 0xfe2   :  { %8406 = vmatpush2.msra.mxu1 %v9917_v45  ;;  %v9999_v45 = vld [vmem:[%s18675_s11 + $0x1188] sm:$0xff] }
0x1056   :  { %v7983_v9 = vpop.f32.mrf.mxu1 }
0x1058   :  { %v7985_v11 = vpop.f32.mrf.mxu1 }
0x105a   :  { %v8273_v10 = vpop.f32.mrf.mxu1 }
0x105b   :  { %v7770_v44 = vpop.f32.mrf.mxu0 }
0x105c   :  { %v7775_v25 = vadd.f32 %v7770_v44, %v17822_v55  ;;  %v8275_v62 = vpop.f32.mrf.mxu1  ;;  %v8416_v55 = vld [vmem:[%s18677_s4 + $0x40] sm:$0xff]  ;;  %v9995_v44 = vld [vmem:[%s18675_s11 + $0x1168] sm:$0xff] }
0x105d   :  { %v7772_v13 = vpop.f32.mrf.mxu0  ;;  %8407 = vmatprep.mubr.f32.mxu1 %v8275_v62  ;;  %v9993_v62 = vld [vmem:[%s18675_s11 + $0x1158] sm:$0xff] }
0x105e   :  { %v7776_v51 = vadd.f32 %v7772_v13, %v17834_v38  ;;  %v18234_v39 = vadd.f32 %v7983_v9, %v7775_v25  ;;  %8408 = vmatmul.mubr.f32.vlgmr.msra.gmra.mxu1 %v8273_v10  ;;  %v9981_v38 = vld [vmem:[%s18675_s11 + $0x10f8] sm:$0xff]  ;;  %v9998_v9 = vld [vmem:[%s18675_s11 + $0x1180] sm:$0xff]  ;;  %v9996_v10 = vld [vmem:[%s18675_s11 + $0x1170] sm:$0xff] }
0x105f   :  { %v8060_v43 = vpop.f32.mrf.mxu0  ;;  %v9994_v25 = vld [vmem:[%s18675_s11 + $0x1160] sm:$0xff]  ;;  %v9992_v13 = vld [vmem:[%s18675_s11 + $0x1150] sm:$0xff] }
0x1060   :  { %v18236_v17 = vadd.f32 %v7985_v11, %v7776_v51  ;;  %v9997_v11 = vld [vmem:[%s18675_s11 + $0x1178] sm:$0xff]  ;;  %v9991_v51 = vld [vmem:[%s18675_s11 + $0x1148] sm:$0xff] }
0x1061   :  { %v8062_v21 = vpop.f32.mrf.mxu0 }
0x1062   :  { %8194 = vmatprep.mubr.f32.mxu0 %v8062_v21  ;;  %v9989_v21 = vld [vmem:[%s18675_s11 + $0x1138] sm:$0xff] }
0x1063   :  { %8195 = vmatmul.mubr.f32.vlgmr.msra.gmra.mxu0 %v8060_v43  ;;  %v9990_v43 = vld [vmem:[%s18675_s11 + $0x1140] sm:$0xff] }
0x1064   :  { %8449 = vmatpush1.msra.mxu0 %v16790_v53  ;;  %8484 = vmatprep.mubr.f32.mxu0 %v17828_v34  ;;  %v9979_v53 = vld [vmem:[%s18675_s11 + $0x10e8] sm:$0xff]  ;;  %v9978_v34 = vld [vmem:[%s18675_s11 + $0x10e0] sm:$0xff] }
0x1065   :  { %8450 = vmatprep.subr.mxu0 %v16792_v49  ;;  %v9977_v49 = vld [vmem:[%s18675_s11 + $0x10d8] sm:$0xff] }
0x1066   :  { %8451 = vmatpush1.msra.mxu0 %v16796_v42  ;;  %v9976_v42 = vld [vmem:[%s18675_s11 + $0x10d0] sm:$0xff] }
0x1067   :  { %9949 = vmatmul.mubr.msk.f32.vlgmr.msra.gmra.mxu0 %vm6717_vm1, %v8416_v55  ;;  %8556 = vmatprep.subr.mxu0 %v9981_v38  ;;  %v9988_v55 = vld [vmem:[%s18675_s11 + $0x1130] sm:$0xff]  ;;  %v9987_v38 = vld [vmem:[%s18675_s11 + $0x1128] sm:$0xff] }
0x1068   :  { %8557 = vmatpush1.msra.mxu0 %v9980_v27  ;;  %v9986_v27 = vld [vmem:[%s18675_s11 + $0x1120] sm:$0xff] }
0x1069   :  { %8558 = vmatprep.subr.mxu0 %v9979_v53  ;;  %v9985_v53 = vld [vmem:[%s18675_s11 + $0x1118] sm:$0xff] }
0x106a   :  { %8559 = vmatpush1.msra.mxu0 %v9978_v34  ;;  %v9984_v34 = vld [vmem:[%s18675_s11 + $0x1110] sm:$0xff] }
0x106b   :  { %8560 = vmatprep.subr.mxu0 %v9977_v49  ;;  %v9983_v49 = vld [vmem:[%s18675_s11 + $0x1108] sm:$0xff] }
0x106c   :  { %8561 = vmatpush1.msra.mxu0 %v9976_v42  ;;  %v9982_v42 = vld [vmem:[%s18675_s11 + $0x1100] sm:$0xff] }
0x106d   :  { %8562 = vmatprep.subr.mxu0 %v9975_v35  ;;  %v8698_v35 = vld [vmem:[%s18678_s15 + $0xf8] sm:$0xff] }
0x106e   :  { %8563 = vmatpush1.msra.mxu0 %v9974_v24  ;;  %v8697_v24 = vld [vmem:[%s18678_s15 + $0xf0] sm:$0xff]  ;;  %8743 = vmatprep.subr.mxu1 %v8698_v35  ;;  %v8708_v35 = vld [vmem:[%s18678_s15 + $0x148] sm:$0xff] }
0x106f   :  { %8564 = vmatprep.subr.mxu0 %v9973_v19  ;;  %v8696_v19 = vld [vmem:[%s18678_s15 + $0xe8] sm:$0xff]  ;;  %8744 = vmatpush1.msra.mxu1 %v8697_v24  ;;  %v8707_v24 = vld [vmem:[%s18678_s15 + $0x140] sm:$0xff] }
0x1070   :  { %8565 = vmatpush1.msra.mxu0 %v9972_v22  ;;  %v8695_v22 = vld [vmem:[%s18678_s15 + $0xe0] sm:$0xff]  ;;  %8745 = vmatprep.subr.mxu1 %v8696_v19  ;;  %v8706_v19 = vld [vmem:[%s18678_s15 + $0x138] sm:$0xff] }
0x1071   :  { %8566 = vmatprep.subr.mxu0 %v9971_v48  ;;  %v8694_v48 = vld [vmem:[%s18678_s15 + $0xd8] sm:$0xff]  ;;  %8746 = vmatpush1.msra.mxu1 %v8695_v22  ;;  %v8705_v22 = vld [vmem:[%s18678_s15 + $0x130] sm:$0xff] }
0x1072   :  { %8567 = vmatpush1.msra.mxu0 %v9970_v47  ;;  %v8693_v47 = vld [vmem:[%s18678_s15 + $0xd0] sm:$0xff]  ;;  %8747 = vmatprep.subr.mxu1 %v8694_v48  ;;  %v8704_v48 = vld [vmem:[%s18678_s15 + $0x128] sm:$0xff] }
0x1073   :  { %8568 = vmatprep.subr.mxu0 %v9969_v31  ;;  %v8692_v31 = vld [vmem:[%s18678_s15 + $0xc8] sm:$0xff]  ;;  %8748 = vmatpush1.msra.mxu1 %v8693_v47  ;;  %v8703_v47 = vld [vmem:[%s18678_s15 + $0x120] sm:$0xff] }
0x1074   :  { %8569 = vmatpush1.msra.mxu0 %v9968_v57  ;;  %v8691_v57 = vld [vmem:[%s18678_s15 + $0xc0] sm:$0xff]  ;;  %8749 = vmatprep.subr.mxu1 %v8692_v31  ;;  %v8702_v31 = vld [vmem:[%s18678_s15 + $0x118] sm:$0xff] }
0x1075   :  { %8570 = vmatprep.subr.mxu0 %v9967_v29  ;;  %v8690_v29 = vld [vmem:[%s18678_s15 + $0xb8] sm:$0xff]  ;;  %8750 = vmatpush1.msra.mxu1 %v8691_v57  ;;  %v8701_v57 = vld [vmem:[%s18678_s15 + $0x110] sm:$0xff] }
0x1076   :  { %8571 = vmatpush1.msra.mxu0 %v9966_v2  ;;  %v8689_v2 = vld [vmem:[%s18678_s15 + $0xb0] sm:$0xff]  ;;  %8751 = vmatprep.subr.mxu1 %v8690_v29  ;;  %v8700_v29 = vld [vmem:[%s18678_s15 + $0x108] sm:$0xff] }
0x1077   :  { %8572 = vmatprep.subr.mxu0 %v9965_v18  ;;  %v8688_v18 = vld [vmem:[%s18678_s15 + $0xa8] sm:$0xff]  ;;  %8752 = vmatpush1.msra.mxu1 %v8689_v2  ;;  %v8699_v2 = vld [vmem:[%s18678_s15 + $0x100] sm:$0xff] }
0x1078   :  { %8573 = vmatpush1.msra.mxu0 %v9964_v12  ;;  %v8687_v12 = vld [vmem:[%s18678_s15 + $0xa0] sm:$0xff]  ;;  %8753 = vmatprep.subr.mxu1 %v8688_v18 }
0x1079   :  { %8574 = vmatprep.subr.mxu0 %v9963_v0  ;;  %v8686_v0 = vld [vmem:[%s18678_s15 + $0x98] sm:$0xff]  ;;  %8754 = vmatpush1.msra.mxu1 %v8687_v12  ;;  %v8629_v12 = vld [vmem:[%s18679_s12] sm:$0x3] }
0x107a   :  { %8575 = vmatpush1.msra.mxu0 %v9962_v6  ;;  %v8685_v6 = vld [vmem:[%s18678_s15 + $0x90] sm:$0xff]  ;;  %8755 = vmatprep.subr.mxu1 %v8686_v0 }
0x107b   :  { %8576 = vmatprep.subr.mxu0 %v9961_v46  ;;  %v8684_v46 = vld [vmem:[%s18678_s15 + $0x88] sm:$0xff]  ;;  %8756 = vmatpush1.msra.mxu1 %v8685_v6 }
0x107c   :  { %8577 = vmatpush1.msra.mxu0 %v9960_v56  ;;  %v8683_v56 = vld [vmem:[%s18678_s15 + $0x80] sm:$0xff]  ;;  %8757 = vmatprep.subr.mxu1 %v8684_v46  ;;  %v8634_v46 = vrot.slane %v8629_v12, %v16777_v61 }
0x107d   :  { %8578 = vmatprep.subr.mxu0 %v9959_v63  ;;  %v8682_v63 = vld [vmem:[%s18678_s15 + $0x78] sm:$0xff]  ;;  %8758 = vmatpush1.msra.mxu1 %v8683_v56 }
0x107e   :  { %8579 = vmatpush1.msra.mxu0 %v9958_v5  ;;  %v8681_v5 = vld [vmem:[%s18678_s15 + $0x70] sm:$0xff]  ;;  %8759 = vmatprep.subr.mxu1 %v8682_v63 }
0x107f   :  { %8580 = vmatprep.subr.mxu0 %v9957_v8  ;;  %v8680_v8 = vld [vmem:[%s18678_s15 + $0x68] sm:$0xff]  ;;  %8760 = vmatpush1.msra.mxu1 %v8681_v5 }
0x1080   :  { %8581 = vmatpush1.msra.mxu0 %v9956_v52  ;;  %v8679_v52 = vld [vmem:[%s18678_s15 + $0x60] sm:$0xff]  ;;  %8761 = vmatprep.subr.mxu1 %v8680_v8  ;;  %v8638_v8 = vrot.slane %v8629_v12, %v16774_v59 }
0x1081   :  { %8582 = vmatprep.subr.mxu0 %v9955_v23  ;;  %v8678_v23 = vld [vmem:[%s18678_s15 + $0x58] sm:$0xff]  ;;  %8762 = vmatpush1.msra.mxu1 %v8679_v52 }
0x1082   :  { %8583 = vmatpush1.msra.mxu0 %v9954_v16  ;;  %v8677_v16 = vld [vmem:[%s18678_s15 + $0x50] sm:$0xff]  ;;  %8763 = vmatprep.subr.mxu1 %v8678_v23 }
0x1083   :  { %8584 = vmatprep.subr.mxu0 %v9953_v32  ;;  %v8676_v32 = vld [vmem:[%s18678_s15 + $0x48] sm:$0xff]  ;;  %8764 = vmatpush1.msra.mxu1 %v8677_v16 }
0x1084   :  { %8585 = vmatpush1.msra.mxu0 %v9952_v4  ;;  %v8675_v4 = vld [vmem:[%s18678_s15 + $0x40] sm:$0xff]  ;;  %8765 = vmatprep.subr.mxu1 %v8676_v32 }
0x1085   :  { %8586 = vmatprep.subr.mxu0 %v9951_v3  ;;  %v8674_v3 = vld [vmem:[%s18678_s15 + $0x38] sm:$0xff]  ;;  %8766 = vmatpush1.msra.mxu1 %v8675_v4 }
0x1086   :  { %8587 = vmatpush1.msra.mxu0 %v9950_v60  ;;  %v8673_v60 = vld [vmem:[%s18678_s15 + $0x30] sm:$0xff]  ;;  %8767 = vmatprep.subr.mxu1 %v8674_v3  ;;  %v8649_v3 = vpop.permute.xlu0 %8648 }
0x1087   :  { %8588 = vmatprep.subr.mxu0 %v10013_v14  ;;  %v8672_v14 = vld [vmem:[%s18678_s15 + $0x28] sm:$0xff]  ;;  %8768 = vmatpush1.msra.mxu1 %v8673_v60 }
0x1088   :  { %8589 = vmatpush2.msra.mxu0 %v10012_v58  ;;  %v8671_v58 = vld [vmem:[%s18678_s15 + $0x20] sm:$0xff]  ;;  %8769 = vmatprep.subr.mxu1 %v8672_v14 }
0x1089   :  { %8590 = vmatprep.subr.mxu0 %v10011_v20  ;;  %v8670_v20 = vld [vmem:[%s18678_s15 + $0x18] sm:$0xff]  ;;  %8770 = vmatpush1.msra.mxu1 %v8671_v58 }
0x108a   :  { %8591 = vmatpush2.msra.mxu0 %v10010_v7  ;;  %v8669_v7 = vld [vmem:[%s18678_s15 + $0x10] sm:$0xff]  ;;  %8771 = vmatprep.subr.mxu1 %v8670_v20 }
0x108b   :  { %8592 = vmatprep.subr.mxu0 %v10009_v50  ;;  %v8668_v50 = vld [vmem:[%s18678_s15 + $0x8] sm:$0xff]  ;;  %8772 = vmatpush1.msra.mxu1 %v8669_v7 }
0x108c   :  { %8593 = vmatpush2.msra.mxu0 %v10008_v37  ;;  %v8667_v37 = vld [vmem:[%s18678_s15] sm:$0xff]  ;;  %8773 = vmatprep.subr.mxu1 %v8668_v50 }
0x108d   :  { %8594 = vmatprep.subr.mxu0 %v10007_v36  ;;  %v8730_v36 = vld [vmem:[%s18678_s15 + $0x1f8] sm:$0xff]  ;;  %8774 = vmatpush1.msra.mxu1 %v8667_v37 }
0x108e   :  { %8595 = vmatpush2.msra.mxu0 %v10006_v40  ;;  %v8729_v40 = vld [vmem:[%s18678_s15 + $0x1f0] sm:$0xff]  ;;  %8775 = vmatprep.subr.mxu1 %v8730_v36 }
0x108f   :  { %8596 = vmatprep.subr.mxu0 %v10005_v30  ;;  %v8728_v30 = vld [vmem:[%s18678_s15 + $0x1e8] sm:$0xff]  ;;  %8776 = vmatpush2.msra.mxu1 %v8729_v40 }
0x1090   :  { %8597 = vmatpush2.msra.mxu0 %v10004_v41  ;;  %v8727_v41 = vld [vmem:[%s18678_s15 + $0x1e0] sm:$0xff]  ;;  %8777 = vmatprep.subr.mxu1 %v8728_v30 }
0x1091   :  { %8598 = vmatprep.subr.mxu0 %v10003_v1  ;;  %v8726_v1 = vld [vmem:[%s18678_s15 + $0x1d8] sm:$0xff]  ;;  %8778 = vmatpush2.msra.mxu1 %v8727_v41  ;;  %v12319_v41 = vmov 1966171168  }
0x1092   :  { %8599 = vmatpush2.msra.mxu0 %v10002_v15  ;;  %v8725_v15 = vld [vmem:[%s18678_s15 + $0x1d0] sm:$0xff]  ;;  %8779 = vmatprep.subr.mxu1 %v8726_v1  ;;  %v8822_v1 = vunpack.c.l.s4 %v12319_v41 }
0x1093   :  { %8600 = vmatprep.subr.mxu0 %v10001_v33  ;;  %8780 = vmatpush2.msra.mxu1 %v8725_v15 }
0x1094   :  { %8601 = vmatpush2.msra.mxu0 %v10000_v28 }
0x1095   :  { %8602 = vmatprep.subr.mxu0 %v9999_v45 }
0x1096   :  { %8603 = vmatpush2.msra.mxu0 %v9998_v9 }
0x1097   :  { %8604 = vmatprep.subr.mxu0 %v9997_v11 }
0x1098   :  { %8605 = vmatpush2.msra.mxu0 %v9996_v10 }
0x1099   :  { %8606 = vmatprep.subr.mxu0 %v9995_v44  ;;  %v8724_v44 = vld [vmem:[%s18678_s15 + $0x1c8] sm:$0xff] }
0x109a   :  { %8607 = vmatpush2.msra.mxu0 %v9994_v25  ;;  %8781 = vmatprep.subr.mxu1 %v8724_v44  ;;  %v8723_v25 = vld [vmem:[%s18678_s15 + $0x1c0] sm:$0xff] }
0x109b   :  { %8608 = vmatprep.subr.mxu0 %v9993_v62  ;;  %8782 = vmatpush2.msra.mxu1 %v8723_v25  ;;  %v8720_v62 = vld [vmem:[%s18678_s15 + $0x1a8] sm:$0xff] }
0x109c   :  { %8609 = vmatpush2.msra.mxu0 %v9992_v13  ;;  %v8719_v13 = vld [vmem:[%s18678_s15 + $0x1a0] sm:$0xff] }
0x109d   :  { %8610 = vmatprep.subr.mxu0 %v9991_v51  ;;  %v8718_v51 = vld [vmem:[%s18678_s15 + $0x198] sm:$0xff] }
0x109e   :  { %8611 = vmatpush2.msra.mxu0 %v9990_v43  ;;  %v8717_v43 = vld [vmem:[%s18678_s15 + $0x190] sm:$0xff] }
0x109f   :  { %8612 = vmatprep.subr.mxu0 %v9989_v21  ;;  %v8716_v21 = vld [vmem:[%s18678_s15 + $0x188] sm:$0xff] }
0x10a0   :  { %8613 = vmatpush2.msra.mxu0 %v9988_v55  ;;  %v8715_v55 = vld [vmem:[%s18678_s15 + $0x180] sm:$0xff] }
0x10a1   :  { %8614 = vmatprep.subr.mxu0 %v9987_v38  ;;  %v8714_v38 = vld [vmem:[%s18678_s15 + $0x178] sm:$0xff] }
0x10a2   :  { %8615 = vmatpush2.msra.mxu0 %v9986_v27  ;;  %v8713_v27 = vld [vmem:[%s18678_s15 + $0x170] sm:$0xff] }
0x10a3   :  { %8616 = vmatprep.subr.mxu0 %v9985_v53  ;;  %v8712_v53 = vld [vmem:[%s18678_s15 + $0x168] sm:$0xff] }
0x10a4   :  { %8617 = vmatpush2.msra.mxu0 %v9984_v34  ;;  %v8711_v34 = vld [vmem:[%s18678_s15 + $0x160] sm:$0xff] }
0x10a5   :  { %8618 = vmatprep.subr.mxu0 %v9983_v49  ;;  %v8710_v49 = vld [vmem:[%s18678_s15 + $0x158] sm:$0xff] }
0x10a6   :  { %8619 = vmatpush2.msra.mxu0 %v9982_v42  ;;  %v8709_v42 = vld [vmem:[%s18678_s15 + $0x150] sm:$0xff] }
0x111e   :  { %v8409_v18 = vpop.f32.mrf.mxu1 }
0x1120   :  { %v8411_v0 = vpop.f32.mrf.mxu1 }
0x1123   :  { %v8196_v33 = vpop.f32.mrf.mxu0 }
0x1124   :  { %v18553_v28 = vadd.f32 %v8196_v33, %v18234_v39  ;;  %v8722_v39 = vld [vmem:[%s18678_s15 + $0x1b8] sm:$0xff] }
0x1125   :  { %v8198_v45 = vpop.f32.mrf.mxu0  ;;  %8783 = vmatprep.subr.mxu1 %v8722_v39 }
0x1126   :  { %v18556_v9 = vadd.f32 %v8198_v45, %v18236_v17  ;;  %v8721_v17 = vld [vmem:[%s18678_s15 + $0x1b0] sm:$0xff]  ;;  %v8414_v6 = vadd.f32 %v8409_v18, %v18553_v28 }
0x1127   :  { %v8486_v11 = vpop.f32.mrf.mxu0  ;;  %8784 = vmatpush2.msra.mxu1 %v8721_v17 }
0x1128   :  { %8785 = vmatprep.subr.mxu1 %v8720_v62  ;;  %v8415_v63 = vadd.f32 %v8411_v0, %v18556_v9  ;;  %v8823_v9 = vunpack.c.0.s8 %v8822_v1 }
0x1129   :  { %v8488_v10 = vpop.f32.mrf.mxu0  ;;  %8786 = vmatpush2.msra.mxu1 %v8719_v13  ;;  %v8731_v13 = vld [vmem:[%s18680_s16] sm:$0x3] }
0x112a   :  { %8620 = vmatprep.mubr.f32.mxu0 %v8488_v10  ;;  %8787 = vmatprep.subr.mxu1 %v8718_v51  ;;  %v8826_v25 = vsub.s32 %v8823_v9, %v16771_v26  ;;  %v8736_v51 = vrot.slane %v8731_v13, %v16777_v61 }
0x112b   :  { %8621 = vmatmul.mubr.f32.vlgmr.msra.gmra.mxu0 %v8486_v11  ;;  %8788 = vmatpush2.msra.mxu1 %v8717_v43  ;;  %v8740_v43 = vrot.slane %v8731_v13, %v16774_v59 }
0x112c   :  { %8789 = vmatprep.subr.mxu1 %v8716_v21 }
0x112d   :  { %8790 = vmatpush2.msra.mxu1 %v8715_v55 }
0x112e   :  { %8791 = vmatprep.subr.mxu1 %v8714_v38 }
0x112f   :  { %8792 = vmatpush2.msra.mxu1 %v8713_v27 }
0x1130   :  { %8793 = vmatprep.subr.mxu1 %v8712_v53 }
0x1131   :  { %8794 = vmatpush2.msra.mxu1 %v8711_v34 }
0x1132   :  { %8795 = vmatprep.subr.mxu1 %v8710_v49 }
0x1133   :  { %8796 = vmatpush2.msra.mxu1 %v8709_v42 }
0x1134   :  { %8797 = vmatprep.subr.mxu1 %v8708_v35 }
0x1135   :  { %8798 = vmatpush2.msra.mxu1 %v8707_v24 }
0x1136   :  { %8799 = vmatprep.subr.mxu1 %v8706_v19 }
0x1137   :  { %8800 = vmatpush2.msra.mxu1 %v8705_v22 }
0x1138   :  { %8801 = vmatprep.subr.mxu1 %v8704_v48 }
0x1139   :  { %8802 = vmatpush2.msra.mxu1 %v8703_v47 }
0x113a   :  { %8803 = vmatprep.subr.mxu1 %v8702_v31 }
0x113b   :  { %8804 = vmatpush2.msra.mxu1 %v8701_v57 }
0x113c   :  { %8805 = vmatprep.subr.mxu1 %v8700_v29 }
0x113d   :  { %8806 = vmatpush2.msra.mxu1 %v8699_v2 }
0x11eb   :  { %v8622_v56 = vpop.f32.mrf.mxu0 }
0x11ec   :  { %v8627_v5 = vadd.f32 %v8622_v56, %v8414_v6 }
0x11ed   :  { %v8624_v52 = vpop.f32.mrf.mxu0 }
0x11ee   :  { %v8641_v23 = vadd.f32 %v8634_v46, %v8627_v5  ;;  %v8628_v16 = vadd.f32 %v8624_v52, %v8415_v63 }
0x11f0   :  { %v8643_v32 = vmax.f32 %v8641_v23, 0.0  ;;  %v8642_v4 = vadd.f32 %v8638_v8, %v8628_v16 }
0x11f2   :  { %v8651_v60 = vmul.f32 %v8649_v3, %v8643_v32  ;;  %v8644_v14 = vmax.f32 %v8642_v4, 0.0 }
0x11f4   :  { %v8653_v58 = vrot.slane %v8651_v60, 4  ;;  %8814 = vst [vmem:[%s18672_s18] sm:$0xff] %v8651_v60  ;;  %v8652_v20 = vmul.f32 %v8649_v3, %v8644_v14 }
0x11f6   :  { %v8654_v7 = vadd.f32 %v8653_v58, %v8651_v60  ;;  %v8659_v50 = vrot.slane %v8652_v20, 4  ;;  %8815 = vst [vmem:[%s18672_s18 + $0x8] sm:$0xff] %v8652_v20 }
0x11f8   :  { %v8655_v37 = vrot.slane %v8654_v7, 2  ;;  %v8660_v36 = vadd.f32 %v8659_v50, %v8652_v20 }
0x11fa   :  { %v8656_v40 = vadd.f32 %v8655_v37, %v8654_v7  ;;  %v8661_v30 = vrot.slane %v8660_v36, 2 }
0x11fc   :  { %v8657_v15 = vrot.slane %v8656_v40, 1  ;;  %v8662_v33 = vadd.f32 %v8661_v30, %v8660_v36 }
0x11fe   :  { %v8658_v28 = vadd.f32 %v8657_v15, %v8656_v40  ;;  %v8663_v45 = vrot.slane %v8662_v33, 1 }
0x1200   :  { %v8664_v11 = vadd.f32 %v8663_v45, %v8662_v33  ;;  %v8665_v10 = vmul.f32 0.25, %v8658_v28 }
0x1202   :  { %v8666_v44 = vmul.f32 0.25, %v8664_v11 }
0x1204   :  { %8807 = vmatprep.mubr.f32.mxu1 %v8666_v44  ;;  %v8820_v39 = vcombine.low %v8665_v10, %v8666_v44 }
0x1205   :  { %8808 = vmatmul.mubr.f32.vlgmr.msra.gmra.mxu1 %v8665_v10 }
0x1206   :  { %v8827_v17 = vrot.slane %v8820_v39, %v8826_v25 }
0x1208   :  { %v8834_v62 = vrot.slane %v8827_v17, %v8826_v25 }
0x120a   :  { %10014 = vst.msk [vmem:[%s18672_s18 + $0x10] ss:$8 sm:$0x3] %vm8838_vm2, %v8834_v62 }
0x12c5   :  { %v8809_v26 = vpop.f32.mrf.mxu1 }
0x12c6   :  { %v8810_v55 = vadd.f32 %v8809_v26, %v8736_v51 }
0x12c7   :  { %v8811_v21 = vpop.f32.mrf.mxu1 }
0x12c8   :  { %v8812_v38 = vadd.f32 %v8811_v21, %v8740_v43 }
0x12ca   :  { %v8846_v27 = vcombine.low %v8810_v55, %v8812_v38 }
0x12cc   :  { %v8853_v53 = vrot.slane %v8846_v27, %v8826_v25 }
0x12ce   :  { %v8860_v54 = vrot.slane %v8853_v53, %v8826_v25 }
0x12d0   :  { %10015 = vst.msk [vmem:[%s18672_s18 + $0x12] ss:$8 sm:$0x3] %vm8838_vm2, %v8860_v54 }

</bundles_post_ra>
